<compile_context>
chip_gen: v5e
topology: v5e:2x2
jax: 0.10.0
libtpu: 0.0.40
codegen_flags: <defaults>
</compile_context>

<pallas_src>
import math
import functools

import jax
import jax.numpy as jnp
from jax.experimental import pallas as pl
from jax.experimental.pallas import tpu as pltpu


# ------------------------------ tiling helpers ------------------------------

_M_TILES = (256, 128, 64, 32, 16, 8)    # sublane-friendly (multiples of 8)
_K_TILES = (512, 256, 128)              # lane-friendly (multiples of 128)
_N_TILES = (1536, 1024, 512, 256, 128)


def _pick_tile(dim, prefs):
    """Largest preferred tile t <= dim that divides dim; else the full dim."""
    for t in prefs:
        if t <= dim and dim % t == 0:
            return t
    return dim


# ------------------------- GEMM (+bias, +opt. GELU) -------------------------

def _matmul_bias_kernel(x_ref, w_ref, b_ref, o_ref, acc_ref, *, activation):
    @pl.when(pl.program_id(2) == 0)
    def _init():
        acc_ref[...] = jnp.zeros_like(acc_ref)

    # x and w arrive in bf16; accumulate in f32 on the MXU.
    acc_ref[...] += jnp.dot(x_ref[...], w_ref[...],
                            preferred_element_type=jnp.float32)

    @pl.when(pl.program_id(2) == pl.num_programs(2) - 1)
    def _finalize():
        y = acc_ref[...] + b_ref[...]
        if activation == "gelu":   # exact erf GELU, matches nn.GELU()
            y = 0.5 * y * (1.0 + jax.lax.erf(y * (1.0 / math.sqrt(2.0))))
        o_ref[...] = y.astype(o_ref.dtype)


def matmul_bias(x, w, b, activation=None, out_dtype=jnp.bfloat16):
    """x: (M, K) bf16, w: (K, N) bf16, b: (N,) f32 -> act(x @ w + b)."""
    M, K = x.shape
    N = w.shape[1]
    tm = _pick_tile(M, _M_TILES)
    tk = _pick_tile(K, _K_TILES)
    # Full-N output tile when it fits the VMEM budget -> wide lane-dense
    # stores and a single K-loop epilogue per M tile.
    tn = N if N <= 2048 else _pick_tile(N, _N_TILES)
    kern = functools.partial(_matmul_bias_kernel, activation=activation)
    return pl.pallas_call(
        kern,
        out_shape=jax.ShapeDtypeStruct((M, N), out_dtype),
        grid=(M // tm, N // tn, K // tk),
        in_specs=[
            pl.BlockSpec((tm, tk), lambda i, j, k: (i, k)),
            pl.BlockSpec((tk, tn), lambda i, j, k: (k, j)),
            pl.BlockSpec((1, tn), lambda i, j, k: (0, j)),
        ],
        out_specs=pl.BlockSpec((tm, tn), lambda i, j, k: (i, j)),
        scratch_shapes=[pltpu.VMEM((tm, tn), jnp.float32)],
        compiler_params=pltpu.CompilerParams(
            dimension_semantics=("parallel", "parallel", "arbitrary")),
    )(x, w, b.reshape(1, N))


# ------- GEMM with fused bias + residual + LayerNorm (+ optional final LN) --

def _matmul_residual_ln_kernel(x_ref, w_ref, b_ref, r_ref, g_ref, beta_ref,
                               *rest, eps, final_ln):
    if final_ln:
        g2_ref, b2_ref, o_ref, acc_ref = rest
    else:
        o_ref, acc_ref = rest

    @pl.when(pl.program_id(1) == 0)
    def _init():
        acc_ref[...] = jnp.zeros_like(acc_ref)

    acc_ref[...] += jnp.dot(x_ref[...], w_ref[...],
                            preferred_element_type=jnp.float32)

    @pl.when(pl.program_id(1) == pl.num_programs(1) - 1)
    def _finalize():
        y = acc_ref[...] + b_ref[...] + r_ref[...].astype(jnp.float32)
        mu = jnp.mean(y, axis=-1, keepdims=True)
        var = jnp.mean(jnp.square(y - mu), axis=-1, keepdims=True)
        y = (y - mu) * jax.lax.rsqrt(var + eps) * g_ref[...] + beta_ref[...]
        if final_ln:   # Encoder.norm fused into the last block's epilogue
            mu2 = jnp.mean(y, axis=-1, keepdims=True)
            var2 = jnp.mean(jnp.square(y - mu2), axis=-1, keepdims=True)
            y = (y - mu2) * jax.lax.rsqrt(var2 + eps) * g2_ref[...] + b2_ref[...]
        o_ref[...] = y.astype(o_ref.dtype)


def matmul_bias_residual_ln(x, w, b, resid, gamma, beta, gamma2=None,
                            beta2=None, eps=1e-5, out_dtype=jnp.bfloat16):
    """LayerNorm(resid + x @ w + b); optionally a second (final) LayerNorm."""
    M, K = x.shape
    N = w.shape[1]
    tm = _pick_tile(M, _M_TILES)
    tk = _pick_tile(K, _K_TILES)
    final_ln = gamma2 is not None
    kern = functools.partial(_matmul_residual_ln_kernel, eps=eps,
                             final_ln=final_ln)
    in_specs = [
        pl.BlockSpec((tm, tk), lambda i, k: (i, k)),
        pl.BlockSpec((tk, N), lambda i, k: (k, 0)),
        pl.BlockSpec((1, N), lambda i, k: (0, 0)),
        pl.BlockSpec((tm, N), lambda i, k: (i, 0)),
        pl.BlockSpec((1, N), lambda i, k: (0, 0)),
        pl.BlockSpec((1, N), lambda i, k: (0, 0)),
    ]
    args = [x, w, b.reshape(1, N), resid, gamma.reshape(1, N),
            beta.reshape(1, N)]
    if final_ln:
        in_specs += [pl.BlockSpec((1, N), lambda i, k: (0, 0)),
                     pl.BlockSpec((1, N), lambda i, k: (0, 0))]
        args += [gamma2.reshape(1, N), beta2.reshape(1, N)]
    return pl.pallas_call(
        kern,
        out_shape=jax.ShapeDtypeStruct((M, N), out_dtype),
        grid=(M // tm, K // tk),
        in_specs=in_specs,
        out_specs=pl.BlockSpec((tm, N), lambda i, k: (i, 0)),
        scratch_shapes=[pltpu.VMEM((tm, N), jnp.float32)],
        compiler_params=pltpu.CompilerParams(
            dimension_semantics=("parallel", "arbitrary")),
    )(*args)


# ------------- lane-dense multi-head attention, tiled over q rows -----------

def _attention_kernel(q_ref, k_ref, v_ref, o_ref, *, num_heads, dk,
                      valid_s, s_pad):
    # q_ref: (1, tq, D) bf16; k_ref/v_ref: (1, S_pad, D) bf16 (resident
    # across q tiles); o_ref: (1, tq, D).  1/sqrt(dk) is folded into wqkv.
    masked = valid_s < s_pad
    if masked:
        key_idx = jax.lax.broadcasted_iota(jnp.int32, (1, s_pad), 1)
        key_mask = key_idx < valid_s
    for h in range(num_heads):            # static unrolled head loop
        q = q_ref[0, :, h * dk:(h + 1) * dk]
        k = k_ref[0, :, h * dk:(h + 1) * dk]
        v = v_ref[0, :, h * dk:(h + 1) * dk]
        s = jax.lax.dot_general(q, k, (((1,), (1,)), ((), ())),
                                preferred_element_type=jnp.float32)   # (tq, S)
        if masked:
            s = jnp.where(key_mask, s, -1e30)
        s = s - jnp.max(s, axis=-1, keepdims=True)
        p = jnp.exp(s)
        p = p * pl.reciprocal(jnp.sum(p, axis=-1, keepdims=True), approx=True)
        # per-head store: keeps only one head's result live, no concat relayout
        o_ref[0, :, h * dk:(h + 1) * dk] = jnp.dot(
            p.astype(jnp.bfloat16), v,
            preferred_element_type=jnp.float32).astype(o_ref.dtype)


def attention(qkv, num_heads, valid_s):
    """qkv: (B, S_pad, 3*D) packed [q|k|v] bf16 -> (B, S_pad, D) bf16."""
    B, s_pad, three_d = qkv.shape
    d_model = three_d // 3
    dk = d_model // num_heads
    tq = _pick_tile(s_pad, (256, 128, 64, 32, 16, 8))
    kern = functools.partial(_attention_kernel, num_heads=num_heads, dk=dk,
                             valid_s=valid_s, s_pad=s_pad)
    return pl.pallas_call(
        kern,
        out_shape=jax.ShapeDtypeStruct((B, s_pad, d_model), jnp.bfloat16),
        grid=(B, s_pad // tq),
        in_specs=[
            # q tile: columns [0, D)
            pl.BlockSpec((1, tq, d_model), lambda b, qi: (b, qi, 0)),
            # full-S K: columns [D, 2D) — block index constant in qi (resident)
            pl.BlockSpec((1, s_pad, d_model), lambda b, qi: (b, 0, 1)),
            # full-S V: columns [2D, 3D)
            pl.BlockSpec((1, s_pad, d_model), lambda b, qi: (b, 0, 2)),
        ],
        out_specs=pl.BlockSpec((1, tq, d_model), lambda b, qi: (b, qi, 0)),
        compiler_params=pltpu.CompilerParams(
            dimension_semantics=("parallel", "parallel")),
    )(qkv, qkv, qkv)


# --------------------------- Encoder forward pass ---------------------------

def encoder_forward(x, params, num_heads):
    """x: (B, S, D) f32.  Runs Nx EncoderBlocks (mask=None) + final LayerNorm."""
    B, S, D = x.shape
    # Pad the sequence so M = B * S_pad tiles cleanly (multiple of 128 when
    # reachable).  Padded key positions are masked inside attention; padded
    # query rows are sliced off at the end (all other ops are row-local).
    s_align = max(8, 128 // math.gcd(B, 128))
    s_pad = ((S + s_align - 1) // s_align) * s_align
    if s_pad != S:
        x = jnp.pad(x, ((0, 0), (0, s_pad - S), (0, 0)))
    M = B * s_pad
    xf = x.astype(jnp.bfloat16).reshape(M, D)   # bf16 activations everywhere

    n_layers = len(params["layers"])
    for li, lp in enumerate(params["layers"]):
        last = li == n_layers - 1
        # fused Q/K/V projection: one GEMM, x read from HBM once
        qkv = matmul_bias(xf, lp["wqkv"], lp["bqkv"])                # (M, 3D)
        # attention with D on the lane axis, heads looped inside the kernel
        ao = attention(qkv.reshape(B, s_pad, 3 * D), num_heads, S)   # (B,Sp,D)
        # output projection with fused bias + residual + LayerNorm (post-norm)
        x1 = matmul_bias_residual_ln(ao.reshape(M, D), lp["wo"], lp["bo"],
                                     xf, lp["ln1_g"], lp["ln1_b"])
        # FFN: GEMM + fused GELU, then GEMM + fused bias/residual/LayerNorm;
        # the last layer also fuses the final Encoder LayerNorm (f32 output).
        h = matmul_bias(x1, lp["w1"], lp["b1"], activation="gelu")
        xf = matmul_bias_residual_ln(
            h, lp["w2"], lp["b2"], x1, lp["ln2_g"], lp["ln2_b"],
            gamma2=params["lnf_g"] if last else None,
            beta2=params["lnf_b"] if last else None,
            out_dtype=jnp.float32 if last else jnp.bfloat16)

    out = xf.reshape(B, s_pad, D)
    return out[:, :S, :]


# ----------------------------- parameter setup ------------------------------

def xavier_uniform(key, shape):
    fan_in, fan_out = shape
    limit = math.sqrt(6.0 / (fan_in + fan_out))
    return jax.random.uniform(key, shape, jnp.float32, -limit, limit)


def init_params(key, num_layers, d_model, d_ff, num_heads):
    dk = d_model // num_heads
    scale = 1.0 / math.sqrt(dk)          # folded into Q projection
    layers = []
    for _ in range(num_layers):
        keys = jax.random.split(key, 7)
        key = keys[0]
        wq = xavier_uniform(keys[1], (d_model, d_model)) * scale
        wk = xavier_uniform(keys[2], (d_model, d_model))
        wv = xavier_uniform(keys[3], (d_model, d_model))
        bq = jnp.zeros((d_model,), jnp.float32) * scale
        bk = jnp.zeros((d_model,), jnp.float32)
        bv = jnp.zeros((d_model,), jnp.float32)
        lp = {
            # weights stored in bf16 once (no per-call cast under jit)
            "wqkv": jnp.concatenate([wq, wk, wv], axis=1).astype(jnp.bfloat16),
            "bqkv": jnp.concatenate([bq, bk, bv], axis=0),
            "wo": xavier_uniform(keys[4], (d_model, d_model)).astype(jnp.bfloat16),
            "bo": jnp.zeros((d_model,), jnp.float32),
            "ln1_g": jnp.ones((d_model,), jnp.float32),
            "ln1_b": jnp.zeros((d_model,), jnp.float32),
            "w1": xavier_uniform(keys[5], (d_model, d_ff)).astype(jnp.bfloat16),
            "b1": jnp.zeros((d_ff,), jnp.float32),
            "w2": xavier_uniform(keys[6], (d_ff, d_model)).astype(jnp.bfloat16),
            "b2": jnp.zeros((d_model,), jnp.float32),
            "ln2_g": jnp.ones((d_model,), jnp.float32),
            "ln2_b": jnp.zeros((d_model,), jnp.float32),
        }
        layers.append(lp)
    return {
        "layers": layers,
        "lnf_g": jnp.ones((d_model,), jnp.float32),
        "lnf_b": jnp.zeros((d_model,), jnp.float32),
    }


# ----------------------------------- main -----------------------------------

if __name__ == "__main__":
    # Small, TPU-friendly configuration of the Encoder (lane-dense d_model):
    B, S, D = 2, 8, 128       # batch, sequence length, d_model
    H = 4                     # heads (d_k = 32)
    DFF = 256                 # feed-forward width
    NX = 2                    # number of encoder blocks

    key = jax.random.PRNGKey(0)
    kx, kp = jax.random.split(key)
    x = jax.random.normal(kx, (B, S, D), jnp.float32)
    params = init_params(kp, NX, D, DFF, H)

    # TODO(synk): dropout layers are identity (inference semantics); mask=None.
    fwd = jax.jit(functools.partial(encoder_forward, num_heads=H))
    y = fwd(x, params)
    jax.block_until_ready(y)
    assert y.shape == (B, S, D) and y.dtype == jnp.float32
    assert bool(jnp.all(jnp.isfinite(y)))
    print("KERNEL_OK")
</pallas_src>

<mosaic_0001>
module attributes {stable_mosaic.version = 11 : i64} {
  func.func @_matmul_bias_kernel(%arg0: i32, %arg1: i32, %arg2: i32, %arg3: memref<128x128xbf16, #tpu.memory_space<vmem>>, %arg4: memref<128x384xbf16, #tpu.memory_space<vmem>>, %arg5: memref<1x384xf32, #tpu.memory_space<vmem>>, %arg6: memref<128x384xbf16, #tpu.memory_space<vmem>>, %arg7: memref<128x384xf32, #tpu.memory_space<vmem>>) attributes {dimension_semantics = [#tpu.dimension_semantics<parallel>, #tpu.dimension_semantics<parallel>, #tpu.dimension_semantics<arbitrary>], iteration_bounds = array<i64: 1, 1, 1>, scalar_prefetch = 0 : i64, scratch_operands = 1 : i64, tpu.core_type = #tpu.core_type<tc>, window_params = [{transform_indices = @transform_0, window_bounds = array<i64: 128, 128>}, {transform_indices = @transform_1, window_bounds = array<i64: 128, 384>}, {transform_indices = @transform_2, window_bounds = array<i64: 1, 384>}, {transform_indices = @transform_3, window_bounds = array<i64: 128, 384>}]} {
    %c0_i32 = arith.constant 0 : i32
    %0 = arith.cmpi eq, %arg2, %c0_i32 : i32
    %1 = arith.extui %0 : i1 to i32
    %c0_i32_0 = arith.constant 0 : i32
    %2 = arith.cmpi ne, %1, %c0_i32_0 : i32
    scf.if %2 {
      %cst_10 = arith.constant 0.000000e+00 : f32
      %12 = vector.broadcast %cst_10 : f32 to vector<128x384xf32>
      %c0_11 = arith.constant 0 : index
      %c0_12 = arith.constant 0 : index
      %13 = vector.load %arg7[%c0_11, %c0_12] : memref<128x384xf32, #tpu.memory_space<vmem>>, vector<128x384xf32>
      tpu.vector_store %arg7[%c0_11, %c0_12], %12 {strides = array<i32>} : memref<128x384xf32, #tpu.memory_space<vmem>>, vector<128x384xf32>,
    } else {
    }
    %c0 = arith.constant 0 : index
    %c0_1 = arith.constant 0 : index
    %3 = vector.load %arg7[%c0, %c0_1] : memref<128x384xf32, #tpu.memory_space<vmem>>, vector<128x384xf32>
    %c0_2 = arith.constant 0 : index
    %c0_3 = arith.constant 0 : index
    %4 = vector.load %arg3[%c0_2, %c0_3] : memref<128x128xbf16, #tpu.memory_space<vmem>>, vector<128x128xbf16>
    %c0_4 = arith.constant 0 : index
    %c0_5 = arith.constant 0 : index
    %5 = vector.load %arg4[%c0_4, %c0_5] : memref<128x384xbf16, #tpu.memory_space<vmem>>, vector<128x384xbf16>
    %cst = arith.constant dense<0.000000e+00> : vector<128x384xf32>
    %6 = tpu.matmul %4, %5, %cst {dimension_numbers = #tpu.dot_dimension_numbers<[1], [0], [0], [1], [0, 0, 1, 1], [], []>} : vector<128x128xbf16>, vector<128x384xbf16>, vector<128x384xf32> -> vector<128x384xf32>
    %7 = arith.addf %3, %6 : vector<128x384xf32>
    %c0_6 = arith.constant 0 : index
    %c0_7 = arith.constant 0 : index
    %8 = vector.load %arg7[%c0_6, %c0_7] : memref<128x384xf32, #tpu.memory_space<vmem>>, vector<128x384xf32>
    tpu.vector_store %arg7[%c0_6, %c0_7], %7 {strides = array<i32>} : memref<128x384xf32, #tpu.memory_space<vmem>>, vector<128x384xf32>,
    %c0_i32_8 = arith.constant 0 : i32
    %9 = arith.cmpi eq, %arg2, %c0_i32_8 : i32
    %10 = arith.extui %9 : i1 to i32
    %c0_i32_9 = arith.constant 0 : i32
    %11 = arith.cmpi ne, %10, %c0_i32_9 : i32
    scf.if %11 {
      %c0_10 = arith.constant 0 : index
      %c0_11 = arith.constant 0 : index
      %12 = vector.load %arg7[%c0_10, %c0_11] : memref<128x384xf32, #tpu.memory_space<vmem>>, vector<128x384xf32>
      %c0_12 = arith.constant 0 : index
      %c0_13 = arith.constant 0 : index
      %13 = vector.load %arg5[%c0_12, %c0_13] : memref<1x384xf32, #tpu.memory_space<vmem>>, vector<1x384xf32>
      %14 = vector.broadcast %13 : vector<1x384xf32> to vector<128x384xf32>
      %15 = arith.addf %12, %14 : vector<128x384xf32>
      %16 = arith.truncf %15 : vector<128x384xf32> to vector<128x384xbf16>
      %c0_14 = arith.constant 0 : index
      %c0_15 = arith.constant 0 : index
      %17 = vector.load %arg6[%c0_14, %c0_15] : memref<128x384xbf16, #tpu.memory_space<vmem>>, vector<128x384xbf16>
      tpu.vector_store %arg6[%c0_14, %c0_15], %16 {strides = array<i32>} : memref<128x384xbf16, #tpu.memory_space<vmem>>, vector<128x384xbf16>,
    } else {
    }
    return
  }
  func.func @transform_0(%arg0: i32, %arg1: i32, %arg2: i32) -> (i32, i32) {
    %c0_i32 = arith.constant 0 : i32
    return %arg0, %arg2 : i32, i32
  }
  func.func @transform_1(%arg0: i32, %arg1: i32, %arg2: i32) -> (i32, i32) {
    %c0_i32 = arith.constant 0 : i32
    return %arg2, %arg1 : i32, i32
  }
  func.func @transform_2(%arg0: i32, %arg1: i32, %arg2: i32) -> (i32, i32) {
    %c0_i32 = arith.constant 0 : i32
    %c0_i32_0 = arith.constant 0 : i32
    return %c0_i32, %arg1 : i32, i32
  }
  func.func @transform_3(%arg0: i32, %arg1: i32, %arg2: i32) -> (i32, i32) {
    %c0_i32 = arith.constant 0 : i32
    return %arg0, %arg1 : i32, i32
  }
}

module attributes {stable_mosaic.version = 11 : i64} {
  func.func @_matmul_residual_ln_kernel(%arg0: i32, %arg1: i32, %arg2: memref<128x128xbf16, #tpu.memory_space<vmem>>, %arg3: memref<128x128xbf16, #tpu.memory_space<vmem>>, %arg4: memref<1x128xf32, #tpu.memory_space<vmem>>, %arg5: memref<128x128xbf16, #tpu.memory_space<vmem>>, %arg6: memref<1x128xf32, #tpu.memory_space<vmem>>, %arg7: memref<1x128xf32, #tpu.memory_space<vmem>>, %arg8: memref<128x128xbf16, #tpu.memory_space<vmem>>, %arg9: memref<128x128xf32, #tpu.memory_space<vmem>>) attributes {dimension_semantics = [#tpu.dimension_semantics<parallel>, #tpu.dimension_semantics<arbitrary>], iteration_bounds = array<i64: 1, 1>, scalar_prefetch = 0 : i64, scratch_operands = 1 : i64, tpu.core_type = #tpu.core_type<tc>, window_params = [{transform_indices = @transform_0, window_bounds = array<i64: 128, 128>}, {transform_indices = @transform_1, window_bounds = array<i64: 128, 128>}, {pipeline_mode = #tpu.pipeline_mode<synchronous>, transform_indices = @transform_2, window_bounds = array<i64: 1, 128>}, {transform_indices = @transform_3, window_bounds = array<i64: 128, 128>}, {pipeline_mode = #tpu.pipeline_mode<synchronous>, transform_indices = @transform_4, window_bounds = array<i64: 1, 128>}, {pipeline_mode = #tpu.pipeline_mode<synchronous>, transform_indices = @transform_5, window_bounds = array<i64: 1, 128>}, {transform_indices = @transform_6, window_bounds = array<i64: 128, 128>}]} {
    %c0_i32 = arith.constant 0 : i32
    %0 = arith.cmpi eq, %arg1, %c0_i32 : i32
    %1 = arith.extui %0 : i1 to i32
    %c0_i32_0 = arith.constant 0 : i32
    %2 = arith.cmpi ne, %1, %c0_i32_0 : i32
    scf.if %2 {
      %cst_10 = arith.constant 0.000000e+00 : f32
      %12 = vector.broadcast %cst_10 : f32 to vector<128x128xf32>
      %c0_11 = arith.constant 0 : index
      %c0_12 = arith.constant 0 : index
      %13 = vector.load %arg9[%c0_11, %c0_12] : memref<128x128xf32, #tpu.memory_space<vmem>>, vector<128x128xf32>
      tpu.vector_store %arg9[%c0_11, %c0_12], %12 {strides = array<i32>} : memref<128x128xf32, #tpu.memory_space<vmem>>, vector<128x128xf32>,
    } else {
    }
    %c0 = arith.constant 0 : index
    %c0_1 = arith.constant 0 : index
    %3 = vector.load %arg9[%c0, %c0_1] : memref<128x128xf32, #tpu.memory_space<vmem>>, vector<128x128xf32>
    %c0_2 = arith.constant 0 : index
    %c0_3 = arith.constant 0 : index
    %4 = vector.load %arg2[%c0_2, %c0_3] : memref<128x128xbf16, #tpu.memory_space<vmem>>, vector<128x128xbf16>
    %c0_4 = arith.constant 0 : index
    %c0_5 = arith.constant 0 : index
    %5 = vector.load %arg3[%c0_4, %c0_5] : memref<128x128xbf16, #tpu.memory_space<vmem>>, vector<128x128xbf16>
    %cst = arith.constant dense<0.000000e+00> : vector<128x128xf32>
    %6 = tpu.matmul %4, %5, %cst {dimension_numbers = #tpu.dot_dimension_numbers<[1], [0], [0], [1], [0, 0, 1, 1], [], []>} : vector<128x128xbf16>, vector<128x128xbf16>, vector<128x128xf32> -> vector<128x128xf32>
    %7 = arith.addf %3, %6 : vector<128x128xf32>
    %c0_6 = arith.constant 0 : index
    %c0_7 = arith.constant 0 : index
    %8 = vector.load %arg9[%c0_6, %c0_7] : memref<128x128xf32, #tpu.memory_space<vmem>>, vector<128x128xf32>
    tpu.vector_store %arg9[%c0_6, %c0_7], %7 {strides = array<i32>} : memref<128x128xf32, #tpu.memory_space<vmem>>, vector<128x128xf32>,
    %c0_i32_8 = arith.constant 0 : i32
    %9 = arith.cmpi eq, %arg1, %c0_i32_8 : i32
    %10 = arith.extui %9 : i1 to i32
    %c0_i32_9 = arith.constant 0 : i32
    %11 = arith.cmpi ne, %10, %c0_i32_9 : i32
    scf.if %11 {
      %c0_10 = arith.constant 0 : index
      %c0_11 = arith.constant 0 : index
      %12 = vector.load %arg9[%c0_10, %c0_11] : memref<128x128xf32, #tpu.memory_space<vmem>>, vector<128x128xf32>
      %c0_12 = arith.constant 0 : index
      %c0_13 = arith.constant 0 : index
      %13 = vector.load %arg4[%c0_12, %c0_13] : memref<1x128xf32, #tpu.memory_space<vmem>>, vector<1x128xf32>
      %14 = vector.broadcast %13 : vector<1x128xf32> to vector<128x128xf32>
      %15 = arith.addf %12, %14 : vector<128x128xf32>
      %c0_14 = arith.constant 0 : index
      %c0_15 = arith.constant 0 : index
      %16 = vector.load %arg5[%c0_14, %c0_15] : memref<128x128xbf16, #tpu.memory_space<vmem>>, vector<128x128xbf16>
      %17 = arith.extf %16 : vector<128x128xbf16> to vector<128x128xf32>
      %18 = arith.addf %15, %17 : vector<128x128xf32>
      %cst_16 = arith.constant dense<0.000000e+00> : vector<128xf32>
      %19 = vector.multi_reduction <add>, %18, %cst_16 [1] : vector<128x128xf32> to vector<128xf32>
      %20 = vector.shape_cast %19 : vector<128xf32> to vector<128x1xf32>
      %cst_17 = arith.constant 1.280000e+02 : f32
      %21 = vector.broadcast %cst_17 : f32 to vector<128x1xf32>
      %22 = arith.divf %20, %21 : vector<128x1xf32>
      %23 = vector.broadcast %22 : vector<128x1xf32> to vector<128x128xf32>
      %24 = arith.subf %18, %23 : vector<128x128xf32>
      %25 = arith.mulf %24, %24 : vector<128x128xf32>
      %cst_18 = arith.constant dense<0.000000e+00> : vector<128xf32>
      %26 = vector.multi_reduction <add>, %25, %cst_18 [1] : vector<128x128xf32> to vector<128xf32>
      %27 = vector.shape_cast %26 : vector<128xf32> to vector<128x1xf32>
      %cst_19 = arith.constant 1.280000e+02 : f32
      %28 = vector.broadcast %cst_19 : f32 to vector<128x1xf32>
      %29 = arith.divf %27, %28 : vector<128x1xf32>
      %30 = vector.broadcast %22 : vector<128x1xf32> to vector<128x128xf32>
      %31 = arith.subf %18, %30 : vector<128x128xf32>
      %cst_20 = arith.constant 9.99999974E-6 : f32
      %32 = vector.broadcast %cst_20 : f32 to vector<128x1xf32>
      %33 = arith.addf %29, %32 : vector<128x1xf32>
      %34 = math.rsqrt %33 : vector<128x1xf32>
      %35 = vector.broadcast %34 : vector<128x1xf32> to vector<128x128xf32>
      %36 = arith.mulf %31, %35 : vector<128x128xf32>
      %c0_21 = arith.constant 0 : index
      %c0_22 = arith.constant 0 : index
      %37 = vector.load %arg6[%c0_21, %c0_22] : memref<1x128xf32, #tpu.memory_space<vmem>>, vector<1x128xf32>
      %38 = vector.broadcast %37 : vector<1x128xf32> to vector<128x128xf32>
      %39 = arith.mulf %36, %38 : vector<128x128xf32>
      %c0_23 = arith.constant 0 : index
      %c0_24 = arith.constant 0 : index
      %40 = vector.load %arg7[%c0_23, %c0_24] : memref<1x128xf32, #tpu.memory_space<vmem>>, vector<1x128xf32>
      %41 = vector.broadcast %40 : vector<1x128xf32> to vector<128x128xf32>
      %42 = arith.addf %39, %41 : vector<128x128xf32>
      %43 = arith.truncf %42 : vector<128x128xf32> to vector<128x128xbf16>
      %c0_25 = arith.constant 0 : index
      %c0_26 = arith.constant 0 : index
      %44 = vector.load %arg8[%c0_25, %c0_26] : memref<128x128xbf16, #tpu.memory_space<vmem>>, vector<128x128xbf16>
      tpu.vector_store %arg8[%c0_25, %c0_26], %43 {strides = array<i32>} : memref<128x128xbf16, #tpu.memory_space<vmem>>, vector<128x128xbf16>,
    } else {
    }
    return
  }
  func.func @transform_0(%arg0: i32, %arg1: i32) -> (i32, i32) {
    %c0_i32 = arith.constant 0 : i32
    return %arg0, %arg1 : i32, i32
  }
  func.func @transform_1(%arg0: i32, %arg1: i32) -> (i32, i32) {
    %c0_i32 = arith.constant 0 : i32
    %c0_i32_0 = arith.constant 0 : i32
    return %arg1, %c0_i32 : i32, i32
  }
  func.func @transform_2(%arg0: i32, %arg1: i32) -> (i32, i32) {
    %c0_i32 = arith.constant 0 : i32
    %c0_i32_0 = arith.constant 0 : i32
    %c0_i32_1 = arith.constant 0 : i32
    return %c0_i32, %c0_i32_0 : i32, i32
  }
  func.func @transform_3(%arg0: i32, %arg1: i32) -> (i32, i32) {
    %c0_i32 = arith.constant 0 : i32
    %c0_i32_0 = arith.constant 0 : i32
    return %arg0, %c0_i32 : i32, i32
  }
  func.func @transform_4(%arg0: i32, %arg1: i32) -> (i32, i32) {
    %c0_i32 = arith.constant 0 : i32
    %c0_i32_0 = arith.constant 0 : i32
    %c0_i32_1 = arith.constant 0 : i32
    return %c0_i32, %c0_i32_0 : i32, i32
  }
  func.func @transform_5(%arg0: i32, %arg1: i32) -> (i32, i32) {
    %c0_i32 = arith.constant 0 : i32
    %c0_i32_0 = arith.constant 0 : i32
    %c0_i32_1 = arith.constant 0 : i32
    return %c0_i32, %c0_i32_0 : i32, i32
  }
  func.func @transform_6(%arg0: i32, %arg1: i32) -> (i32, i32) {
    %c0_i32 = arith.constant 0 : i32
    %c0_i32_0 = arith.constant 0 : i32
    return %arg0, %c0_i32 : i32, i32
  }
}

module attributes {stable_mosaic.version = 11 : i64} {
  func.func @_attention_kernel(%arg0: i32, %arg1: i32, %arg2: memref<1x64x128xbf16, #tpu.memory_space<vmem>>, %arg3: memref<1x64x128xbf16, #tpu.memory_space<vmem>>, %arg4: memref<1x64x128xbf16, #tpu.memory_space<vmem>>, %arg5: memref<1x64x128xbf16, #tpu.memory_space<vmem>>) attributes {dimension_semantics = [#tpu.dimension_semantics<parallel>, #tpu.dimension_semantics<parallel>], iteration_bounds = array<i64: 2, 1>, scalar_prefetch = 0 : i64, scratch_operands = 0 : i64, tpu.core_type = #tpu.core_type<tc>, window_params = [{transform_indices = @transform_0, window_bounds = array<i64: 1, 64, 128>}, {transform_indices = @transform_1, window_bounds = array<i64: 1, 64, 128>}, {transform_indices = @transform_2, window_bounds = array<i64: 1, 64, 128>}, {transform_indices = @transform_3, window_bounds = array<i64: 1, 64, 128>}]} {
    %0 = tpu.iota {dimensions = array<i32: 1>} : vector<1x64xi32>
    %c8_i32 = arith.constant 8 : i32
    %1 = vector.broadcast %c8_i32 : i32 to vector<1x64xi32>
    %2 = arith.cmpi slt, %0, %1 : vector<1x64xi32>
    %c0 = arith.constant 0 : index
    %c0_0 = arith.constant 0 : index
    %c0_1 = arith.constant 0 : index
    %3 = vector.load %arg2[%c0, %c0_0, %c0_1] : memref<1x64x128xbf16, #tpu.memory_space<vmem>>, vector<1x64x32xbf16>
    %4 = vector.shape_cast %3 : vector<1x64x32xbf16> to vector<64x32xbf16>
    %c0_2 = arith.constant 0 : index
    %c0_3 = arith.constant 0 : index
    %c0_4 = arith.constant 0 : index
    %5 = vector.load %arg3[%c0_2, %c0_3, %c0_4] : memref<1x64x128xbf16, #tpu.memory_space<vmem>>, vector<1x64x32xbf16>
    %6 = vector.shape_cast %5 : vector<1x64x32xbf16> to vector<64x32xbf16>
    %c0_5 = arith.constant 0 : index
    %c0_6 = arith.constant 0 : index
    %c0_7 = arith.constant 0 : index
    %7 = vector.load %arg4[%c0_5, %c0_6, %c0_7] : memref<1x64x128xbf16, #tpu.memory_space<vmem>>, vector<1x64x32xbf16>
    %8 = vector.shape_cast %7 : vector<1x64x32xbf16> to vector<64x32xbf16>
    %cst = arith.constant dense<0.000000e+00> : vector<64x64xf32>
    %9 = tpu.matmul %4, %6, %cst {dimension_numbers = #tpu.dot_dimension_numbers<[1], [1], [0], [0], [0, 0, 1, 0], [], []>} : vector<64x32xbf16>, vector<64x32xbf16>, vector<64x64xf32> -> vector<64x64xf32>
    %cst_8 = arith.constant -1.000000e+30 : f32
    %10 = vector.shape_cast %2 : vector<1x64xi1> to vector<1x64xi1>
    %11 = vector.broadcast %10 : vector<1x64xi1> to vector<64x64xi1>
    %12 = vector.broadcast %cst_8 : f32 to vector<64x64xf32>
    %13 = arith.select %11, %9, %12 : vector<64x64xi1>, vector<64x64xf32>
    %cst_9 = arith.constant dense<0xFF800000> : vector<64xf32>
    %14 = vector.multi_reduction <maximumf>, %13, %cst_9 [1] : vector<64x64xf32> to vector<64xf32>
    %15 = vector.shape_cast %14 : vector<64xf32> to vector<64x1xf32>
    %16 = vector.broadcast %15 : vector<64x1xf32> to vector<64x64xf32>
    %17 = arith.subf %13, %16 : vector<64x64xf32>
    %18 = math.exp %17 : vector<64x64xf32>
    %cst_10 = arith.constant dense<0.000000e+00> : vector<64xf32>
    %19 = vector.multi_reduction <add>, %18, %cst_10 [1] : vector<64x64xf32> to vector<64xf32>
    %20 = vector.shape_cast %19 : vector<64xf32> to vector<64x1xf32>
    %21 = tpu.reciprocal %20 {approx = true} : vector<64x1xf32> -> vector<64x1xf32>
    %22 = vector.broadcast %21 : vector<64x1xf32> to vector<64x64xf32>
    %23 = arith.mulf %18, %22 : vector<64x64xf32>
    %24 = arith.truncf %23 : vector<64x64xf32> to vector<64x64xbf16>
    %cst_11 = arith.constant dense<0.000000e+00> : vector<64x32xf32>
    %25 = tpu.matmul %24, %8, %cst_11 {dimension_numbers = #tpu.dot_dimension_numbers<[1], [0], [0], [1], [0, 0, 1, 1], [], []>} : vector<64x64xbf16>, vector<64x32xbf16>, vector<64x32xf32> -> vector<64x32xf32>
    %26 = arith.truncf %25 : vector<64x32xf32> to vector<64x32xbf16>
    %c0_12 = arith.constant 0 : index
    %c0_13 = arith.constant 0 : index
    %c0_14 = arith.constant 0 : index
    %27 = vector.load %arg5[%c0_12, %c0_13, %c0_14] : memref<1x64x128xbf16, #tpu.memory_space<vmem>>, vector<1x64x32xbf16>
    %28 = vector.shape_cast %27 : vector<1x64x32xbf16> to vector<64x32xbf16>
    %29 = vector.shape_cast %26 : vector<64x32xbf16> to vector<1x64x32xbf16>
    tpu.vector_store %arg5[%c0_12, %c0_13, %c0_14], %29 {strides = array<i32>} : memref<1x64x128xbf16, #tpu.memory_space<vmem>>, vector<1x64x32xbf16>,
    %c0_15 = arith.constant 0 : index
    %c0_16 = arith.constant 0 : index
    %c32 = arith.constant 32 : index
    %30 = vector.load %arg2[%c0_15, %c0_16, %c32] : memref<1x64x128xbf16, #tpu.memory_space<vmem>>, vector<1x64x32xbf16>
    %31 = vector.shape_cast %30 : vector<1x64x32xbf16> to vector<64x32xbf16>
    %c0_17 = arith.constant 0 : index
    %c0_18 = arith.constant 0 : index
    %c32_19 = arith.constant 32 : index
    %32 = vector.load %arg3[%c0_17, %c0_18, %c32_19] : memref<1x64x128xbf16, #tpu.memory_space<vmem>>, vector<1x64x32xbf16>
    %33 = vector.shape_cast %32 : vector<1x64x32xbf16> to vector<64x32xbf16>
    %c0_20 = arith.constant 0 : index
    %c0_21 = arith.constant 0 : index
    %c32_22 = arith.constant 32 : index
    %34 = vector.load %arg4[%c0_20, %c0_21, %c32_22] : memref<1x64x128xbf16, #tpu.memory_space<vmem>>, vector<1x64x32xbf16>
    %35 = vector.shape_cast %34 : vector<1x64x32xbf16> to vector<64x32xbf16>
    %cst_23 = arith.constant dense<0.000000e+00> : vector<64x64xf32>
    %36 = tpu.matmul %31, %33, %cst_23 {dimension_numbers = #tpu.dot_dimension_numbers<[1], [1], [0], [0], [0, 0, 1, 0], [], []>} : vector<64x32xbf16>, vector<64x32xbf16>, vector<64x64xf32> -> vector<64x64xf32>
    %cst_24 = arith.constant -1.000000e+30 : f32
    %37 = vector.shape_cast %2 : vector<1x64xi1> to vector<1x64xi1>
    %38 = vector.broadcast %37 : vector<1x64xi1> to vector<64x64xi1>
    %39 = vector.broadcast %cst_24 : f32 to vector<64x64xf32>
    %40 = arith.select %38, %36, %39 : vector<64x64xi1>, vector<64x64xf32>
    %cst_25 = arith.constant dense<0xFF800000> : vector<64xf32>
    %41 = vector.multi_reduction <maximumf>, %40, %cst_25 [1] : vector<64x64xf32> to vector<64xf32>
    %42 = vector.shape_cast %41 : vector<64xf32> to vector<64x1xf32>
    %43 = vector.broadcast %42 : vector<64x1xf32> to vector<64x64xf32>
    %44 = arith.subf %40, %43 : vector<64x64xf32>
    %45 = math.exp %44 : vector<64x64xf32>
    %cst_26 = arith.constant dense<0.000000e+00> : vector<64xf32>
    %46 = vector.multi_reduction <add>, %45, %cst_26 [1] : vector<64x64xf32> to vector<64xf32>
    %47 = vector.shape_cast %46 : vector<64xf32> to vector<64x1xf32>
    %48 = tpu.reciprocal %47 {approx = true} : vector<64x1xf32> -> vector<64x1xf32>
    %49 = vector.broadcast %48 : vector<64x1xf32> to vector<64x64xf32>
    %50 = arith.mulf %45, %49 : vector<64x64xf32>
    %51 = arith.truncf %50 : vector<64x64xf32> to vector<64x64xbf16>
    %cst_27 = arith.constant dense<0.000000e+00> : vector<64x32xf32>
    %52 = tpu.matmul %51, %35, %cst_27 {dimension_numbers = #tpu.dot_dimension_numbers<[1], [0], [0], [1], [0, 0, 1, 1], [], []>} : vector<64x64xbf16>, vector<64x32xbf16>, vector<64x32xf32> -> vector<64x32xf32>
    %53 = arith.truncf %52 : vector<64x32xf32> to vector<64x32xbf16>
    %c0_28 = arith.constant 0 : index
    %c0_29 = arith.constant 0 : index
    %c32_30 = arith.constant 32 : index
    %54 = vector.load %arg5[%c0_28, %c0_29, %c32_30] : memref<1x64x128xbf16, #tpu.memory_space<vmem>>, vector<1x64x32xbf16>
    %55 = vector.shape_cast %54 : vector<1x64x32xbf16> to vector<64x32xbf16>
    %56 = vector.shape_cast %53 : vector<64x32xbf16> to vector<1x64x32xbf16>
    tpu.vector_store %arg5[%c0_28, %c0_29, %c32_30], %56 {strides = array<i32>} : memref<1x64x128xbf16, #tpu.memory_space<vmem>>, vector<1x64x32xbf16>,
    %c0_31 = arith.constant 0 : index
    %c0_32 = arith.constant 0 : index
    %c64 = arith.constant 64 : index
    %57 = vector.load %arg2[%c0_31, %c0_32, %c64] : memref<1x64x128xbf16, #tpu.memory_space<vmem>>, vector<1x64x32xbf16>
    %58 = vector.shape_cast %57 : vector<1x64x32xbf16> to vector<64x32xbf16>
    %c0_33 = arith.constant 0 : index
    %c0_34 = arith.constant 0 : index
    %c64_35 = arith.constant 64 : index
    %59 = vector.load %arg3[%c0_33, %c0_34, %c64_35] : memref<1x64x128xbf16, #tpu.memory_space<vmem>>, vector<1x64x32xbf16>
    %60 = vector.shape_cast %59 : vector<1x64x32xbf16> to vector<64x32xbf16>
    %c0_36 = arith.constant 0 : index
    %c0_37 = arith.constant 0 : index
    %c64_38 = arith.constant 64 : index
    %61 = vector.load %arg4[%c0_36, %c0_37, %c64_38] : memref<1x64x128xbf16, #tpu.memory_space<vmem>>, vector<1x64x32xbf16>
    %62 = vector.shape_cast %61 : vector<1x64x32xbf16> to vector<64x32xbf16>
    %cst_39 = arith.constant dense<0.000000e+00> : vector<64x64xf32>
    %63 = tpu.matmul %58, %60, %cst_39 {dimension_numbers = #tpu.dot_dimension_numbers<[1], [1], [0], [0], [0, 0, 1, 0], [], []>} : vector<64x32xbf16>, vector<64x32xbf16>, vector<64x64xf32> -> vector<64x64xf32>
    %cst_40 = arith.constant -1.000000e+30 : f32
    %64 = vector.shape_cast %2 : vector<1x64xi1> to vector<1x64xi1>
    %65 = vector.broadcast %64 : vector<1x64xi1> to vector<64x64xi1>
    %66 = vector.broadcast %cst_40 : f32 to vector<64x64xf32>
    %67 = arith.select %65, %63, %66 : vector<64x64xi1>, vector<64x64xf32>
    %cst_41 = arith.constant dense<0xFF800000> : vector<64xf32>
    %68 = vector.multi_reduction <maximumf>, %67, %cst_41 [1] : vector<64x64xf32> to vector<64xf32>
    %69 = vector.shape_cast %68 : vector<64xf32> to vector<64x1xf32>
    %70 = vector.broadcast %69 : vector<64x1xf32> to vector<64x64xf32>
    %71 = arith.subf %67, %70 : vector<64x64xf32>
    %72 = math.exp %71 : vector<64x64xf32>
    %cst_42 = arith.constant dense<0.000000e+00> : vector<64xf32>
    %73 = vector.multi_reduction <add>, %72, %cst_42 [1] : vector<64x64xf32> to vector<64xf32>
    %74 = vector.shape_cast %73 : vector<64xf32> to vector<64x1xf32>
    %75 = tpu.reciprocal %74 {approx = true} : vector<64x1xf32> -> vector<64x1xf32>
    %76 = vector.broadcast %75 : vector<64x1xf32> to vector<64x64xf32>
    %77 = arith.mulf %72, %76 : vector<64x64xf32>
    %78 = arith.truncf %77 : vector<64x64xf32> to vector<64x64xbf16>
    %cst_43 = arith.constant dense<0.000000e+00> : vector<64x32xf32>
    %79 = tpu.matmul %78, %62, %cst_43 {dimension_numbers = #tpu.dot_dimension_numbers<[1], [0], [0], [1], [0, 0, 1, 1], [], []>} : vector<64x64xbf16>, vector<64x32xbf16>, vector<64x32xf32> -> vector<64x32xf32>
    %80 = arith.truncf %79 : vector<64x32xf32> to vector<64x32xbf16>
    %c0_44 = arith.constant 0 : index
    %c0_45 = arith.constant 0 : index
    %c64_46 = arith.constant 64 : index
    %81 = vector.load %arg5[%c0_44, %c0_45, %c64_46] : memref<1x64x128xbf16, #tpu.memory_space<vmem>>, vector<1x64x32xbf16>
    %82 = vector.shape_cast %81 : vector<1x64x32xbf16> to vector<64x32xbf16>
    %83 = vector.shape_cast %80 : vector<64x32xbf16> to vector<1x64x32xbf16>
    tpu.vector_store %arg5[%c0_44, %c0_45, %c64_46], %83 {strides = array<i32>} : memref<1x64x128xbf16, #tpu.memory_space<vmem>>, vector<1x64x32xbf16>,
    %c0_47 = arith.constant 0 : index
    %c0_48 = arith.constant 0 : index
    %c96 = arith.constant 96 : index
    %84 = vector.load %arg2[%c0_47, %c0_48, %c96] : memref<1x64x128xbf16, #tpu.memory_space<vmem>>, vector<1x64x32xbf16>
    %85 = vector.shape_cast %84 : vector<1x64x32xbf16> to vector<64x32xbf16>
    %c0_49 = arith.constant 0 : index
    %c0_50 = arith.constant 0 : index
    %c96_51 = arith.constant 96 : index
    %86 = vector.load %arg3[%c0_49, %c0_50, %c96_51] : memref<1x64x128xbf16, #tpu.memory_space<vmem>>, vector<1x64x32xbf16>
    %87 = vector.shape_cast %86 : vector<1x64x32xbf16> to vector<64x32xbf16>
    %c0_52 = arith.constant 0 : index
    %c0_53 = arith.constant 0 : index
    %c96_54 = arith.constant 96 : index
    %88 = vector.load %arg4[%c0_52, %c0_53, %c96_54] : memref<1x64x128xbf16, #tpu.memory_space<vmem>>, vector<1x64x32xbf16>
    %89 = vector.shape_cast %88 : vector<1x64x32xbf16> to vector<64x32xbf16>
    %cst_55 = arith.constant dense<0.000000e+00> : vector<64x64xf32>
    %90 = tpu.matmul %85, %87, %cst_55 {dimension_numbers = #tpu.dot_dimension_numbers<[1], [1], [0], [0], [0, 0, 1, 0], [], []>} : vector<64x32xbf16>, vector<64x32xbf16>, vector<64x64xf32> -> vector<64x64xf32>
    %cst_56 = arith.constant -1.000000e+30 : f32
    %91 = vector.shape_cast %2 : vector<1x64xi1> to vector<1x64xi1>
    %92 = vector.broadcast %91 : vector<1x64xi1> to vector<64x64xi1>
    %93 = vector.broadcast %cst_56 : f32 to vector<64x64xf32>
    %94 = arith.select %92, %90, %93 : vector<64x64xi1>, vector<64x64xf32>
    %cst_57 = arith.constant dense<0xFF800000> : vector<64xf32>
    %95 = vector.multi_reduction <maximumf>, %94, %cst_57 [1] : vector<64x64xf32> to vector<64xf32>
    %96 = vector.shape_cast %95 : vector<64xf32> to vector<64x1xf32>
    %97 = vector.broadcast %96 : vector<64x1xf32> to vector<64x64xf32>
    %98 = arith.subf %94, %97 : vector<64x64xf32>
    %99 = math.exp %98 : vector<64x64xf32>
    %cst_58 = arith.constant dense<0.000000e+00> : vector<64xf32>
    %100 = vector.multi_reduction <add>, %99, %cst_58 [1] : vector<64x64xf32> to vector<64xf32>
    %101 = vector.shape_cast %100 : vector<64xf32> to vector<64x1xf32>
    %102 = tpu.reciprocal %101 {approx = true} : vector<64x1xf32> -> vector<64x1xf32>
    %103 = vector.broadcast %102 : vector<64x1xf32> to vector<64x64xf32>
    %104 = arith.mulf %99, %103 : vector<64x64xf32>
    %105 = arith.truncf %104 : vector<64x64xf32> to vector<64x64xbf16>
    %cst_59 = arith.constant dense<0.000000e+00> : vector<64x32xf32>
    %106 = tpu.matmul %105, %89, %cst_59 {dimension_numbers = #tpu.dot_dimension_numbers<[1], [0], [0], [1], [0, 0, 1, 1], [], []>} : vector<64x64xbf16>, vector<64x32xbf16>, vector<64x32xf32> -> vector<64x32xf32>
    %107 = arith.truncf %106 : vector<64x32xf32> to vector<64x32xbf16>
    %c0_60 = arith.constant 0 : index
    %c0_61 = arith.constant 0 : index
    %c96_62 = arith.constant 96 : index
    %108 = vector.load %arg5[%c0_60, %c0_61, %c96_62] : memref<1x64x128xbf16, #tpu.memory_space<vmem>>, vector<1x64x32xbf16>
    %109 = vector.shape_cast %108 : vector<1x64x32xbf16> to vector<64x32xbf16>
    %110 = vector.shape_cast %107 : vector<64x32xbf16> to vector<1x64x32xbf16>
    tpu.vector_store %arg5[%c0_60, %c0_61, %c96_62], %110 {strides = array<i32>} : memref<1x64x128xbf16, #tpu.memory_space<vmem>>, vector<1x64x32xbf16>,
    return
  }
  func.func @transform_0(%arg0: i32, %arg1: i32) -> (i32, i32, i32) {
    %c0_i32 = arith.constant 0 : i32
    %c0_i32_0 = arith.constant 0 : i32
    return %arg0, %arg1, %c0_i32 : i32, i32, i32
  }
  func.func @transform_1(%arg0: i32, %arg1: i32) -> (i32, i32, i32) {
    %c0_i32 = arith.constant 0 : i32
    %c1_i32 = arith.constant 1 : i32
    %c0_i32_0 = arith.constant 0 : i32
    return %arg0, %c0_i32, %c1_i32 : i32, i32, i32
  }
  func.func @transform_2(%arg0: i32, %arg1: i32) -> (i32, i32, i32) {
    %c0_i32 = arith.constant 0 : i32
    %c2_i32 = arith.constant 2 : i32
    %c0_i32_0 = arith.constant 0 : i32
    return %arg0, %c0_i32, %c2_i32 : i32, i32, i32
  }
  func.func @transform_3(%arg0: i32, %arg1: i32) -> (i32, i32, i32) {
    %c0_i32 = arith.constant 0 : i32
    %c0_i32_0 = arith.constant 0 : i32
    return %arg0, %arg1, %c0_i32 : i32, i32, i32
  }
}

module attributes {stable_mosaic.version = 11 : i64} {
  func.func @_matmul_bias_kernel(%arg0: i32, %arg1: i32, %arg2: i32, %arg3: memref<128x128xbf16, #tpu.memory_space<vmem>>, %arg4: memref<128x256xbf16, #tpu.memory_space<vmem>>, %arg5: memref<1x256xf32, #tpu.memory_space<vmem>>, %arg6: memref<128x256xbf16, #tpu.memory_space<vmem>>, %arg7: memref<128x256xf32, #tpu.memory_space<vmem>>) attributes {dimension_semantics = [#tpu.dimension_semantics<parallel>, #tpu.dimension_semantics<parallel>, #tpu.dimension_semantics<arbitrary>], iteration_bounds = array<i64: 1, 1, 1>, scalar_prefetch = 0 : i64, scratch_operands = 1 : i64, tpu.core_type = #tpu.core_type<tc>, window_params = [{transform_indices = @transform_0, window_bounds = array<i64: 128, 128>}, {transform_indices = @transform_1, window_bounds = array<i64: 128, 256>}, {transform_indices = @transform_2, window_bounds = array<i64: 1, 256>}, {transform_indices = @transform_3, window_bounds = array<i64: 128, 256>}]} {
    %c0_i32 = arith.constant 0 : i32
    %0 = arith.cmpi eq, %arg2, %c0_i32 : i32
    %1 = arith.extui %0 : i1 to i32
    %c0_i32_0 = arith.constant 0 : i32
    %2 = arith.cmpi ne, %1, %c0_i32_0 : i32
    scf.if %2 {
      %cst_10 = arith.constant 0.000000e+00 : f32
      %12 = vector.broadcast %cst_10 : f32 to vector<128x256xf32>
      %c0_11 = arith.constant 0 : index
      %c0_12 = arith.constant 0 : index
      %13 = vector.load %arg7[%c0_11, %c0_12] : memref<128x256xf32, #tpu.memory_space<vmem>>, vector<128x256xf32>
      tpu.vector_store %arg7[%c0_11, %c0_12], %12 {strides = array<i32>} : memref<128x256xf32, #tpu.memory_space<vmem>>, vector<128x256xf32>,
    } else {
    }
    %c0 = arith.constant 0 : index
    %c0_1 = arith.constant 0 : index
    %3 = vector.load %arg7[%c0, %c0_1] : memref<128x256xf32, #tpu.memory_space<vmem>>, vector<128x256xf32>
    %c0_2 = arith.constant 0 : index
    %c0_3 = arith.constant 0 : index
    %4 = vector.load %arg3[%c0_2, %c0_3] : memref<128x128xbf16, #tpu.memory_space<vmem>>, vector<128x128xbf16>
    %c0_4 = arith.constant 0 : index
    %c0_5 = arith.constant 0 : index
    %5 = vector.load %arg4[%c0_4, %c0_5] : memref<128x256xbf16, #tpu.memory_space<vmem>>, vector<128x256xbf16>
    %cst = arith.constant dense<0.000000e+00> : vector<128x256xf32>
    %6 = tpu.matmul %4, %5, %cst {dimension_numbers = #tpu.dot_dimension_numbers<[1], [0], [0], [1], [0, 0, 1, 1], [], []>} : vector<128x128xbf16>, vector<128x256xbf16>, vector<128x256xf32> -> vector<128x256xf32>
    %7 = arith.addf %3, %6 : vector<128x256xf32>
    %c0_6 = arith.constant 0 : index
    %c0_7 = arith.constant 0 : index
    %8 = vector.load %arg7[%c0_6, %c0_7] : memref<128x256xf32, #tpu.memory_space<vmem>>, vector<128x256xf32>
    tpu.vector_store %arg7[%c0_6, %c0_7], %7 {strides = array<i32>} : memref<128x256xf32, #tpu.memory_space<vmem>>, vector<128x256xf32>,
    %c0_i32_8 = arith.constant 0 : i32
    %9 = arith.cmpi eq, %arg2, %c0_i32_8 : i32
    %10 = arith.extui %9 : i1 to i32
    %c0_i32_9 = arith.constant 0 : i32
    %11 = arith.cmpi ne, %10, %c0_i32_9 : i32
    scf.if %11 {
      %c0_10 = arith.constant 0 : index
      %c0_11 = arith.constant 0 : index
      %12 = vector.load %arg7[%c0_10, %c0_11] : memref<128x256xf32, #tpu.memory_space<vmem>>, vector<128x256xf32>
      %c0_12 = arith.constant 0 : index
      %c0_13 = arith.constant 0 : index
      %13 = vector.load %arg5[%c0_12, %c0_13] : memref<1x256xf32, #tpu.memory_space<vmem>>, vector<1x256xf32>
      %14 = vector.broadcast %13 : vector<1x256xf32> to vector<128x256xf32>
      %15 = arith.addf %12, %14 : vector<128x256xf32>
      %cst_14 = arith.constant 5.000000e-01 : f32
      %16 = vector.broadcast %cst_14 : f32 to vector<128x256xf32>
      %17 = arith.mulf %16, %15 : vector<128x256xf32>
      %cst_15 = arith.constant 0.707106769 : f32
      %18 = vector.broadcast %cst_15 : f32 to vector<128x256xf32>
      %19 = arith.mulf %15, %18 : vector<128x256xf32>
      %20 = math.erf %19 : vector<128x256xf32>
      %cst_16 = arith.constant 1.000000e+00 : f32
      %21 = vector.broadcast %cst_16 : f32 to vector<128x256xf32>
      %22 = arith.addf %21, %20 : vector<128x256xf32>
      %23 = arith.mulf %17, %22 : vector<128x256xf32>
      %24 = arith.truncf %23 : vector<128x256xf32> to vector<128x256xbf16>
      %c0_17 = arith.constant 0 : index
      %c0_18 = arith.constant 0 : index
      %25 = vector.load %arg6[%c0_17, %c0_18] : memref<128x256xbf16, #tpu.memory_space<vmem>>, vector<128x256xbf16>
      tpu.vector_store %arg6[%c0_17, %c0_18], %24 {strides = array<i32>} : memref<128x256xbf16, #tpu.memory_space<vmem>>, vector<128x256xbf16>,
    } else {
    }
    return
  }
  func.func @transform_0(%arg0: i32, %arg1: i32, %arg2: i32) -> (i32, i32) {
    %c0_i32 = arith.constant 0 : i32
    return %arg0, %arg2 : i32, i32
  }
  func.func @transform_1(%arg0: i32, %arg1: i32, %arg2: i32) -> (i32, i32) {
    %c0_i32 = arith.constant 0 : i32
    return %arg2, %arg1 : i32, i32
  }
  func.func @transform_2(%arg0: i32, %arg1: i32, %arg2: i32) -> (i32, i32) {
    %c0_i32 = arith.constant 0 : i32
    %c0_i32_0 = arith.constant 0 : i32
    return %c0_i32, %arg1 : i32, i32
  }
  func.func @transform_3(%arg0: i32, %arg1: i32, %arg2: i32) -> (i32, i32) {
    %c0_i32 = arith.constant 0 : i32
    return %arg0, %arg1 : i32, i32
  }
}

module attributes {stable_mosaic.version = 11 : i64} {
  func.func @_matmul_residual_ln_kernel(%arg0: i32, %arg1: i32, %arg2: memref<128x256xbf16, #tpu.memory_space<vmem>>, %arg3: memref<256x128xbf16, #tpu.memory_space<vmem>>, %arg4: memref<1x128xf32, #tpu.memory_space<vmem>>, %arg5: memref<128x128xbf16, #tpu.memory_space<vmem>>, %arg6: memref<1x128xf32, #tpu.memory_space<vmem>>, %arg7: memref<1x128xf32, #tpu.memory_space<vmem>>, %arg8: memref<128x128xbf16, #tpu.memory_space<vmem>>, %arg9: memref<128x128xf32, #tpu.memory_space<vmem>>) attributes {dimension_semantics = [#tpu.dimension_semantics<parallel>, #tpu.dimension_semantics<arbitrary>], iteration_bounds = array<i64: 1, 1>, scalar_prefetch = 0 : i64, scratch_operands = 1 : i64, tpu.core_type = #tpu.core_type<tc>, window_params = [{transform_indices = @transform_0, window_bounds = array<i64: 128, 256>}, {transform_indices = @transform_1, window_bounds = array<i64: 256, 128>}, {pipeline_mode = #tpu.pipeline_mode<synchronous>, transform_indices = @transform_2, window_bounds = array<i64: 1, 128>}, {transform_indices = @transform_3, window_bounds = array<i64: 128, 128>}, {pipeline_mode = #tpu.pipeline_mode<synchronous>, transform_indices = @transform_4, window_bounds = array<i64: 1, 128>}, {pipeline_mode = #tpu.pipeline_mode<synchronous>, transform_indices = @transform_5, window_bounds = array<i64: 1, 128>}, {transform_indices = @transform_6, window_bounds = array<i64: 128, 128>}]} {
    %c0_i32 = arith.constant 0 : i32
    %0 = arith.cmpi eq, %arg1, %c0_i32 : i32
    %1 = arith.extui %0 : i1 to i32
    %c0_i32_0 = arith.constant 0 : i32
    %2 = arith.cmpi ne, %1, %c0_i32_0 : i32
    scf.if %2 {
      %cst_10 = arith.constant 0.000000e+00 : f32
      %12 = vector.broadcast %cst_10 : f32 to vector<128x128xf32>
      %c0_11 = arith.constant 0 : index
      %c0_12 = arith.constant 0 : index
      %13 = vector.load %arg9[%c0_11, %c0_12] : memref<128x128xf32, #tpu.memory_space<vmem>>, vector<128x128xf32>
      tpu.vector_store %arg9[%c0_11, %c0_12], %12 {strides = array<i32>} : memref<128x128xf32, #tpu.memory_space<vmem>>, vector<128x128xf32>,
    } else {
    }
    %c0 = arith.constant 0 : index
    %c0_1 = arith.constant 0 : index
    %3 = vector.load %arg9[%c0, %c0_1] : memref<128x128xf32, #tpu.memory_space<vmem>>, vector<128x128xf32>
    %c0_2 = arith.constant 0 : index
    %c0_3 = arith.constant 0 : index
    %4 = vector.load %arg2[%c0_2, %c0_3] : memref<128x256xbf16, #tpu.memory_space<vmem>>, vector<128x256xbf16>
    %c0_4 = arith.constant 0 : index
    %c0_5 = arith.constant 0 : index
    %5 = vector.load %arg3[%c0_4, %c0_5] : memref<256x128xbf16, #tpu.memory_space<vmem>>, vector<256x128xbf16>
    %cst = arith.constant dense<0.000000e+00> : vector<128x128xf32>
    %6 = tpu.matmul %4, %5, %cst {dimension_numbers = #tpu.dot_dimension_numbers<[1], [0], [0], [1], [0, 0, 1, 1], [], []>} : vector<128x256xbf16>, vector<256x128xbf16>, vector<128x128xf32> -> vector<128x128xf32>
    %7 = arith.addf %3, %6 : vector<128x128xf32>
    %c0_6 = arith.constant 0 : index
    %c0_7 = arith.constant 0 : index
    %8 = vector.load %arg9[%c0_6, %c0_7] : memref<128x128xf32, #tpu.memory_space<vmem>>, vector<128x128xf32>
    tpu.vector_store %arg9[%c0_6, %c0_7], %7 {strides = array<i32>} : memref<128x128xf32, #tpu.memory_space<vmem>>, vector<128x128xf32>,
    %c0_i32_8 = arith.constant 0 : i32
    %9 = arith.cmpi eq, %arg1, %c0_i32_8 : i32
    %10 = arith.extui %9 : i1 to i32
    %c0_i32_9 = arith.constant 0 : i32
    %11 = arith.cmpi ne, %10, %c0_i32_9 : i32
    scf.if %11 {
      %c0_10 = arith.constant 0 : index
      %c0_11 = arith.constant 0 : index
      %12 = vector.load %arg9[%c0_10, %c0_11] : memref<128x128xf32, #tpu.memory_space<vmem>>, vector<128x128xf32>
      %c0_12 = arith.constant 0 : index
      %c0_13 = arith.constant 0 : index
      %13 = vector.load %arg4[%c0_12, %c0_13] : memref<1x128xf32, #tpu.memory_space<vmem>>, vector<1x128xf32>
      %14 = vector.broadcast %13 : vector<1x128xf32> to vector<128x128xf32>
      %15 = arith.addf %12, %14 : vector<128x128xf32>
      %c0_14 = arith.constant 0 : index
      %c0_15 = arith.constant 0 : index
      %16 = vector.load %arg5[%c0_14, %c0_15] : memref<128x128xbf16, #tpu.memory_space<vmem>>, vector<128x128xbf16>
      %17 = arith.extf %16 : vector<128x128xbf16> to vector<128x128xf32>
      %18 = arith.addf %15, %17 : vector<128x128xf32>
      %cst_16 = arith.constant dense<0.000000e+00> : vector<128xf32>
      %19 = vector.multi_reduction <add>, %18, %cst_16 [1] : vector<128x128xf32> to vector<128xf32>
      %20 = vector.shape_cast %19 : vector<128xf32> to vector<128x1xf32>
      %cst_17 = arith.constant 1.280000e+02 : f32
      %21 = vector.broadcast %cst_17 : f32 to vector<128x1xf32>
      %22 = arith.divf %20, %21 : vector<128x1xf32>
      %23 = vector.broadcast %22 : vector<128x1xf32> to vector<128x128xf32>
      %24 = arith.subf %18, %23 : vector<128x128xf32>
      %25 = arith.mulf %24, %24 : vector<128x128xf32>
      %cst_18 = arith.constant dense<0.000000e+00> : vector<128xf32>
      %26 = vector.multi_reduction <add>, %25, %cst_18 [1] : vector<128x128xf32> to vector<128xf32>
      %27 = vector.shape_cast %26 : vector<128xf32> to vector<128x1xf32>
      %cst_19 = arith.constant 1.280000e+02 : f32
      %28 = vector.broadcast %cst_19 : f32 to vector<128x1xf32>
      %29 = arith.divf %27, %28 : vector<128x1xf32>
      %30 = vector.broadcast %22 : vector<128x1xf32> to vector<128x128xf32>
      %31 = arith.subf %18, %30 : vector<128x128xf32>
      %cst_20 = arith.constant 9.99999974E-6 : f32
      %32 = vector.broadcast %cst_20 : f32 to vector<128x1xf32>
      %33 = arith.addf %29, %32 : vector<128x1xf32>
      %34 = math.rsqrt %33 : vector<128x1xf32>
      %35 = vector.broadcast %34 : vector<128x1xf32> to vector<128x128xf32>
      %36 = arith.mulf %31, %35 : vector<128x128xf32>
      %c0_21 = arith.constant 0 : index
      %c0_22 = arith.constant 0 : index
      %37 = vector.load %arg6[%c0_21, %c0_22] : memref<1x128xf32, #tpu.memory_space<vmem>>, vector<1x128xf32>
      %38 = vector.broadcast %37 : vector<1x128xf32> to vector<128x128xf32>
      %39 = arith.mulf %36, %38 : vector<128x128xf32>
      %c0_23 = arith.constant 0 : index
      %c0_24 = arith.constant 0 : index
      %40 = vector.load %arg7[%c0_23, %c0_24] : memref<1x128xf32, #tpu.memory_space<vmem>>, vector<1x128xf32>
      %41 = vector.broadcast %40 : vector<1x128xf32> to vector<128x128xf32>
      %42 = arith.addf %39, %41 : vector<128x128xf32>
      %43 = arith.truncf %42 : vector<128x128xf32> to vector<128x128xbf16>
      %c0_25 = arith.constant 0 : index
      %c0_26 = arith.constant 0 : index
      %44 = vector.load %arg8[%c0_25, %c0_26] : memref<128x128xbf16, #tpu.memory_space<vmem>>, vector<128x128xbf16>
      tpu.vector_store %arg8[%c0_25, %c0_26], %43 {strides = array<i32>} : memref<128x128xbf16, #tpu.memory_space<vmem>>, vector<128x128xbf16>,
    } else {
    }
    return
  }
  func.func @transform_0(%arg0: i32, %arg1: i32) -> (i32, i32) {
    %c0_i32 = arith.constant 0 : i32
    return %arg0, %arg1 : i32, i32
  }
  func.func @transform_1(%arg0: i32, %arg1: i32) -> (i32, i32) {
    %c0_i32 = arith.constant 0 : i32
    %c0_i32_0 = arith.constant 0 : i32
    return %arg1, %c0_i32 : i32, i32
  }
  func.func @transform_2(%arg0: i32, %arg1: i32) -> (i32, i32) {
    %c0_i32 = arith.constant 0 : i32
    %c0_i32_0 = arith.constant 0 : i32
    %c0_i32_1 = arith.constant 0 : i32
    return %c0_i32, %c0_i32_0 : i32, i32
  }
  func.func @transform_3(%arg0: i32, %arg1: i32) -> (i32, i32) {
    %c0_i32 = arith.constant 0 : i32
    %c0_i32_0 = arith.constant 0 : i32
    return %arg0, %c0_i32 : i32, i32
  }
  func.func @transform_4(%arg0: i32, %arg1: i32) -> (i32, i32) {
    %c0_i32 = arith.constant 0 : i32
    %c0_i32_0 = arith.constant 0 : i32
    %c0_i32_1 = arith.constant 0 : i32
    return %c0_i32, %c0_i32_0 : i32, i32
  }
  func.func @transform_5(%arg0: i32, %arg1: i32) -> (i32, i32) {
    %c0_i32 = arith.constant 0 : i32
    %c0_i32_0 = arith.constant 0 : i32
    %c0_i32_1 = arith.constant 0 : i32
    return %c0_i32, %c0_i32_0 : i32, i32
  }
  func.func @transform_6(%arg0: i32, %arg1: i32) -> (i32, i32) {
    %c0_i32 = arith.constant 0 : i32
    %c0_i32_0 = arith.constant 0 : i32
    return %arg0, %c0_i32 : i32, i32
  }
}

module attributes {stable_mosaic.version = 11 : i64} {
  func.func @_matmul_residual_ln_kernel(%arg0: i32, %arg1: i32, %arg2: memref<128x128xbf16, #tpu.memory_space<vmem>>, %arg3: memref<128x128xbf16, #tpu.memory_space<vmem>>, %arg4: memref<1x128xf32, #tpu.memory_space<vmem>>, %arg5: memref<128x128xbf16, #tpu.memory_space<vmem>>, %arg6: memref<1x128xf32, #tpu.memory_space<vmem>>, %arg7: memref<1x128xf32, #tpu.memory_space<vmem>>, %arg8: memref<128x128xbf16, #tpu.memory_space<vmem>>, %arg9: memref<128x128xf32, #tpu.memory_space<vmem>>) attributes {dimension_semantics = [#tpu.dimension_semantics<parallel>, #tpu.dimension_semantics<arbitrary>], iteration_bounds = array<i64: 1, 1>, scalar_prefetch = 0 : i64, scratch_operands = 1 : i64, tpu.core_type = #tpu.core_type<tc>, window_params = [{transform_indices = @transform_0, window_bounds = array<i64: 128, 128>}, {transform_indices = @transform_1, window_bounds = array<i64: 128, 128>}, {pipeline_mode = #tpu.pipeline_mode<synchronous>, transform_indices = @transform_2, window_bounds = array<i64: 1, 128>}, {transform_indices = @transform_3, window_bounds = array<i64: 128, 128>}, {pipeline_mode = #tpu.pipeline_mode<synchronous>, transform_indices = @transform_4, window_bounds = array<i64: 1, 128>}, {pipeline_mode = #tpu.pipeline_mode<synchronous>, transform_indices = @transform_5, window_bounds = array<i64: 1, 128>}, {transform_indices = @transform_6, window_bounds = array<i64: 128, 128>}]} {
    %c0_i32 = arith.constant 0 : i32
    %0 = arith.cmpi eq, %arg1, %c0_i32 : i32
    %1 = arith.extui %0 : i1 to i32
    %c0_i32_0 = arith.constant 0 : i32
    %2 = arith.cmpi ne, %1, %c0_i32_0 : i32
    scf.if %2 {
      %cst_10 = arith.constant 0.000000e+00 : f32
      %12 = vector.broadcast %cst_10 : f32 to vector<128x128xf32>
      %c0_11 = arith.constant 0 : index
      %c0_12 = arith.constant 0 : index
      %13 = vector.load %arg9[%c0_11, %c0_12] : memref<128x128xf32, #tpu.memory_space<vmem>>, vector<128x128xf32>
      tpu.vector_store %arg9[%c0_11, %c0_12], %12 {strides = array<i32>} : memref<128x128xf32, #tpu.memory_space<vmem>>, vector<128x128xf32>,
    } else {
    }
    %c0 = arith.constant 0 : index
    %c0_1 = arith.constant 0 : index
    %3 = vector.load %arg9[%c0, %c0_1] : memref<128x128xf32, #tpu.memory_space<vmem>>, vector<128x128xf32>
    %c0_2 = arith.constant 0 : index
    %c0_3 = arith.constant 0 : index
    %4 = vector.load %arg2[%c0_2, %c0_3] : memref<128x128xbf16, #tpu.memory_space<vmem>>, vector<128x128xbf16>
    %c0_4 = arith.constant 0 : index
    %c0_5 = arith.constant 0 : index
    %5 = vector.load %arg3[%c0_4, %c0_5] : memref<128x128xbf16, #tpu.memory_space<vmem>>, vector<128x128xbf16>
    %cst = arith.constant dense<0.000000e+00> : vector<128x128xf32>
    %6 = tpu.matmul %4, %5, %cst {dimension_numbers = #tpu.dot_dimension_numbers<[1], [0], [0], [1], [0, 0, 1, 1], [], []>} : vector<128x128xbf16>, vector<128x128xbf16>, vector<128x128xf32> -> vector<128x128xf32>
    %7 = arith.addf %3, %6 : vector<128x128xf32>
    %c0_6 = arith.constant 0 : index
    %c0_7 = arith.constant 0 : index
    %8 = vector.load %arg9[%c0_6, %c0_7] : memref<128x128xf32, #tpu.memory_space<vmem>>, vector<128x128xf32>
    tpu.vector_store %arg9[%c0_6, %c0_7], %7 {strides = array<i32>} : memref<128x128xf32, #tpu.memory_space<vmem>>, vector<128x128xf32>,
    %c0_i32_8 = arith.constant 0 : i32
    %9 = arith.cmpi eq, %arg1, %c0_i32_8 : i32
    %10 = arith.extui %9 : i1 to i32
    %c0_i32_9 = arith.constant 0 : i32
    %11 = arith.cmpi ne, %10, %c0_i32_9 : i32
    scf.if %11 {
      %c0_10 = arith.constant 0 : index
      %c0_11 = arith.constant 0 : index
      %12 = vector.load %arg9[%c0_10, %c0_11] : memref<128x128xf32, #tpu.memory_space<vmem>>, vector<128x128xf32>
      %c0_12 = arith.constant 0 : index
      %c0_13 = arith.constant 0 : index
      %13 = vector.load %arg4[%c0_12, %c0_13] : memref<1x128xf32, #tpu.memory_space<vmem>>, vector<1x128xf32>
      %14 = vector.broadcast %13 : vector<1x128xf32> to vector<128x128xf32>
      %15 = arith.addf %12, %14 : vector<128x128xf32>
      %c0_14 = arith.constant 0 : index
      %c0_15 = arith.constant 0 : index
      %16 = vector.load %arg5[%c0_14, %c0_15] : memref<128x128xbf16, #tpu.memory_space<vmem>>, vector<128x128xbf16>
      %17 = arith.extf %16 : vector<128x128xbf16> to vector<128x128xf32>
      %18 = arith.addf %15, %17 : vector<128x128xf32>
      %cst_16 = arith.constant dense<0.000000e+00> : vector<128xf32>
      %19 = vector.multi_reduction <add>, %18, %cst_16 [1] : vector<128x128xf32> to vector<128xf32>
      %20 = vector.shape_cast %19 : vector<128xf32> to vector<128x1xf32>
      %cst_17 = arith.constant 1.280000e+02 : f32
      %21 = vector.broadcast %cst_17 : f32 to vector<128x1xf32>
      %22 = arith.divf %20, %21 : vector<128x1xf32>
      %23 = vector.broadcast %22 : vector<128x1xf32> to vector<128x128xf32>
      %24 = arith.subf %18, %23 : vector<128x128xf32>
      %25 = arith.mulf %24, %24 : vector<128x128xf32>
      %cst_18 = arith.constant dense<0.000000e+00> : vector<128xf32>
      %26 = vector.multi_reduction <add>, %25, %cst_18 [1] : vector<128x128xf32> to vector<128xf32>
      %27 = vector.shape_cast %26 : vector<128xf32> to vector<128x1xf32>
      %cst_19 = arith.constant 1.280000e+02 : f32
      %28 = vector.broadcast %cst_19 : f32 to vector<128x1xf32>
      %29 = arith.divf %27, %28 : vector<128x1xf32>
      %30 = vector.broadcast %22 : vector<128x1xf32> to vector<128x128xf32>
      %31 = arith.subf %18, %30 : vector<128x128xf32>
      %cst_20 = arith.constant 9.99999974E-6 : f32
      %32 = vector.broadcast %cst_20 : f32 to vector<128x1xf32>
      %33 = arith.addf %29, %32 : vector<128x1xf32>
      %34 = math.rsqrt %33 : vector<128x1xf32>
      %35 = vector.broadcast %34 : vector<128x1xf32> to vector<128x128xf32>
      %36 = arith.mulf %31, %35 : vector<128x128xf32>
      %c0_21 = arith.constant 0 : index
      %c0_22 = arith.constant 0 : index
      %37 = vector.load %arg6[%c0_21, %c0_22] : memref<1x128xf32, #tpu.memory_space<vmem>>, vector<1x128xf32>
      %38 = vector.broadcast %37 : vector<1x128xf32> to vector<128x128xf32>
      %39 = arith.mulf %36, %38 : vector<128x128xf32>
      %c0_23 = arith.constant 0 : index
      %c0_24 = arith.constant 0 : index
      %40 = vector.load %arg7[%c0_23, %c0_24] : memref<1x128xf32, #tpu.memory_space<vmem>>, vector<1x128xf32>
      %41 = vector.broadcast %40 : vector<1x128xf32> to vector<128x128xf32>
      %42 = arith.addf %39, %41 : vector<128x128xf32>
      %43 = arith.truncf %42 : vector<128x128xf32> to vector<128x128xbf16>
      %c0_25 = arith.constant 0 : index
      %c0_26 = arith.constant 0 : index
      %44 = vector.load %arg8[%c0_25, %c0_26] : memref<128x128xbf16, #tpu.memory_space<vmem>>, vector<128x128xbf16>
      tpu.vector_store %arg8[%c0_25, %c0_26], %43 {strides = array<i32>} : memref<128x128xbf16, #tpu.memory_space<vmem>>, vector<128x128xbf16>,
    } else {
    }
    return
  }
  func.func @transform_0(%arg0: i32, %arg1: i32) -> (i32, i32) {
    %c0_i32 = arith.constant 0 : i32
    return %arg0, %arg1 : i32, i32
  }
  func.func @transform_1(%arg0: i32, %arg1: i32) -> (i32, i32) {
    %c0_i32 = arith.constant 0 : i32
    %c0_i32_0 = arith.constant 0 : i32
    return %arg1, %c0_i32 : i32, i32
  }
  func.func @transform_2(%arg0: i32, %arg1: i32) -> (i32, i32) {
    %c0_i32 = arith.constant 0 : i32
    %c0_i32_0 = arith.constant 0 : i32
    %c0_i32_1 = arith.constant 0 : i32
    return %c0_i32, %c0_i32_0 : i32, i32
  }
  func.func @transform_3(%arg0: i32, %arg1: i32) -> (i32, i32) {
    %c0_i32 = arith.constant 0 : i32
    %c0_i32_0 = arith.constant 0 : i32
    return %arg0, %c0_i32 : i32, i32
  }
  func.func @transform_4(%arg0: i32, %arg1: i32) -> (i32, i32) {
    %c0_i32 = arith.constant 0 : i32
    %c0_i32_0 = arith.constant 0 : i32
    %c0_i32_1 = arith.constant 0 : i32
    return %c0_i32, %c0_i32_0 : i32, i32
  }
  func.func @transform_5(%arg0: i32, %arg1: i32) -> (i32, i32) {
    %c0_i32 = arith.constant 0 : i32
    %c0_i32_0 = arith.constant 0 : i32
    %c0_i32_1 = arith.constant 0 : i32
    return %c0_i32, %c0_i32_0 : i32, i32
  }
  func.func @transform_6(%arg0: i32, %arg1: i32) -> (i32, i32) {
    %c0_i32 = arith.constant 0 : i32
    %c0_i32_0 = arith.constant 0 : i32
    return %arg0, %c0_i32 : i32, i32
  }
}

module attributes {stable_mosaic.version = 11 : i64} {
  func.func @_matmul_residual_ln_kernel(%arg0: i32, %arg1: i32, %arg2: memref<128x256xbf16, #tpu.memory_space<vmem>>, %arg3: memref<256x128xbf16, #tpu.memory_space<vmem>>, %arg4: memref<1x128xf32, #tpu.memory_space<vmem>>, %arg5: memref<128x128xbf16, #tpu.memory_space<vmem>>, %arg6: memref<1x128xf32, #tpu.memory_space<vmem>>, %arg7: memref<1x128xf32, #tpu.memory_space<vmem>>, %arg8: memref<1x128xf32, #tpu.memory_space<vmem>>, %arg9: memref<1x128xf32, #tpu.memory_space<vmem>>, %arg10: memref<128x128xf32, #tpu.memory_space<vmem>>, %arg11: memref<128x128xf32, #tpu.memory_space<vmem>>) attributes {dimension_semantics = [#tpu.dimension_semantics<parallel>, #tpu.dimension_semantics<arbitrary>], iteration_bounds = array<i64: 1, 1>, scalar_prefetch = 0 : i64, scratch_operands = 1 : i64, tpu.core_type = #tpu.core_type<tc>, window_params = [{transform_indices = @transform_0, window_bounds = array<i64: 128, 256>}, {transform_indices = @transform_1, window_bounds = array<i64: 256, 128>}, {pipeline_mode = #tpu.pipeline_mode<synchronous>, transform_indices = @transform_2, window_bounds = array<i64: 1, 128>}, {transform_indices = @transform_3, window_bounds = array<i64: 128, 128>}, {pipeline_mode = #tpu.pipeline_mode<synchronous>, transform_indices = @transform_4, window_bounds = array<i64: 1, 128>}, {pipeline_mode = #tpu.pipeline_mode<synchronous>, transform_indices = @transform_5, window_bounds = array<i64: 1, 128>}, {pipeline_mode = #tpu.pipeline_mode<synchronous>, transform_indices = @transform_6, window_bounds = array<i64: 1, 128>}, {pipeline_mode = #tpu.pipeline_mode<synchronous>, transform_indices = @transform_7, window_bounds = array<i64: 1, 128>}, {transform_indices = @transform_8, window_bounds = array<i64: 128, 128>}]} {
    %c0_i32 = arith.constant 0 : i32
    %0 = arith.cmpi eq, %arg1, %c0_i32 : i32
    %1 = arith.extui %0 : i1 to i32
    %c0_i32_0 = arith.constant 0 : i32
    %2 = arith.cmpi ne, %1, %c0_i32_0 : i32
    scf.if %2 {
      %cst_10 = arith.constant 0.000000e+00 : f32
      %12 = vector.broadcast %cst_10 : f32 to vector<128x128xf32>
      %c0_11 = arith.constant 0 : index
      %c0_12 = arith.constant 0 : index
      %13 = vector.load %arg11[%c0_11, %c0_12] : memref<128x128xf32, #tpu.memory_space<vmem>>, vector<128x128xf32>
      tpu.vector_store %arg11[%c0_11, %c0_12], %12 {strides = array<i32>} : memref<128x128xf32, #tpu.memory_space<vmem>>, vector<128x128xf32>,
    } else {
    }
    %c0 = arith.constant 0 : index
    %c0_1 = arith.constant 0 : index
    %3 = vector.load %arg11[%c0, %c0_1] : memref<128x128xf32, #tpu.memory_space<vmem>>, vector<128x128xf32>
    %c0_2 = arith.constant 0 : index
    %c0_3 = arith.constant 0 : index
    %4 = vector.load %arg2[%c0_2, %c0_3] : memref<128x256xbf16, #tpu.memory_space<vmem>>, vector<128x256xbf16>
    %c0_4 = arith.constant 0 : index
    %c0_5 = arith.constant 0 : index
    %5 = vector.load %arg3[%c0_4, %c0_5] : memref<256x128xbf16, #tpu.memory_space<vmem>>, vector<256x128xbf16>
    %cst = arith.constant dense<0.000000e+00> : vector<128x128xf32>
    %6 = tpu.matmul %4, %5, %cst {dimension_numbers = #tpu.dot_dimension_numbers<[1], [0], [0], [1], [0, 0, 1, 1], [], []>} : vector<128x256xbf16>, vector<256x128xbf16>, vector<128x128xf32> -> vector<128x128xf32>
    %7 = arith.addf %3, %6 : vector<128x128xf32>
    %c0_6 = arith.constant 0 : index
    %c0_7 = arith.constant 0 : index
    %8 = vector.load %arg11[%c0_6, %c0_7] : memref<128x128xf32, #tpu.memory_space<vmem>>, vector<128x128xf32>
    tpu.vector_store %arg11[%c0_6, %c0_7], %7 {strides = array<i32>} : memref<128x128xf32, #tpu.memory_space<vmem>>, vector<128x128xf32>,
    %c0_i32_8 = arith.constant 0 : i32
    %9 = arith.cmpi eq, %arg1, %c0_i32_8 : i32
    %10 = arith.extui %9 : i1 to i32
    %c0_i32_9 = arith.constant 0 : i32
    %11 = arith.cmpi ne, %10, %c0_i32_9 : i32
    scf.if %11 {
      %c0_10 = arith.constant 0 : index
      %c0_11 = arith.constant 0 : index
      %12 = vector.load %arg11[%c0_10, %c0_11] : memref<128x128xf32, #tpu.memory_space<vmem>>, vector<128x128xf32>
      %c0_12 = arith.constant 0 : index
      %c0_13 = arith.constant 0 : index
      %13 = vector.load %arg4[%c0_12, %c0_13] : memref<1x128xf32, #tpu.memory_space<vmem>>, vector<1x128xf32>
      %14 = vector.broadcast %13 : vector<1x128xf32> to vector<128x128xf32>
      %15 = arith.addf %12, %14 : vector<128x128xf32>
      %c0_14 = arith.constant 0 : index
      %c0_15 = arith.constant 0 : index
      %16 = vector.load %arg5[%c0_14, %c0_15] : memref<128x128xbf16, #tpu.memory_space<vmem>>, vector<128x128xbf16>
      %17 = arith.extf %16 : vector<128x128xbf16> to vector<128x128xf32>
      %18 = arith.addf %15, %17 : vector<128x128xf32>
      %cst_16 = arith.constant dense<0.000000e+00> : vector<128xf32>
      %19 = vector.multi_reduction <add>, %18, %cst_16 [1] : vector<128x128xf32> to vector<128xf32>
      %20 = vector.shape_cast %19 : vector<128xf32> to vector<128x1xf32>
      %cst_17 = arith.constant 1.280000e+02 : f32
      %21 = vector.broadcast %cst_17 : f32 to vector<128x1xf32>
      %22 = arith.divf %20, %21 : vector<128x1xf32>
      %23 = vector.broadcast %22 : vector<128x1xf32> to vector<128x128xf32>
      %24 = arith.subf %18, %23 : vector<128x128xf32>
      %25 = arith.mulf %24, %24 : vector<128x128xf32>
      %cst_18 = arith.constant dense<0.000000e+00> : vector<128xf32>
      %26 = vector.multi_reduction <add>, %25, %cst_18 [1] : vector<128x128xf32> to vector<128xf32>
      %27 = vector.shape_cast %26 : vector<128xf32> to vector<128x1xf32>
      %cst_19 = arith.constant 1.280000e+02 : f32
      %28 = vector.broadcast %cst_19 : f32 to vector<128x1xf32>
      %29 = arith.divf %27, %28 : vector<128x1xf32>
      %30 = vector.broadcast %22 : vector<128x1xf32> to vector<128x128xf32>
      %31 = arith.subf %18, %30 : vector<128x128xf32>
      %cst_20 = arith.constant 9.99999974E-6 : f32
      %32 = vector.broadcast %cst_20 : f32 to vector<128x1xf32>
      %33 = arith.addf %29, %32 : vector<128x1xf32>
      %34 = math.rsqrt %33 : vector<128x1xf32>
      %35 = vector.broadcast %34 : vector<128x1xf32> to vector<128x128xf32>
      %36 = arith.mulf %31, %35 : vector<128x128xf32>
      %c0_21 = arith.constant 0 : index
      %c0_22 = arith.constant 0 : index
      %37 = vector.load %arg6[%c0_21, %c0_22] : memref<1x128xf32, #tpu.memory_space<vmem>>, vector<1x128xf32>
      %38 = vector.broadcast %37 : vector<1x128xf32> to vector<128x128xf32>
      %39 = arith.mulf %36, %38 : vector<128x128xf32>
      %c0_23 = arith.constant 0 : index
      %c0_24 = arith.constant 0 : index
      %40 = vector.load %arg7[%c0_23, %c0_24] : memref<1x128xf32, #tpu.memory_space<vmem>>, vector<1x128xf32>
      %41 = vector.broadcast %40 : vector<1x128xf32> to vector<128x128xf32>
      %42 = arith.addf %39, %41 : vector<128x128xf32>
      %cst_25 = arith.constant dense<0.000000e+00> : vector<128xf32>
      %43 = vector.multi_reduction <add>, %42, %cst_25 [1] : vector<128x128xf32> to vector<128xf32>
      %44 = vector.shape_cast %43 : vector<128xf32> to vector<128x1xf32>
      %cst_26 = arith.constant 1.280000e+02 : f32
      %45 = vector.broadcast %cst_26 : f32 to vector<128x1xf32>
      %46 = arith.divf %44, %45 : vector<128x1xf32>
      %47 = vector.broadcast %46 : vector<128x1xf32> to vector<128x128xf32>
      %48 = arith.subf %42, %47 : vector<128x128xf32>
      %49 = arith.mulf %48, %48 : vector<128x128xf32>
      %cst_27 = arith.constant dense<0.000000e+00> : vector<128xf32>
      %50 = vector.multi_reduction <add>, %49, %cst_27 [1] : vector<128x128xf32> to vector<128xf32>
      %51 = vector.shape_cast %50 : vector<128xf32> to vector<128x1xf32>
      %cst_28 = arith.constant 1.280000e+02 : f32
      %52 = vector.broadcast %cst_28 : f32 to vector<128x1xf32>
      %53 = arith.divf %51, %52 : vector<128x1xf32>
      %54 = vector.broadcast %46 : vector<128x1xf32> to vector<128x128xf32>
      %55 = arith.subf %42, %54 : vector<128x128xf32>
      %cst_29 = arith.constant 9.99999974E-6 : f32
      %56 = vector.broadcast %cst_29 : f32 to vector<128x1xf32>
      %57 = arith.addf %53, %56 : vector<128x1xf32>
      %58 = math.rsqrt %57 : vector<128x1xf32>
      %59 = vector.broadcast %58 : vector<128x1xf32> to vector<128x128xf32>
      %60 = arith.mulf %55, %59 : vector<128x128xf32>
      %c0_30 = arith.constant 0 : index
      %c0_31 = arith.constant 0 : index
      %61 = vector.load %arg8[%c0_30, %c0_31] : memref<1x128xf32, #tpu.memory_space<vmem>>, vector<1x128xf32>
      %62 = vector.broadcast %61 : vector<1x128xf32> to vector<128x128xf32>
      %63 = arith.mulf %60, %62 : vector<128x128xf32>
      %c0_32 = arith.constant 0 : index
      %c0_33 = arith.constant 0 : index
      %64 = vector.load %arg9[%c0_32, %c0_33] : memref<1x128xf32, #tpu.memory_space<vmem>>, vector<1x128xf32>
      %65 = vector.broadcast %64 : vector<1x128xf32> to vector<128x128xf32>
      %66 = arith.addf %63, %65 : vector<128x128xf32>
      %c0_34 = arith.constant 0 : index
      %c0_35 = arith.constant 0 : index
      %67 = vector.load %arg10[%c0_34, %c0_35] : memref<128x128xf32, #tpu.memory_space<vmem>>, vector<128x128xf32>
      tpu.vector_store %arg10[%c0_34, %c0_35], %66 {strides = array<i32>} : memref<128x128xf32, #tpu.memory_space<vmem>>, vector<128x128xf32>,
    } else {
    }
    return
  }
  func.func @transform_0(%arg0: i32, %arg1: i32) -> (i32, i32) {
    %c0_i32 = arith.constant 0 : i32
    return %arg0, %arg1 : i32, i32
  }
  func.func @transform_1(%arg0: i32, %arg1: i32) -> (i32, i32) {
    %c0_i32 = arith.constant 0 : i32
    %c0_i32_0 = arith.constant 0 : i32
    return %arg1, %c0_i32 : i32, i32
  }
  func.func @transform_2(%arg0: i32, %arg1: i32) -> (i32, i32) {
    %c0_i32 = arith.constant 0 : i32
    %c0_i32_0 = arith.constant 0 : i32
    %c0_i32_1 = arith.constant 0 : i32
    return %c0_i32, %c0_i32_0 : i32, i32
  }
  func.func @transform_3(%arg0: i32, %arg1: i32) -> (i32, i32) {
    %c0_i32 = arith.constant 0 : i32
    %c0_i32_0 = arith.constant 0 : i32
    return %arg0, %c0_i32 : i32, i32
  }
  func.func @transform_4(%arg0: i32, %arg1: i32) -> (i32, i32) {
    %c0_i32 = arith.constant 0 : i32
    %c0_i32_0 = arith.constant 0 : i32
    %c0_i32_1 = arith.constant 0 : i32
    return %c0_i32, %c0_i32_0 : i32, i32
  }
  func.func @transform_5(%arg0: i32, %arg1: i32) -> (i32, i32) {
    %c0_i32 = arith.constant 0 : i32
    %c0_i32_0 = arith.constant 0 : i32
    %c0_i32_1 = arith.constant 0 : i32
    return %c0_i32, %c0_i32_0 : i32, i32
  }
  func.func @transform_6(%arg0: i32, %arg1: i32) -> (i32, i32) {
    %c0_i32 = arith.constant 0 : i32
    %c0_i32_0 = arith.constant 0 : i32
    %c0_i32_1 = arith.constant 0 : i32
    return %c0_i32, %c0_i32_0 : i32, i32
  }
  func.func @transform_7(%arg0: i32, %arg1: i32) -> (i32, i32) {
    %c0_i32 = arith.constant 0 : i32
    %c0_i32_0 = arith.constant 0 : i32
    %c0_i32_1 = arith.constant 0 : i32
    return %c0_i32, %c0_i32_0 : i32, i32
  }
  func.func @transform_8(%arg0: i32, %arg1: i32) -> (i32, i32) {
    %c0_i32 = arith.constant 0 : i32
    %c0_i32_0 = arith.constant 0 : i32
    return %arg0, %c0_i32 : i32, i32
  }
}

</mosaic_0001>

<bundles_post_ra>
// kernel: encoder_forward.12
= control target key start
LH: loop header
LB: loop body
LE: loop exit
PB: predicated region body
PF: predicated region fallthrough
CT: control target
= control target key end

     0   :  { %s1537_s1 = inlined_call_operand.vmem [shape: bf16[128,128], index: 1, kind: input, shape index: {}]   ;;  %s1538_s2 = inlined_call_operand.vmem [shape: f32[1,128], index: 2, kind: input, shape index: {}]   ;;  %s1539_s0 = inlined_call_operand.vmem [shape: bf16[128,128], index: 0, kind: input, shape index: {}]   ;;  %s1540_s3 = inlined_call_operand.vmem [shape: bf16[128,128], index: 3, kind: input, shape index: {}]   ;;  %s1541_s4 = inlined_call_operand.vmem [shape: f32[1,128], index: 4, kind: input, shape index: {}]   ;;  %s1542_s5 = inlined_call_operand.vmem [shape: f32[1,128], index: 5, kind: input, shape index: {}]   ;;  %s1543_s6 = inlined_call_operand.vmem [shape: bf16[128,128], index: 6, kind: output, shape index: {}]  }
   0x1   :  { %v837_v0 = vld [vmem:[%s1537_s1 + $0x38] sm:$0xff]  ;;  %v836_v1 = vld [vmem:[%s1537_s1 + $0x30] sm:$0xff]  ;;  %v835_v2 = vld [vmem:[%s1537_s1 + $0x28] sm:$0xff] }
   0x2   :  { %187 = vmatpush.bf16.msra.mxu0 %v837_v0  ;;  %924 = vmatpush.bf16.msra.mxu1 %v837_v0  ;;  %v834_v3 = vld [vmem:[%s1537_s1 + $0x20] sm:$0xff]  ;;  %v833_v4 = vld [vmem:[%s1537_s1 + $0x18] sm:$0xff]  ;;  %v832_v5 = vld [vmem:[%s1537_s1 + $0x10] sm:$0xff] }
   0x3   :  { %925 = vmatpush.bf16.msra.mxu2 %v837_v0  ;;  %926 = vmatpush.bf16.msra.mxu3 %v837_v0  ;;  %v831_v6 = vld [vmem:[%s1537_s1 + $0x8] sm:$0xff]  ;;  %v830_v7 = vld [vmem:[%s1537_s1] sm:$0xff]  ;;  %v824_v9 = vld [vmem:[%s1539_s0 + $0x10] sm:$0xff] }
   0x4   :  { %v822_v8 = vld [vmem:[%s1539_s0] sm:$0xff]  ;;  %v828_v11 = vld [vmem:[%s1539_s0 + $0x30] sm:$0xff]  ;;  %v823_v12 = vld [vmem:[%s1539_s0 + $0x8] sm:$0xff] }
   0x5   :  { %v826_v10 = vld [vmem:[%s1539_s0 + $0x20] sm:$0xff]  ;;  %v825_v13 = vld [vmem:[%s1539_s0 + $0x18] sm:$0xff]  ;;  %v827_v14 = vld [vmem:[%s1539_s0 + $0x28] sm:$0xff] }
   0x6   :  { %188 = vmatpush.bf16.msra.mxu0 %v836_v1  ;;  %927 = vmatpush.bf16.msra.mxu1 %v836_v1  ;;  %v829_v15 = vld [vmem:[%s1539_s0 + $0x38] sm:$0xff]  ;;  %v911_v16 = vld [vmem:[%s1540_s3 + $0x10] sm:$0xff]   ;;  %v839_v17 = vld [vmem:[%s1540_s3] sm:$0xff]  }
   0x7   :  { %928 = vmatpush.bf16.msra.mxu2 %v836_v1  ;;  %929 = vmatpush.bf16.msra.mxu3 %v836_v1  ;;  %v1079_v18 = vld [vmem:[%s1538_s2] ss:$0 sm:$0xff]  ;;  %v848_v19 = vunpack.c.l.bf16 %v911_v16  ;;  %v840_v20 = vunpack.c.l.bf16 %v839_v17  ;;  %v915_v28 = vld [vmem:[%s1540_s3 + $0x30] sm:$0xff]   ;;  %v849_v44 = vunpack.c.h.bf16 %v911_v16  ;;  %v841_v45 = vunpack.c.h.bf16 %v839_v17  ;;  %v910_v47 = vld [vmem:[%s1540_s3 + $0x8] sm:$0xff]  }
   0x8   :  { %v913_v27 = vld [vmem:[%s1540_s3 + $0x20] sm:$0xff]   ;;  %v864_v32 = vunpack.c.l.bf16 %v915_v28  ;;  %v865_v39 = vunpack.c.h.bf16 %v915_v28  ;;  %v844_v53 = vunpack.c.l.bf16 %v910_v47  ;;  %v914_v59 = vld [vmem:[%s1540_s3 + $0x28] sm:$0xff]   ;;  %v912_v60 = vld [vmem:[%s1540_s3 + $0x18] sm:$0xff]   ;;  %v845_v17 = vunpack.c.h.bf16 %v910_v47 }
   0x9   :  { %v856_v29 = vunpack.c.l.bf16 %v913_v27  ;;  %v857_v56 = vunpack.c.h.bf16 %v913_v27  ;;  %v860_v0 = vunpack.c.l.bf16 %v914_v59  ;;  %v986_v28 = vmov 128.0  }
   0xa   :  { %189 = vmatpush.bf16.msra.mxu0 %v835_v2  ;;  %930 = vmatpush.bf16.msra.mxu1 %v835_v2  ;;  %952 = vrcp.f32 %v986_v28 }
   0xb   :  { %931 = vmatpush.bf16.msra.mxu2 %v835_v2  ;;  %932 = vmatpush.bf16.msra.mxu3 %v835_v2  ;;  %v852_v2 = vunpack.c.l.bf16 %v912_v60 }
   0xe   :  { %190 = vmatpush.bf16.msra.mxu0 %v834_v3  ;;  %933 = vmatpush.bf16.msra.mxu1 %v834_v3 }
   0xf   :  { %934 = vmatpush.bf16.msra.mxu2 %v834_v3  ;;  %935 = vmatpush.bf16.msra.mxu3 %v834_v3  ;;  %v861_v3 = vunpack.c.h.bf16 %v914_v59 }
  0x12   :  { %191 = vmatpush.bf16.msra.mxu0 %v833_v4  ;;  %936 = vmatpush.bf16.msra.mxu1 %v833_v4 }
  0x13   :  { %937 = vmatpush.bf16.msra.mxu2 %v833_v4  ;;  %938 = vmatpush.bf16.msra.mxu3 %v833_v4 }
  0x16   :  { %192 = vmatpush.bf16.msra.mxu0 %v832_v5  ;;  %939 = vmatpush.bf16.msra.mxu1 %v832_v5 }
  0x17   :  { %940 = vmatpush.bf16.msra.mxu2 %v832_v5  ;;  %941 = vmatpush.bf16.msra.mxu3 %v832_v5 }
  0x1a   :  { %193 = vmatpush.bf16.msra.mxu0 %v831_v6  ;;  %942 = vmatpush.bf16.msra.mxu1 %v831_v6 }
  0x1b   :  { %943 = vmatpush.bf16.msra.mxu2 %v831_v6  ;;  %944 = vmatpush.bf16.msra.mxu3 %v831_v6 }
  0x1e   :  { %194 = vmatpush.bf16.msra.mxu0 %v830_v7  ;;  %945 = vmatpush.bf16.msra.mxu1 %v830_v7 }
  0x1f   :  { %946 = vmatpush.bf16.msra.mxu2 %v830_v7  ;;  %947 = vmatpush.bf16.msra.mxu3 %v830_v7 }
  0x21   :  { %195 = vmatmul.bf16.vlgmr.msra.gmra.mxu0 %v822_v8  ;;  %205 = vmatmul.bf16.vlgmr.msra.gmra.mxu1 %v824_v9  ;;  %v916_v8 = vld [vmem:[%s1540_s3 + $0x38] sm:$0xff]  }
  0x22   :  { %215 = vmatmul.bf16.vlgmr.msra.gmra.mxu2 %v826_v10  ;;  %225 = vmatmul.bf16.vlgmr.msra.gmra.mxu3 %v828_v11 }
  0x31   :  { %200 = vmatmul.bf16.gmra.mxu0 %v823_v12  ;;  %210 = vmatmul.bf16.gmra.mxu1 %v825_v13  ;;  %v868_v13 = vunpack.c.l.bf16 %v916_v8 }
  0x32   :  { %220 = vmatmul.bf16.gmra.mxu2 %v827_v14  ;;  %230 = vmatmul.bf16.gmra.mxu3 %v829_v15  ;;  %v869_v15 = vunpack.c.h.bf16 %v916_v8 }
  0x9e   :  { %v196_v21 = vpop.f32.mrf.mxu0  ;;  %v206_v22 = vpop.f32.mrf.mxu1 }
  0x9f   :  { %v291_v23 = vadd.f32 %v1079_v18, %v196_v21  ;;  %v295_v24 = vadd.f32 %v1079_v18, %v206_v22 }
  0xa1   :  { %v1083_v25 = vadd.f32 %v848_v19, %v295_v24  ;;  %v1085_v26 = vadd.f32 %v840_v20, %v291_v23  ;;  %v853_v24 = vunpack.c.h.bf16 %v912_v60 }
  0xa3   :  { %363 = vadd.xlane.f32.xlu2 %v1083_v25  ;;  %355 = vadd.xlane.f32.xlu0 %v1085_v26 }
  0xa5   :  { %v216_v30 = vpop.f32.mrf.mxu2  ;;  %v226_v31 = vpop.f32.mrf.mxu3 }
  0xa6   :  { %v299_v33 = vadd.f32 %v1079_v18, %v216_v30  ;;  %v303_v34 = vadd.f32 %v1079_v18, %v226_v31  ;;  %v198_v35 = vpop.f32.mrf.mxu0  ;;  %v208_v38 = vpop.f32.mrf.mxu1 }
  0xa7   :  { %v292_v40 = vadd.f32 %v1079_v18, %v198_v35  ;;  %v296_v41 = vadd.f32 %v1079_v18, %v208_v38 }
  0xa8   :  { %v1097_v36 = vadd.f32 %v856_v29, %v299_v33  ;;  %v1099_v37 = vadd.f32 %v864_v32, %v303_v34  ;;  %v953_v29 = vpop.eup %952 }
  0xa9   :  { %v1111_v50 = vadd.f32 %v849_v44, %v296_v41  ;;  %v1113_v51 = vadd.f32 %v841_v45, %v292_v40  ;;  %v388_v30 = vmul.f32 128.0, %v953_v29  ;;  %vm392_vm0 = vweird.f32 %v953_v29 }
  0xab   :  { %371 = vadd.xlane.f32.xlu2 %v1097_v36  ;;  %379 = vadd.xlane.f32.xlu0 %v1099_v37  ;;  %v389_v31 = vsub.f32 1.0, %v388_v30 }
  0xad   :  { %v218_v42 = vpop.f32.mrf.mxu2  ;;  %v228_v43 = vpop.f32.mrf.mxu3  ;;  %v390_v32 = vmul.f32 %v953_v29, %v389_v31 }
  0xae   :  { %v304_v46 = vadd.f32 %v1079_v18, %v228_v43  ;;  %v201_v49 = vpop.f32.mrf.mxu0  ;;  %v300_v54 = vadd.f32 %v1079_v18, %v218_v42  ;;  %v211_v63 = vpop.f32.mrf.mxu1 }
  0xaf   :  { %v293_v52 = vadd.f32 %v1079_v18, %v201_v49  ;;  %v297_v1 = vadd.f32 %v1079_v18, %v211_v63  ;;  %v391_v33 = vadd.f32 %v953_v29, %v390_v32 }
  0xb0   :  { %v1109_v48 = vadd.f32 %v865_v39, %v304_v46  ;;  %v1128_v61 = vadd.f32 %v857_v56, %v300_v54 }
  0xb1   :  { %v1120_v57 = vadd.f32 %v844_v53, %v293_v52  ;;  %v1137_v7 = vadd.f32 %v852_v2, %v297_v1  ;;  %v1163_v34 = vsel %vm392_vm0, %v953_v29, %v391_v33 }
  0xb2   :  { %381 = vadd.xlane.f32.xlu1 %v1109_v48 }
  0xb3   :  { %365 = vadd.xlane.f32.xlu2 %v1111_v50  ;;  %357 = vadd.xlane.f32.xlu0 %v1113_v51 }
  0xb5   :  { %v221_v55 = vpop.f32.mrf.mxu2  ;;  %v231_v58 = vpop.f32.mrf.mxu3 }
  0xb6   :  { %v301_v62 = vadd.f32 %v1079_v18, %v221_v55  ;;  %v203_v11 = vpop.f32.mrf.mxu0  ;;  %v305_v12 = vadd.f32 %v1079_v18, %v231_v58  ;;  %v213_v22 = vpop.f32.mrf.mxu1 }
  0xb7   :  { %v294_v16 = vadd.f32 %v1079_v18, %v203_v11  ;;  %v298_v23 = vadd.f32 %v1079_v18, %v213_v22 }
  0xb8   :  { %v1135_v6 = vadd.f32 %v860_v0, %v301_v62  ;;  %v1150_v19 = vadd.f32 %v868_v13, %v305_v12 }
  0xb9   :  { %v1154_v21 = vadd.f32 %v845_v17, %v294_v16  ;;  %v1160_v27 = vadd.f32 %v853_v24, %v298_v23 }
  0xba   :  { %359 = vadd.xlane.f32.xlu1 %v1120_v57 }
  0xbb   :  { %373 = vadd.xlane.f32.xlu0 %v1128_v61 }
  0xbd   :  { %v223_v4 = vpop.f32.mrf.mxu2  ;;  %v233_v10 = vpop.f32.mrf.mxu3 }
  0xbe   :  { %v302_v5 = vadd.f32 %v1079_v18, %v223_v4  ;;  %v306_v14 = vadd.f32 %v1079_v18, %v233_v10 }
  0xc0   :  { %v1142_v9 = vadd.f32 %v861_v3, %v302_v5  ;;  %v1152_v20 = vadd.f32 %v869_v15, %v306_v14 }
  0xc2   :  { %377 = vadd.xlane.f32.xlu2 %v1142_v9  ;;  %375 = vadd.xlane.f32.xlu1 %v1135_v6 }
  0xc3   :  { %367 = vadd.xlane.f32.xlu0 %v1137_v7 }
  0xca   :  { %383 = vadd.xlane.f32.xlu2 %v1150_v19  ;;  %361 = vadd.xlane.f32.xlu1 %v1154_v21 }
  0xcb   :  { %385 = vadd.xlane.f32.xlu0 %v1152_v20 }
  0xd2   :  { %369 = vadd.xlane.f32.xlu1 %v1160_v27 }
 0x116   :  { %v364_v35 = vpop.xlane.xlu2 %363  ;;  %v356_v38 = vpop.xlane.xlu0 %355 }
 0x117   :  { %v398_v39 = vmul.f32 %v1163_v34, %v364_v35  ;;  %v394_v18 = vmul.f32 %v1163_v34, %v356_v38 }
 0x119   :  { %v1168_v40 = vsub.f32 %v1083_v25, %v398_v39  ;;  %v1171_v41 = vsub.f32 %v1085_v26, %v394_v18 }
 0x11b   :  { %v430_v42 = vmul.f32 %v1168_v40, %v1168_v40  ;;  %v426_v43 = vmul.f32 %v1171_v41, %v1171_v41 }
 0x11d   :  { %450 = vadd.xlane.f32.xlu2 %v430_v42  ;;  %442 = vadd.xlane.f32.xlu1 %v426_v43 }
 0x11e   :  { %v372_v44 = vpop.xlane.xlu2 %371  ;;  %v380_v45 = vpop.xlane.xlu0 %379 }
 0x11f   :  { %v402_v46 = vmul.f32 %v1163_v34, %v372_v44  ;;  %v406_v47 = vmul.f32 %v1163_v34, %v380_v45 }
 0x121   :  { %v1180_v25 = vsub.f32 %v1097_v36, %v402_v46  ;;  %v1183_v26 = vsub.f32 %v1099_v37, %v406_v47 }
 0x123   :  { %v434_v49 = vmul.f32 %v1180_v25, %v1180_v25  ;;  %v438_v52 = vmul.f32 %v1183_v26, %v1183_v26 }
 0x125   :  { %v382_v53 = vpop.xlane.xlu1 %381  ;;  %458 = vadd.xlane.f32.xlu0 %v434_v49  ;;  %466 = vadd.xlane.f32.xlu1 %v438_v52 }
 0x126   :  { %v366_v54 = vpop.xlane.xlu2 %365  ;;  %v358_v55 = vpop.xlane.xlu0 %357  ;;  %v407_v33 = vmul.f32 %v1163_v34, %v382_v53 }
 0x127   :  { %v399_v56 = vmul.f32 %v1163_v34, %v366_v54  ;;  %v395_v58 = vmul.f32 %v1163_v34, %v358_v55 }
 0x128   :  { %v1257_v39 = vsub.f32 %v1109_v48, %v407_v33 }
 0x129   :  { %v1192_v36 = vsub.f32 %v1111_v50, %v399_v56  ;;  %v1195_v37 = vsub.f32 %v1113_v51, %v395_v58 }
 0x12b   :  { %v431_v59 = vmul.f32 %v1192_v36, %v1192_v36  ;;  %v427_v60 = vmul.f32 %v1195_v37, %v1195_v37 }
 0x12d   :  { %v360_v62 = vpop.xlane.xlu1 %359  ;;  %452 = vadd.xlane.f32.xlu0 %v431_v59  ;;  %444 = vadd.xlane.f32.xlu2 %v427_v60 }
 0x12e   :  { %v396_v63 = vmul.f32 %v1163_v34, %v360_v62  ;;  %v374_v0 = vpop.xlane.xlu0 %373 }
 0x12f   :  { %v403_v1 = vmul.f32 %v1163_v34, %v374_v0 }
 0x130   :  { %v1204_v50 = vsub.f32 %v1120_v57, %v396_v63 }
 0x131   :  { %v1207_v51 = vsub.f32 %v1128_v61, %v403_v1 }
 0x132   :  { %v428_v2 = vmul.f32 %v1204_v50, %v1204_v50 }
 0x133   :  { %v435_v3 = vmul.f32 %v1207_v51, %v1207_v51 }
 0x135   :  { %v378_v4 = vpop.xlane.xlu2 %377  ;;  %v376_v5 = vpop.xlane.xlu1 %375  ;;  %446 = vadd.xlane.f32.xlu0 %v428_v2  ;;  %460 = vadd.xlane.f32.xlu1 %v435_v3 }
 0x136   :  { %v405_v8 = vmul.f32 %v1163_v34, %v378_v4  ;;  %v404_v10 = vmul.f32 %v1163_v34, %v376_v5  ;;  %v368_v11 = vpop.xlane.xlu0 %367 }
 0x137   :  { %v400_v57 = vmul.f32 %v1163_v34, %v368_v11 }
 0x138   :  { %v1217_v61 = vsub.f32 %v1142_v9, %v405_v8  ;;  %v1220_v12 = vsub.f32 %v1135_v6, %v404_v10 }
 0x139   :  { %v1223_v13 = vsub.f32 %v1137_v7, %v400_v57 }
 0x13a   :  { %v436_v14 = vmul.f32 %v1220_v12, %v1220_v12  ;;  %v437_v15 = vmul.f32 %v1217_v61, %v1217_v61 }
 0x13b   :  { %v432_v16 = vmul.f32 %v1223_v13, %v1223_v13 }
 0x13c   :  { %462 = vadd.xlane.f32.xlu2 %v436_v14 }
 0x13d   :  { %v384_v17 = vpop.xlane.xlu2 %383  ;;  %v362_v22 = vpop.xlane.xlu1 %361  ;;  %464 = vadd.xlane.f32.xlu0 %v437_v15  ;;  %454 = vadd.xlane.f32.xlu1 %v432_v16 }
 0x13e   :  { %v408_v6 = vmul.f32 %v1163_v34, %v384_v17  ;;  %v397_v9 = vmul.f32 %v1163_v34, %v362_v22  ;;  %v386_v24 = vpop.xlane.xlu0 %385 }
 0x13f   :  { %v409_v28 = vmul.f32 %v1163_v34, %v386_v24 }
 0x140   :  { %v1234_v7 = vsub.f32 %v1150_v19, %v408_v6  ;;  %v1237_v23 = vsub.f32 %v1154_v21, %v397_v9 }
 0x141   :  { %v1246_v19 = vsub.f32 %v1152_v20, %v409_v28  ;;  %v439_v20 = vmul.f32 %v1257_v39, %v1257_v39 }
 0x142   :  { %v440_v29 = vmul.f32 %v1234_v7, %v1234_v7  ;;  %v429_v30 = vmul.f32 %v1237_v23, %v1237_v23 }
 0x143   :  { %v441_v38 = vmul.f32 %v1246_v19, %v1246_v19 }
 0x145   :  { %v370_v31 = vpop.xlane.xlu1 %369  ;;  %470 = vadd.xlane.f32.xlu0 %v440_v29  ;;  %448 = vadd.xlane.f32.xlu1 %v429_v30 }
 0x146   :  { %v401_v32 = vmul.f32 %v1163_v34, %v370_v31 }
 0x148   :  { %v1249_v21 = vsub.f32 %v1160_v27, %v401_v32 }
 0x14a   :  { %v433_v35 = vmul.f32 %v1249_v21, %v1249_v21 }
 0x14c   :  { %456 = vadd.xlane.f32.xlu2 %v433_v35 }
 0x14d   :  { %472 = vadd.xlane.f32.xlu1 %v441_v38 }
 0x154   :  { %468 = vadd.xlane.f32.xlu2 %v439_v20 }
 0x190   :  { %v451_v18 = vpop.xlane.xlu2 %450  ;;  %v443_v27 = vpop.xlane.xlu1 %442 }
 0x191   :  { %v478_v42 = vmul.f32 %v451_v18, %v1163_v34  ;;  %v474_v43 = vmul.f32 %v443_v27, %v1163_v34 }
 0x193   :  { %v494_v44 = vadd.f32 1e-05, %v478_v42  ;;  %v490_v45 = vadd.f32 1e-05, %v474_v43 }
 0x195   :  { %954 = vrsqrt.f32 %v494_v44  ;;  %vm552_vm2 = vweird.f32 %v494_v44  ;;  %vm512_vm5 = vweird.f32 %v490_v45 }
 0x196   :  { %956 = vrsqrt.f32 %v490_v45 }
 0x198   :  { %v459_v46 = vpop.xlane.xlu0 %458  ;;  %v467_v58 = vpop.xlane.xlu1 %466 }
 0x199   :  { %v482_v47 = vmul.f32 %v459_v46, %v1163_v34  ;;  %v486_v6 = vmul.f32 %v467_v58, %v1163_v34 }
 0x19b   :  { %v955_v49 = vpop.eup %954  ;;  %v1264_v48 = vadd.f32 1e-05, %v482_v47  ;;  %v1306_v27 = vadd.f32 1e-05, %v486_v6 }
 0x19c   :  { %v1266_v52 = vpop.eup %956  ;;  %v547_v53 = vmul.f32 %v955_v49, %v494_v44  ;;  %vm553_vm1 = vweird.f32 %v955_v49 }
 0x19d   :  { %v507_v54 = vmul.f32 %v1266_v52, %v490_v45  ;;  %958 = vrsqrt.f32 %v1264_v48  ;;  %vm513_vm3 = vweird.f32 %v1266_v52  ;;  %vm554_vm4 = vmor %vm552_vm2, %vm553_vm1  ;;  %vm592_vm7 = vweird.f32 %v1264_v48 }
 0x19e   :  { %v548_v55 = vmul.f32 %v955_v49, %v547_v53  ;;  %vm1297_vm6 = vmor %vm512_vm5, %vm513_vm3 }
 0x19f   :  { %v508_v56 = vmul.f32 %v1266_v52, %v507_v54 }
 0x1a0   :  { %v445_v59 = vpop.xlane.xlu2 %444  ;;  %v453_v60 = vpop.xlane.xlu0 %452  ;;  %v549_v62 = vmul.f32 0.5, %v548_v55 }
 0x1a1   :  { %v475_v63 = vmul.f32 %v445_v59, %v1163_v34  ;;  %v479_v0 = vmul.f32 %v453_v60, %v1163_v34  ;;  %v509_v2 = vmul.f32 0.5, %v508_v56  ;;  %v1317_v56 = vld [vmem:[%s1541_s4] ss:$0 sm:$0xff] }
 0x1a2   :  { %v550_v8 = vsub.f32 1.5, %v549_v62 }
 0x1a3   :  { %v1273_v1 = vpop.eup %958  ;;  %v1275_v3 = vadd.f32 1e-05, %v475_v63  ;;  %v1277_v4 = vadd.f32 1e-05, %v479_v0  ;;  %v510_v11 = vsub.f32 1.5, %v509_v2 }
 0x1a4   :  { %v587_v5 = vmul.f32 %v1273_v1, %v1264_v48  ;;  %v551_v15 = vmul.f32 %v955_v49, %v550_v8  ;;  %vm593_vm8 = vweird.f32 %v1273_v1 }
 0x1a5   :  { %960 = vrsqrt.f32 %v1275_v3  ;;  %v511_v24 = vmul.f32 %v1266_v52, %v510_v11  ;;  %vm522_vm10 = vweird.f32 %v1275_v3  ;;  %vm1333_vm12 = vmor %vm592_vm7, %vm593_vm8  ;;  %vm562_vm13 = vweird.f32 %v1277_v4 }
 0x1a6   :  { %v588_v10 = vmul.f32 %v1273_v1, %v587_v5  ;;  %962 = vrsqrt.f32 %v1277_v4  ;;  %v555_v32 = vsel %vm554_vm4, %v955_v49, %v551_v15 }
 0x1a7   :  { %v515_v18 = vsel %vm1297_vm6, %v1266_v52, %v511_v24  ;;  %v670_v44 = vmul.f32 %v555_v32, %v1168_v40 }
 0x1a8   :  { %v447_v57 = vpop.xlane.xlu0 %446  ;;  %v461_v14 = vpop.xlane.xlu1 %460  ;;  %v589_v16 = vmul.f32 0.5, %v588_v10  ;;  %v666_v40 = vmul.f32 %v515_v18, %v1171_v41 }
 0x1a9   :  { %v476_v17 = vmul.f32 %v447_v57, %v1163_v34  ;;  %v483_v22 = vmul.f32 %v461_v14, %v1163_v34  ;;  %v690_v11 = vmul.f32 %v1317_v56, %v670_v44 }
 0x1aa   :  { %v590_v33 = vsub.f32 1.5, %v589_v16  ;;  %v686_v57 = vmul.f32 %v1317_v56, %v666_v40 }
 0x1ab   :  { %v961_v9 = vpop.eup %960  ;;  %v1289_v28 = vadd.f32 1e-05, %v476_v17  ;;  %v1291_v29 = vadd.f32 1e-05, %v483_v22 }
 0x1ac   :  { %v963_v30 = vpop.eup %962  ;;  %v517_v31 = vmul.f32 %v961_v9, %v1275_v3  ;;  %v591_v53 = vmul.f32 %v1273_v1, %v590_v33  ;;  %vm523_vm9 = vweird.f32 %v961_v9 }
 0x1ad   :  { %v557_v35 = vmul.f32 %v963_v30, %v1277_v4  ;;  %964 = vrsqrt.f32 %v1289_v28  ;;  %vm563_vm11 = vweird.f32 %v963_v30  ;;  %vm524_vm14 = vmor %vm522_vm10, %vm523_vm9  ;;  %v1351_v4 = vld [vmem:[%s1542_s5] ss:$0 sm:$0xff]  ;;  %vm602_vm0 = vweird.f32 %v1291_v29 }
 0x1ae   :  { %v518_v20 = vmul.f32 %v961_v9, %v517_v31  ;;  %966 = vrsqrt.f32 %v1291_v29  ;;  %v595_v8 = vsel %vm1333_vm12, %v1273_v1, %v591_v53  ;;  %vm564_vm15 = vmor %vm562_vm13, %vm563_vm11  ;;  %vm532_vm10 = vweird.f32 %v1289_v28 }
 0x1af   :  { %v558_v42 = vmul.f32 %v963_v30, %v557_v35  ;;  %v463_v43 = vpop.xlane.xlu2 %462  ;;  %v674_v17 = vmul.f32 %v595_v8, %v1180_v25  ;;  %v706_v35 = vadd.f32 %v1351_v4, %v686_v57 }
 0x1b0   :  { %v519_v45 = vmul.f32 0.5, %v518_v20  ;;  %v484_v46 = vmul.f32 %v463_v43, %v1163_v34  ;;  %v465_v47 = vpop.xlane.xlu0 %464  ;;  %v455_v49 = vpop.xlane.xlu1 %454 }
 0x1b1   :  { %v559_v54 = vmul.f32 0.5, %v558_v42  ;;  %v485_v52 = vmul.f32 %v465_v47, %v1163_v34  ;;  %v480_v55 = vmul.f32 %v455_v49, %v1163_v34  ;;  %v694_v43 = vmul.f32 %v1317_v56, %v674_v17 }
 0x1b2   :  { %v520_v58 = vsub.f32 1.5, %v519_v45  ;;  %v1320_v59 = vadd.f32 1e-05, %v484_v46 }
 0x1b3   :  { %v1322_v60 = vpop.eup %964  ;;  %v560_v62 = vsub.f32 1.5, %v559_v54  ;;  %v1325_v63 = vadd.f32 1e-05, %v485_v52  ;;  %v1340_v5 = vadd.f32 1e-05, %v480_v55  ;;  %v714_v8 = vadd.f32 %v1351_v4, %v694_v43 }
 0x1b4   :  { %v1327_v0 = vpop.eup %966  ;;  %v521_v2 = vmul.f32 %v961_v9, %v520_v58  ;;  %v527_v3 = vmul.f32 %v1322_v60, %v1289_v28  ;;  %968 = vrsqrt.f32 %v1320_v59  ;;  %vm612_vm4 = vweird.f32 %v1320_v59 }
 0x1b5   :  { %v561_v10 = vmul.f32 %v963_v30, %v560_v62  ;;  %v597_v48 = vmul.f32 %v1327_v0, %v1291_v29  ;;  %970 = vrsqrt.f32 %v1325_v63  ;;  %vm603_vm1 = vweird.f32 %v1327_v0 }
 0x1b6   :  { %v525_v14 = vsel %vm524_vm14, %v961_v9, %v521_v2  ;;  %972 = vrsqrt.f32 %v1306_v27  ;;  %v528_v6 = vmul.f32 %v1322_v60, %v527_v3  ;;  %vm604_vm2 = vmor %vm602_vm0, %vm603_vm1  ;;  %vm533_vm6 = vweird.f32 %v1322_v60 }
 0x1b7   :  { %v667_v1 = vmul.f32 %v525_v14, %v1195_v37  ;;  %v565_v15 = vsel %vm564_vm15, %v963_v30, %v561_v10  ;;  %v598_v16 = vmul.f32 %v1327_v0, %v597_v48  ;;  %974 = vrsqrt.f32 %v1340_v5  ;;  %vm1445_vm11 = vmor %vm532_vm10, %vm533_vm6 }
 0x1b8   :  { %v671_v22 = vmul.f32 %v565_v15, %v1192_v36  ;;  %v471_v9 = vpop.xlane.xlu0 %470  ;;  %v449_v24 = vpop.xlane.xlu1 %448  ;;  %v710_v30 = vadd.f32 %v1351_v4, %v690_v11  ;;  %v529_v45 = vmul.f32 0.5, %v528_v6  ;;  %vm622_vm8 = vweird.f32 %v1325_v63 }
 0x1b9   :  { %v687_v31 = vmul.f32 %v1317_v56, %v667_v1  ;;  %v599_v32 = vmul.f32 0.5, %v598_v16  ;;  %v488_v33 = vmul.f32 %v471_v9, %v1163_v34  ;;  %v477_v37 = vmul.f32 %v449_v24, %v1163_v34 }
 0x1ba   :  { %v691_v25 = vmul.f32 %v1317_v56, %v671_v22  ;;  %v969_v36 = vpop.eup %968  ;;  %v530_v11 = vsub.f32 1.5, %v529_v45  ;;  %vm572_vm13 = vweird.f32 %v1340_v5 }
 0x1bb   :  { %v707_v38 = vadd.f32 %v1351_v4, %v687_v31  ;;  %v600_v20 = vsub.f32 1.5, %v599_v32  ;;  %v1373_v18 = vadd.f32 1e-05, %v488_v33  ;;  %v1375_v42 = vpop.eup %970  ;;  %v607_v46 = vmul.f32 %v969_v36, %v1320_v59 }
 0x1bc   :  { %v711_v44 = vadd.f32 %v1351_v4, %v691_v25  ;;  %v1380_v47 = vpop.eup %972  ;;  %v617_v54 = vmul.f32 %v1375_v42, %v1325_v63  ;;  %v1385_v52 = vadd.f32 1e-05, %v477_v37  ;;  %vm613_vm3 = vweird.f32 %v969_v36 }
 0x1bd   :  { %v873_v49 = vpack.c.bf16 %v707_v38, %v706_v35  ;;  %v601_v53 = vmul.f32 %v1327_v0, %v600_v20  ;;  %v1387_v55 = vpop.eup %974  ;;  %v608_v58 = vmul.f32 %v969_v36, %v607_v46  ;;  %976 = vrsqrt.f32 %v1373_v18  ;;  %vm614_vm7 = vmor %vm612_vm4, %vm613_vm3 }
 0x1be   :  { %v883_v40 = vpack.c.bf16 %v711_v44, %v710_v30  ;;  %v618_v41 = vmul.f32 %v1375_v42, %v617_v54  ;;  %v567_v2 = vmul.f32 %v1387_v55, %v1340_v5  ;;  %v627_v29 = vmul.f32 %v1380_v47, %v1306_v27 }
 0x1bf   :  { %874 = vst [vmem:[%s1543_s6] sm:$0xff] %v873_v49   ;;  %v605_v62 = vsel %vm604_vm2, %v1327_v0, %v601_v53  ;;  %v457_v3 = vpop.xlane.xlu2 %456  ;;  %v609_v48 = vmul.f32 0.5, %v608_v58  ;;  %978 = vrsqrt.f32 %v1385_v52  ;;  %vm623_vm5 = vweird.f32 %v1375_v42 }
 0x1c0   :  { %918 = vst [vmem:[%s1543_s6 + $0x10] sm:$0xff] %v883_v40   ;;  %v675_v10 = vmul.f32 %v605_v62, %v1207_v51  ;;  %v619_v0 = vmul.f32 0.5, %v618_v41  ;;  %v568_v57 = vmul.f32 %v1387_v55, %v567_v2  ;;  %v473_v14 = vpop.xlane.xlu1 %472  ;;  %v481_v16 = vmul.f32 %v457_v3, %v1163_v34  ;;  %vm624_vm9 = vmor %vm622_vm8, %vm623_vm5 }
 0x1c1   :  { %v610_v15 = vsub.f32 1.5, %v609_v48  ;;  %v489_v31 = vmul.f32 %v473_v14, %v1163_v34  ;;  %v531_v33 = vmul.f32 %v1322_v60, %v530_v11  ;;  %v628_v44 = vmul.f32 %v1380_v47, %v627_v29 }
 0x1c2   :  { %v695_v1 = vmul.f32 %v1317_v56, %v675_v10  ;;  %v620_v17 = vsub.f32 1.5, %v619_v0  ;;  %v569_v51 = vmul.f32 0.5, %v568_v57  ;;  %v1417_v24 = vadd.f32 1e-05, %v481_v16 }
 0x1c3   :  { %v1414_v22 = vpop.eup %976  ;;  %v611_v9 = vmul.f32 %v969_v36, %v610_v15  ;;  %v1438_v46 = vadd.f32 1e-05, %v489_v31  ;;  %v535_v28 = vsel %vm1445_vm11, %v1322_v60, %v531_v33  ;;  %vm573_vm12 = vweird.f32 %v1387_v55 }
 0x1c4   :  { %v715_v6 = vadd.f32 %v1351_v4, %v695_v1  ;;  %v621_v32 = vmul.f32 %v1375_v42, %v620_v17  ;;  %v647_v59 = vmul.f32 %v1414_v22, %v1373_v18  ;;  %980 = vrsqrt.f32 %v1417_v24  ;;  %vm1464_vm14 = vmor %vm572_vm13, %vm573_vm12 }
 0x1c5   :  { %v615_v30 = vsel %vm614_vm7, %v969_v36, %v611_v9  ;;  %v979_v35 = vpop.eup %978  ;;  %v570_v20 = vsub.f32 1.5, %v569_v51  ;;  %982 = vrsqrt.f32 %v1438_v46  ;;  %v629_v62 = vmul.f32 0.5, %v628_v44 }
 0x1c6   :  { %v893_v37 = vpack.c.bf16 %v715_v6, %v714_v8  ;;  %v676_v25 = vmul.f32 %v615_v30, %v1220_v12  ;;  %v625_v38 = vsel %vm624_vm9, %v1375_v42, %v621_v32  ;;  %v648_v63 = vmul.f32 %v1414_v22, %v647_v59 }
 0x1c7   :  { %v469_v43 = vpop.xlane.xlu2 %468  ;;  %v677_v36 = vmul.f32 %v625_v38, %v1217_v61  ;;  %v537_v45 = vmul.f32 %v979_v35, %v1385_v52  ;;  %v571_v40 = vmul.f32 %v1387_v55, %v570_v20  ;;  %v668_v60 = vmul.f32 %v535_v28, %v1204_v50 }
 0x1c8   :  { %920 = vst [vmem:[%s1543_s6 + $0x20] sm:$0xff] %v893_v37   ;;  %v696_v12 = vmul.f32 %v1317_v56, %v676_v25  ;;  %v649_v42 = vmul.f32 0.5, %v648_v63  ;;  %v487_v49 = vmul.f32 %v469_v43, %v1163_v34  ;;  %vm543_vm15 = vweird.f32 %v979_v35 }
 0x1c9   :  { %v697_v54 = vmul.f32 %v1317_v56, %v677_v36  ;;  %v538_v61 = vmul.f32 %v979_v35, %v537_v45  ;;  %v575_v0 = vsel %vm1464_vm14, %v1387_v55, %v571_v40  ;;  %v630_v14 = vsub.f32 1.5, %v629_v62 }
 0x1ca   :  { %v1456_v34 = vadd.f32 1e-05, %v487_v49  ;;  %v981_v58 = vpop.eup %980  ;;  %v716_v41 = vadd.f32 %v1351_v4, %v696_v12  ;;  %v650_v8 = vsub.f32 1.5, %v649_v42  ;;  %vm542_vm0 = vweird.f32 %v1385_v52 }
 0x1cb   :  { %v717_v2 = vadd.f32 %v1351_v4, %v697_v54  ;;  %v539_v3 = vmul.f32 0.5, %v538_v61  ;;  %v577_v29 = vmul.f32 %v981_v58, %v1417_v24  ;;  %v983_v5 = vpop.eup %982  ;;  %vm653_vm1 = vweird.f32 %v1414_v22  ;;  %vm544_vm2 = vmor %vm542_vm0, %vm543_vm15 }
 0x1cc   :  { %984 = vrsqrt.f32 %v1456_v34  ;;  %v651_v50 = vmul.f32 %v1414_v22, %v650_v8  ;;  %v657_v16 = vmul.f32 %v983_v5, %v1438_v46  ;;  %v688_v55 = vmul.f32 %v1317_v56, %v668_v60 }
 0x1cd   :  { %v898_v10 = vpack.c.bf16 %v717_v2, %v716_v41  ;;  %v540_v11 = vsub.f32 1.5, %v539_v3  ;;  %v578_v57 = vmul.f32 %v981_v58, %v577_v29  ;;  %v672_v17 = vmul.f32 %v575_v0, %v1223_v13 }
 0x1ce   :  { %vm652_vm3 = vweird.f32 %v1373_v18  ;;  %vm583_vm4 = vweird.f32 %v981_v58  ;;  %v658_v52 = vmul.f32 %v983_v5, %v657_v16  ;;  %v631_v32 = vmul.f32 %v1380_v47, %v630_v14 }
 0x1cf   :  { %921 = vst [vmem:[%s1543_s6 + $0x28] sm:$0xff] %v898_v10   ;;  %v541_v1 = vmul.f32 %v979_v35, %v540_v11  ;;  %v579_v15 = vmul.f32 0.5, %v578_v57  ;;  %vm633_vm5 = vweird.f32 %v1380_v47  ;;  %vm1486_vm6 = vmor %vm652_vm3, %vm653_vm1  ;;  %vm582_vm7 = vweird.f32 %v1417_v24 }
 0x1d0   :  { %v659_v37 = vmul.f32 0.5, %v658_v52  ;;  %vm632_vm8 = vweird.f32 %v1306_v27  ;;  %v708_v30 = vadd.f32 %v1351_v4, %v688_v55  ;;  %vm584_vm9 = vmor %vm582_vm7, %vm583_vm4  ;;  %vm663_vm11 = vweird.f32 %v983_v5 }
 0x1d1   :  { %v545_v51 = vsel %vm544_vm2, %v979_v35, %v541_v1  ;;  %v580_v31 = vsub.f32 1.5, %v579_v15  ;;  %v692_v35 = vmul.f32 %v1317_v56, %v672_v17  ;;  %vm1499_vm10 = vmor %vm632_vm8, %vm633_vm5  ;;  %vm662_vm12 = vweird.f32 %v1438_v46 }
 0x1d2   :  { %v985_v6 = vpop.eup %984  ;;  %v669_v9 = vmul.f32 %v545_v51, %v1237_v23  ;;  %v655_v23 = vsel %vm1486_vm6, %v1414_v22, %v651_v50  ;;  %v660_v22 = vsub.f32 1.5, %v659_v37  ;;  %v635_v63 = vsel %vm1499_vm10, %v1380_v47, %v631_v32  ;;  %vm664_vm13 = vmor %vm662_vm12, %vm663_vm11 }
 0x1d3   :  { %v637_v13 = vmul.f32 %v985_v6, %v1456_v34  ;;  %v581_v33 = vmul.f32 %v981_v58, %v580_v31  ;;  %v680_v27 = vmul.f32 %v655_v23, %v1234_v7  ;;  %vm643_vm14 = vweird.f32 %v985_v6 }
 0x1d4   :  { %v689_v18 = vmul.f32 %v1317_v56, %v669_v9  ;;  %v661_v45 = vmul.f32 %v983_v5, %v660_v22  ;;  %v678_v49 = vmul.f32 %v635_v63, %v1183_v26  ;;  %v712_v53 = vadd.f32 %v1351_v4, %v692_v35 }
 0x1d5   :  { %v638_v25 = vmul.f32 %v985_v6, %v637_v13  ;;  %v585_v20 = vsel %vm584_vm9, %v981_v58, %v581_v33  ;;  %vm642_vm15 = vweird.f32 %v1456_v34 }
 0x1d6   :  { %v709_v38 = vadd.f32 %v1351_v4, %v689_v18  ;;  %v673_v43 = vmul.f32 %v585_v20, %v1249_v21  ;;  %v665_v7 = vsel %vm664_vm13, %v983_v5, %v661_v45  ;;  %v700_v21 = vmul.f32 %v1317_v56, %v680_v27  ;;  %vm644_vm0 = vmor %vm642_vm15, %vm643_vm14 }
 0x1d7   :  { %v639_v44 = vmul.f32 0.5, %v638_v25  ;;  %v681_v46 = vmul.f32 %v665_v7, %v1246_v19  ;;  %v698_v40 = vmul.f32 %v1317_v56, %v678_v49 }
 0x1d8   :  { %v878_v36 = vpack.c.bf16 %v709_v38, %v708_v30  ;;  %v693_v12 = vmul.f32 %v1317_v56, %v673_v43  ;;  %v720_v62 = vadd.f32 %v1351_v4, %v700_v21 }
 0x1d9   :  { %v640_v42 = vsub.f32 1.5, %v639_v44  ;;  %v701_v26 = vmul.f32 %v1317_v56, %v681_v46  ;;  %v718_v2 = vadd.f32 %v1351_v4, %v698_v40 }
 0x1da   :  { %917 = vst [vmem:[%s1543_s6 + $0x8] sm:$0xff] %v878_v36   ;;  %v713_v47 = vadd.f32 %v1351_v4, %v693_v12 }
 0x1db   :  { %v641_v54 = vmul.f32 %v985_v6, %v640_v42  ;;  %v721_v34 = vadd.f32 %v1351_v4, %v701_v26 }
 0x1dc   :  { %v888_v61 = vpack.c.bf16 %v713_v47, %v712_v53 }
 0x1dd   :  { %v645_v28 = vsel %vm644_vm0, %v985_v6, %v641_v54  ;;  %v908_v41 = vpack.c.bf16 %v721_v34, %v720_v62 }
 0x1de   :  { %v679_v58 = vmul.f32 %v645_v28, %v1257_v39  ;;  %919 = vst [vmem:[%s1543_s6 + $0x18] sm:$0xff] %v888_v61  }
 0x1df   :  { %923 = vst [vmem:[%s1543_s6 + $0x38] sm:$0xff] %v908_v41  }
 0x1e0   :  { %v699_v19 = vmul.f32 %v1317_v56, %v679_v58 }
 0x1e2   :  { %v719_v3 = vadd.f32 %v1351_v4, %v699_v19 }
 0x1e4   :  { %v903_v39 = vpack.c.bf16 %v719_v3, %v718_v2 }
 0x1e6   :  { %922 = vst [vmem:[%s1543_s6 + $0x30] sm:$0xff] %v903_v39  }

// kernel: encoder_forward.13
= control target key start
LH: loop header
LB: loop body
LE: loop exit
PB: predicated region body
PF: predicated region fallthrough
CT: control target
= control target key end

     0   :  { %8 = vsyncpa [#allocation4], 0  ;;  %s2199_s15 = smov [#allocation3]   ;;  %s2200_s17 = smov 128   ;;  %s3367_s0 = inlined_call_operand.vmem [shape: bf16[128,128], index: 0, kind: input, shape index: {}]   ;;  %s3368_s1 = inlined_call_operand.hbm [shape: bf16[128,256], index: 1, kind: input, shape index: {}]   ;;  %s3369_s2 = inlined_call_operand.vmem [shape: f32[1,256], index: 2, kind: input, shape index: {}]   ;;  %s3370_s3 = inlined_call_operand.vmem [shape: bf16[128,256], index: 3, kind: output, shape index: {}]  }
   0x1   :  { %s15_s14 = sshll.u32 %s3368_s1, 4  ;;  %s17_s16 = sshll.u32 %s2199_s15, 4  ;;  %s16_s14 = int_to_ptr.hbm [resolvable:$true] %s15_s14  ;;  %s18_s16 = int_to_ptr.vmem [resolvable:$true] %s17_s16 }
   0x2   :  { %s2201_s18 = smov 8  }
   0x3   :  { %23 = dma.hbm_to_vmem [thread:$0]  %s16_s14, 2048, %s18_s16, [#allocation4], %s2200_s17, %s2200_s17, %s2201_s18  }
   0x4   :  { %2197 = dma.done.wait [#allocation4], 2048  }
   0x5   :  { %2198 = vsyncadd [#allocation4], 4294965248  ;;  %v2028_v0 = vld [vmem:[#allocation3 + $0x70] sm:$0xf]  ;;  %v2089_v1 = vld [vmem:[#allocation3 + $0x74] sm:$0xf0] }
   0x6   :  { %v2088_v2 = vld [vmem:[#allocation3 + $0x74] sm:$0xf]  ;;  %v2029_v3 = vor.u32 %v2089_v1, %v2028_v0  ;;  %v2030_v4 = vld [vmem:[#allocation3 + $0x78] sm:$0xf0]  ;;  %v2020_v5 = vld [vmem:[#allocation3 + $0x60] sm:$0xf] }
   0x7   :  { %v2087_v6 = vld [vmem:[#allocation3 + $0x64] sm:$0xf0]  ;;  %v2033_v7 = vor.u32 %v2088_v2, %v2030_v4  ;;  %v2086_v8 = vld [vmem:[#allocation3 + $0x64] sm:$0xf]  ;;  %v2022_v9 = vld [vmem:[#allocation3 + $0x68] sm:$0xf0] }
   0x8   :  { %258 = vmatpush.bf16.msra.mxu0 %v2029_v3  ;;  %2090 = vmatpush.bf16.msra.mxu2 %v2029_v3  ;;  %v2021_v10 = vor.u32 %v2087_v6, %v2020_v5  ;;  %v2025_v11 = vor.u32 %v2086_v8, %v2022_v9  ;;  %v2012_v12 = vld [vmem:[#allocation3 + $0x50] sm:$0xf]  ;;  %v2085_v13 = vld [vmem:[#allocation3 + $0x54] sm:$0xf0]  ;;  %v2084_v14 = vld [vmem:[#allocation3 + $0x54] sm:$0xf] }
   0x9   :  { %307 = vmatpush.bf16.msra.mxu1 %v2033_v7  ;;  %2098 = vmatpush.bf16.msra.mxu3 %v2033_v7  ;;  %v2014_v15 = vld [vmem:[#allocation3 + $0x58] sm:$0xf0]  ;;  %v2013_v16 = vor.u32 %v2085_v13, %v2012_v12  ;;  %v2004_v18 = vld [vmem:[#allocation3 + $0x40] sm:$0xf]  ;;  %v2083_v19 = vld [vmem:[#allocation3 + $0x44] sm:$0xf0] }
   0xa   :  { %v2017_v17 = vor.u32 %v2084_v14, %v2014_v15  ;;  %v2082_v20 = vld [vmem:[#allocation3 + $0x44] sm:$0xf]  ;;  %v2006_v21 = vld [vmem:[#allocation3 + $0x48] sm:$0xf0]  ;;  %v2005_v22 = vor.u32 %v2083_v19, %v2004_v18  ;;  %v1996_v24 = vld [vmem:[#allocation3 + $0x30] sm:$0xf] }
   0xb   :  { %v2009_v23 = vor.u32 %v2082_v20, %v2006_v21  ;;  %v2081_v25 = vld [vmem:[#allocation3 + $0x34] sm:$0xf0]  ;;  %v2080_v26 = vld [vmem:[#allocation3 + $0x34] sm:$0xf]  ;;  %v1998_v27 = vld [vmem:[#allocation3 + $0x38] sm:$0xf0] }
   0xc   :  { %259 = vmatpush.bf16.msra.mxu0 %v2021_v10  ;;  %2091 = vmatpush.bf16.msra.mxu2 %v2021_v10  ;;  %v1997_v28 = vor.u32 %v2081_v25, %v1996_v24  ;;  %v2001_v29 = vor.u32 %v2080_v26, %v1998_v27  ;;  %v1988_v30 = vld [vmem:[#allocation3 + $0x20] sm:$0xf]  ;;  %v2079_v31 = vld [vmem:[#allocation3 + $0x24] sm:$0xf0]  ;;  %v2078_v32 = vld [vmem:[#allocation3 + $0x24] sm:$0xf] }
   0xd   :  { %308 = vmatpush.bf16.msra.mxu1 %v2025_v11  ;;  %2099 = vmatpush.bf16.msra.mxu3 %v2025_v11  ;;  %v1990_v33 = vld [vmem:[#allocation3 + $0x28] sm:$0xf0]  ;;  %v1989_v34 = vor.u32 %v2079_v31, %v1988_v30  ;;  %v1980_v36 = vld [vmem:[#allocation3 + $0x10] sm:$0xf]  ;;  %v2077_v37 = vld [vmem:[#allocation3 + $0x14] sm:$0xf0] }
   0xe   :  { %v1993_v35 = vor.u32 %v2078_v32, %v1990_v33  ;;  %v2076_v38 = vld [vmem:[#allocation3 + $0x14] sm:$0xf]  ;;  %v1982_v39 = vld [vmem:[#allocation3 + $0x18] sm:$0xf0]  ;;  %v1981_v40 = vor.u32 %v2077_v37, %v1980_v36  ;;  %v1972_v42 = vld [vmem:[#allocation3] sm:$0xf] }
   0xf   :  { %v1985_v41 = vor.u32 %v2076_v38, %v1982_v39  ;;  %v2075_v43 = vld [vmem:[#allocation3 + $0x4] sm:$0xf0]  ;;  %v2074_v44 = vld [vmem:[#allocation3 + $0x4] sm:$0xf]  ;;  %v1974_v45 = vld [vmem:[#allocation3 + $0x8] sm:$0xf0] }
  0x10   :  { %260 = vmatpush.bf16.msra.mxu0 %v2013_v16  ;;  %2092 = vmatpush.bf16.msra.mxu2 %v2013_v16  ;;  %v1973_v46 = vor.u32 %v2075_v43, %v1972_v42  ;;  %v1977_v47 = vor.u32 %v2074_v44, %v1974_v45  ;;  %v2066_v48 = vld [vmem:[%s3367_s0] sm:$0xff]  ;;  %v2067_v50 = vld [vmem:[%s3367_s0 + $0x8] sm:$0xff]  ;;  %v2068_v52 = vld [vmem:[%s3367_s0 + $0x10] sm:$0xff] }
  0x11   :  { %309 = vmatpush.bf16.msra.mxu1 %v2017_v17  ;;  %2100 = vmatpush.bf16.msra.mxu3 %v2017_v17  ;;  %v2070_v49 = vld [vmem:[%s3367_s0 + $0x20] sm:$0xff]  ;;  %v2071_v51 = vld [vmem:[%s3367_s0 + $0x28] sm:$0xff]  ;;  %v2072_v53 = vld [vmem:[%s3367_s0 + $0x30] sm:$0xff] }
  0x12   :  { %v2069_v54 = vld [vmem:[%s3367_s0 + $0x18] sm:$0xff]  ;;  %v455_v56 = vld [vmem:[%s3369_s2] sm:$0x3] }
  0x13   :  { %v2073_v55 = vld [vmem:[%s3367_s0 + $0x38] sm:$0xff]  ;;  %v2252_v57 = vperm.slane %v455_v56, 0  ;;  %v2254_v58 = vperm.slane %v455_v56, 1 }
  0x14   :  { %261 = vmatpush.bf16.msra.mxu0 %v2005_v22  ;;  %2093 = vmatpush.bf16.msra.mxu2 %v2005_v22 }
  0x15   :  { %310 = vmatpush.bf16.msra.mxu1 %v2009_v23  ;;  %2101 = vmatpush.bf16.msra.mxu3 %v2009_v23 }
  0x18   :  { %262 = vmatpush.bf16.msra.mxu0 %v1997_v28  ;;  %2094 = vmatpush.bf16.msra.mxu2 %v1997_v28 }
  0x19   :  { %311 = vmatpush.bf16.msra.mxu1 %v2001_v29  ;;  %2102 = vmatpush.bf16.msra.mxu3 %v2001_v29 }
  0x1c   :  { %263 = vmatpush.bf16.msra.mxu0 %v1989_v34  ;;  %2095 = vmatpush.bf16.msra.mxu2 %v1989_v34 }
  0x1d   :  { %312 = vmatpush.bf16.msra.mxu1 %v1993_v35  ;;  %2103 = vmatpush.bf16.msra.mxu3 %v1993_v35 }
  0x20   :  { %264 = vmatpush.bf16.msra.mxu0 %v1981_v40  ;;  %2096 = vmatpush.bf16.msra.mxu2 %v1981_v40 }
  0x21   :  { %313 = vmatpush.bf16.msra.mxu1 %v1985_v41  ;;  %2104 = vmatpush.bf16.msra.mxu3 %v1985_v41 }
  0x24   :  { %265 = vmatpush.bf16.msra.mxu0 %v1973_v46  ;;  %2097 = vmatpush.bf16.msra.mxu2 %v1973_v46 }
  0x25   :  { %314 = vmatpush.bf16.msra.mxu1 %v1977_v47  ;;  %2105 = vmatpush.bf16.msra.mxu3 %v1977_v47 }
  0x27   :  { %266 = vmatmul.bf16.vlgmr.msra.gmra.mxu0 %v2066_v48  ;;  %286 = vmatmul.bf16.vlgmr.msra.gmra.mxu2 %v2070_v49 }
  0x28   :  { %315 = vmatmul.bf16.vlgmr.msra.gmra.mxu1 %v2066_v48  ;;  %335 = vmatmul.bf16.vlgmr.msra.gmra.mxu3 %v2070_v49 }
  0x37   :  { %271 = vmatmul.bf16.gmra.mxu0 %v2067_v50  ;;  %291 = vmatmul.bf16.gmra.mxu2 %v2071_v51 }
  0x38   :  { %320 = vmatmul.bf16.gmra.mxu1 %v2067_v50  ;;  %340 = vmatmul.bf16.gmra.mxu3 %v2071_v51 }
  0x47   :  { %276 = vmatmul.bf16.gmra.mxu0 %v2068_v52  ;;  %296 = vmatmul.bf16.gmra.mxu2 %v2072_v53 }
  0x48   :  { %325 = vmatmul.bf16.gmra.mxu1 %v2068_v52  ;;  %345 = vmatmul.bf16.gmra.mxu3 %v2072_v53 }
  0x57   :  { %281 = vmatmul.bf16.gmra.mxu0 %v2069_v54  ;;  %301 = vmatmul.bf16.gmra.mxu2 %v2073_v55 }
  0x58   :  { %330 = vmatmul.bf16.gmra.mxu1 %v2069_v54  ;;  %350 = vmatmul.bf16.gmra.mxu3 %v2073_v55 }
  0xa4   :  { %v267_v59 = vpop.f32.mrf.mxu0 }
  0xa5   :  { %v2257_v60 = vadd.f32 %v2252_v57, %v267_v59  ;;  %v316_v61 = vpop.f32.mrf.mxu1 }
  0xa6   :  { %v2260_v62 = vadd.f32 %v2254_v58, %v316_v61 }
  0xa7   :  { %v2263_v63 = vmul.f32 0.70710677, %v2257_v60 }
  0xa8   :  { %v2266_v0 = vmul.f32 0.70710677, %v2260_v62 }
  0xa9   :  { %v557_v1 = vmul.f32 %v2263_v63, %v2263_v63 }
  0xaa   :  { %v597_v2 = vmul.f32 %v2266_v0, %v2266_v0  ;;  %v287_v3 = vpop.f32.mrf.mxu2 }
  0xab   :  { %v2272_v4 = vmin.f32 %v557_v1, 16.0  ;;  %v2275_v5 = vadd.f32 %v2252_v57, %v287_v3  ;;  %v336_v6 = vpop.f32.mrf.mxu3 }
  0xac   :  { %v2277_v7 = vmin.f32 %v597_v2, 16.0  ;;  %v2280_v8 = vadd.f32 %v2254_v58, %v336_v6  ;;  %v269_v14 = vpop.f32.mrf.mxu0 }
  0xad   :  { %v559_v9 = vmul.f32 2.1237322e-06, %v2272_v4  ;;  %v570_v10 = vmul.f32 3.8918573e-05, %v2272_v4  ;;  %v2287_v13 = vmul.f32 0.70710677, %v2275_v5  ;;  %v2297_v23 = vadd.f32 %v2252_v57, %v269_v14  ;;  %v318_v33 = vpop.f32.mrf.mxu1 }
  0xae   :  { %v599_v11 = vmul.f32 2.1237322e-06, %v2277_v7  ;;  %v610_v12 = vmul.f32 3.8918573e-05, %v2277_v7  ;;  %v2292_v20 = vmul.f32 0.70710677, %v2280_v8  ;;  %v2317_v45 = vadd.f32 %v2254_v58, %v318_v33 }
  0xaf   :  { %v560_v15 = vadd.f32 0.00028619796, %v559_v9  ;;  %v571_v16 = vadd.f32 0.001143296, %v570_v10  ;;  %v1197_v19 = vmul.f32 %v2287_v13, %v2287_v13  ;;  %v2314_v41 = vmul.f32 0.70710677, %v2297_v23 }
  0xb0   :  { %v600_v17 = vadd.f32 0.00028619796, %v599_v11  ;;  %v611_v18 = vadd.f32 0.001143296, %v610_v12  ;;  %v1237_v27 = vmul.f32 %v2292_v20, %v2292_v20 }
  0xb1   :  { %v561_v21 = vmul.f32 %v560_v15, %v2272_v4  ;;  %v572_v22 = vmul.f32 %v571_v16, %v2272_v4  ;;  %v2301_v26 = vmin.f32 %v1197_v19, 16.0  ;;  %v637_v3 = vmul.f32 %v2314_v41, %v2314_v41 }
  0xb2   :  { %v601_v24 = vmul.f32 %v600_v17, %v2277_v7  ;;  %v612_v25 = vmul.f32 %v611_v18, %v2277_v7  ;;  %v2309_v37 = vmin.f32 %v1237_v27, 16.0  ;;  %v289_v33 = vpop.f32.mrf.mxu2 }
  0xb3   :  { %v562_v28 = vadd.f32 0.0036580483, %v561_v21  ;;  %v573_v29 = vadd.f32 0.014752088, %v572_v22  ;;  %v1199_v32 = vmul.f32 2.1237322e-06, %v2301_v26 }
  0xb4   :  { %v602_v30 = vadd.f32 0.0036580483, %v601_v24  ;;  %v613_v31 = vadd.f32 0.014752088, %v612_v25  ;;  %v1210_v36 = vmul.f32 3.8918573e-05, %v2301_v26 }
  0xb5   :  { %v563_v34 = vmul.f32 %v562_v28, %v2272_v4  ;;  %v574_v35 = vmul.f32 %v573_v29, %v2272_v4  ;;  %v1200_v40 = vadd.f32 0.00028619796, %v1199_v32  ;;  %v1239_v49 = vmul.f32 2.1237322e-06, %v2309_v37 }
  0xb6   :  { %v603_v38 = vmul.f32 %v602_v30, %v2277_v7  ;;  %v614_v39 = vmul.f32 %v613_v31, %v2277_v7  ;;  %v1211_v44 = vadd.f32 0.001143296, %v1210_v36  ;;  %v1250_v53 = vmul.f32 3.8918573e-05, %v2309_v37 }
  0xb7   :  { %v564_v42 = vadd.f32 0.05243302, %v563_v34  ;;  %v575_v43 = vadd.f32 0.112945676, %v574_v35  ;;  %v1201_v48 = vmul.f32 %v1200_v40, %v2301_v26  ;;  %v1240_v59 = vadd.f32 0.00028619796, %v1239_v49 }
  0xb8   :  { %v604_v46 = vadd.f32 0.05243302, %v603_v38  ;;  %v615_v47 = vadd.f32 0.112945676, %v614_v39  ;;  %v1212_v52 = vmul.f32 %v1211_v44, %v2301_v26  ;;  %v1251_v16 = vadd.f32 0.001143296, %v1250_v53 }
  0xb9   :  { %v565_v50 = vmul.f32 %v564_v42, %v2272_v4  ;;  %v576_v51 = vmul.f32 %v575_v43, %v2272_v4  ;;  %v1202_v56 = vadd.f32 0.0036580483, %v1201_v48  ;;  %v1241_v11 = vmul.f32 %v1240_v59, %v2309_v37 }
  0xba   :  { %v605_v54 = vmul.f32 %v604_v46, %v2277_v7  ;;  %v616_v55 = vmul.f32 %v615_v47, %v2277_v7  ;;  %v1213_v2 = vadd.f32 0.014752088, %v1212_v52  ;;  %v2339_v25 = vmul.f32 0.70710677, %v2317_v45 }
  0xbb   :  { %v566_v61 = vadd.f32 0.18741608, %v565_v50  ;;  %v577_v1 = vadd.f32 0.4994258, %v576_v51  ;;  %v1203_v10 = vmul.f32 %v1202_v56, %v2301_v26  ;;  %v1242_v21 = vadd.f32 0.0036580483, %v1241_v11 }
  0xbc   :  { %v606_v6 = vadd.f32 0.18741608, %v605_v54  ;;  %v617_v9 = vadd.f32 0.4994258, %v616_v55  ;;  %v1214_v15 = vmul.f32 %v1213_v2, %v2301_v26  ;;  %v1252_v29 = vmul.f32 %v1251_v16, %v2309_v37 }
  0xbd   :  { %v567_v12 = vmul.f32 %v566_v61, %v2272_v4  ;;  %v578_v14 = vmul.f32 %v577_v1, %v2272_v4  ;;  %v1204_v19 = vadd.f32 0.05243302, %v1203_v10  ;;  %v1243_v4 = vmul.f32 %v1242_v21, %v2309_v37 }
  0xbe   :  { %v607_v17 = vmul.f32 %v606_v6, %v2277_v7  ;;  %v618_v18 = vmul.f32 %v617_v9, %v2277_v7  ;;  %v1215_v24 = vadd.f32 0.112945676, %v1214_v15  ;;  %v2347_v7 = vmin.f32 %v637_v3, 16.0 }
  0xbf   :  { %v2336_v22 = vadd.f32 1.0, %v578_v14  ;;  %v1205_v28 = vmul.f32 %v1204_v19, %v2301_v26  ;;  %v568_v30 = vadd.f32 1.1283791, %v567_v12  ;;  %v2350_v31 = vmul.f32 0.5, %v2257_v60 }
  0xc0   :  { %v2341_v27 = vadd.f32 1.0, %v618_v18  ;;  %v608_v32 = vadd.f32 1.1283791, %v607_v17  ;;  %v2354_v34 = vmul.f32 0.5, %v2260_v62  ;;  %v2357_v35 = vmul.f32 0.5, %v2275_v5 }
  0xc1   :  { %2109 = vrcp.f32 %v2336_v22  ;;  %v1206_v36 = vadd.f32 0.18741608, %v1205_v28  ;;  %v677_v38 = vmul.f32 %v2339_v25, %v2339_v25  ;;  %v589_v39 = vand.u32 2147483647, %v2336_v22 }
  0xc2   :  { %2111 = vrcp.f32 %v2341_v27  ;;  %v1216_v40 = vmul.f32 %v1215_v24, %v2301_v26  ;;  %v1244_v60 = vadd.f32 0.05243302, %v1243_v4  ;;  %v1253_v42 = vadd.f32 0.014752088, %v1252_v29 }
  0xc3   :  { %v569_v43 = vmul.f32 %v568_v30, %v2263_v63  ;;  %v591_v44 = vand.u32 2147483648, %v2336_v22  ;;  %v639_v62 = vmul.f32 2.1237322e-06, %v2347_v7  ;;  %v2367_v46 = vadd.f32 %v2252_v57, %v289_v33 }
  0xc4   :  { %vm585_vm0 = vweird.f32 %v2336_v22  ;;  %v609_v5 = vmul.f32 %v608_v32, %v2266_v0  ;;  %v1217_v47 = vadd.f32 0.4994258, %v1216_v40  ;;  %v1254_v48 = vmul.f32 %v1253_v42, %v2309_v37 }
  0xc5   :  { %vm625_vm1 = vweird.f32 %v2341_v27  ;;  %v1207_v50 = vmul.f32 %v1206_v36, %v2301_v26  ;;  %v640_v63 = vadd.f32 0.00028619796, %v639_v62  ;;  %v650_v51 = vmul.f32 3.8918573e-05, %v2347_v7 }
  0xc6   :  { %vm2376_vm2 = vcmp.eq.f32.partialorder %v589_v39, 8.507059e+37  ;;  %v629_v0 = vand.u32 2147483647, %v2341_v27  ;;  %v1218_v55 = vmul.f32 %v1217_v47, %v2301_v26  ;;  %v1245_v56 = vmul.f32 %v1244_v60, %v2309_v37 }
  0xc7   :  { %v2110_v49 = vpop.eup %2109  ;;  %v592_v59 = vor.u32 1.1754944e-38, %v591_v44  ;;  %v631_v1 = vand.u32 2147483648, %v2341_v27  ;;  %v1255_v2 = vadd.f32 0.112945676, %v1254_v48  ;;  %v641_v9 = vmul.f32 %v640_v63, %v2347_v7 }
  0xc8   :  { %v2112_v52 = vpop.eup %2111  ;;  %v581_v53 = vmul.f32 %v2110_v49, %v2336_v22  ;;  %v2385_v6 = vadd.f32 1.0, %v1218_v55  ;;  %v2388_v10 = vmin.f32 %v677_v38, 16.0  ;;  %v1208_v12 = vadd.f32 1.1283791, %v1207_v50 }
  0xc9   :  { %v621_v61 = vmul.f32 %v2112_v52, %v2341_v27  ;;  %v1256_v14 = vmul.f32 %v1255_v2, %v2309_v37  ;;  %v651_v26 = vadd.f32 0.001143296, %v650_v51  ;;  %vm586_vm3 = vweird.f32 %v2110_v49 }
  0xca   :  { %v582_v3 = vsub.f32 1.0, %v581_v53  ;;  %2113 = vrcp.f32 %v2385_v6  ;;  %v1246_v16 = vadd.f32 0.18741608, %v1245_v56  ;;  %vm626_vm4 = vweird.f32 %v2112_v52  ;;  %vm587_vm6 = vmor %vm585_vm0, %vm586_vm3 }
  0xcb   :  { %v622_v11 = vsub.f32 1.0, %v621_v61  ;;  %vm2392_vm5 = vcmp.eq.f32.partialorder %v629_v0, 8.507059e+37  ;;  %v1257_v19 = vadd.f32 0.4994258, %v1256_v14  ;;  %v642_v24 = vadd.f32 0.0036580483, %v641_v9  ;;  %vm627_vm7 = vmor %vm625_vm1, %vm626_vm4 }
  0xcc   :  { %v583_v15 = vmul.f32 %v2110_v49, %v582_v3  ;;  %v652_v28 = vmul.f32 %v651_v26, %v2347_v7  ;;  %v679_v4 = vmul.f32 2.1237322e-06, %v2388_v10  ;;  %v632_v30 = vor.u32 1.1754944e-38, %v631_v1 }
  0xcd   :  { %v623_v17 = vmul.f32 %v2112_v52, %v622_v11  ;;  %v1209_v32 = vmul.f32 %v1208_v12, %v2287_v13  ;;  %v1258_v33 = vmul.f32 %v1257_v19, %v2309_v37  ;;  %v1247_v38 = vmul.f32 %v1246_v16, %v2309_v37 }
  0xce   :  { %v584_v21 = vadd.f32 %v2110_v49, %v583_v15  ;;  %v643_v39 = vmul.f32 %v642_v24, %v2347_v7  ;;  %v653_v40 = vadd.f32 0.014752088, %v652_v28  ;;  %v1229_v42 = vand.u32 2147483647, %v2385_v6 }
  0xcf   :  { %v624_v29 = vadd.f32 %v2112_v52, %v623_v17  ;;  %v2409_v44 = vadd.f32 1.0, %v1258_v33  ;;  %v680_v48 = vadd.f32 0.00028619796, %v679_v4  ;;  %vm1225_vm8 = vweird.f32 %v2385_v6 }
  0xd0   :  { %v588_v36 = vsel %vm587_vm6, %v2110_v49, %v584_v21  ;;  %v2114_v13 = vpop.eup %2113  ;;  %v654_v27 = vmul.f32 %v653_v40, %v2347_v7  ;;  %v644_v50 = vadd.f32 0.05243302, %v643_v39  ;;  %v1231_v51 = vand.u32 2147483648, %v2385_v6 }
  0xd1   :  { %v593_v60 = vsel %vm2376_vm2, %v592_v59, %v588_v36  ;;  %v628_v22 = vsel %vm627_vm7, %v2112_v52, %v624_v29  ;;  %v1221_v49 = vmul.f32 %v2114_v13, %v2385_v6  ;;  %2115 = vrcp.f32 %v2409_v44 }
  0xd2   :  { %v594_v62 = vmul.f32 %v593_v60, %v569_v43  ;;  %v633_v47 = vsel %vm2392_vm5, %v632_v30, %v628_v22  ;;  %v690_v52 = vmul.f32 3.8918573e-05, %v2388_v10  ;;  %v1248_v54 = vadd.f32 1.1283791, %v1247_v38  ;;  %v338_v60 = vpop.f32.mrf.mxu3 }
  0xd3   :  { %v634_v37 = vmul.f32 %v633_v47, %v609_v5  ;;  %v1222_v53 = vsub.f32 1.0, %v1221_v49  ;;  %v655_v0 = vadd.f32 0.112945676, %v654_v27  ;;  %vm1226_vm9 = vweird.f32 %v2114_v13 }
  0xd4   :  { %v2034_v63 = vclamps-f32 %v594_v62, 1.0  ;;  %vm2419_vm10 = vcmp.eq.f32.partialorder %v1229_v42, 8.507059e+37  ;;  %v681_v56 = vmul.f32 %v680_v48, %v2388_v10  ;;  %v645_v1 = vmul.f32 %v644_v50, %v2347_v7  ;;  %vm1227_vm11 = vmor %vm1225_vm8, %vm1226_vm9 }
  0xd5   :  { %v2035_v43 = vclamps-f32 %v634_v37, 1.0  ;;  %v1223_v61 = vmul.f32 %v2114_v13, %v1222_v53  ;;  %v656_v2 = vmul.f32 %v655_v0, %v2347_v7  ;;  %v1232_v9 = vor.u32 1.1754944e-38, %v1231_v51 }
  0xd6   :  { %v1837_v55 = vadd.f32 1.0, %v2034_v63  ;;  %v682_v11 = vadd.f32 0.0036580483, %v681_v56  ;;  %v691_v12 = vadd.f32 0.001143296, %v690_v52  ;;  %v1271_v38 = vand.u32 2147483648, %v2409_v44  ;;  %v272_v52 = vpop.f32.mrf.mxu0 }
  0xd7   :  { %v1838_v59 = vadd.f32 1.0, %v2035_v43  ;;  %v2116_v14 = vpop.eup %2115  ;;  %v1224_v15 = vadd.f32 %v2114_v13, %v1223_v61  ;;  %v657_v16 = vadd.f32 0.4994258, %v656_v2  ;;  %v2429_v17 = vmul.f32 0.70710677, %v2367_v46 }
  0xd8   :  { %v1869_v3 = vmul.f32 %v1837_v55, %v2350_v31  ;;  %v1261_v18 = vmul.f32 %v2116_v14, %v2409_v44  ;;  %v1269_v19 = vand.u32 2147483647, %v2409_v44  ;;  %v683_v31 = vmul.f32 %v682_v11, %v2388_v10 }
  0xd9   :  { %v1870_v26 = vmul.f32 %v1838_v59, %v2354_v34  ;;  %v692_v21 = vmul.f32 %v691_v12, %v2388_v10  ;;  %v1228_v28 = vsel %vm1227_vm11, %v2114_v13, %v1224_v15  ;;  %v646_v34 = vadd.f32 0.18741608, %v645_v1 }
  0xda   :  { %v658_v4 = vmul.f32 %v657_v16, %v2347_v7  ;;  %v1233_v29 = vsel %vm2419_vm10, %v1232_v9, %v1228_v28  ;;  %v1262_v30 = vsub.f32 1.0, %v1261_v18  ;;  %v684_v33 = vadd.f32 0.05243302, %v683_v31 }
  0xdb   :  { %v1901_v24 = vpack.c.bf16 %v1870_v26, %v1869_v3  ;;  %v693_v6 = vadd.f32 0.014752088, %v692_v21  ;;  %v1234_v36 = vmul.f32 %v1233_v29, %v1209_v32  ;;  %v1277_v40 = vmul.f32 %v2429_v17, %v2429_v17 }
  0xdc   :  { %v2445_v39 = vadd.f32 1.0, %v658_v4  ;;  %v1263_v22 = vmul.f32 %v2116_v14, %v1262_v30  ;;  %vm1266_vm12 = vweird.f32 %v2116_v14  ;;  %v685_v42 = vmul.f32 %v684_v33, %v2388_v10 }
  0xdd   :  { %1917 = vst [vmem:[%s3370_s3] sm:$0xff] %v1901_v24  ;;  %v694_v13 = vmul.f32 %v693_v6, %v2388_v10  ;;  %v510_v62 = vmul.f32 0.5, %v2280_v8  ;;  %vm1265_vm13 = vweird.f32 %v2409_v44  ;;  %v647_v32 = vmul.f32 %v646_v34, %v2347_v7  ;;  %v321_v24 = vpop.f32.mrf.mxu1 }
  0xde   :  { %2117 = vrcp.f32 %v2445_v39  ;;  %v2050_v47 = vclamps-f32 %v1234_v36, 1.0  ;;  %v1264_v27 = vadd.f32 %v2116_v14, %v1263_v22  ;;  %v2456_v37 = vadd.f32 %v2254_v58, %v338_v60  ;;  %vm1267_vm14 = vmor %vm1265_vm13, %vm1266_vm12 }
  0xdf   :  { %v695_v48 = vadd.f32 0.112945676, %v694_v13  ;;  %v1249_v49 = vmul.f32 %v1248_v54, %v2292_v20  ;;  %v1272_v50 = vor.u32 1.1754944e-38, %v1271_v38  ;;  %v2460_v63 = vmul.f32 0.5, %v2297_v23 }
  0xe0   :  { %v2462_v8 = vmin.f32 %v1277_v40, 16.0  ;;  %v1268_v44 = vsel %vm1267_vm14, %v2116_v14, %v1264_v27  ;;  %vm1270_vm15 = vcmp.eq.f32.partialorder %v1269_v19, 8.507059e+37  ;;  %v686_v7 = vadd.f32 0.18741608, %v685_v42 }
  0xe1   :  { %v696_v51 = vmul.f32 %v695_v48, %v2388_v10  ;;  %v1273_v43 = vsel %vm1270_vm15, %v1272_v50, %v1268_v44  ;;  %v648_v53 = vadd.f32 1.1283791, %v647_v32  ;;  %v1853_v20 = vadd.f32 1.0, %v2050_v47 }
  0xe2   :  { %v1279_v0 = vmul.f32 2.1237322e-06, %v2462_v8  ;;  %v1290_v55 = vmul.f32 3.8918573e-05, %v2462_v8  ;;  %v1274_v54 = vmul.f32 %v1273_v43, %v1249_v49  ;;  %vm665_vm0 = vweird.f32 %v2445_v39 }
  0xe3   :  { %v697_v23 = vadd.f32 0.4994258, %v696_v51  ;;  %v2469_v5 = vmul.f32 0.70710677, %v2456_v37  ;;  %v669_v59 = vand.u32 2147483647, %v2445_v39  ;;  %v2473_v2 = vadd.f32 %v2252_v57, %v272_v52 }
  0xe4   :  { %v2118_v56 = vpop.eup %2117  ;;  %v1280_v61 = vadd.f32 0.00028619796, %v1279_v0  ;;  %v1291_v1 = vadd.f32 0.001143296, %v1290_v55  ;;  %v2051_v3 = vclamps-f32 %v1274_v54, 1.0  ;;  %v671_v11 = vand.u32 2147483648, %v2445_v39 }
  0xe5   :  { %v661_v9 = vmul.f32 %v2118_v56, %v2445_v39  ;;  %v687_v12 = vmul.f32 %v686_v7, %v2388_v10  ;;  %v698_v14 = vmul.f32 %v697_v23, %v2388_v10  ;;  %v1317_v16 = vmul.f32 %v2469_v5, %v2469_v5 }
  0xe6   :  { %v1281_v26 = vmul.f32 %v1280_v61, %v2462_v8  ;;  %v1292_v15 = vmul.f32 %v1291_v1, %v2462_v8  ;;  %v1885_v18 = vmul.f32 %v1853_v20, %v2357_v35  ;;  %v1854_v19 = vadd.f32 1.0, %v2051_v3 }
  0xe7   :  { %v662_v31 = vsub.f32 1.0, %v661_v9  ;;  %v2485_v21 = vmul.f32 0.70710677, %v2473_v2  ;;  %v2487_v28 = vadd.f32 1.0, %v698_v14  ;;  %v2489_v10 = vmin.f32 %v1317_v16, 16.0 }
  0xe8   :  { %v1282_v34 = vadd.f32 0.0036580483, %v1281_v26  ;;  %v1293_v4 = vadd.f32 0.014752088, %v1292_v15  ;;  %v1886_v29 = vmul.f32 %v1854_v19, %v510_v62  ;;  %vm666_vm1 = vweird.f32 %v2118_v56 }
  0xe9   :  { %v663_v30 = vmul.f32 %v2118_v56, %v662_v31  ;;  %v717_v33 = vmul.f32 %v2485_v21, %v2485_v21  ;;  %vm2493_vm2 = vcmp.eq.f32.partialorder %v669_v59, 8.507059e+37  ;;  %v672_v6 = vor.u32 1.1754944e-38, %v671_v11  ;;  %vm667_vm3 = vmor %vm665_vm0, %vm666_vm1 }
  0xea   :  { %2119 = vrcp.f32 %v2487_v28  ;;  %v2499_v36 = vadd.f32 %v2254_v58, %v321_v24  ;;  %v1909_v38 = vpack.c.bf16 %v1886_v29, %v1885_v18  ;;  %v1283_v60 = vmul.f32 %v1282_v34, %v2462_v8  ;;  %v292_v34 = vpop.f32.mrf.mxu2 }
  0xeb   :  { %v664_v40 = vadd.f32 %v2118_v56, %v663_v30  ;;  %v1294_v22 = vmul.f32 %v1293_v4, %v2462_v8  ;;  %v649_v42 = vmul.f32 %v648_v53, %v2314_v41  ;;  %v688_v13 = vadd.f32 1.1283791, %v687_v12 }
  0xec   :  { %v1319_v62 = vmul.f32 2.1237322e-06, %v2489_v10  ;;  %v1330_v32 = vmul.f32 3.8918573e-05, %v2489_v10  ;;  %1925 = vst [vmem:[%s3370_s3 + $0x40] sm:$0xff] %v1909_v38  ;;  %v2511_v49 = vmin.f32 %v717_v33, 16.0  ;;  %vm705_vm5 = vweird.f32 %v2487_v28 }
  0xed   :  { %v668_v47 = vsel %vm667_vm3, %v2118_v56, %v664_v40  ;;  %v1284_v27 = vadd.f32 0.05243302, %v1283_v60  ;;  %v1295_v48 = vadd.f32 0.112945676, %v1294_v22  ;;  %v2516_v44 = vmul.f32 0.70710677, %v2499_v36 }
  0xee   :  { %v673_v41 = vsel %vm2493_vm2, %v672_v6, %v668_v47  ;;  %v1320_v50 = vadd.f32 0.00028619796, %v1319_v62  ;;  %v1331_v39 = vadd.f32 0.001143296, %v1330_v32  ;;  %v719_v43 = vmul.f32 2.1237322e-06, %v2511_v49 }
  0xef   :  { %v674_v7 = vmul.f32 %v673_v41, %v649_v42  ;;  %v1285_v51 = vmul.f32 %v1284_v27, %v2462_v8  ;;  %v1296_v52 = vmul.f32 %v1295_v48, %v2462_v8  ;;  %v2522_v0 = vmul.f32 0.5, %v2317_v45 }
  0xf0   :  { %v2120_v53 = vpop.eup %2119  ;;  %v1321_v55 = vmul.f32 %v1320_v50, %v2489_v10  ;;  %v1332_v20 = vmul.f32 %v1331_v39, %v2489_v10  ;;  %v730_v54 = vmul.f32 3.8918573e-05, %v2511_v49  ;;  %v709_v56 = vand.u32 2147483647, %v2487_v28 }
  0xf1   :  { %v701_v23 = vmul.f32 %v2120_v53, %v2487_v28  ;;  %v711_v59 = vand.u32 2147483648, %v2487_v28  ;;  %v1286_v61 = vadd.f32 0.18741608, %v1285_v51  ;;  %v689_v1 = vmul.f32 %v688_v13, %v2339_v25 }
  0xf2   :  { %v1297_v3 = vadd.f32 0.4994258, %v1296_v52  ;;  %v1322_v9 = vadd.f32 0.0036580483, %v1321_v55  ;;  %v1333_v11 = vadd.f32 0.014752088, %v1332_v20  ;;  %v757_v26 = vmul.f32 %v2516_v44, %v2516_v44 }
  0xf3   :  { %v2036_v45 = vclamps-f32 %v674_v7, 1.0  ;;  %v702_v12 = vsub.f32 1.0, %v701_v23  ;;  %v720_v14 = vadd.f32 0.00028619796, %v719_v43  ;;  %v731_v19 = vadd.f32 0.001143296, %v730_v54 }
  0xf4   :  { %v1298_v15 = vmul.f32 %v1297_v3, %v2462_v8  ;;  %v1323_v16 = vmul.f32 %v1322_v9, %v2489_v10  ;;  %v1334_v18 = vmul.f32 %v1333_v11, %v2489_v10  ;;  %vm706_vm4 = vweird.f32 %v2120_v53 }
  0xf5   :  { %v703_v31 = vmul.f32 %v2120_v53, %v702_v12  ;;  %v1287_v25 = vmul.f32 %v1286_v61, %v2462_v8  ;;  %v721_v24 = vmul.f32 %v720_v14, %v2511_v49  ;;  %v732_v33 = vmul.f32 %v731_v19, %v2511_v49  ;;  %vm707_vm7 = vmor %vm705_vm5, %vm706_vm4 }
  0xf6   :  { %v2538_v4 = vadd.f32 1.0, %v1298_v15  ;;  %v1324_v29 = vadd.f32 0.05243302, %v1323_v16  ;;  %v1335_v30 = vadd.f32 0.112945676, %v1334_v18  ;;  %vm710_vm6 = vcmp.eq.f32.partialorder %v709_v56, 8.507059e+37 }
  0xf7   :  { %v704_v35 = vadd.f32 %v2120_v53, %v703_v31  ;;  %v722_v6 = vadd.f32 0.0036580483, %v721_v24  ;;  %v712_v38 = vor.u32 1.1754944e-38, %v711_v59  ;;  %v2543_v40 = vmin.f32 %v757_v26, 16.0 }
  0xf8   :  { %2121 = vrcp.f32 %v2538_v4  ;;  %v2546_v8 = vadd.f32 %v2252_v57, %v292_v34  ;;  %v1325_v22 = vmul.f32 %v1324_v29, %v2489_v10  ;;  %v1336_v42 = vmul.f32 %v1335_v30, %v2489_v10 }
  0xf9   :  { %v708_v60 = vsel %vm707_vm7, %v2120_v53, %v704_v35  ;;  %v723_v13 = vmul.f32 %v722_v6, %v2511_v49  ;;  %v1839_v62 = vadd.f32 1.0, %v2036_v45  ;;  %v1288_v32 = vadd.f32 1.1283791, %v1287_v25  ;;  %v341_v45 = vpop.f32.mrf.mxu3 }
  0xfa   :  { %v713_v28 = vsel %vm710_vm6, %v712_v38, %v708_v60  ;;  %v733_v47 = vadd.f32 0.014752088, %v732_v33  ;;  %v1326_v48 = vadd.f32 0.18741608, %v1325_v22  ;;  %v1337_v41 = vadd.f32 0.4994258, %v1336_v42 }
  0xfb   :  { %v714_v27 = vmul.f32 %v713_v28, %v689_v1  ;;  %v724_v50 = vadd.f32 0.05243302, %v723_v13  ;;  %v1309_v39 = vand.u32 2147483647, %v2538_v4  ;;  %v759_v51 = vmul.f32 2.1237322e-06, %v2543_v40 }
  0xfc   :  { %v734_v7 = vmul.f32 %v733_v47, %v2511_v49  ;;  %v770_v52 = vmul.f32 3.8918573e-05, %v2543_v40  ;;  %v1311_v53 = vand.u32 2147483648, %v2538_v4  ;;  %v1338_v55 = vmul.f32 %v1337_v41, %v2489_v10 }
  0xfd   :  { %v2037_v43 = vclamps-f32 %v714_v27, 1.0  ;;  %v725_v20 = vmul.f32 %v724_v50, %v2511_v49  ;;  %v1871_v23 = vmul.f32 %v1839_v62, %v2460_v63  ;;  %v760_v59 = vadd.f32 0.00028619796, %v759_v51 }
  0xfe   :  { %v2122_v54 = vpop.eup %2121  ;;  %v735_v56 = vadd.f32 0.112945676, %v734_v7  ;;  %v771_v61 = vadd.f32 0.001143296, %v770_v52  ;;  %v1289_v3 = vmul.f32 %v1288_v32, %v2429_v17  ;;  %v1327_v11 = vmul.f32 %v1326_v48, %v2489_v10 }
  0xff   :  { %v1840_v1 = vadd.f32 1.0, %v2037_v43  ;;  %v1301_v9 = vmul.f32 %v2122_v54, %v2538_v4  ;;  %v2562_v12 = vadd.f32 1.0, %v1338_v55  ;;  %v726_v14 = vadd.f32 0.18741608, %v725_v20 }
 0x100   :  { %v736_v26 = vmul.f32 %v735_v56, %v2511_v49  ;;  %v761_v15 = vmul.f32 %v760_v59, %v2543_v40  ;;  %vm2567_vm8 = vcmp.eq.f32.partialorder %v1309_v39, 8.507059e+37  ;;  %v772_v17 = vmul.f32 %v771_v61, %v2543_v40 }
 0x101   :  { %v1872_v63 = vmul.f32 %v1840_v1, %v2522_v0  ;;  %v1302_v16 = vsub.f32 1.0, %v1301_v9  ;;  %vm1306_vm9 = vweird.f32 %v2122_v54  ;;  %v1312_v19 = vor.u32 1.1754944e-38, %v1311_v53 }
 0x102   :  { %2123 = vrcp.f32 %v2562_v12  ;;  %v2574_v10 = vadd.f32 %v2254_v58, %v341_v45  ;;  %v727_v24 = vmul.f32 %v726_v14, %v2511_v49  ;;  %v737_v34 = vadd.f32 0.4994258, %v736_v26 }
 0x103   :  { %v1902_v31 = vpack.c.bf16 %v1872_v63, %v1871_v23  ;;  %v1303_v25 = vmul.f32 %v2122_v54, %v1302_v16  ;;  %vm1305_vm10 = vweird.f32 %v2538_v4  ;;  %v1328_v0 = vadd.f32 1.1283791, %v1327_v11 }
 0x104   :  { %v762_v29 = vadd.f32 0.0036580483, %v761_v15  ;;  %v773_v30 = vadd.f32 0.014752088, %v772_v17  ;;  %v1349_v35 = vand.u32 2147483647, %v2562_v12  ;;  %v738_v6 = vmul.f32 %v737_v34, %v2511_v49  ;;  %vm1307_vm11 = vmor %vm1305_vm10, %vm1306_vm9 }
 0x105   :  { %1918 = vst [vmem:[%s3370_s3 + $0x8] sm:$0xff] %v1902_v31  ;;  %v1304_v33 = vadd.f32 %v2122_v54, %v1303_v25  ;;  %v2584_v38 = vmul.f32 0.70710677, %v2546_v8  ;;  %v1351_v60 = vand.u32 2147483648, %v2562_v12  ;;  %v2591_v42 = vmul.f32 0.70710677, %v2574_v10 }
 0x106   :  { %v763_v4 = vmul.f32 %v762_v29, %v2543_v40  ;;  %v774_v22 = vmul.f32 %v773_v30, %v2543_v40  ;;  %v728_v62 = vadd.f32 1.1283791, %v727_v24  ;;  %v2593_v28 = vadd.f32 1.0, %v738_v6 }
 0x107   :  { %v1308_v13 = vsel %vm1307_vm11, %v2122_v54, %v1304_v33  ;;  %v1357_v49 = vmul.f32 %v2584_v38, %v2584_v38  ;;  %v1397_v41 = vmul.f32 %v2591_v42, %v2591_v42  ;;  %v511_v50 = vmul.f32 0.5, %v2367_v46 }
 0x108   :  { %v2124_v32 = vpop.eup %2123  ;;  %v1313_v47 = vsel %vm2567_vm8, %v1312_v19, %v1308_v13  ;;  %v764_v27 = vadd.f32 0.05243302, %v763_v4  ;;  %v775_v48 = vadd.f32 0.112945676, %v774_v22  ;;  %v2603_v39 = vmul.f32 0.5, %v2456_v37 }
 0x109   :  { %v1341_v7 = vmul.f32 %v2124_v32, %v2562_v12  ;;  %2125 = vrcp.f32 %v2593_v28  ;;  %v1314_v51 = vmul.f32 %v1313_v47, %v1289_v3  ;;  %v1329_v52 = vmul.f32 %v1328_v0, %v2469_v5 }
 0x10a   :  { %vm1345_vm12 = vweird.f32 %v2562_v12  ;;  %vm2609_vm13 = vcmp.eq.f32.partialorder %v1349_v35, 8.507059e+37  ;;  %v765_v55 = vmul.f32 %v764_v27, %v2543_v40  ;;  %v776_v46 = vmul.f32 %v775_v48, %v2543_v40 }
 0x10b   :  { %v1342_v53 = vsub.f32 1.0, %v1341_v7  ;;  %v2615_v37 = vmin.f32 %v1357_v49, 16.0  ;;  %vm1346_vm14 = vweird.f32 %v2124_v32  ;;  %v1352_v20 = vor.u32 1.1754944e-38, %v1351_v60  ;;  %v274_v49 = vpop.f32.mrf.mxu0 }
 0x10c   :  { %v729_v54 = vmul.f32 %v728_v62, %v2485_v21  ;;  %v2618_v23 = vmin.f32 %v1397_v41, 16.0  ;;  %v749_v56 = vand.u32 2147483647, %v2593_v28  ;;  %v777_v59 = vadd.f32 0.4994258, %v776_v46  ;;  %vm1347_vm0 = vmor %vm1345_vm12, %vm1346_vm14 }
 0x10d   :  { %v1343_v5 = vmul.f32 %v2124_v32, %v1342_v53  ;;  %v1359_v61 = vmul.f32 2.1237322e-06, %v2615_v37  ;;  %v2052_v1 = vclamps-f32 %v1314_v51, 1.0  ;;  %vm745_vm15 = vweird.f32 %v2593_v28 }
 0x10e   :  { %v1370_v3 = vmul.f32 3.8918573e-05, %v2615_v37  ;;  %v1399_v9 = vmul.f32 2.1237322e-06, %v2618_v23  ;;  %v766_v14 = vadd.f32 0.18741608, %v765_v55  ;;  %v778_v21 = vmul.f32 %v777_v59, %v2543_v40 }
 0x10f   :  { %v2126_v11 = vpop.eup %2125  ;;  %v1344_v45 = vadd.f32 %v2124_v32, %v1343_v5  ;;  %v1360_v26 = vadd.f32 0.00028619796, %v1359_v61  ;;  %v751_v63 = vand.u32 2147483648, %v2593_v28  ;;  %v1410_v18 = vmul.f32 3.8918573e-05, %v2618_v23 }
 0x110   :  { %v741_v15 = vmul.f32 %v2126_v11, %v2593_v28  ;;  %v1371_v16 = vadd.f32 0.001143296, %v1370_v3  ;;  %v2632_v19 = vadd.f32 1.0, %v778_v21  ;;  %v1400_v25 = vadd.f32 0.00028619796, %v1399_v9 }
 0x111   :  { %v1348_v17 = vsel %vm1347_vm0, %v2124_v32, %v1344_v45  ;;  %v1361_v31 = vmul.f32 %v1360_v26, %v2615_v37  ;;  %v1855_v24 = vadd.f32 1.0, %v2052_v1  ;;  %vm2638_vm1 = vcmp.eq.f32.partialorder %v749_v56, 8.507059e+37 }
 0x112   :  { %v1353_v34 = vsel %vm2609_vm13, %v1352_v20, %v1348_v17  ;;  %v742_v0 = vsub.f32 1.0, %v741_v15  ;;  %v1372_v12 = vmul.f32 %v1371_v16, %v2615_v37  ;;  %v767_v33 = vmul.f32 %v766_v14, %v2543_v40 }
 0x113   :  { %v1354_v29 = vmul.f32 %v1353_v34, %v1329_v52  ;;  %2127 = vrcp.f32 %v2632_v19  ;;  %vm746_vm2 = vweird.f32 %v2126_v11  ;;  %v1362_v6 = vadd.f32 0.0036580483, %v1361_v31  ;;  %v323_v52 = vpop.f32.mrf.mxu1 }
 0x114   :  { %v743_v35 = vmul.f32 %v2126_v11, %v742_v0  ;;  %v1373_v60 = vadd.f32 0.014752088, %v1372_v12  ;;  %v752_v22 = vor.u32 1.1754944e-38, %v751_v63  ;;  %v1401_v13 = vmul.f32 %v1400_v25, %v2618_v23  ;;  %vm747_vm3 = vmor %vm745_vm15, %vm746_vm2 }
 0x115   :  { %v2053_v4 = vclamps-f32 %v1354_v29, 1.0  ;;  %v1411_v62 = vadd.f32 0.001143296, %v1410_v18  ;;  %v1887_v32 = vmul.f32 %v1855_v24, %v511_v50  ;;  %v1363_v27 = vmul.f32 %v1362_v6, %v2615_v37 }
 0x116   :  { %v744_v47 = vadd.f32 %v2126_v11, %v743_v35  ;;  %v1374_v48 = vmul.f32 %v1373_v60, %v2615_v37  ;;  %v768_v40 = vadd.f32 1.1283791, %v767_v33  ;;  %v1402_v7 = vadd.f32 0.0036580483, %v1401_v13 }
 0x117   :  { %v1856_v41 = vadd.f32 1.0, %v2053_v4  ;;  %v1412_v51 = vmul.f32 %v1411_v62, %v2618_v23  ;;  %v1364_v53 = vadd.f32 0.05243302, %v1363_v27  ;;  %v2651_v46 = vadd.f32 %v2252_v57, %v274_v49 }
 0x118   :  { %v748_v43 = vsel %vm747_vm3, %v2126_v11, %v744_v47  ;;  %v1375_v55 = vadd.f32 0.112945676, %v1374_v48  ;;  %v1403_v28 = vmul.f32 %v1402_v7, %v2618_v23  ;;  %v2660_v3 = vadd.f32 %v2254_v58, %v323_v52 }
 0x119   :  { %v2128_v50 = vpop.eup %2127  ;;  %v1888_v20 = vmul.f32 %v1856_v41, %v2603_v39  ;;  %v753_v5 = vsel %vm2638_vm1, %v752_v22, %v748_v43  ;;  %v1413_v56 = vadd.f32 0.014752088, %v1412_v51  ;;  %v1365_v1 = vmul.f32 %v1364_v53, %v2615_v37  ;;  %v294_v51 = vpop.f32.mrf.mxu2 }
 0x11a   :  { %v754_v59 = vmul.f32 %v753_v5, %v729_v54  ;;  %v781_v61 = vmul.f32 %v2128_v50, %v2632_v19  ;;  %v1376_v11 = vmul.f32 %v1375_v55, %v2615_v37  ;;  %v1404_v45 = vadd.f32 0.05243302, %v1403_v28 }
 0x11b   :  { %v1910_v9 = vpack.c.bf16 %v1888_v20, %v1887_v32  ;;  %v1414_v39 = vmul.f32 %v1413_v56, %v2618_v23  ;;  %v769_v14 = vmul.f32 %v768_v40, %v2516_v44  ;;  %v789_v26 = vand.u32 2147483647, %v2632_v19  ;;  %v343_v56 = vpop.f32.mrf.mxu3 }
 0x11c   :  { %v782_v21 = vsub.f32 1.0, %v781_v61  ;;  %v1366_v15 = vadd.f32 0.18741608, %v1365_v1  ;;  %v791_v54 = vand.u32 2147483648, %v2632_v19  ;;  %v1377_v63 = vadd.f32 0.4994258, %v1376_v11 }
 0x11d   :  { %1926 = vst [vmem:[%s3370_s3 + $0x48] sm:$0xff] %v1910_v9  ;;  %v1405_v16 = vmul.f32 %v1404_v45, %v2618_v23  ;;  %v1415_v18 = vadd.f32 0.112945676, %v1414_v39  ;;  %v2038_v17 = vclamps-f32 %v754_v59, 1.0  ;;  %vm786_vm4 = vweird.f32 %v2128_v50 }
 0x11e   :  { %v783_v31 = vmul.f32 %v2128_v50, %v782_v21  ;;  %v2672_v25 = vmul.f32 0.70710677, %v2651_v46  ;;  %v1378_v44 = vmul.f32 %v1377_v63, %v2615_v37  ;;  %v2677_v0 = vmul.f32 0.70710677, %v2660_v3 }
 0x11f   :  { %v1406_v24 = vadd.f32 0.18741608, %v1405_v16  ;;  %v1416_v34 = vmul.f32 %v1415_v18, %v2618_v23  ;;  %vm785_vm5 = vweird.f32 %v2632_v19  ;;  %v1367_v29 = vmul.f32 %v1366_v15, %v2615_v37 }
 0x120   :  { %v784_v12 = vadd.f32 %v2128_v50, %v783_v31  ;;  %v797_v30 = vmul.f32 %v2672_v25, %v2672_v25  ;;  %vm787_vm6 = vmor %vm785_vm5, %vm786_vm4  ;;  %v792_v33 = vor.u32 1.1754944e-38, %v791_v54  ;;  %v2683_v35 = vadd.f32 1.0, %v1378_v44 }
 0x121   :  { %v1417_v6 = vadd.f32 0.4994258, %v1416_v34  ;;  %v837_v60 = vmul.f32 %v2677_v0, %v2677_v0  ;;  %vm790_vm7 = vcmp.eq.f32.partialorder %v789_v26, 8.507059e+37  ;;  %v1407_v22 = vmul.f32 %v1406_v24, %v2618_v23 }
 0x122   :  { %v788_v4 = vsel %vm787_vm6, %v2128_v50, %v784_v12  ;;  %v2688_v13 = vmin.f32 %v797_v30, 16.0  ;;  %v497_v19 = vmul.f32 0.5, %v2473_v2  ;;  %v1841_v37 = vadd.f32 1.0, %v2038_v17 }
 0x123   :  { %v793_v62 = vsel %vm790_vm7, %v792_v33, %v788_v4  ;;  %2129 = vrcp.f32 %v2683_v35  ;;  %v1368_v32 = vadd.f32 1.1283791, %v1367_v29  ;;  %v1389_v47 = vand.u32 2147483647, %v2683_v35 }
 0x124   :  { %v794_v49 = vmul.f32 %v793_v62, %v769_v14  ;;  %v1418_v27 = vmul.f32 %v1417_v6, %v2618_v23  ;;  %v498_v48 = vmul.f32 0.5, %v2499_v36  ;;  %v799_v41 = vmul.f32 2.1237322e-06, %v2688_v13 }
 0x125   :  { %v810_v40 = vmul.f32 3.8918573e-05, %v2688_v13  ;;  %v2697_v7 = vmin.f32 %v837_v60, 16.0  ;;  %v1391_v52 = vand.u32 2147483648, %v2683_v35  ;;  %v1408_v43 = vadd.f32 1.1283791, %v1407_v22 }
 0x126   :  { %v2039_v2 = vclamps-f32 %v794_v49, 1.0  ;;  %v2700_v53 = vadd.f32 1.0, %v1418_v27  ;;  %v1873_v55 = vmul.f32 %v1841_v37, %v497_v19  ;;  %v800_v50 = vadd.f32 0.00028619796, %v799_v41 }
 0x127   :  { %v811_v20 = vadd.f32 0.001143296, %v810_v40  ;;  %v839_v23 = vmul.f32 2.1237322e-06, %v2697_v7  ;;  %v1369_v36 = vmul.f32 %v1368_v32, %v2584_v38  ;;  %v2706_v28 = vadd.f32 %v2252_v57, %v294_v51 }
 0x128   :  { %v1842_v5 = vadd.f32 1.0, %v2039_v2  ;;  %2131 = vrcp.f32 %v2700_v53  ;;  %vm1385_vm8 = vweird.f32 %v2683_v35  ;;  %v801_v61 = vmul.f32 %v800_v50, %v2688_v13 }
 0x129   :  { %v2130_v59 = vpop.eup %2129  ;;  %v812_v1 = vmul.f32 %v811_v20, %v2688_v13  ;;  %v840_v9 = vadd.f32 0.00028619796, %v839_v23  ;;  %vm2712_vm9 = vcmp.eq.f32.partialorder %v1389_v47, 8.507059e+37  ;;  %v1392_v38 = vor.u32 1.1754944e-38, %v1391_v52 }
 0x12a   :  { %v1874_v11 = vmul.f32 %v1842_v5, %v498_v48  ;;  %v1381_v45 = vmul.f32 %v2130_v59, %v2683_v35  ;;  %v1409_v14 = vmul.f32 %v1408_v43, %v2591_v42  ;;  %v802_v21 = vadd.f32 0.0036580483, %v801_v61 }
 0x12b   :  { %v813_v26 = vadd.f32 0.014752088, %v812_v1  ;;  %v841_v15 = vmul.f32 %v840_v9, %v2697_v7  ;;  %v2719_v54 = vadd.f32 %v2254_v58, %v343_v56  ;;  %v1429_v18 = vand.u32 2147483647, %v2700_v53 }
 0x12c   :  { %v1903_v63 = vpack.c.bf16 %v1874_v11, %v1873_v55  ;;  %v1382_v16 = vsub.f32 1.0, %v1381_v45  ;;  %v850_v17 = vmul.f32 3.8918573e-05, %v2697_v7  ;;  %vm1425_vm10 = vweird.f32 %v2700_v53 }
 0x12d   :  { %v803_v31 = vmul.f32 %v802_v21, %v2688_v13  ;;  %v814_v44 = vmul.f32 %v813_v26, %v2688_v13  ;;  %v842_v42 = vadd.f32 0.0036580483, %v841_v15  ;;  %v2727_v24 = vmul.f32 0.70710677, %v2706_v28 }
 0x12e   :  { %v2132_v34 = vpop.eup %2131  ;;  %1919 = vst [vmem:[%s3370_s3 + $0x10] sm:$0xff] %v1903_v63  ;;  %v1383_v12 = vmul.f32 %v2130_v59, %v1382_v16  ;;  %vm1386_vm11 = vweird.f32 %v2130_v59  ;;  %v1431_v29 = vand.u32 2147483648, %v2700_v53  ;;  %v851_v30 = vadd.f32 0.001143296, %v850_v17 }
 0x12f   :  { %v1421_v33 = vmul.f32 %v2132_v34, %v2700_v53  ;;  %v804_v6 = vadd.f32 0.05243302, %v803_v31  ;;  %v815_v60 = vadd.f32 0.112945676, %v814_v44  ;;  %v2735_v4 = vmul.f32 0.70710677, %v2719_v54  ;;  %vm1387_vm12 = vmor %vm1385_vm8, %vm1386_vm11 }
 0x130   :  { %v1384_v22 = vadd.f32 %v2130_v59, %v1383_v12  ;;  %v843_v19 = vmul.f32 %v842_v42, %v2697_v7  ;;  %v852_v37 = vmul.f32 %v851_v30, %v2697_v7  ;;  %v1437_v62 = vmul.f32 %v2727_v24, %v2727_v24 }
 0x131   :  { %v1422_v49 = vsub.f32 1.0, %v1421_v33  ;;  %vm1426_vm13 = vweird.f32 %v2132_v34  ;;  %v805_v32 = vmul.f32 %v804_v6, %v2688_v13  ;;  %v816_v47 = vmul.f32 %v815_v60, %v2688_v13 }
 0x132   :  { %v1388_v27 = vsel %vm1387_vm12, %v2130_v59, %v1384_v22  ;;  %v844_v48 = vadd.f32 0.05243302, %v843_v19  ;;  %v853_v41 = vadd.f32 0.014752088, %v852_v37  ;;  %v2745_v40 = vmin.f32 %v1437_v62, 16.0  ;;  %vm1427_vm15 = vmor %vm1425_vm10, %vm1426_vm13 }
 0x133   :  { %v1393_v51 = vsel %vm2712_vm9, %v1392_v38, %v1388_v27  ;;  %v1423_v2 = vmul.f32 %v2132_v34, %v1422_v49  ;;  %v806_v52 = vadd.f32 0.18741608, %v805_v32  ;;  %v817_v43 = vadd.f32 0.4994258, %v816_v47 }
 0x134   :  { %v1394_v55 = vmul.f32 %v1393_v51, %v1369_v36  ;;  %v854_v35 = vmul.f32 %v853_v41, %v2697_v7  ;;  %v1439_v50 = vmul.f32 2.1237322e-06, %v2745_v40  ;;  %v1477_v20 = vmul.f32 %v2735_v4, %v2735_v4 }
 0x135   :  { %v1424_v23 = vadd.f32 %v2132_v34, %v1423_v2  ;;  %vm1430_vm14 = vcmp.eq.f32.partialorder %v1429_v18, 8.507059e+37  ;;  %v1432_v5 = vor.u32 1.1754944e-38, %v1431_v29  ;;  %v818_v56 = vmul.f32 %v817_v43, %v2688_v13 }
 0x136   :  { %v2054_v59 = vclamps-f32 %v1394_v55, 1.0  ;;  %v807_v61 = vmul.f32 %v806_v52, %v2688_v13  ;;  %v845_v36 = vmul.f32 %v844_v48, %v2697_v7  ;;  %v855_v1 = vadd.f32 0.112945676, %v854_v35  ;;  %v326_v48 = vpop.f32.mrf.mxu1 }
 0x137   :  { %v1428_v9 = vsel %vm1427_vm15, %v2132_v34, %v1424_v23  ;;  %v2759_v11 = vadd.f32 1.0, %v818_v56  ;;  %v1440_v45 = vadd.f32 0.00028619796, %v1439_v50  ;;  %v1450_v39 = vmul.f32 3.8918573e-05, %v2745_v40 }
 0x138   :  { %v1857_v38 = vadd.f32 1.0, %v2054_v59  ;;  %v1433_v21 = vsel %vm1430_vm14, %v1432_v5, %v1428_v9  ;;  %v856_v26 = vmul.f32 %v855_v1, %v2697_v7  ;;  %v2763_v15 = vmin.f32 %v1477_v20, 16.0 }
 0x139   :  { %v1434_v63 = vmul.f32 %v1433_v21, %v1409_v14  ;;  %2133 = vrcp.f32 %v2759_v11  ;;  %v513_v13 = vmul.f32 0.5, %v2546_v8  ;;  %v514_v53 = vmul.f32 0.5, %v2574_v10 }
 0x13a   :  { %v808_v16 = vadd.f32 1.1283791, %v807_v61  ;;  %v846_v18 = vadd.f32 0.18741608, %v845_v36  ;;  %v857_v31 = vadd.f32 0.4994258, %v856_v26  ;;  %v1441_v44 = vmul.f32 %v1440_v45, %v2745_v40 }
 0x13b   :  { %v2055_v17 = vclamps-f32 %v1434_v63, 1.0  ;;  %v1451_v42 = vadd.f32 0.001143296, %v1450_v39  ;;  %v1889_v34 = vmul.f32 %v1857_v38, %v513_v13  ;;  %v2770_v12 = vmul.f32 0.5, %v2651_v46  ;;  %v277_v46 = vpop.f32.mrf.mxu0 }
 0x13c   :  { %v2773_v29 = vmul.f32 0.5, %v2660_v3  ;;  %v1479_v14 = vmul.f32 2.1237322e-06, %v2763_v15  ;;  %v858_v8 = vmul.f32 %v857_v31, %v2697_v7  ;;  %v1442_v10 = vadd.f32 0.0036580483, %v1441_v44 }
 0x13d   :  { %v1858_v30 = vadd.f32 1.0, %v2055_v17  ;;  %v1452_v33 = vmul.f32 %v1451_v42, %v2745_v40  ;;  %v809_v6 = vmul.f32 %v808_v16, %v2672_v25  ;;  %v847_v60 = vmul.f32 %v846_v18, %v2697_v7 }
 0x13e   :  { %v1480_v22 = vadd.f32 0.00028619796, %v1479_v14  ;;  %v1490_v19 = vmul.f32 3.8918573e-05, %v2763_v15  ;;  %v2781_v3 = vadd.f32 1.0, %v858_v8  ;;  %v1443_v49 = vmul.f32 %v1442_v10, %v2745_v40 }
 0x13f   :  { %v2134_v37 = vpop.eup %2133  ;;  %v1890_v62 = vmul.f32 %v1858_v30, %v514_v53  ;;  %v1453_v32 = vadd.f32 0.014752088, %v1452_v33  ;;  %vm825_vm0 = vweird.f32 %v2759_v11  ;;  %v829_v41 = vand.u32 2147483647, %v2759_v11 }
 0x140   :  { %v821_v47 = vmul.f32 %v2134_v37, %v2759_v11  ;;  %v1481_v27 = vmul.f32 %v1480_v22, %v2763_v15  ;;  %v1491_v25 = vadd.f32 0.001143296, %v1490_v19  ;;  %2135 = vrcp.f32 %v2781_v3 }
 0x141   :  { %v1911_v7 = vpack.c.bf16 %v1890_v62, %v1889_v34  ;;  %v2790_v51 = vadd.f32 %v2252_v57, %v277_v46  ;;  %v831_v52 = vand.u32 2147483648, %v2759_v11  ;;  %v1444_v43 = vadd.f32 0.05243302, %v1443_v49 }
 0x142   :  { %v822_v2 = vsub.f32 1.0, %v821_v47  ;;  %v1454_v55 = vmul.f32 %v1453_v32, %v2745_v40  ;;  %v848_v35 = vadd.f32 1.1283791, %v847_v60  ;;  %v1482_v50 = vadd.f32 0.0036580483, %v1481_v27  ;;  %v297_v47 = vpop.f32.mrf.mxu2 }
 0x143   :  { %1927 = vst [vmem:[%s3370_s3 + $0x50] sm:$0xff] %v1911_v7  ;;  %v1492_v20 = vmul.f32 %v1491_v25, %v2763_v15  ;;  %v2799_v23 = vadd.f32 %v2254_v58, %v326_v48  ;;  %vm826_vm1 = vweird.f32 %v2134_v37  ;;  %v1445_v56 = vmul.f32 %v1444_v43, %v2745_v40 }
 0x144   :  { %v823_v5 = vmul.f32 %v2134_v37, %v822_v2  ;;  %v1455_v59 = vadd.f32 0.112945676, %v1454_v55  ;;  %vm2802_vm2 = vcmp.eq.f32.partialorder %v829_v41, 8.507059e+37  ;;  %v1483_v36 = vmul.f32 %v1482_v50, %v2763_v15  ;;  %vm827_vm3 = vmor %vm825_vm0, %vm826_vm1 }
 0x145   :  { %v1493_v1 = vadd.f32 0.014752088, %v1492_v20  ;;  %v2808_v9 = vmul.f32 0.70710677, %v2790_v51  ;;  %v832_v39 = vor.u32 1.1754944e-38, %v831_v52  ;;  %v849_v17 = vmul.f32 %v848_v35, %v2677_v0 }
 0x146   :  { %v824_v45 = vadd.f32 %v2134_v37, %v823_v5  ;;  %v1446_v38 = vadd.f32 0.18741608, %v1445_v56  ;;  %v1456_v21 = vmul.f32 %v1455_v59, %v2745_v40  ;;  %v2136_v26 = vpop.eup %2135  ;;  %v1484_v63 = vadd.f32 0.05243302, %v1483_v36 }
 0x147   :  { %v1494_v13 = vmul.f32 %v1493_v1, %v2763_v15  ;;  %v877_v53 = vmul.f32 %v2808_v9, %v2808_v9  ;;  %v2817_v16 = vmul.f32 0.70710677, %v2799_v23  ;;  %v861_v31 = vmul.f32 %v2136_v26, %v2781_v3 }
 0x148   :  { %v828_v18 = vsel %vm827_vm3, %v2134_v37, %v824_v45  ;;  %v871_v44 = vand.u32 2147483648, %v2781_v3  ;;  %v1457_v42 = vadd.f32 0.4994258, %v1456_v21  ;;  %v1485_v34 = vmul.f32 %v1484_v63, %v2763_v15 }
 0x149   :  { %v833_v11 = vsel %vm2802_vm2, %v832_v39, %v828_v18  ;;  %v1495_v14 = vadd.f32 0.112945676, %v1494_v13  ;;  %v862_v8 = vsub.f32 1.0, %v861_v31  ;;  %v1447_v10 = vmul.f32 %v1446_v38, %v2745_v40 }
 0x14a   :  { %v834_v30 = vmul.f32 %v833_v11, %v809_v6  ;;  %v2826_v33 = vmin.f32 %v877_v53, 16.0  ;;  %v1458_v60 = vmul.f32 %v1457_v42, %v2745_v40  ;;  %v1486_v0 = vadd.f32 0.18741608, %v1485_v34 }
 0x14b   :  { %v1496_v22 = vmul.f32 %v1495_v14, %v2763_v15  ;;  %v917_v19 = vmul.f32 %v2817_v16, %v2817_v16  ;;  %v863_v46 = vmul.f32 %v2136_v26, %v862_v8  ;;  %vm866_vm4 = vweird.f32 %v2136_v26 }
 0x14c   :  { %v869_v37 = vand.u32 2147483647, %v2781_v3  ;;  %v879_v62 = vmul.f32 2.1237322e-06, %v2826_v33  ;;  %v2040_v6 = vclamps-f32 %v834_v30, 1.0  ;;  %vm865_vm5 = vweird.f32 %v2781_v3 }
 0x14d   :  { %v2835_v49 = vadd.f32 1.0, %v1458_v60  ;;  %v1497_v32 = vadd.f32 0.4994258, %v1496_v22  ;;  %v864_v40 = vadd.f32 %v2136_v26, %v863_v46  ;;  %v872_v27 = vor.u32 1.1754944e-38, %v871_v44  ;;  %vm867_vm6 = vmor %vm865_vm5, %vm866_vm4 }
 0x14e   :  { %v880_v25 = vadd.f32 0.00028619796, %v879_v62  ;;  %v890_v48 = vmul.f32 3.8918573e-05, %v2826_v33  ;;  %v1448_v7 = vadd.f32 1.1283791, %v1447_v10  ;;  %v1487_v41 = vmul.f32 %v1486_v0, %v2763_v15 }
 0x14f   :  { %2137 = vrcp.f32 %v2835_v49  ;;  %v2840_v2 = vmin.f32 %v917_v19, 16.0  ;;  %v868_v52 = vsel %vm867_vm6, %v2136_v26, %v864_v40  ;;  %vm870_vm7 = vcmp.eq.f32.partialorder %v869_v37, 8.507059e+37 }
 0x150   :  { %v1498_v3 = vmul.f32 %v1497_v32, %v2763_v15  ;;  %v2844_v43 = vadd.f32 %v2252_v57, %v297_v47  ;;  %v1843_v55 = vadd.f32 1.0, %v2040_v6  ;;  %v873_v35 = vsel %vm870_vm7, %v872_v27, %v868_v52 }
 0x151   :  { %v1469_v50 = vand.u32 2147483647, %v2835_v49  ;;  %v881_v20 = vmul.f32 %v880_v25, %v2826_v33  ;;  %v874_v5 = vmul.f32 %v873_v35, %v849_v17  ;;  %v1471_v56 = vand.u32 2147483648, %v2835_v49 }
 0x152   :  { %v2849_v59 = vadd.f32 1.0, %v1498_v3  ;;  %v891_v61 = vadd.f32 0.001143296, %v890_v48  ;;  %v1449_v36 = vmul.f32 %v1448_v7, %v2727_v24  ;;  %v1488_v1 = vadd.f32 1.1283791, %v1487_v41  ;;  %v346_v24 = vpop.f32.mrf.mxu3 }
 0x153   :  { %v882_v45 = vadd.f32 0.0036580483, %v881_v20  ;;  %v919_v15 = vmul.f32 2.1237322e-06, %v2840_v2  ;;  %v2041_v39 = vclamps-f32 %v874_v5, 1.0  ;;  %vm1465_vm8 = vweird.f32 %v2835_v49 }
 0x154   :  { %2139 = vrcp.f32 %v2849_v59  ;;  %v930_v38 = vmul.f32 3.8918573e-05, %v2840_v2  ;;  %v1875_v26 = vmul.f32 %v1843_v55, %v2770_v12  ;;  %v892_v13 = vmul.f32 %v891_v61, %v2826_v33 }
 0x155   :  { %v2138_v21 = vpop.eup %2137  ;;  %v883_v63 = vmul.f32 %v882_v45, %v2826_v33  ;;  %v920_v53 = vadd.f32 0.00028619796, %v919_v15  ;;  %v1844_v18 = vadd.f32 1.0, %v2041_v39  ;;  %vm2860_vm9 = vcmp.eq.f32.partialorder %v1469_v50, 8.507059e+37 }
 0x156   :  { %v1461_v17 = vmul.f32 %v2138_v21, %v2835_v49  ;;  %v1472_v44 = vor.u32 1.1754944e-38, %v1471_v56  ;;  %v1489_v11 = vmul.f32 %v1488_v1, %v2735_v4  ;;  %v893_v34 = vadd.f32 0.014752088, %v892_v13 }
 0x157   :  { %v884_v42 = vadd.f32 0.05243302, %v883_v63  ;;  %v921_v12 = vmul.f32 %v920_v53, %v2840_v2  ;;  %v1876_v14 = vmul.f32 %v1844_v18, %v2773_v29  ;;  %v931_v8 = vadd.f32 0.001143296, %v930_v38 }
 0x158   :  { %v1462_v30 = vsub.f32 1.0, %v1461_v17  ;;  %v2868_v10 = vadd.f32 %v2254_v58, %v346_v24  ;;  %vm1505_vm10 = vweird.f32 %v2849_v59  ;;  %v894_v0 = vmul.f32 %v893_v34, %v2826_v33 }
 0x159   :  { %v885_v60 = vmul.f32 %v884_v42, %v2826_v33  ;;  %v922_v22 = vadd.f32 0.0036580483, %v921_v12  ;;  %v2874_v4 = vmul.f32 0.70710677, %v2844_v43  ;;  %v1904_v46 = vpack.c.bf16 %v1876_v14, %v1875_v26 }
 0x15a   :  { %v2140_v19 = vpop.eup %2139  ;;  %v1463_v37 = vmul.f32 %v2138_v21, %v1462_v30  ;;  %vm1466_vm11 = vweird.f32 %v2138_v21  ;;  %v932_v29 = vmul.f32 %v931_v8, %v2840_v2  ;;  %v1509_v6 = vand.u32 2147483647, %v2849_v59 }
 0x15b   :  { %v1501_v62 = vmul.f32 %v2140_v19, %v2849_v59  ;;  %v1511_v32 = vand.u32 2147483648, %v2849_v59  ;;  %v895_v47 = vadd.f32 0.112945676, %v894_v0  ;;  %1920 = vst [vmem:[%s3370_s3 + $0x18] sm:$0xff] %v1904_v46  ;;  %v923_v27 = vmul.f32 %v922_v22, %v2840_v2  ;;  %vm1467_vm12 = vmor %vm1465_vm8, %vm1466_vm11  ;;  %v279_v22 = vpop.f32.mrf.mxu0 }
 0x15c   :  { %v1464_v40 = vadd.f32 %v2138_v21, %v1463_v37  ;;  %v933_v25 = vadd.f32 0.014752088, %v932_v29  ;;  %v1517_v48 = vmul.f32 %v2874_v4, %v2874_v4  ;;  %vm1506_vm13 = vweird.f32 %v2140_v19 }
 0x15d   :  { %v1502_v7 = vsub.f32 1.0, %v1501_v62  ;;  %v886_v41 = vadd.f32 0.18741608, %v885_v60  ;;  %v896_v52 = vmul.f32 %v895_v47, %v2826_v33  ;;  %v924_v55 = vadd.f32 0.05243302, %v923_v27  ;;  %vm1507_vm15 = vmor %vm1505_vm10, %vm1506_vm13 }
 0x15e   :  { %v1468_v3 = vsel %vm1467_vm12, %v2138_v21, %v1464_v40  ;;  %v934_v35 = vmul.f32 %v933_v25, %v2840_v2  ;;  %v2890_v50 = vmin.f32 %v1517_v48, 16.0  ;;  %v2895_v61 = vmul.f32 0.70710677, %v2868_v10 }
 0x15f   :  { %v1473_v20 = vsel %vm2860_vm9, %v1472_v44, %v1468_v3  ;;  %v1503_v5 = vmul.f32 %v2140_v19, %v1502_v7  ;;  %v897_v56 = vadd.f32 0.4994258, %v896_v52  ;;  %v925_v1 = vmul.f32 %v924_v55, %v2840_v2 }
 0x160   :  { %v1474_v49 = vmul.f32 %v1473_v20, %v1449_v36  ;;  %v935_v45 = vadd.f32 0.112945676, %v934_v35  ;;  %v1519_v15 = vmul.f32 2.1237322e-06, %v2890_v50  ;;  %vm1510_vm14 = vcmp.eq.f32.partialorder %v1509_v6, 8.507059e+37 }
 0x161   :  { %v1504_v39 = vadd.f32 %v2140_v19, %v1503_v5  ;;  %v898_v38 = vmul.f32 %v897_v56, %v2826_v33  ;;  %v1530_v21 = vmul.f32 3.8918573e-05, %v2890_v50  ;;  %v1512_v63 = vor.u32 1.1754944e-38, %v1511_v32 }
 0x162   :  { %v2056_v26 = vclamps-f32 %v1474_v49, 1.0  ;;  %v887_v13 = vmul.f32 %v886_v41, %v2826_v33  ;;  %v936_v36 = vmul.f32 %v935_v45, %v2840_v2  ;;  %v1520_v18 = vadd.f32 0.00028619796, %v1519_v15 }
 0x163   :  { %v1508_v53 = vsel %vm1507_vm15, %v2140_v19, %v1504_v39  ;;  %v2906_v24 = vadd.f32 1.0, %v898_v38  ;;  %v1531_v17 = vadd.f32 0.001143296, %v1530_v21  ;;  %v926_v44 = vadd.f32 0.18741608, %v925_v1 }
 0x164   :  { %v1513_v31 = vsel %vm1510_vm14, %v1512_v63, %v1508_v53  ;;  %v937_v42 = vadd.f32 0.4994258, %v936_v36  ;;  %v1557_v34 = vmul.f32 %v2895_v61, %v2895_v61  ;;  %v1859_v12 = vadd.f32 1.0, %v2056_v26 }
 0x165   :  { %v1514_v14 = vmul.f32 %v1513_v31, %v1489_v11  ;;  %2141 = vrcp.f32 %v2906_v24  ;;  %v515_v59 = vmul.f32 0.5, %v2706_v28  ;;  %v516_v30 = vmul.f32 0.5, %v2719_v54 }
 0x166   :  { %v938_v33 = vmul.f32 %v937_v42, %v2840_v2  ;;  %v1521_v60 = vmul.f32 %v1520_v18, %v2890_v50  ;;  %v1532_v0 = vmul.f32 %v1531_v17, %v2890_v50  ;;  %v888_v19 = vadd.f32 1.1283791, %v887_v13 }
 0x167   :  { %v2057_v8 = vclamps-f32 %v1514_v14, 1.0  ;;  %v927_v46 = vmul.f32 %v926_v44, %v2840_v2  ;;  %v2919_v11 = vmin.f32 %v1557_v34, 16.0  ;;  %v1891_v29 = vmul.f32 %v1859_v12, %v515_v59 }
 0x168   :  { %v2917_v37 = vadd.f32 1.0, %v938_v33  ;;  %v1522_v28 = vadd.f32 0.0036580483, %v1521_v60  ;;  %v1533_v6 = vadd.f32 0.014752088, %v1532_v0  ;;  %v911_v54 = vand.u32 2147483648, %v2906_v24 }
 0x169   :  { %v1860_v62 = vadd.f32 1.0, %v2057_v8  ;;  %v909_v32 = vand.u32 2147483647, %v2906_v24  ;;  %v2925_v47 = vadd.f32 %v2252_v57, %v279_v22  ;;  %v1559_v48 = vmul.f32 2.1237322e-06, %v2919_v11  ;;  %v328_v22 = vpop.f32.mrf.mxu1 }
 0x16a   :  { %2143 = vrcp.f32 %v2917_v37  ;;  %v1523_v2 = vmul.f32 %v1522_v28, %v2890_v50  ;;  %v1534_v25 = vmul.f32 %v1533_v6, %v2890_v50  ;;  %v889_v7 = vmul.f32 %v888_v19, %v2808_v9 }
 0x16b   :  { %v2142_v40 = vpop.eup %2141  ;;  %v1892_v27 = vmul.f32 %v1860_v62, %v516_v30  ;;  %vm905_vm0 = vweird.f32 %v2906_v24  ;;  %v928_v52 = vadd.f32 1.1283791, %v927_v46  ;;  %v1560_v20 = vadd.f32 0.00028619796, %v1559_v48 }
 0x16c   :  { %v901_v41 = vmul.f32 %v2142_v40, %v2906_v24  ;;  %v1524_v55 = vadd.f32 0.05243302, %v1523_v2  ;;  %v1535_v35 = vadd.f32 0.112945676, %v1534_v25  ;;  %vm2933_vm1 = vcmp.eq.f32.partialorder %v909_v32, 8.507059e+37 }
 0x16d   :  { %v1912_v3 = vpack.c.bf16 %v1892_v27, %v1891_v29  ;;  %v1570_v49 = vmul.f32 3.8918573e-05, %v2919_v11  ;;  %v2939_v1 = vmul.f32 0.70710677, %v2925_v47  ;;  %v912_v9 = vor.u32 1.1754944e-38, %v911_v54 }
 0x16e   :  { %v902_v5 = vsub.f32 1.0, %v901_v41  ;;  %v1525_v45 = vmul.f32 %v1524_v55, %v2890_v50  ;;  %v1536_v15 = vmul.f32 %v1535_v35, %v2890_v50  ;;  %v1561_v39 = vmul.f32 %v1560_v20, %v2919_v11 }
 0x16f   :  { %1928 = vst [vmem:[%s3370_s3 + $0x58] sm:$0xff] %v1912_v3  ;;  %vm906_vm2 = vweird.f32 %v2142_v40  ;;  %v1571_v26 = vadd.f32 0.001143296, %v1570_v49  ;;  %v957_v63 = vmul.f32 %v2939_v1, %v2939_v1  ;;  %v929_v13 = vmul.f32 %v928_v52, %v2817_v16  ;;  %v299_v52 = vpop.f32.mrf.mxu2 }
 0x170   :  { %v2144_v38 = vpop.eup %2143  ;;  %v903_v21 = vmul.f32 %v2142_v40, %v902_v5  ;;  %v1526_v53 = vadd.f32 0.18741608, %v1525_v45  ;;  %v1537_v18 = vadd.f32 0.4994258, %v1536_v15  ;;  %v1562_v31 = vadd.f32 0.0036580483, %v1561_v39  ;;  %vm907_vm3 = vmor %vm905_vm0, %vm906_vm2 }
 0x171   :  { %v941_v36 = vmul.f32 %v2144_v38, %v2917_v37  ;;  %v1572_v44 = vmul.f32 %v1571_v26, %v2919_v11  ;;  %v2952_v42 = vmin.f32 %v957_v63, 16.0  ;;  %v949_v12 = vand.u32 2147483647, %v2917_v37 }
 0x172   :  { %v904_v17 = vadd.f32 %v2142_v40, %v903_v21  ;;  %v951_v14 = vand.u32 2147483648, %v2917_v37  ;;  %v1538_v16 = vmul.f32 %v1537_v18, %v2890_v50  ;;  %v1563_v33 = vmul.f32 %v1562_v31, %v2919_v11 }
 0x173   :  { %v942_v34 = vsub.f32 1.0, %v941_v36  ;;  %v1573_v30 = vadd.f32 0.014752088, %v1572_v44  ;;  %v959_v8 = vmul.f32 2.1237322e-06, %v2952_v42  ;;  %vm946_vm4 = vweird.f32 %v2144_v38 }
 0x174   :  { %v908_v59 = vsel %vm907_vm3, %v2142_v40, %v904_v17  ;;  %v2963_v24 = vadd.f32 1.0, %v1538_v16  ;;  %v1527_v46 = vmul.f32 %v1526_v53, %v2890_v50  ;;  %vm945_vm5 = vweird.f32 %v2917_v37 }
 0x175   :  { %v913_v60 = vsel %vm2933_vm1, %v912_v9, %v908_v59  ;;  %v943_v0 = vmul.f32 %v2144_v38, %v942_v34  ;;  %v1574_v29 = vmul.f32 %v1573_v30, %v2919_v11  ;;  %v960_v62 = vadd.f32 0.00028619796, %v959_v8  ;;  %vm947_vm6 = vmor %vm945_vm5, %vm946_vm4 }
 0x176   :  { %v914_v19 = vmul.f32 %v913_v60, %v889_v7  ;;  %2145 = vrcp.f32 %v2963_v24  ;;  %v1564_v6 = vadd.f32 0.05243302, %v1563_v33  ;;  %vm950_vm7 = vcmp.eq.f32.partialorder %v949_v12, 8.507059e+37 }
 0x177   :  { %v944_v28 = vadd.f32 %v2144_v38, %v943_v0  ;;  %v952_v54 = vor.u32 1.1754944e-38, %v951_v14  ;;  %v2970_v40 = vadd.f32 %v2254_v58, %v328_v22  ;;  %v1575_v2 = vadd.f32 0.112945676, %v1574_v29 }
 0x178   :  { %v2042_v32 = vclamps-f32 %v914_v19, 1.0  ;;  %v961_v50 = vmul.f32 %v960_v62, %v2952_v42  ;;  %v970_v25 = vmul.f32 3.8918573e-05, %v2952_v42  ;;  %v501_v48 = vmul.f32 0.5, %v2790_v51 }
 0x179   :  { %v948_v27 = vsel %vm947_vm6, %v2144_v38, %v944_v28  ;;  %v502_v37 = vmul.f32 0.5, %v2799_v23  ;;  %v1528_v41 = vadd.f32 1.1283791, %v1527_v46  ;;  %v1565_v35 = vmul.f32 %v1564_v6, %v2919_v11 }
 0x17a   :  { %v953_v7 = vsel %vm950_vm7, %v952_v54, %v948_v27  ;;  %v1845_v3 = vadd.f32 1.0, %v2042_v32  ;;  %v1576_v20 = vmul.f32 %v1575_v2, %v2919_v11  ;;  %v962_v5 = vadd.f32 0.0036580483, %v961_v50  ;;  %v348_v50 = vpop.f32.mrf.mxu3 }
 0x17b   :  { %v954_v55 = vmul.f32 %v953_v7, %v929_v13  ;;  %v971_v56 = vadd.f32 0.001143296, %v970_v25  ;;  %v2979_v49 = vmul.f32 0.70710677, %v2970_v40  ;;  %v1549_v51 = vand.u32 2147483647, %v2963_v24 }
 0x17c   :  { %v2146_v9 = vpop.eup %2145  ;;  %v1577_v15 = vadd.f32 0.4994258, %v1576_v20  ;;  %v2983_v23 = vadd.f32 %v2252_v57, %v299_v52  ;;  %v1551_v38 = vand.u32 2147483648, %v2963_v24  ;;  %v1877_v63 = vmul.f32 %v1845_v3, %v501_v48 }
 0x17d   :  { %v2043_v45 = vclamps-f32 %v954_v55, 1.0  ;;  %v1541_v39 = vmul.f32 %v2146_v9, %v2963_v24  ;;  %v972_v21 = vmul.f32 %v971_v56, %v2952_v42  ;;  %v997_v26 = vmul.f32 %v2979_v49, %v2979_v49 }
 0x17e   :  { %v1566_v36 = vadd.f32 0.18741608, %v1565_v35  ;;  %v1578_v53 = vmul.f32 %v1577_v15, %v2919_v11  ;;  %v963_v17 = vmul.f32 %v962_v5, %v2952_v42  ;;  %vm1546_vm8 = vweird.f32 %v2146_v9 }
 0x17f   :  { %v1846_v13 = vadd.f32 1.0, %v2043_v45  ;;  %v1542_v18 = vsub.f32 1.0, %v1541_v39  ;;  %v973_v31 = vadd.f32 0.014752088, %v972_v21  ;;  %v2992_v44 = vmin.f32 %v997_v26, 16.0 }
 0x180   :  { %v2994_v12 = vadd.f32 1.0, %v1578_v53  ;;  %v2997_v14 = vmul.f32 0.70710677, %v2983_v23  ;;  %v3003_v60 = vmul.f32 0.5, %v2844_v43  ;;  %vm1545_vm9 = vweird.f32 %v2963_v24 }
 0x181   :  { %v1878_v34 = vmul.f32 %v1846_v13, %v502_v37  ;;  %v1543_v16 = vmul.f32 %v2146_v9, %v1542_v18  ;;  %v974_v59 = vmul.f32 %v973_v31, %v2952_v42  ;;  %v999_v33 = vmul.f32 2.1237322e-06, %v2992_v44  ;;  %vm1547_vm10 = vmor %vm1545_vm9, %vm1546_vm8 }
 0x182   :  { %v1010_v30 = vmul.f32 3.8918573e-05, %v2992_v44  ;;  %2147 = vrcp.f32 %v2994_v12  ;;  %v1567_v22 = vmul.f32 %v1566_v36, %v2919_v11  ;;  %v964_v19 = vadd.f32 0.05243302, %v963_v17 }
 0x183   :  { %v1905_v8 = vpack.c.bf16 %v1878_v34, %v1877_v63  ;;  %v1544_v0 = vadd.f32 %v2146_v9, %v1543_v16  ;;  %v975_v46 = vadd.f32 0.112945676, %v974_v59  ;;  %v1552_v29 = vor.u32 1.1754944e-38, %v1551_v38 }
 0x184   :  { %v1000_v62 = vadd.f32 0.00028619796, %v999_v33  ;;  %v1011_v28 = vadd.f32 0.001143296, %v1010_v30  ;;  %v1597_v43 = vmul.f32 %v2997_v14, %v2997_v14  ;;  %v1529_v24 = vmul.f32 %v1528_v41, %v2874_v4 }
 0x185   :  { %1921 = vst [vmem:[%s3370_s3 + $0x20] sm:$0xff] %v1905_v8  ;;  %v1548_v6 = vsel %vm1547_vm10, %v2146_v9, %v1544_v0  ;;  %vm1550_vm11 = vcmp.eq.f32.partialorder %v1549_v51, 8.507059e+37  ;;  %v976_v11 = vmul.f32 %v975_v46, %v2952_v42  ;;  %v1568_v48 = vadd.f32 1.1283791, %v1567_v22  ;;  %v282_v22 = vpop.f32.mrf.mxu0 }
 0x186   :  { %v1553_v32 = vsel %vm1550_vm11, %v1552_v29, %v1548_v6  ;;  %v1001_v54 = vmul.f32 %v1000_v62, %v2992_v44  ;;  %v1012_v27 = vmul.f32 %v1011_v28, %v2992_v44  ;;  %v3018_v2 = vmin.f32 %v1597_v43, 16.0 }
 0x187   :  { %v1554_v25 = vmul.f32 %v1553_v32, %v1529_v24  ;;  %v965_v37 = vmul.f32 %v964_v19, %v2952_v42  ;;  %v977_v7 = vadd.f32 0.4994258, %v976_v11  ;;  %v1589_v35 = vand.u32 2147483647, %v2994_v12 }
 0x188   :  { %v2148_v52 = vpop.eup %2147  ;;  %v1002_v3 = vadd.f32 0.0036580483, %v1001_v54  ;;  %v1013_v4 = vadd.f32 0.014752088, %v1012_v27  ;;  %v1599_v41 = vmul.f32 2.1237322e-06, %v3018_v2  ;;  %v3026_v5 = vadd.f32 %v2254_v58, %v348_v50 }
 0x189   :  { %v1581_v55 = vmul.f32 %v2148_v52, %v2994_v12  ;;  %v1591_v20 = vand.u32 2147483648, %v2994_v12  ;;  %v978_v56 = vmul.f32 %v977_v7, %v2952_v42  ;;  %v2058_v15 = vclamps-f32 %v1554_v25, 1.0 }
 0x18a   :  { %v1003_v9 = vmul.f32 %v1002_v3, %v2992_v44  ;;  %v1014_v45 = vmul.f32 %v1013_v4, %v2992_v44  ;;  %v1600_v51 = vadd.f32 0.00028619796, %v1599_v41  ;;  %v966_v38 = vadd.f32 0.18741608, %v965_v37 }
 0x18b   :  { %v1582_v39 = vsub.f32 1.0, %v1581_v55  ;;  %v1610_v21 = vmul.f32 3.8918573e-05, %v3018_v2  ;;  %v3032_v26 = vadd.f32 1.0, %v978_v56  ;;  %vm1586_vm12 = vweird.f32 %v2148_v52 }
 0x18c   :  { %v1004_v63 = vadd.f32 0.05243302, %v1003_v9  ;;  %v1015_v13 = vadd.f32 0.112945676, %v1014_v45  ;;  %v1601_v36 = vmul.f32 %v1600_v51, %v3018_v2  ;;  %v3036_v17 = vmul.f32 0.70710677, %v3026_v5 }
 0x18d   :  { %v1583_v53 = vmul.f32 %v2148_v52, %v1582_v39  ;;  %v1611_v18 = vadd.f32 0.001143296, %v1610_v21  ;;  %v518_v31 = vmul.f32 0.5, %v2868_v10  ;;  %v1569_v34 = vmul.f32 %v1568_v48, %v2895_v61 }
 0x18e   :  { %vm1585_vm13 = vweird.f32 %v2994_v12  ;;  %2149 = vrcp.f32 %v3032_v26  ;;  %vm1590_vm14 = vcmp.eq.f32.partialorder %v1589_v35, 8.507059e+37  ;;  %v1005_v59 = vmul.f32 %v1004_v63, %v2992_v44 }
 0x18f   :  { %v1584_v16 = vadd.f32 %v2148_v52, %v1583_v53  ;;  %v1016_v33 = vmul.f32 %v1015_v13, %v2992_v44  ;;  %vm1587_vm15 = vmor %vm1585_vm13, %vm1586_vm12  ;;  %v1592_v30 = vor.u32 1.1754944e-38, %v1591_v20  ;;  %v1602_v8 = vadd.f32 0.0036580483, %v1601_v36 }
 0x190   :  { %v1612_v0 = vmul.f32 %v1611_v18, %v3018_v2  ;;  %v1637_v10 = vmul.f32 %v3036_v17, %v3036_v17  ;;  %v1861_v61 = vadd.f32 1.0, %v2058_v15  ;;  %v967_v12 = vmul.f32 %v966_v38, %v2952_v42 }
 0x191   :  { %v1588_v19 = vsel %vm1587_vm15, %v2148_v52, %v1584_v16  ;;  %v1017_v46 = vadd.f32 0.4994258, %v1016_v33  ;;  %v3049_v62 = vmul.f32 0.5, %v2925_v47  ;;  %v1006_v6 = vadd.f32 0.18741608, %v1005_v59 }
 0x192   :  { %v1593_v29 = vsel %vm1590_vm14, %v1592_v30, %v1588_v19  ;;  %v1613_v28 = vadd.f32 0.014752088, %v1612_v0  ;;  %v3051_v43 = vmin.f32 %v1637_v10, 16.0  ;;  %v3055_v32 = vadd.f32 %v2252_v57, %v282_v22 }
 0x193   :  { %v1594_v24 = vmul.f32 %v1593_v29, %v1569_v34  ;;  %v1018_v11 = vmul.f32 %v1017_v46, %v2992_v44  ;;  %v1603_v27 = vmul.f32 %v1602_v8, %v3018_v2  ;;  %v1893_v25 = vmul.f32 %v1861_v61, %v3003_v60  ;;  %v331_v46 = vpop.f32.mrf.mxu1  ;;  %v302_v29 = vpop.f32.mrf.mxu2 }
 0x194   :  { %v2150_v54 = vpop.eup %2149  ;;  %v1614_v42 = vmul.f32 %v1613_v28, %v3018_v2  ;;  %v1639_v50 = vmul.f32 2.1237322e-06, %v3051_v43  ;;  %v1650_v47 = vmul.f32 3.8918573e-05, %v3051_v43  ;;  %v968_v37 = vadd.f32 1.1283791, %v967_v12 }
 0x195   :  { %v2059_v48 = vclamps-f32 %v1594_v24, 1.0  ;;  %v981_v7 = vmul.f32 %v2150_v54, %v3032_v26  ;;  %v991_v52 = vand.u32 2147483648, %v3032_v26  ;;  %v3064_v3 = vadd.f32 1.0, %v1018_v11 }
 0x196   :  { %v1615_v4 = vadd.f32 0.112945676, %v1614_v42  ;;  %v1640_v41 = vadd.f32 0.00028619796, %v1639_v50  ;;  %v1007_v20 = vmul.f32 %v1006_v6, %v2992_v44  ;;  %v1651_v56 = vadd.f32 0.001143296, %v1650_v47 }
 0x197   :  { %v1862_v55 = vadd.f32 1.0, %v2059_v48  ;;  %v982_v35 = vsub.f32 1.0, %v981_v7  ;;  %v989_v9 = vand.u32 2147483647, %v3032_v26  ;;  %2151 = vrcp.f32 %v3064_v3 }
 0x198   :  { %v1604_v60 = vadd.f32 0.05243302, %v1603_v27  ;;  %v3070_v45 = vmul.f32 0.70710677, %v3055_v32  ;;  %vm986_vm0 = vweird.f32 %v2150_v54  ;;  %v1616_v39 = vmul.f32 %v1615_v4, %v3018_v2 }
 0x199   :  { %v1894_v51 = vmul.f32 %v1862_v55, %v518_v31  ;;  %v983_v15 = vmul.f32 %v2150_v54, %v982_v35  ;;  %vm985_vm1 = vweird.f32 %v3032_v26  ;;  %v992_v38 = vor.u32 1.1754944e-38, %v991_v52 }
 0x19a   :  { %v1641_v21 = vmul.f32 %v1640_v41, %v3051_v43  ;;  %v1652_v44 = vmul.f32 %v1651_v56, %v3051_v43  ;;  %v1008_v36 = vadd.f32 1.1283791, %v1007_v20  ;;  %v1617_v53 = vadd.f32 0.4994258, %v1616_v39  ;;  %vm987_vm2 = vmor %vm985_vm1, %vm986_vm0 }
 0x19b   :  { %v1913_v63 = vpack.c.bf16 %v1894_v51, %v1893_v25  ;;  %v984_v13 = vadd.f32 %v2150_v54, %v983_v15  ;;  %v1605_v18 = vmul.f32 %v1604_v60, %v3018_v2  ;;  %v1037_v16 = vmul.f32 %v3070_v45, %v3070_v45 }
 0x19c   :  { %v1642_v34 = vadd.f32 0.0036580483, %v1641_v21  ;;  %v1653_v31 = vadd.f32 0.014752088, %v1652_v44  ;;  %v969_v26 = vmul.f32 %v968_v37, %v2939_v1  ;;  %vm990_vm3 = vcmp.eq.f32.partialorder %v989_v9, 8.507059e+37 }
 0x19d   :  { %1929 = vst [vmem:[%s3370_s3 + $0x60] sm:$0xff] %v1913_v63  ;;  %v988_v59 = vsel %vm987_vm2, %v2150_v54, %v984_v13  ;;  %v1618_v33 = vmul.f32 %v1617_v53, %v3018_v2  ;;  %v2152_v30 = vpop.eup %2151  ;;  %v3085_v0 = vmul.f32 0.5, %v2970_v40  ;;  %v3088_v22 = vmin.f32 %v1037_v16, 16.0 }
 0x19e   :  { %v993_v8 = vsel %vm990_vm3, %v992_v38, %v988_v59  ;;  %v1654_v10 = vmul.f32 %v1653_v31, %v3051_v43  ;;  %v1021_v19 = vmul.f32 %v2152_v30, %v3064_v3  ;;  %v1029_v12 = vand.u32 2147483647, %v3064_v3 }
 0x19f   :  { %v994_v61 = vmul.f32 %v993_v8, %v969_v26  ;;  %v1643_v1 = vmul.f32 %v1642_v34, %v3051_v43  ;;  %v1009_v28 = vmul.f32 %v1008_v36, %v2979_v49  ;;  %v1606_v24 = vadd.f32 0.18741608, %v1605_v18 }
 0x1a0   :  { %v3094_v6 = vadd.f32 1.0, %v1618_v33  ;;  %v1655_v40 = vadd.f32 0.112945676, %v1654_v10  ;;  %v1022_v11 = vsub.f32 1.0, %v1021_v19  ;;  %v1031_v54 = vand.u32 2147483648, %v3064_v3 }
 0x1a1   :  { %v1039_v27 = vmul.f32 2.1237322e-06, %v3088_v22  ;;  %v1050_v42 = vmul.f32 3.8918573e-05, %v3088_v22  ;;  %v2044_v50 = vclamps-f32 %v994_v61, 1.0  ;;  %v3101_v47 = vadd.f32 %v2254_v58, %v331_v46 }
 0x1a2   :  { %2153 = vrcp.f32 %v3094_v6  ;;  %v3104_v25 = vadd.f32 %v2252_v57, %v302_v29  ;;  %v1023_v49 = vmul.f32 %v2152_v30, %v1022_v11  ;;  %vm1026_vm4 = vweird.f32 %v2152_v30 }
 0x1a3   :  { %v1644_v48 = vadd.f32 0.05243302, %v1643_v1  ;;  %v1656_v37 = vmul.f32 %v1655_v40, %v3051_v43  ;;  %vm1025_vm5 = vweird.f32 %v3064_v3  ;;  %vm3108_vm6 = vcmp.eq.f32.partialorder %v1029_v12, 8.507059e+37 }
 0x1a4   :  { %v1040_v52 = vadd.f32 0.00028619796, %v1039_v27  ;;  %v1051_v4 = vadd.f32 0.001143296, %v1050_v42  ;;  %v1024_v41 = vadd.f32 %v2152_v30, %v1023_v49  ;;  %v1032_v55 = vor.u32 1.1754944e-38, %v1031_v54  ;;  %vm1027_vm7 = vmor %vm1025_vm5, %vm1026_vm4 }
 0x1a5   :  { %v1607_v35 = vmul.f32 %v1606_v24, %v3018_v2  ;;  %v1657_v20 = vadd.f32 0.4994258, %v1656_v37  ;;  %v1847_v56 = vadd.f32 1.0, %v2044_v50  ;;  %v3116_v51 = vmul.f32 0.70710677, %v3101_v47 }
 0x1a6   :  { %v1041_v9 = vmul.f32 %v1040_v52, %v3088_v22  ;;  %v1052_v60 = vmul.f32 %v1051_v4, %v3088_v22  ;;  %v1028_v3 = vsel %vm1027_vm7, %v2152_v30, %v1024_v41  ;;  %v1645_v15 = vmul.f32 %v1644_v48, %v3051_v43 }
 0x1a7   :  { %v1658_v39 = vmul.f32 %v1657_v20, %v3051_v43  ;;  %v3121_v38 = vmul.f32 0.70710677, %v3104_v25  ;;  %v1033_v2 = vsel %vm3108_vm6, %v1032_v55, %v1028_v3  ;;  %v1077_v13 = vmul.f32 %v3116_v51, %v3116_v51 }
 0x1a8   :  { %v2154_v21 = vpop.eup %2153  ;;  %v1042_v44 = vadd.f32 0.0036580483, %v1041_v9  ;;  %v1053_v63 = vadd.f32 0.014752088, %v1052_v60  ;;  %v1034_v36 = vmul.f32 %v1033_v2, %v1009_v28  ;;  %v1608_v53 = vadd.f32 1.1283791, %v1607_v35 }
 0x1a9   :  { %v1621_v18 = vmul.f32 %v2154_v21, %v3094_v6  ;;  %v1629_v34 = vand.u32 2147483647, %v3094_v6  ;;  %v3129_v31 = vadd.f32 1.0, %v1658_v39  ;;  %v3133_v59 = vmin.f32 %v1077_v13, 16.0  ;;  %v351_v13 = vpop.f32.mrf.mxu3 }
 0x1aa   :  { %v1043_v16 = vmul.f32 %v1042_v44, %v3088_v22  ;;  %v1054_v26 = vmul.f32 %v1053_v63, %v3088_v22  ;;  %v2045_v33 = vclamps-f32 %v1034_v36, 1.0  ;;  %v1631_v8 = vand.u32 2147483648, %v3094_v6 }
 0x1ab   :  { %v1622_v30 = vsub.f32 1.0, %v1621_v18  ;;  %v1646_v10 = vadd.f32 0.18741608, %v1645_v15  ;;  %v1879_v61 = vmul.f32 %v1847_v56, %v3049_v62  ;;  %vm1626_vm8 = vweird.f32 %v2154_v21 }
 0x1ac   :  { %2155 = vrcp.f32 %v3129_v31  ;;  %v1677_v19 = vmul.f32 %v3121_v38, %v3121_v38  ;;  %v1848_v12 = vadd.f32 1.0, %v2045_v33  ;;  %v1044_v46 = vadd.f32 0.05243302, %v1043_v16 }
 0x1ad   :  { %v1623_v1 = vmul.f32 %v2154_v21, %v1622_v30  ;;  %v1055_v29 = vadd.f32 0.112945676, %v1054_v26  ;;  %vm1625_vm9 = vweird.f32 %v3094_v6  ;;  %vm3141_vm10 = vcmp.eq.f32.partialorder %v1629_v34, 8.507059e+37 }
 0x1ae   :  { %v1079_v24 = vmul.f32 2.1237322e-06, %v3133_v59  ;;  %v1090_v62 = vmul.f32 3.8918573e-05, %v3133_v59  ;;  %v1880_v40 = vmul.f32 %v1848_v12, %v3085_v0  ;;  %v1647_v54 = vmul.f32 %v1646_v10, %v3051_v43  ;;  %vm1627_vm11 = vmor %vm1625_vm9, %vm1626_vm8 }
 0x1af   :  { %v1624_v11 = vadd.f32 %v2154_v21, %v1623_v1  ;;  %v1056_v27 = vmul.f32 %v1055_v29, %v3088_v22  ;;  %v1632_v42 = vor.u32 1.1754944e-38, %v1631_v8  ;;  %v3151_v49 = vmin.f32 %v1677_v19, 16.0 }
 0x1b0   :  { %v1080_v50 = vadd.f32 0.00028619796, %v1079_v24  ;;  %v1091_v6 = vadd.f32 0.001143296, %v1090_v62  ;;  %v1906_v48 = vpack.c.bf16 %v1880_v40, %v1879_v61  ;;  %v1045_v7 = vmul.f32 %v1044_v46, %v3088_v22 }
 0x1b1   :  { %v1628_v37 = vsel %vm1627_vm11, %v2154_v21, %v1624_v11  ;;  %v1057_v52 = vadd.f32 0.4994258, %v1056_v27  ;;  %v1679_v55 = vmul.f32 2.1237322e-06, %v3151_v49  ;;  %v1609_v35 = vmul.f32 %v1608_v53, %v2997_v14 }
 0x1b2   :  { %v2156_v4 = vpop.eup %2155  ;;  %v1633_v0 = vsel %vm3141_vm10, %v1632_v42, %v1628_v37  ;;  %v1081_v43 = vmul.f32 %v1080_v50, %v3133_v59  ;;  %v1092_v41 = vmul.f32 %v1091_v6, %v3133_v59  ;;  %1922 = vst [vmem:[%s3370_s3 + $0x28] sm:$0xff] %v1906_v48  ;;  %v1648_v20 = vadd.f32 1.1283791, %v1647_v54 }
 0x1b3   :  { %v1661_v56 = vmul.f32 %v2156_v4, %v3129_v31  ;;  %v1671_v9 = vand.u32 2147483648, %v3129_v31  ;;  %v1058_v60 = vmul.f32 %v1057_v52, %v3088_v22  ;;  %v1680_v39 = vadd.f32 0.00028619796, %v1679_v55 }
 0x1b4   :  { %v1082_v3 = vadd.f32 0.0036580483, %v1081_v43  ;;  %v1093_v15 = vadd.f32 0.014752088, %v1092_v41  ;;  %v1634_v21 = vmul.f32 %v1633_v0, %v1609_v35  ;;  %v1046_v44 = vadd.f32 0.18741608, %v1045_v7  ;;  %v284_v43 = vpop.f32.mrf.mxu0 }
 0x1b5   :  { %v1662_v2 = vsub.f32 1.0, %v1661_v56  ;;  %v1690_v63 = vmul.f32 3.8918573e-05, %v3151_v49  ;;  %v3167_v36 = vadd.f32 1.0, %v1058_v60  ;;  %v1681_v18 = vmul.f32 %v1680_v39, %v3151_v49 }
 0x1b6   :  { %v1083_v14 = vmul.f32 %v1082_v3, %v3133_v59  ;;  %v1094_v53 = vmul.f32 %v1093_v15, %v3133_v59  ;;  %vm1666_vm12 = vweird.f32 %v2156_v4  ;;  %v1669_v16 = vand.u32 2147483647, %v3129_v31 }
 0x1b7   :  { %v1663_v34 = vmul.f32 %v2156_v4, %v1662_v2  ;;  %v1691_v26 = vadd.f32 0.001143296, %v1690_v63  ;;  %v519_v33 = vmul.f32 0.5, %v2983_v23  ;;  %vm1665_vm13 = vweird.f32 %v3129_v31 }
 0x1b8   :  { %2157 = vrcp.f32 %v3167_v36  ;;  %v3177_v30 = vadd.f32 %v2254_v58, %v351_v13  ;;  %v2060_v8 = vclamps-f32 %v1634_v21, 1.0  ;;  %v1084_v61 = vadd.f32 0.05243302, %v1083_v14  ;;  %vm1667_vm14 = vmor %vm1665_vm13, %vm1666_vm12  ;;  %v333_v13 = vpop.f32.mrf.mxu1 }
 0x1b9   :  { %v1664_v10 = vadd.f32 %v2156_v4, %v1663_v34  ;;  %v1095_v19 = vadd.f32 0.112945676, %v1094_v53  ;;  %v1672_v12 = vor.u32 1.1754944e-38, %v1671_v9  ;;  %v1047_v1 = vmul.f32 %v1046_v44, %v3088_v22 }
 0x1ba   :  { %v1682_v46 = vadd.f32 0.0036580483, %v1681_v18  ;;  %v1692_v29 = vmul.f32 %v1691_v26, %v3151_v49  ;;  %v1649_v23 = vmul.f32 %v1648_v20, %v3036_v17  ;;  %vm1670_vm15 = vcmp.eq.f32.partialorder %v1669_v16, 8.507059e+37 }
 0x1bb   :  { %v1668_v28 = vsel %vm1667_vm14, %v2156_v4, %v1664_v10  ;;  %v1096_v31 = vmul.f32 %v1095_v19, %v3133_v59  ;;  %v1085_v62 = vmul.f32 %v1084_v61, %v3133_v59  ;;  %v3185_v11 = vmul.f32 0.70710677, %v3177_v30 }
 0x1bc   :  { %v1673_v24 = vsel %vm1670_vm15, %v1672_v12, %v1668_v28  ;;  %v1693_v40 = vadd.f32 0.014752088, %v1692_v29  ;;  %v1863_v54 = vadd.f32 1.0, %v2060_v8  ;;  %v1683_v22 = vmul.f32 %v1682_v46, %v3151_v49 }
 0x1bd   :  { %v1674_v27 = vmul.f32 %v1673_v24, %v1649_v23  ;;  %v1097_v42 = vadd.f32 0.4994258, %v1096_v31  ;;  %v520_v6 = vmul.f32 0.5, %v3026_v5  ;;  %v1048_v17 = vadd.f32 1.1283791, %v1047_v1 }
 0x1be   :  { %v2158_v50 = vpop.eup %2157  ;;  %v1694_v48 = vmul.f32 %v1693_v40, %v3151_v49  ;;  %v1717_v37 = vmul.f32 %v3185_v11, %v3185_v11  ;;  %v1069_v4 = vand.u32 2147483647, %v3167_v36  ;;  %v1071_v0 = vand.u32 2147483648, %v3167_v36 }
 0x1bf   :  { %v2061_v7 = vclamps-f32 %v1674_v27, 1.0  ;;  %v1061_v52 = vmul.f32 %v2158_v50, %v3167_v36  ;;  %v1086_v41 = vadd.f32 0.18741608, %v1085_v62  ;;  %v1098_v55 = vmul.f32 %v1097_v42, %v3133_v59 }
 0x1c0   :  { %v1695_v35 = vadd.f32 0.112945676, %v1694_v48  ;;  %v3196_v20 = vmin.f32 %v1717_v37, 16.0  ;;  %v1895_v5 = vmul.f32 %v1863_v54, %v519_v33  ;;  %v1684_v60 = vadd.f32 0.05243302, %v1683_v22 }
 0x1c1   :  { %v1864_v56 = vadd.f32 1.0, %v2061_v7  ;;  %v1062_v9 = vsub.f32 1.0, %v1061_v52  ;;  %v3198_v3 = vadd.f32 1.0, %v1098_v55  ;;  %v3203_v21 = vadd.f32 %v2252_v57, %v284_v43 }
 0x1c2   :  { %v1696_v15 = vmul.f32 %v1695_v35, %v3151_v49  ;;  %v1719_v39 = vmul.f32 2.1237322e-06, %v3196_v20  ;;  %vm1066_vm0 = vweird.f32 %v2158_v50  ;;  %v1730_v63 = vmul.f32 3.8918573e-05, %v3196_v20 }
 0x1c3   :  { %v1896_v2 = vmul.f32 %v1864_v56, %v520_v6  ;;  %v1063_v44 = vmul.f32 %v2158_v50, %v1062_v9  ;;  %v1049_v14 = vmul.f32 %v1048_v17, %v3070_v45  ;;  %vm1065_vm1 = vweird.f32 %v3167_v36 }
 0x1c4   :  { %v1087_v53 = vmul.f32 %v1086_v41, %v3133_v59  ;;  %2159 = vrcp.f32 %v3198_v3  ;;  %v1685_v16 = vmul.f32 %v1684_v60, %v3151_v49  ;;  %v1697_v26 = vadd.f32 0.4994258, %v1696_v15  ;;  %vm1067_vm2 = vmor %vm1065_vm1, %vm1066_vm0 }
 0x1c5   :  { %v1914_v18 = vpack.c.bf16 %v1896_v2, %v1895_v5  ;;  %v1064_v34 = vadd.f32 %v2158_v50, %v1063_v44  ;;  %v1072_v33 = vor.u32 1.1754944e-38, %v1071_v0  ;;  %v1720_v8 = vadd.f32 0.00028619796, %v1719_v39 }
 0x1c6   :  { %v1731_v10 = vadd.f32 0.001143296, %v1730_v63  ;;  %v3212_v61 = vadd.f32 %v2254_v58, %v333_v13  ;;  %vm1070_vm3 = vcmp.eq.f32.partialorder %v1069_v4, 8.507059e+37  ;;  %v1698_v59 = vmul.f32 %v1697_v26, %v3151_v49  ;;  %v304_v4 = vpop.f32.mrf.mxu2 }
 0x1c7   :  { %1930 = vst [vmem:[%s3370_s3 + $0x68] sm:$0xff] %v1914_v18  ;;  %v1068_v45 = vsel %vm1067_vm2, %v2158_v50, %v1064_v34  ;;  %v3219_v36 = vmul.f32 0.70710677, %v3203_v21  ;;  %v1088_v12 = vadd.f32 1.1283791, %v1087_v53  ;;  %v1721_v1 = vmul.f32 %v1720_v8, %v3196_v20 }
 0x1c8   :  { %v1073_v19 = vsel %vm1070_vm3, %v1072_v33, %v1068_v45  ;;  %v1732_v46 = vmul.f32 %v1731_v10, %v3196_v20  ;;  %v1686_v29 = vadd.f32 0.18741608, %v1685_v16  ;;  %v3223_v23 = vadd.f32 1.0, %v1698_v59 }
 0x1c9   :  { %v1117_v28 = vmul.f32 %v3219_v36, %v3219_v36  ;;  %v1074_v24 = vmul.f32 %v1073_v19, %v1049_v14  ;;  %v1722_v62 = vadd.f32 0.0036580483, %v1721_v1  ;;  %v3228_v54 = vmul.f32 0.70710677, %v3212_v61 }
 0x1ca   :  { %v2160_v31 = vpop.eup %2159  ;;  %v1733_v40 = vadd.f32 0.014752088, %v1732_v46  ;;  %v505_v27 = vmul.f32 0.5, %v3055_v32  ;;  %v3232_v42 = vmul.f32 0.5, %v3101_v47  ;;  %2161 = vrcp.f32 %v3223_v23 }
 0x1cb   :  { %v1101_v22 = vmul.f32 %v2160_v31, %v3198_v3  ;;  %v1089_v50 = vmul.f32 %v1088_v12, %v3116_v51  ;;  %v1109_v6 = vand.u32 2147483647, %v3198_v3  ;;  %v1111_v17 = vand.u32 2147483648, %v3198_v3 }
 0x1cc   :  { %v1723_v48 = vmul.f32 %v1722_v62, %v3196_v20  ;;  %vm1105_vm4 = vweird.f32 %v3198_v3  ;;  %v1734_v32 = vmul.f32 %v1733_v40, %v3196_v20  ;;  %v3242_v7 = vmin.f32 %v1117_v28, 16.0 }
 0x1cd   :  { %v1102_v37 = vsub.f32 1.0, %v1101_v22  ;;  %v2046_v47 = vclamps-f32 %v1074_v24, 1.0  ;;  %vm1106_vm5 = vweird.f32 %v2160_v31  ;;  %v1687_v52 = vmul.f32 %v1686_v29, %v3151_v49 }
 0x1ce   :  { %v1157_v51 = vmul.f32 %v3228_v54, %v3228_v54  ;;  %v1724_v43 = vadd.f32 0.05243302, %v1723_v48  ;;  %v1735_v41 = vadd.f32 0.112945676, %v1734_v32  ;;  %v1119_v55 = vmul.f32 2.1237322e-06, %v3242_v7  ;;  %vm1107_vm7 = vmor %vm1105_vm4, %vm1106_vm5 }
 0x1cf   :  { %v1103_v0 = vmul.f32 %v2160_v31, %v1102_v37  ;;  %vm3248_vm6 = vcmp.eq.f32.partialorder %v1109_v6, 8.507059e+37  ;;  %v1112_v5 = vor.u32 1.1754944e-38, %v1111_v17  ;;  %v1130_v56 = vmul.f32 3.8918573e-05, %v3242_v7 }
 0x1d0   :  { %v3253_v9 = vmin.f32 %v1157_v51, 16.0  ;;  %v2162_v60 = vpop.eup %2161  ;;  %v1736_v15 = vmul.f32 %v1735_v41, %v3196_v20  ;;  %v1120_v39 = vadd.f32 0.00028619796, %v1119_v55  ;;  %v3257_v2 = vadd.f32 %v2252_v57, %v304_v4 }
 0x1d1   :  { %v1104_v49 = vadd.f32 %v2160_v31, %v1103_v0  ;;  %v1849_v44 = vadd.f32 1.0, %v2046_v47  ;;  %v1701_v63 = vmul.f32 %v2162_v60, %v3223_v23  ;;  %vm1705_vm8 = vweird.f32 %v3223_v23 }
 0x1d2   :  { %v1131_v13 = vadd.f32 0.001143296, %v1130_v56  ;;  %v1725_v53 = vmul.f32 %v1724_v43, %v3196_v20  ;;  %v1737_v18 = vadd.f32 0.4994258, %v1736_v15  ;;  %v1159_v34 = vmul.f32 2.1237322e-06, %v3253_v9 }
 0x1d3   :  { %v1108_v14 = vsel %vm1107_vm7, %v2160_v31, %v1104_v49  ;;  %v1702_v16 = vsub.f32 1.0, %v1701_v63  ;;  %v1121_v26 = vmul.f32 %v1120_v39, %v3242_v7  ;;  %v1709_v8 = vand.u32 2147483647, %v3223_v23  ;;  %v353_v39 = vpop.f32.mrf.mxu3 }
 0x1d4   :  { %v1113_v57 = vsel %vm3248_vm6, %v1112_v5, %v1108_v14  ;;  %v1132_v3 = vmul.f32 %v1131_v13, %v3242_v7  ;;  %v1711_v10 = vand.u32 2147483648, %v3223_v23  ;;  %v1738_v45 = vmul.f32 %v1737_v18, %v3196_v20 }
 0x1d5   :  { %v1114_v33 = vmul.f32 %v1113_v57, %v1089_v50  ;;  %v1703_v59 = vmul.f32 %v2162_v60, %v1702_v16  ;;  %v1160_v12 = vadd.f32 0.00028619796, %v1159_v34  ;;  %v1170_v1 = vmul.f32 3.8918573e-05, %v3253_v9 }
 0x1d6   :  { %v1133_v19 = vadd.f32 0.014752088, %v1132_v3  ;;  %v1881_v46 = vmul.f32 %v1849_v44, %v505_v27  ;;  %vm1706_vm9 = vweird.f32 %v2162_v60  ;;  %v3274_v28 = vadd.f32 1.0, %v1738_v45 }
 0x1d7   :  { %v2047_v29 = vclamps-f32 %v1114_v33, 1.0  ;;  %v1704_v31 = vadd.f32 %v2162_v60, %v1703_v59  ;;  %v1726_v24 = vadd.f32 0.18741608, %v1725_v53  ;;  %v1122_v62 = vadd.f32 0.0036580483, %v1121_v26  ;;  %vm1707_vm10 = vmor %vm1705_vm8, %vm1706_vm9 }
 0x1d8   :  { %v1134_v40 = vmul.f32 %v1133_v19, %v3242_v7  ;;  %2163 = vrcp.f32 %v3274_v28  ;;  %v1171_v50 = vadd.f32 0.001143296, %v1170_v1  ;;  %v3279_v6 = vmul.f32 0.70710677, %v3257_v2 }
 0x1d9   :  { %v1850_v22 = vadd.f32 1.0, %v2047_v29  ;;  %v1161_v17 = vmul.f32 %v1160_v12, %v3253_v9  ;;  %v1688_v37 = vadd.f32 1.1283791, %v1687_v52  ;;  %v1708_v32 = vsel %vm1707_vm10, %v2162_v60, %v1704_v31 }
 0x1da   :  { %v1135_v27 = vadd.f32 0.112945676, %v1134_v40  ;;  %v1712_v47 = vor.u32 1.1754944e-38, %v1711_v10  ;;  %v1727_v51 = vmul.f32 %v1726_v24, %v3196_v20  ;;  %v1123_v4 = vmul.f32 %v1122_v62, %v3242_v7 }
 0x1db   :  { %v1882_v48 = vmul.f32 %v1850_v22, %v3232_v42  ;;  %vm1710_vm11 = vcmp.eq.f32.partialorder %v1709_v8, 8.507059e+37  ;;  %v1172_v41 = vmul.f32 %v1171_v50, %v3253_v9  ;;  %v1757_v23 = vmul.f32 %v3279_v6, %v3279_v6 }
 0x1dc   :  { %v1136_v0 = vmul.f32 %v1135_v27, %v3242_v7  ;;  %v1713_v55 = vsel %vm1710_vm11, %v1712_v47, %v1708_v32  ;;  %v1162_v5 = vadd.f32 0.0036580483, %v1161_v17  ;;  %v1689_v20 = vmul.f32 %v1688_v37, %v3121_v38 }
 0x1dd   :  { %v1907_v43 = vpack.c.bf16 %v1882_v48, %v1881_v46  ;;  %v1173_v52 = vadd.f32 0.014752088, %v1172_v41  ;;  %v3295_v56 = vmin.f32 %v1757_v23, 16.0  ;;  %v1728_v60 = vadd.f32 1.1283791, %v1727_v51 }
 0x1de   :  { %v1137_v35 = vadd.f32 0.4994258, %v1136_v0  ;;  %v2164_v42 = vpop.eup %2163  ;;  %v1124_v15 = vadd.f32 0.05243302, %v1123_v4  ;;  %v1714_v44 = vmul.f32 %v1713_v55, %v1689_v20  ;;  %v1749_v63 = vand.u32 2147483647, %v3274_v28 }
 0x1df   :  { %1923 = vst [vmem:[%s3370_s3 + $0x30] sm:$0xff] %v1907_v43  ;;  %v1741_v49 = vmul.f32 %v2164_v42, %v3274_v28  ;;  %v1174_v14 = vmul.f32 %v1173_v52, %v3253_v9  ;;  %v1751_v18 = vand.u32 2147483648, %v3274_v28  ;;  %v1163_v38 = vmul.f32 %v1162_v5, %v3253_v9 }
 0x1e0   :  { %v1138_v13 = vmul.f32 %v1137_v35, %v3242_v7  ;;  %v1770_v34 = vmul.f32 3.8918573e-05, %v3295_v56  ;;  %v1759_v26 = vmul.f32 2.1237322e-06, %v3295_v56  ;;  %v3308_v3 = vadd.f32 %v2254_v58, %v353_v39 }
 0x1e1   :  { %v1742_v53 = vsub.f32 1.0, %v1741_v49  ;;  %v1175_v16 = vadd.f32 0.112945676, %v1174_v14  ;;  %vm1746_vm12 = vweird.f32 %v2164_v42  ;;  %v1125_v8 = vmul.f32 %v1124_v15, %v3242_v7 }
 0x1e2   :  { %v3304_v57 = vadd.f32 1.0, %v1138_v13  ;;  %v1771_v10 = vadd.f32 0.001143296, %v1770_v34  ;;  %v2062_v45 = vclamps-f32 %v1714_v44, 1.0  ;;  %v1729_v59 = vmul.f32 %v1728_v60, %v3185_v11 }
 0x1e3   :  { %v1743_v33 = vmul.f32 %v2164_v42, %v1742_v53  ;;  %vm1745_vm13 = vweird.f32 %v3274_v28  ;;  %v1164_v12 = vadd.f32 0.05243302, %v1163_v38  ;;  %v1176_v1 = vmul.f32 %v1175_v16, %v3253_v9 }
 0x1e4   :  { %2165 = vrcp.f32 %v3304_v57  ;;  %vm1747_vm14 = vmor %vm1745_vm13, %vm1746_vm12  ;;  %v1752_v46 = vor.u32 1.1754944e-38, %v1751_v18  ;;  %v1760_v58 = vadd.f32 0.00028619796, %v1759_v26  ;;  %v1772_v29 = vmul.f32 %v1771_v10, %v3295_v56 }
 0x1e5   :  { %v1744_v19 = vadd.f32 %v2164_v42, %v1743_v33  ;;  %v3317_v31 = vmul.f32 0.70710677, %v3308_v3  ;;  %vm1750_vm15 = vcmp.eq.f32.partialorder %v1749_v63, 8.507059e+37  ;;  %v1126_v62 = vadd.f32 0.18741608, %v1125_v8 }
 0x1e6   :  { %v1177_v11 = vadd.f32 0.4994258, %v1176_v1  ;;  %v1865_v40 = vadd.f32 1.0, %v2062_v45  ;;  %v1773_v50 = vadd.f32 0.014752088, %v1772_v29  ;;  %v1165_v17 = vmul.f32 %v1164_v12, %v3253_v9 }
 0x1e7   :  { %v1748_v24 = vsel %vm1747_vm14, %v2164_v42, %v1744_v19  ;;  %v1797_v28 = vmul.f32 %v3317_v31, %v3317_v31  ;;  %v521_v32 = vmul.f32 0.5, %v3104_v25  ;;  %v1761_v47 = vmul.f32 %v1760_v58, %v3295_v56 }
 0x1e8   :  { %v1753_v22 = vsel %vm1750_vm15, %v1752_v46, %v1748_v24  ;;  %v1178_v48 = vmul.f32 %v1177_v11, %v3253_v9  ;;  %v1774_v51 = vmul.f32 %v1773_v50, %v3295_v56  ;;  %v522_v0 = vmul.f32 0.5, %v3177_v30 }
 0x1e9   :  { %v1754_v27 = vmul.f32 %v1753_v22, %v1729_v59  ;;  %v3326_v4 = vmin.f32 %v1797_v28, 16.0  ;;  %v1897_v55 = vmul.f32 %v1865_v40, %v521_v32  ;;  %v1127_v35 = vmul.f32 %v1126_v62, %v3242_v7 }
 0x1ea   :  { %v2166_v37 = vpop.eup %2165  ;;  %v1179_v23 = vadd.f32 1.0, %v1178_v48  ;;  %v1775_v5 = vadd.f32 0.112945676, %v1774_v51  ;;  %v1166_v52 = vadd.f32 0.18741608, %v1165_v17  ;;  %v1151_v49 = vand.u32 2147483648, %v3304_v57 }
 0x1eb   :  { %v2063_v43 = vclamps-f32 %v1754_v27, 1.0  ;;  %v1141_v41 = vmul.f32 %v2166_v37, %v3304_v57  ;;  %v1799_v42 = vmul.f32 2.1237322e-06, %v3326_v4  ;;  %v1149_v60 = vand.u32 2147483647, %v3304_v57 }
 0x1ec   :  { %2167 = vrcp.f32 %v1179_v23  ;;  %v1762_v15 = vadd.f32 0.0036580483, %v1761_v47  ;;  %v1776_v30 = vmul.f32 %v1775_v5, %v3295_v56  ;;  %vm1146_vm0 = vweird.f32 %v2166_v37 }
 0x1ed   :  { %v1866_v20 = vadd.f32 1.0, %v2063_v43  ;;  %v1142_v25 = vsub.f32 1.0, %v1141_v41  ;;  %v1810_v63 = vmul.f32 3.8918573e-05, %v3326_v4  ;;  %v1128_v7 = vadd.f32 1.1283791, %v1127_v35 }
 0x1ee   :  { %v1777_v13 = vadd.f32 0.4994258, %v1776_v30  ;;  %v1800_v14 = vadd.f32 0.00028619796, %v1799_v42  ;;  %vm1145_vm1 = vweird.f32 %v3304_v57  ;;  %v1152_v34 = vor.u32 1.1754944e-38, %v1151_v49 }
 0x1ef   :  { %v1898_v39 = vmul.f32 %v1866_v20, %v522_v0  ;;  %v1143_v44 = vmul.f32 %v2166_v37, %v1142_v25  ;;  %v1811_v38 = vadd.f32 0.001143296, %v1810_v63  ;;  %vm1147_vm2 = vmor %vm1145_vm1, %vm1146_vm0  ;;  %v1167_v16 = vmul.f32 %v1166_v52, %v3253_v9 }
 0x1f0   :  { %v1778_v26 = vmul.f32 %v1777_v13, %v3295_v56  ;;  %vm1150_vm3 = vcmp.eq.f32.partialorder %v1149_v60, 8.507059e+37  ;;  %v1763_v10 = vmul.f32 %v1762_v15, %v3295_v56  ;;  %v1129_v57 = vmul.f32 %v1128_v7, %v3219_v36 }
 0x1f1   :  { %v1915_v53 = vpack.c.bf16 %v1898_v39, %v1897_v55  ;;  %v1144_v18 = vadd.f32 %v2166_v37, %v1143_v44  ;;  %v1812_v45 = vmul.f32 %v1811_v38, %v3326_v4  ;;  %v1801_v12 = vmul.f32 %v1800_v14, %v3326_v4 }
 0x1f2   :  { %v2168_v33 = vpop.eup %2167  ;;  %v1779_v9 = vadd.f32 1.0, %v1778_v26  ;;  %v1168_v58 = vadd.f32 1.1283791, %v1167_v16  ;;  %v1189_v24 = vand.u32 2147483647, %v1179_v23  ;;  %v1191_v62 = vand.u32 2147483648, %v1179_v23 }
 0x1f3   :  { %1931 = vst [vmem:[%s3370_s3 + $0x70] sm:$0xff] %v1915_v53  ;;  %v1148_v8 = vsel %vm1147_vm2, %v2166_v37, %v1144_v18  ;;  %v1181_v19 = vmul.f32 %v2168_v33, %v1179_v23  ;;  %v1813_v1 = vadd.f32 0.014752088, %v1812_v45  ;;  %v1764_v11 = vadd.f32 0.05243302, %v1763_v10 }
 0x1f4   :  { %v1153_v59 = vsel %vm1150_vm3, %v1152_v34, %v1148_v8  ;;  %2169 = vrcp.f32 %v1779_v9  ;;  %vm1186_vm4 = vweird.f32 %v2168_v33  ;;  %v1802_v22 = vadd.f32 0.0036580483, %v1801_v12 }
 0x1f5   :  { %v1154_v46 = vmul.f32 %v1153_v59, %v1129_v57  ;;  %v1182_v29 = vsub.f32 1.0, %v1181_v19  ;;  %v1814_v50 = vmul.f32 %v1813_v1, %v3326_v4  ;;  %vm1185_vm5 = vweird.f32 %v1179_v23 }
 0x1f6   :  { %v1169_v17 = vmul.f32 %v1168_v58, %v3228_v54  ;;  %vm1187_vm6 = vmor %vm1185_vm5, %vm1186_vm4  ;;  %v1192_v48 = vor.u32 1.1754944e-38, %v1191_v62  ;;  %v1765_v37 = vmul.f32 %v1764_v11, %v3295_v56  ;;  %vm1190_vm7 = vcmp.eq.f32.partialorder %v1189_v24, 8.507059e+37 }
 0x1f7   :  { %v1183_v40 = vmul.f32 %v2168_v33, %v1182_v29  ;;  %v2048_v28 = vclamps-f32 %v1154_v46, 1.0  ;;  %v1815_v27 = vadd.f32 0.112945676, %v1814_v50  ;;  %v1803_v47 = vmul.f32 %v1802_v22, %v3326_v4 }
 0x1f8   :  { %v1766_v5 = vadd.f32 0.18741608, %v1765_v37  ;;  %v507_v42 = vmul.f32 0.5, %v3203_v21  ;;  %v508_v49 = vmul.f32 0.5, %v3212_v61  ;;  %v1791_v14 = vand.u32 2147483648, %v1779_v9 }
 0x1f9   :  { %v1184_v36 = vadd.f32 %v2168_v33, %v1183_v40  ;;  %v1816_v51 = vmul.f32 %v1815_v27, %v3326_v4  ;;  %v1851_v41 = vadd.f32 1.0, %v2048_v28  ;;  %v1804_v25 = vadd.f32 0.05243302, %v1803_v47 }
 0x1fa   :  { %v2170_v0 = vpop.eup %2169  ;;  %v1767_v39 = vmul.f32 %v1766_v5, %v3295_v56  ;;  %vm1785_vm9 = vweird.f32 %v1779_v9  ;;  %v1789_v53 = vand.u32 2147483647, %v1779_v9  ;;  %v1792_v56 = vor.u32 1.1754944e-38, %v1791_v14 }
 0x1fb   :  { %v1188_v32 = vsel %vm1187_vm6, %v2168_v33, %v1184_v36  ;;  %v1781_v35 = vmul.f32 %v2170_v0, %v1779_v9  ;;  %v1817_v23 = vadd.f32 0.4994258, %v1816_v51  ;;  %v1883_v60 = vmul.f32 %v1851_v41, %v507_v42 }
 0x1fc   :  { %v1193_v43 = vsel %vm1190_vm7, %v1192_v48, %v1188_v32  ;;  %vm1786_vm8 = vweird.f32 %v2170_v0  ;;  %v1805_v13 = vmul.f32 %v1804_v25, %v3326_v4  ;;  %v1768_v61 = vadd.f32 1.1283791, %v1767_v39 }
 0x1fd   :  { %v1194_v55 = vmul.f32 %v1193_v43, %v1169_v17  ;;  %v1782_v20 = vsub.f32 1.0, %v1781_v35  ;;  %v1818_v52 = vmul.f32 %v1817_v23, %v3326_v4  ;;  %vm1787_vm10 = vmor %vm1785_vm9, %vm1786_vm8  ;;  %vm1790_vm11 = vcmp.eq.f32.partialorder %v1789_v53, 8.507059e+37 }
 0x1fe   :  { %v1806_v38 = vadd.f32 0.18741608, %v1805_v13  ;;  %v1769_v26 = vmul.f32 %v1768_v61, %v3279_v6  ;;  %v523_v62 = vmul.f32 0.5, %v3257_v2  ;;  %v524_v22 = vmul.f32 0.5, %v3308_v3 }
 0x1ff   :  { %v2049_v54 = vclamps-f32 %v1194_v55, 1.0  ;;  %v1783_v30 = vmul.f32 %v2170_v0, %v1782_v20  ;;  %v1819_v44 = vadd.f32 1.0, %v1818_v52 }
 0x200   :  { %v1807_v33 = vmul.f32 %v1806_v38, %v3326_v4 }
 0x201   :  { %v1852_v15 = vadd.f32 1.0, %v2049_v54  ;;  %v1784_v7 = vadd.f32 %v2170_v0, %v1783_v30  ;;  %2171 = vrcp.f32 %v1819_v44  ;;  %v1831_v57 = vand.u32 2147483648, %v1819_v44 }
 0x202   :  { %v1808_v59 = vadd.f32 1.1283791, %v1807_v33  ;;  %v1829_v12 = vand.u32 2147483647, %v1819_v44  ;;  %vm1825_vm13 = vweird.f32 %v1819_v44 }
 0x203   :  { %v1884_v63 = vmul.f32 %v1852_v15, %v508_v49  ;;  %v1788_v18 = vsel %vm1787_vm10, %v2170_v0, %v1784_v7  ;;  %v1832_v46 = vor.u32 1.1754944e-38, %v1831_v57 }
 0x204   :  { %v1793_v16 = vsel %vm1790_vm11, %v1792_v56, %v1788_v18  ;;  %v1809_v58 = vmul.f32 %v1808_v59, %v3317_v31  ;;  %vm1830_vm15 = vcmp.eq.f32.partialorder %v1829_v12, 8.507059e+37 }
 0x205   :  { %v1908_v21 = vpack.c.bf16 %v1884_v63, %v1883_v60  ;;  %v1794_v10 = vmul.f32 %v1793_v16, %v1769_v26 }
 0x207   :  { %1924 = vst [vmem:[%s3370_s3 + $0x38] sm:$0xff] %v1908_v21  ;;  %v2172_v34 = vpop.eup %2171  ;;  %v2064_v9 = vclamps-f32 %v1794_v10, 1.0 }
 0x208   :  { %v1821_v8 = vmul.f32 %v2172_v34, %v1819_v44  ;;  %vm1826_vm12 = vweird.f32 %v2172_v34 }
 0x209   :  { %vm1827_vm14 = vmor %vm1825_vm13, %vm1826_vm12  ;;  %v1867_v24 = vadd.f32 1.0, %v2064_v9 }
 0x20a   :  { %v1822_v45 = vsub.f32 1.0, %v1821_v8 }
 0x20b   :  { %v1899_v40 = vmul.f32 %v1867_v24, %v523_v62 }
 0x20c   :  { %v1823_v19 = vmul.f32 %v2172_v34, %v1822_v45 }
 0x20e   :  { %v1824_v1 = vadd.f32 %v2172_v34, %v1823_v19 }
 0x210   :  { %v1828_v29 = vsel %vm1827_vm14, %v2172_v34, %v1824_v1 }
 0x211   :  { %v1833_v6 = vsel %vm1830_vm15, %v1832_v46, %v1828_v29 }
 0x212   :  { %v1834_v4 = vmul.f32 %v1833_v6, %v1809_v58 }
 0x214   :  { %v2065_v11 = vclamps-f32 %v1834_v4, 1.0 }
 0x216   :  { %v1868_v50 = vadd.f32 1.0, %v2065_v11 }
 0x218   :  { %v1900_v28 = vmul.f32 %v1868_v50, %v524_v22 }
 0x21a   :  { %v1916_v36 = vpack.c.bf16 %v1900_v28, %v1899_v40 }
 0x21c   :  { %1932 = vst [vmem:[%s3370_s3 + $0x78] sm:$0xff] %v1916_v36 }
 0x21d   :  { %1937 = vsyncpa [#allocation4], 1 }

// kernel: encoder_forward.10
= control target key start
LH: loop header
LB: loop body
LE: loop exit
PB: predicated region body
PF: predicated region fallthrough
CT: control target
= control target key end

     0   :  { %8 = vsyncpa [#allocation4], 0  ;;  %s986_s15 = smov [#allocation3]   ;;  %s987_s17 = smov 192   ;;  %s1229_s0 = inlined_call_operand.vmem [shape: bf16[128,128], index: 0, kind: input, shape index: {}]   ;;  %s1230_s1 = inlined_call_operand.hbm [shape: bf16[128,384], index: 1, kind: input, shape index: {}]   ;;  %s1231_s2 = inlined_call_operand.vmem [shape: f32[1,384], index: 2, kind: input, shape index: {}]   ;;  %s1232_s3 = inlined_call_operand.vmem [shape: bf16[128,384], index: 3, kind: output, shape index: {}]  }
   0x1   :  { %s15_s14 = sshll.u32 %s1230_s1, 4  ;;  %s17_s16 = sshll.u32 %s986_s15, 4  ;;  %s16_s14 = int_to_ptr.hbm [resolvable:$true] %s15_s14  ;;  %s18_s16 = int_to_ptr.vmem [resolvable:$true] %s17_s16 }
   0x2   :  { %s988_s18 = smov 12  }
   0x3   :  { %23 = dma.hbm_to_vmem [thread:$0]  %s16_s14, 3072, %s18_s16, [#allocation4], %s987_s17, %s987_s17, %s988_s18  }
   0x4   :  { %984 = dma.done.wait [#allocation4], 3072  }
   0x5   :  { %985 = vsyncadd [#allocation4], 4294964224  ;;  %v891_v0 = vld [vmem:[#allocation3 + $0xa8] sm:$0xf]  ;;  %v931_v1 = vld [vmem:[#allocation3 + $0xb0] sm:$0xf0] }
   0x6   :  { %v930_v2 = vld [vmem:[#allocation3 + $0xac] sm:$0xf]  ;;  %v892_v3 = vor.u32 %v931_v1, %v891_v0  ;;  %v893_v4 = vld [vmem:[#allocation3 + $0xb4] sm:$0xf0]  ;;  %v899_v5 = vld [vmem:[#allocation3 + $0xb0] sm:$0xf] }
   0x7   :  { %v932_v6 = vld [vmem:[#allocation3 + $0xb8] sm:$0xf0]  ;;  %v1012_v7 = vor.u32 %v930_v2, %v893_v4  ;;  %v879_v9 = vld [vmem:[#allocation3 + $0x90] sm:$0xf]  ;;  %v927_v11 = vld [vmem:[#allocation3 + $0x94] sm:$0xf] }
   0x8   :  { %v1014_v8 = vor.u32 %v932_v6, %v899_v5  ;;  %v928_v10 = vld [vmem:[#allocation3 + $0x98] sm:$0xf0]  ;;  %354 = vmatpush.bf16.msra.mxu0 %v892_v3  ;;  %933 = vmatpush.bf16.msra.mxu3 %v892_v3  ;;  %v881_v13 = vld [vmem:[#allocation3 + $0x9c] sm:$0xf0]  ;;  %v887_v14 = vld [vmem:[#allocation3 + $0x98] sm:$0xf] }
   0x9   :  { %v880_v12 = vor.u32 %v928_v10, %v879_v9  ;;  %v929_v15 = vld [vmem:[#allocation3 + $0xa0] sm:$0xf0]  ;;  %403 = vmatpush.bf16.msra.mxu1 %v1012_v7  ;;  %v1018_v16 = vor.u32 %v927_v11, %v881_v13  ;;  %v867_v18 = vld [vmem:[#allocation3 + $0x78] sm:$0xf]  ;;  %v924_v20 = vld [vmem:[#allocation3 + $0x7c] sm:$0xf] }
   0xa   :  { %452 = vmatpush.bf16.msra.mxu2 %v1014_v8  ;;  %v1020_v17 = vor.u32 %v929_v15, %v887_v14  ;;  %v925_v19 = vld [vmem:[#allocation3 + $0x80] sm:$0xf0]  ;;  %v869_v21 = vld [vmem:[#allocation3 + $0x84] sm:$0xf0]  ;;  %v875_v22 = vld [vmem:[#allocation3 + $0x80] sm:$0xf] }
   0xb   :  { %v926_v23 = vld [vmem:[#allocation3 + $0x88] sm:$0xf0]  ;;  %v868_v24 = vor.u32 %v925_v19, %v867_v18  ;;  %v1024_v25 = vor.u32 %v924_v20, %v869_v21  ;;  %v855_v27 = vld [vmem:[#allocation3 + $0x60] sm:$0xf]  ;;  %v921_v29 = vld [vmem:[#allocation3 + $0x64] sm:$0xf] }
   0xc   :  { %355 = vmatpush.bf16.msra.mxu0 %v880_v12  ;;  %934 = vmatpush.bf16.msra.mxu3 %v880_v12  ;;  %v1026_v26 = vor.u32 %v926_v23, %v875_v22  ;;  %v922_v28 = vld [vmem:[#allocation3 + $0x68] sm:$0xf0]  ;;  %v857_v30 = vld [vmem:[#allocation3 + $0x6c] sm:$0xf0]  ;;  %v863_v31 = vld [vmem:[#allocation3 + $0x68] sm:$0xf] }
   0xd   :  { %404 = vmatpush.bf16.msra.mxu1 %v1018_v16  ;;  %v923_v32 = vld [vmem:[#allocation3 + $0x70] sm:$0xf0]  ;;  %v856_v33 = vor.u32 %v922_v28, %v855_v27  ;;  %v1030_v34 = vor.u32 %v921_v29, %v857_v30  ;;  %v843_v36 = vld [vmem:[#allocation3 + $0x48] sm:$0xf]  ;;  %v918_v38 = vld [vmem:[#allocation3 + $0x4c] sm:$0xf] }
   0xe   :  { %453 = vmatpush.bf16.msra.mxu2 %v1020_v17  ;;  %v1032_v35 = vor.u32 %v923_v32, %v863_v31  ;;  %v919_v37 = vld [vmem:[#allocation3 + $0x50] sm:$0xf0]  ;;  %v845_v39 = vld [vmem:[#allocation3 + $0x54] sm:$0xf0]  ;;  %v851_v40 = vld [vmem:[#allocation3 + $0x50] sm:$0xf] }
   0xf   :  { %v920_v41 = vld [vmem:[#allocation3 + $0x58] sm:$0xf0]  ;;  %v844_v42 = vor.u32 %v919_v37, %v843_v36  ;;  %v848_v43 = vor.u32 %v918_v38, %v845_v39  ;;  %v831_v45 = vld [vmem:[#allocation3 + $0x30] sm:$0xf]  ;;  %v915_v47 = vld [vmem:[#allocation3 + $0x34] sm:$0xf] }
  0x10   :  { %356 = vmatpush.bf16.msra.mxu0 %v868_v24  ;;  %935 = vmatpush.bf16.msra.mxu3 %v868_v24  ;;  %v1036_v44 = vor.u32 %v920_v41, %v851_v40  ;;  %v916_v46 = vld [vmem:[#allocation3 + $0x38] sm:$0xf0]  ;;  %v833_v48 = vld [vmem:[#allocation3 + $0x3c] sm:$0xf0]  ;;  %v839_v49 = vld [vmem:[#allocation3 + $0x38] sm:$0xf] }
  0x11   :  { %405 = vmatpush.bf16.msra.mxu1 %v1024_v25  ;;  %v917_v50 = vld [vmem:[#allocation3 + $0x40] sm:$0xf0]  ;;  %v832_v51 = vor.u32 %v916_v46, %v831_v45  ;;  %v836_v52 = vor.u32 %v915_v47, %v833_v48  ;;  %v819_v54 = vld [vmem:[#allocation3 + $0x18] sm:$0xf]  ;;  %v912_v56 = vld [vmem:[#allocation3 + $0x1c] sm:$0xf] }
  0x12   :  { %454 = vmatpush.bf16.msra.mxu2 %v1026_v26  ;;  %v1039_v53 = vor.u32 %v917_v50, %v839_v49  ;;  %v913_v55 = vld [vmem:[#allocation3 + $0x20] sm:$0xf0]  ;;  %v821_v57 = vld [vmem:[#allocation3 + $0x24] sm:$0xf0]  ;;  %v827_v58 = vld [vmem:[#allocation3 + $0x20] sm:$0xf] }
  0x13   :  { %v914_v59 = vld [vmem:[#allocation3 + $0x28] sm:$0xf0]  ;;  %v820_v60 = vor.u32 %v913_v55, %v819_v54  ;;  %v824_v61 = vor.u32 %v912_v56, %v821_v57  ;;  %v807_v63 = vld [vmem:[#allocation3] sm:$0xf]  ;;  %v909_v1 = vld [vmem:[#allocation3 + $0x4] sm:$0xf] }
  0x14   :  { %357 = vmatpush.bf16.msra.mxu0 %v856_v33  ;;  %936 = vmatpush.bf16.msra.mxu3 %v856_v33  ;;  %v828_v62 = vor.u32 %v914_v59, %v827_v58  ;;  %v910_v0 = vld [vmem:[#allocation3 + $0x8] sm:$0xf0]  ;;  %v809_v2 = vld [vmem:[#allocation3 + $0xc] sm:$0xf0]  ;;  %v815_v3 = vld [vmem:[#allocation3 + $0x8] sm:$0xf] }
  0x15   :  { %406 = vmatpush.bf16.msra.mxu1 %v1030_v34  ;;  %v911_v4 = vld [vmem:[#allocation3 + $0x10] sm:$0xf0]  ;;  %v808_v5 = vor.u32 %v910_v0, %v807_v63  ;;  %v812_v6 = vor.u32 %v909_v1, %v809_v2  ;;  %v901_v10 = vld [vmem:[%s1229_s0] sm:$0xff]  ;;  %v902_v12 = vld [vmem:[%s1229_s0 + $0x8] sm:$0xff] }
  0x16   :  { %455 = vmatpush.bf16.msra.mxu2 %v1032_v35  ;;  %v816_v9 = vor.u32 %v911_v4, %v815_v3  ;;  %v907_v11 = vld [vmem:[%s1229_s0 + $0x30] sm:$0xff]  ;;  %v908_v13 = vld [vmem:[%s1229_s0 + $0x38] sm:$0xff]  ;;  %v906_v15 = vld [vmem:[%s1229_s0 + $0x28] sm:$0xff] }
  0x17   :  { %v904_v14 = vld [vmem:[%s1229_s0 + $0x18] sm:$0xff] }
  0x18   :  { %358 = vmatpush.bf16.msra.mxu0 %v844_v42  ;;  %937 = vmatpush.bf16.msra.mxu3 %v844_v42 }
  0x19   :  { %407 = vmatpush.bf16.msra.mxu1 %v848_v43 }
  0x1a   :  { %456 = vmatpush.bf16.msra.mxu2 %v1036_v44 }
  0x1c   :  { %359 = vmatpush.bf16.msra.mxu0 %v832_v51  ;;  %938 = vmatpush.bf16.msra.mxu3 %v832_v51 }
  0x1d   :  { %408 = vmatpush.bf16.msra.mxu1 %v836_v52 }
  0x1e   :  { %457 = vmatpush.bf16.msra.mxu2 %v1039_v53 }
  0x20   :  { %360 = vmatpush.bf16.msra.mxu0 %v820_v60  ;;  %939 = vmatpush.bf16.msra.mxu3 %v820_v60 }
  0x21   :  { %409 = vmatpush.bf16.msra.mxu1 %v824_v61 }
  0x22   :  { %458 = vmatpush.bf16.msra.mxu2 %v828_v62 }
  0x24   :  { %361 = vmatpush.bf16.msra.mxu0 %v808_v5  ;;  %940 = vmatpush.bf16.msra.mxu3 %v808_v5 }
  0x25   :  { %410 = vmatpush.bf16.msra.mxu1 %v812_v6 }
  0x26   :  { %459 = vmatpush.bf16.msra.mxu2 %v816_v9 }
  0x27   :  { %362 = vmatmul.bf16.vlgmr.msra.gmra.mxu0 %v901_v10  ;;  %392 = vmatmul.bf16.vlgmr.msra.gmra.mxu3 %v907_v11 }
  0x28   :  { %941 = vmatpush.bf16.msrb.mxu3 %v1012_v7  ;;  %411 = vmatmul.bf16.vlgmr.msra.gmra.mxu1 %v901_v10  ;;  %v903_v7 = vld [vmem:[%s1229_s0 + $0x10] sm:$0xff] }
  0x29   :  { %460 = vmatmul.bf16.vlgmr.msra.gmra.mxu2 %v901_v10 }
  0x2c   :  { %942 = vmatpush.bf16.msrb.mxu3 %v1018_v16  ;;  %v648_v16 = vld [vmem:[%s1231_s2] sm:$0x7] }
  0x2d   :  { %v1081_v18 = vperm.slane %v648_v16, 1  ;;  %v1085_v24 = vperm.slane %v648_v16, 2 }
  0x30   :  { %943 = vmatpush.bf16.msrb.mxu3 %v1024_v25 }
  0x34   :  { %944 = vmatpush.bf16.msrb.mxu3 %v1030_v34 }
  0x37   :  { %367 = vmatmul.bf16.gmra.mxu0 %v902_v12  ;;  %397 = vmatmul.bf16.gmra.mxu3 %v908_v13 }
  0x38   :  { %945 = vmatpush.bf16.msrb.mxu3 %v848_v43  ;;  %416 = vmatmul.bf16.gmra.mxu1 %v902_v12 }
  0x39   :  { %465 = vmatmul.bf16.gmra.mxu2 %v902_v12 }
  0x3c   :  { %946 = vmatpush.bf16.msrb.mxu3 %v836_v52 }
  0x40   :  { %947 = vmatpush.bf16.msrb.mxu3 %v824_v61 }
  0x44   :  { %948 = vmatpush.bf16.msrb.mxu3 %v812_v6 }
  0x47   :  { %372 = vmatmul.bf16.gmra.mxu0 %v903_v7  ;;  %441 = vmatmul.bf16.vlgmr.msrb.gmra.mxu3 %v907_v11 }
  0x48   :  { %949 = vmatpush.bf16.msra.mxu3 %v1014_v8  ;;  %421 = vmatmul.bf16.gmra.mxu1 %v903_v7  ;;  %v905_v8 = vld [vmem:[%s1229_s0 + $0x20] sm:$0xff] }
  0x49   :  { %470 = vmatmul.bf16.gmra.mxu2 %v903_v7 }
  0x4c   :  { %950 = vmatpush.bf16.msra.mxu3 %v1020_v17  ;;  %v1079_v17 = vperm.slane %v648_v16, 0 }
  0x50   :  { %951 = vmatpush.bf16.msra.mxu3 %v1026_v26 }
  0x54   :  { %952 = vmatpush.bf16.msra.mxu3 %v1032_v35 }
  0x57   :  { %377 = vmatmul.bf16.gmra.mxu0 %v904_v14  ;;  %446 = vmatmul.bf16.gmra.mxu3 %v908_v13 }
  0x58   :  { %953 = vmatpush.bf16.msra.mxu3 %v1036_v44  ;;  %426 = vmatmul.bf16.gmra.mxu1 %v904_v14 }
  0x59   :  { %475 = vmatmul.bf16.gmra.mxu2 %v904_v14 }
  0x5c   :  { %954 = vmatpush.bf16.msra.mxu3 %v1039_v53 }
  0x60   :  { %955 = vmatpush.bf16.msra.mxu3 %v828_v62 }
  0x64   :  { %956 = vmatpush.bf16.msra.mxu3 %v816_v9 }
  0x67   :  { %382 = vmatmul.bf16.gmra.mxu0 %v905_v8  ;;  %490 = vmatmul.bf16.vlgmr.msra.gmra.mxu3 %v907_v11 }
  0x68   :  { %431 = vmatmul.bf16.gmra.mxu1 %v905_v8 }
  0x69   :  { %480 = vmatmul.bf16.gmra.mxu2 %v905_v8 }
  0x77   :  { %387 = vmatmul.bf16.gmra.mxu0 %v906_v15  ;;  %495 = vmatmul.bf16.gmra.mxu3 %v908_v13 }
  0x78   :  { %436 = vmatmul.bf16.gmra.mxu1 %v906_v15 }
  0x79   :  { %485 = vmatmul.bf16.gmra.mxu2 %v906_v15 }
  0xa4   :  { %v363_v19 = vpop.f32.mrf.mxu0 }
  0xa5   :  { %v656_v20 = vadd.f32 %v1079_v17, %v363_v19  ;;  %v412_v21 = vpop.f32.mrf.mxu1 }
  0xa6   :  { %v657_v22 = vadd.f32 %v1081_v18, %v412_v21 }
  0xa8   :  { %v704_v23 = vpack.c.bf16 %v657_v22, %v656_v20 }
  0xaa   :  { %736 = vst [vmem:[%s1232_s3] sm:$0xff] %v704_v23  ;;  %v393_v25 = vpop.f32.mrf.mxu3 }
  0xab   :  { %v692_v62 = vadd.f32 %v1079_v17, %v393_v25 }
  0xac   :  { %v461_v26 = vpop.f32.mrf.mxu2  ;;  %v365_v28 = vpop.f32.mrf.mxu0 }
  0xad   :  { %v658_v27 = vadd.f32 %v1085_v24, %v461_v26  ;;  %v659_v29 = vadd.f32 %v1079_v17, %v365_v28  ;;  %v414_v30 = vpop.f32.mrf.mxu1 }
  0xae   :  { %v660_v32 = vadd.f32 %v1081_v18, %v414_v30 }
  0xaf   :  { %v705_v31 = vpack.c.bf16 %v658_v27, %v658_v27 }
  0xb0   :  { %v706_v33 = vpack.c.bf16 %v660_v32, %v659_v29 }
  0xb1   :  { %737 = vst [vmem:[%s1232_s3 + $0x8] sm:$0xf] %v705_v31 }
  0xb2   :  { %738 = vst [vmem:[%s1232_s3 + $0xc] sm:$0xff] %v706_v33  ;;  %v395_v34 = vpop.f32.mrf.mxu3 }
  0xb3   :  { %v695_v12 = vadd.f32 %v1079_v17, %v395_v34 }
  0xb4   :  { %v463_v35 = vpop.f32.mrf.mxu2  ;;  %v368_v37 = vpop.f32.mrf.mxu0 }
  0xb5   :  { %v661_v36 = vadd.f32 %v1085_v24, %v463_v35  ;;  %v662_v38 = vadd.f32 %v1079_v17, %v368_v37  ;;  %v417_v39 = vpop.f32.mrf.mxu1 }
  0xb6   :  { %v663_v41 = vadd.f32 %v1081_v18, %v417_v39 }
  0xb7   :  { %v707_v40 = vpack.c.bf16 %v661_v36, %v661_v36 }
  0xb8   :  { %v708_v42 = vpack.c.bf16 %v663_v41, %v662_v38 }
  0xb9   :  { %739 = vst [vmem:[%s1232_s3 + $0x14] sm:$0xf] %v707_v40 }
  0xba   :  { %740 = vst [vmem:[%s1232_s3 + $0x18] sm:$0xff] %v708_v42  ;;  %v398_v43 = vpop.f32.mrf.mxu3 }
  0xbb   :  { %v698_v25 = vadd.f32 %v1079_v17, %v398_v43 }
  0xbc   :  { %v466_v44 = vpop.f32.mrf.mxu2  ;;  %v370_v46 = vpop.f32.mrf.mxu0 }
  0xbd   :  { %v664_v45 = vadd.f32 %v1085_v24, %v466_v44  ;;  %v665_v47 = vadd.f32 %v1079_v17, %v370_v46  ;;  %v419_v48 = vpop.f32.mrf.mxu1 }
  0xbe   :  { %v666_v50 = vadd.f32 %v1081_v18, %v419_v48 }
  0xbf   :  { %v709_v49 = vpack.c.bf16 %v664_v45, %v664_v45 }
  0xc0   :  { %v710_v51 = vpack.c.bf16 %v666_v50, %v665_v47 }
  0xc1   :  { %741 = vst [vmem:[%s1232_s3 + $0x20] sm:$0xf] %v709_v49 }
  0xc2   :  { %742 = vst [vmem:[%s1232_s3 + $0x24] sm:$0xff] %v710_v51  ;;  %v400_v52 = vpop.f32.mrf.mxu3 }
  0xc3   :  { %v701_v37 = vadd.f32 %v1079_v17, %v400_v52 }
  0xc4   :  { %v468_v53 = vpop.f32.mrf.mxu2  ;;  %v373_v55 = vpop.f32.mrf.mxu0 }
  0xc5   :  { %v667_v54 = vadd.f32 %v1085_v24, %v468_v53  ;;  %v668_v56 = vadd.f32 %v1079_v17, %v373_v55  ;;  %v422_v57 = vpop.f32.mrf.mxu1 }
  0xc6   :  { %v669_v59 = vadd.f32 %v1081_v18, %v422_v57 }
  0xc7   :  { %v711_v58 = vpack.c.bf16 %v667_v54, %v667_v54 }
  0xc8   :  { %v712_v60 = vpack.c.bf16 %v669_v59, %v668_v56 }
  0xc9   :  { %743 = vst [vmem:[%s1232_s3 + $0x2c] sm:$0xf] %v711_v58 }
  0xca   :  { %744 = vst [vmem:[%s1232_s3 + $0x30] sm:$0xff] %v712_v60  ;;  %v442_v61 = vpop.f32.mrf.mxu3 }
  0xcb   :  { %v693_v63 = vadd.f32 %v1081_v18, %v442_v61 }
  0xcc   :  { %v471_v0 = vpop.f32.mrf.mxu2  ;;  %v375_v2 = vpop.f32.mrf.mxu0 }
  0xcd   :  { %v670_v1 = vadd.f32 %v1085_v24, %v471_v0  ;;  %v728_v3 = vpack.c.bf16 %v693_v63, %v692_v62  ;;  %v671_v4 = vadd.f32 %v1079_v17, %v375_v2  ;;  %v424_v5 = vpop.f32.mrf.mxu1 }
  0xce   :  { %v672_v9 = vadd.f32 %v1081_v18, %v424_v5 }
  0xcf   :  { %v713_v6 = vpack.c.bf16 %v670_v1, %v670_v1  ;;  %760 = vst [vmem:[%s1232_s3 + $0x90] sm:$0xff] %v728_v3 }
  0xd0   :  { %v714_v10 = vpack.c.bf16 %v672_v9, %v671_v4 }
  0xd1   :  { %745 = vst [vmem:[%s1232_s3 + $0x38] sm:$0xf] %v713_v6 }
  0xd2   :  { %746 = vst [vmem:[%s1232_s3 + $0x3c] sm:$0xff] %v714_v10  ;;  %v444_v11 = vpop.f32.mrf.mxu3 }
  0xd3   :  { %v696_v13 = vadd.f32 %v1081_v18, %v444_v11 }
  0xd4   :  { %v473_v7 = vpop.f32.mrf.mxu2  ;;  %v378_v8 = vpop.f32.mrf.mxu0 }
  0xd5   :  { %v673_v14 = vadd.f32 %v1085_v24, %v473_v7  ;;  %v730_v15 = vpack.c.bf16 %v696_v13, %v695_v12  ;;  %v674_v16 = vadd.f32 %v1079_v17, %v378_v8  ;;  %v427_v19 = vpop.f32.mrf.mxu1 }
  0xd6   :  { %v675_v21 = vadd.f32 %v1081_v18, %v427_v19 }
  0xd7   :  { %v715_v20 = vpack.c.bf16 %v673_v14, %v673_v14  ;;  %762 = vst [vmem:[%s1232_s3 + $0x9c] sm:$0xff] %v730_v15 }
  0xd8   :  { %v716_v22 = vpack.c.bf16 %v675_v21, %v674_v16 }
  0xd9   :  { %747 = vst [vmem:[%s1232_s3 + $0x44] sm:$0xf] %v715_v20 }
  0xda   :  { %748 = vst [vmem:[%s1232_s3 + $0x48] sm:$0xff] %v716_v22  ;;  %v447_v23 = vpop.f32.mrf.mxu3 }
  0xdb   :  { %v699_v26 = vadd.f32 %v1081_v18, %v447_v23 }
  0xdc   :  { %v476_v27 = vpop.f32.mrf.mxu2  ;;  %v380_v29 = vpop.f32.mrf.mxu0 }
  0xdd   :  { %v676_v28 = vadd.f32 %v1085_v24, %v476_v27  ;;  %v732_v30 = vpack.c.bf16 %v699_v26, %v698_v25  ;;  %v677_v31 = vadd.f32 %v1079_v17, %v380_v29  ;;  %v429_v32 = vpop.f32.mrf.mxu1 }
  0xde   :  { %v678_v34 = vadd.f32 %v1081_v18, %v429_v32 }
  0xdf   :  { %v717_v33 = vpack.c.bf16 %v676_v28, %v676_v28  ;;  %764 = vst [vmem:[%s1232_s3 + $0xa8] sm:$0xff] %v732_v30 }
  0xe0   :  { %v718_v35 = vpack.c.bf16 %v678_v34, %v677_v31 }
  0xe1   :  { %749 = vst [vmem:[%s1232_s3 + $0x50] sm:$0xf] %v717_v33 }
  0xe2   :  { %750 = vst [vmem:[%s1232_s3 + $0x54] sm:$0xff] %v718_v35  ;;  %v449_v36 = vpop.f32.mrf.mxu3 }
  0xe3   :  { %v702_v38 = vadd.f32 %v1081_v18, %v449_v36 }
  0xe4   :  { %v478_v39 = vpop.f32.mrf.mxu2  ;;  %v383_v41 = vpop.f32.mrf.mxu0 }
  0xe5   :  { %v679_v40 = vadd.f32 %v1085_v24, %v478_v39  ;;  %v734_v42 = vpack.c.bf16 %v702_v38, %v701_v37  ;;  %v680_v43 = vadd.f32 %v1079_v17, %v383_v41  ;;  %v432_v44 = vpop.f32.mrf.mxu1 }
  0xe6   :  { %v681_v46 = vadd.f32 %v1081_v18, %v432_v44 }
  0xe7   :  { %v719_v45 = vpack.c.bf16 %v679_v40, %v679_v40  ;;  %766 = vst [vmem:[%s1232_s3 + $0xb4] sm:$0xff] %v734_v42 }
  0xe8   :  { %v720_v47 = vpack.c.bf16 %v681_v46, %v680_v43 }
  0xe9   :  { %751 = vst [vmem:[%s1232_s3 + $0x5c] sm:$0xf] %v719_v45 }
  0xea   :  { %752 = vst [vmem:[%s1232_s3 + $0x60] sm:$0xff] %v720_v47  ;;  %v491_v48 = vpop.f32.mrf.mxu3 }
  0xeb   :  { %v694_v50 = vadd.f32 %v1085_v24, %v491_v48 }
  0xec   :  { %v481_v49 = vpop.f32.mrf.mxu2  ;;  %v385_v52 = vpop.f32.mrf.mxu0 }
  0xed   :  { %v682_v51 = vadd.f32 %v1085_v24, %v481_v49  ;;  %v729_v53 = vpack.c.bf16 %v694_v50, %v694_v50  ;;  %v683_v54 = vadd.f32 %v1079_v17, %v385_v52  ;;  %v434_v55 = vpop.f32.mrf.mxu1 }
  0xee   :  { %v684_v57 = vadd.f32 %v1081_v18, %v434_v55 }
  0xef   :  { %v721_v56 = vpack.c.bf16 %v682_v51, %v682_v51  ;;  %761 = vst [vmem:[%s1232_s3 + $0x98] sm:$0xf] %v729_v53 }
  0xf0   :  { %v722_v58 = vpack.c.bf16 %v684_v57, %v683_v54 }
  0xf1   :  { %753 = vst [vmem:[%s1232_s3 + $0x68] sm:$0xf] %v721_v56 }
  0xf2   :  { %754 = vst [vmem:[%s1232_s3 + $0x6c] sm:$0xff] %v722_v58  ;;  %v493_v59 = vpop.f32.mrf.mxu3 }
  0xf3   :  { %v697_v61 = vadd.f32 %v1085_v24, %v493_v59 }
  0xf4   :  { %v483_v60 = vpop.f32.mrf.mxu2  ;;  %v388_v63 = vpop.f32.mrf.mxu0 }
  0xf5   :  { %v685_v62 = vadd.f32 %v1085_v24, %v483_v60  ;;  %v731_v0 = vpack.c.bf16 %v697_v61, %v697_v61  ;;  %v686_v1 = vadd.f32 %v1079_v17, %v388_v63  ;;  %v437_v2 = vpop.f32.mrf.mxu1 }
  0xf6   :  { %v687_v4 = vadd.f32 %v1081_v18, %v437_v2 }
  0xf7   :  { %v723_v3 = vpack.c.bf16 %v685_v62, %v685_v62  ;;  %763 = vst [vmem:[%s1232_s3 + $0xa4] sm:$0xf] %v731_v0 }
  0xf8   :  { %v724_v5 = vpack.c.bf16 %v687_v4, %v686_v1 }
  0xf9   :  { %755 = vst [vmem:[%s1232_s3 + $0x74] sm:$0xf] %v723_v3 }
  0xfa   :  { %756 = vst [vmem:[%s1232_s3 + $0x78] sm:$0xff] %v724_v5  ;;  %v496_v6 = vpop.f32.mrf.mxu3 }
  0xfb   :  { %v700_v10 = vadd.f32 %v1085_v24, %v496_v6 }
  0xfc   :  { %v486_v9 = vpop.f32.mrf.mxu2  ;;  %v390_v12 = vpop.f32.mrf.mxu0 }
  0xfd   :  { %v688_v11 = vadd.f32 %v1085_v24, %v486_v9  ;;  %v733_v13 = vpack.c.bf16 %v700_v10, %v700_v10  ;;  %v689_v7 = vadd.f32 %v1079_v17, %v390_v12  ;;  %v439_v14 = vpop.f32.mrf.mxu1 }
  0xfe   :  { %v690_v15 = vadd.f32 %v1081_v18, %v439_v14 }
  0xff   :  { %v725_v8 = vpack.c.bf16 %v688_v11, %v688_v11  ;;  %765 = vst [vmem:[%s1232_s3 + $0xb0] sm:$0xf] %v733_v13 }
 0x100   :  { %v726_v16 = vpack.c.bf16 %v690_v15, %v689_v7 }
 0x101   :  { %757 = vst [vmem:[%s1232_s3 + $0x80] sm:$0xf] %v725_v8 }
 0x102   :  { %758 = vst [vmem:[%s1232_s3 + $0x84] sm:$0xff] %v726_v16  ;;  %v498_v19 = vpop.f32.mrf.mxu3 }
 0x103   :  { %v703_v17 = vadd.f32 %v1085_v24, %v498_v19 }
 0x104   :  { %v488_v20 = vpop.f32.mrf.mxu2 }
 0x105   :  { %v691_v21 = vadd.f32 %v1085_v24, %v488_v20  ;;  %v735_v18 = vpack.c.bf16 %v703_v17, %v703_v17 }
 0x107   :  { %v727_v22 = vpack.c.bf16 %v691_v21, %v691_v21  ;;  %767 = vst [vmem:[%s1232_s3 + $0xbc] sm:$0xf] %v735_v18 }
 0x109   :  { %759 = vst [vmem:[%s1232_s3 + $0x8c] sm:$0xf] %v727_v22 }
 0x10a   :  { %772 = vsyncpa [#allocation4], 1 }

// kernel: encoder_forward.11
= control target key start
LH: loop header
LB: loop body
LE: loop exit
PB: predicated region body
PF: predicated region fallthrough
CT: control target
= control target key end

     0   :  { %s2502_s12 = smov 0   ;;  %s2504_s13 = smov 0   ;;  %s3251_s0 = inlined_call_operand.vmem [shape: bf16[2,64,384], index: 0, kind: input, shape index: {}, may-alias: {0,1,2}]   ;;  %s3252_s1 = inlined_call_operand.vmem [shape: bf16[2,64,384], index: 1, kind: input, shape index: {}, may-alias: {0,1,2}]   ;;  %s3253_s2 = inlined_call_operand.vmem [shape: bf16[2,64,384], index: 2, kind: input, shape index: {}, may-alias: {0,1,2}]   ;;  %s3254_s3 = inlined_call_operand.vmem [shape: bf16[2,64,128], index: 3, kind: output, shape index: {}]  }
   0x1   :  { %s2506_s14 = smov 0   ;;  %s2508_s15 = smov 0  }
   0x2   :  { %s2510_s16 = smov 0  }
   0x3 LB: > { %s25_s17 = sadd.s32 1, %s2473_s15  ;;  %p41_p1 = scmp.ne.s32.totalorder %s2465_s13, %s2461_s12  ;;  %s2477_s16 = sphi %s2510_s16, %s13_s16   ;;  %s2473_s15 = sphi %s2508_s15, %s3259_s15   ;;  %s2469_s14 = sphi %s2506_s14, %s3258_s14   ;;  %s2465_s13 = sphi %s2504_s13, %s3257_s13   ;;  %s2461_s12 = sphi %s2502_s12, %s3256_s12  }
   0x4   : > { %p27_p0 = scmp.ge.s32.totalorder %s25_s17, 2  ;;  %p42_p2 = scmp.eq.s32.totalorder %s2477_s16, 0 }
   0x5   : > { %s34_s20 = sadd.s32 1, %s2465_s13  ;;  %p1963_p5 = scmp.ge.s32.totalorder %s2477_s16, 2 }
   0x6   : > { %s3261_s17 = smov (%p27_p0, %s25_s17), 0  ;;  %p2533_p3 = por %p42_p2, %p41_p1 }
   0x7   : > { %s29_s19 = ssub.s32 %s2473_s15, %s3261_s17  ;;  %147 = sbr.rel (%p1963_p5) target bundleno = 51 (0x33), region = 16 }
   0x8   : > { %p32_p4 = scmp.eq.s32.totalorder %s29_s19, 0 }
   0xa   : > { %s2541_s21 = scalar_select %p32_p4, %s2465_s13, %s34_s20  }
   0xc   : > { %150 = sbr.rel (!%p2533_p3) target bundleno = 25 (0x19), region = 20  ;;  %s152_s22 = sand.u32 (%p2533_p3), 1, %s2465_s13  }
   0xd   : > { %s2267_s23 = smul.u32 (%p2533_p3), 96, %s2473_s15  ;;  %s1964_s24 = sshll.u32 (%p2533_p3), %s152_s22, 5 }
   0xe   : > { %s154_s28 = scalar_lea.vmem (%p2533_p3), [#allocation2], %s1964_s24 }
   0xf   : > { %s160_s27 = scalar_lea.vmem (%p2533_p3), %s3251_s0, %s2267_s23 }
  0x10   : > { %v177_v0 = vld [vmem:[%s160_s27] sm:$0xf] (%p2533_p3)  ;;  %v179_v1 = vld [vmem:[%s160_s27 + $0xc] sm:$0xf] (%p2533_p3)  ;;  %v181_v2 = vld [vmem:[%s160_s27 + $0x18] sm:$0xf] (%p2533_p3) }
  0x11   : > { %178 = vst [vmem:[%s154_s28] sm:$0xf] %v177_v0  ;;  %v183_v3 = vld [vmem:[%s160_s27 + $0x24] sm:$0xf]  ;;  %v185_v4 = vld [vmem:[%s160_s27 + $0x30] sm:$0xf] }
  0x12   : > { %180 = vst [vmem:[%s154_s28 + $0x4] sm:$0xf] %v179_v1  ;;  %v187_v5 = vld [vmem:[%s160_s27 + $0x3c] sm:$0xf]  ;;  %v189_v6 = vld [vmem:[%s160_s27 + $0x48] sm:$0xf] }
  0x13   : > { %182 = vst [vmem:[%s154_s28 + $0x8] sm:$0xf] %v181_v2  ;;  %v191_v7 = vld [vmem:[%s160_s27 + $0x54] sm:$0xf] }
  0x14   : > { %184 = vst [vmem:[%s154_s28 + $0xc] sm:$0xf] %v183_v3 }
  0x15   : > { %186 = vst [vmem:[%s154_s28 + $0x10] sm:$0xf] %v185_v4 }
  0x16   : > { %188 = vst [vmem:[%s154_s28 + $0x14] sm:$0xf] %v187_v5 }
  0x17   : > { %190 = vst [vmem:[%s154_s28 + $0x18] sm:$0xf] %v189_v6 }
  0x18   : > { %192 = vst [vmem:[%s154_s28 + $0x1c] sm:$0xf] %v191_v7 }
  0x19 PF: > { %232 = sbr.rel (!%p2533_p3) target bundleno = 38 (0x26), region = 61  ;;  %s234_s29 = sand.u32 (%p2533_p3), 1, %s2465_s13  }
  0x1a   : > { %s1967_s30 = smul.u32 (%p2533_p3), 96, %s2473_s15  ;;  %s1966_s4 = sshll.u32 (%p2533_p3), %s234_s29, 5 }
  0x1b   : > { %s236_s8 = scalar_lea.vmem (%p2533_p3), [#allocation3], %s1966_s4 }
  0x1c   : > { %s1871_s7 = scalar_lea.vmem (%p2533_p3), %s3252_s1, %s1967_s30 }
  0x1d   : > { %v1968_v8 = vld [vmem:[%s1871_s7 + $0x4] sm:$0xf] (%p2533_p3)  ;;  %v1969_v9 = vld [vmem:[%s1871_s7 + $0x10] sm:$0xf] (%p2533_p3)  ;;  %v1970_v10 = vld [vmem:[%s1871_s7 + $0x1c] sm:$0xf] (%p2533_p3) }
  0x1e   : > { %258 = vst [vmem:[%s236_s8] sm:$0xf] %v1968_v8  ;;  %v1971_v11 = vld [vmem:[%s1871_s7 + $0x28] sm:$0xf]  ;;  %v1972_v12 = vld [vmem:[%s1871_s7 + $0x34] sm:$0xf] }
  0x1f   : > { %260 = vst [vmem:[%s236_s8 + $0x4] sm:$0xf] %v1969_v9  ;;  %v1973_v13 = vld [vmem:[%s1871_s7 + $0x40] sm:$0xf]  ;;  %v1974_v14 = vld [vmem:[%s1871_s7 + $0x4c] sm:$0xf] }
  0x20   : > { %262 = vst [vmem:[%s236_s8 + $0x8] sm:$0xf] %v1970_v10  ;;  %v1975_v15 = vld [vmem:[%s1871_s7 + $0x58] sm:$0xf] }
  0x21   : > { %264 = vst [vmem:[%s236_s8 + $0xc] sm:$0xf] %v1971_v11 }
  0x22   : > { %266 = vst [vmem:[%s236_s8 + $0x10] sm:$0xf] %v1972_v12 }
  0x23   : > { %268 = vst [vmem:[%s236_s8 + $0x14] sm:$0xf] %v1973_v13 }
  0x24   : > { %270 = vst [vmem:[%s236_s8 + $0x18] sm:$0xf] %v1974_v14 }
  0x25   : > { %272 = vst [vmem:[%s236_s8 + $0x1c] sm:$0xf] %v1975_v15 }
  0x26 PF: > { %312 = sbr.rel (!%p2533_p3) target bundleno = 51 (0x33), region = 102  ;;  %s314_s9 = sand.u32 (%p2533_p3), 1, %s2465_s13  }
  0x27   : > { %s1977_s10 = smul.u32 (%p2533_p3), 96, %s2473_s15  ;;  %s1976_s11 = sshll.u32 (%p2533_p3), %s314_s9, 5 }
  0x28   : > { %s316_s23 = scalar_lea.vmem (%p2533_p3), [#allocation4], %s1976_s11 }
  0x29   : > { %s1877_s22 = scalar_lea.vmem (%p2533_p3), %s3253_s2, %s1977_s10 }
  0x2a   : > { %v1978_v16 = vld [vmem:[%s1877_s22 + $0x8] sm:$0xf] (%p2533_p3)  ;;  %v1979_v17 = vld [vmem:[%s1877_s22 + $0x14] sm:$0xf] (%p2533_p3)  ;;  %v1980_v18 = vld [vmem:[%s1877_s22 + $0x20] sm:$0xf] (%p2533_p3) }
  0x2b   : > { %338 = vst [vmem:[%s316_s23] sm:$0xf] %v1978_v16  ;;  %v1981_v19 = vld [vmem:[%s1877_s22 + $0x2c] sm:$0xf]  ;;  %v1982_v20 = vld [vmem:[%s1877_s22 + $0x38] sm:$0xf] }
  0x2c   : > { %340 = vst [vmem:[%s316_s23 + $0x4] sm:$0xf] %v1979_v17  ;;  %v1983_v21 = vld [vmem:[%s1877_s22 + $0x44] sm:$0xf]  ;;  %v1984_v22 = vld [vmem:[%s1877_s22 + $0x50] sm:$0xf] }
  0x2d   : > { %342 = vst [vmem:[%s316_s23 + $0x8] sm:$0xf] %v1980_v18  ;;  %v1985_v23 = vld [vmem:[%s1877_s22 + $0x5c] sm:$0xf] }
  0x2e   : > { %344 = vst [vmem:[%s316_s23 + $0xc] sm:$0xf] %v1981_v19 }
  0x2f   : > { %346 = vst [vmem:[%s316_s23 + $0x10] sm:$0xf] %v1982_v20 }
  0x30   : > { %348 = vst [vmem:[%s316_s23 + $0x14] sm:$0xf] %v1983_v21 }
  0x31   : > { %350 = vst [vmem:[%s316_s23 + $0x18] sm:$0xf] %v1984_v22 }
  0x32   : > { %352 = vst [vmem:[%s316_s23 + $0x1c] sm:$0xf] %v1985_v23 }
  0x33 PF: > { %p1986_p6 = scmp.ge.s32.totalorder %s2477_s16, 1  ;;  %p391_p7 = scmp.lt.s32.totalorder %s2477_s16, 3 }
  0x35   : > { %p392_p8 = pnand %p1986_p6, %p391_p7 }
  0x36   : > { %s398_s18 = sand.u32 (!%p392_p8), 1, %s2461_s12   ;;  %s2479_s26 = smov (!%p392_p8), 96  }
  0x37   : > { %395 = sbr.rel (%p392_p8) target bundleno = 1358 (0x54e), region = 143  ;;  %s2568_s24 = sshll.u32 (!%p392_p8), %s398_s18, 5 }
  0x38   : > { %s2571_s25 = scalar_lea.vmem (!%p392_p8), [#allocation3], %s2568_s24  ;;  %s2583_s12 = scalar_lea.vmem (!%p392_p8), [#allocation2], %s2568_s24 }
  0x39   : > { %s2480_s27 = smov (!%p392_p8), 64   ;;  %s2481_s28 = smov (!%p392_p8), 32  }
  0x3a   : > { %s2639_s29 = scalar_lea.vmem (!%p392_p8), [#allocation4], %s2568_s24  ;;  %p449_p9 = scmp.lt.s32.totalorder (!%p392_p8), %s2469_s14, 1 }
  0x3c   : > { %vm526_vm0 = vcmask 261120   ;;  %v2237_v24 = vld [vmem:[%s2571_s25 + $0x10] sm:$0xff]  ;;  %v2226_v25 = vld [vmem:[%s2571_s25 + $0x18] sm:$0xff]  ;;  %v2236_v26 = vld [vmem:[%s2571_s25 + $0x8] sm:$0xff]  ;;  %v459_v11 = vlaneseq  ;;  %vm590_vm2 = vcmask 523264   ;;  %s3263_s14 = smov (!%p449_p9, %s2469_s14), 1 }
  0x3d   : > { %v2238_v27 = vld [vmem:[%s2571_s25 + $0x18] sm:$0xff]  ;;  %841 = vrot.lane.b32.xlu1 %v2237_v24, %s2479_s26  ;;  %v549_v28 = vsel %vm526_vm0, %v2226_v25, 0  ;;  %839 = vrot.lane.b32.xlu0 %v2236_v26, %s2479_s26  ;;  %v2225_v29 = vld [vmem:[%s2571_s25 + $0x10] sm:$0xff]  ;;  %s2218_s30 = sshll.u32 %s3263_s14, 5  ;;  %vm756_vm3 = vcmask 257024   ;;  %vm1111_vm4 = vcmask 519424  }
  0x3e   : > { %555 = vmatpush.bf16.xpose.msra.mxu0 %v549_v28  ;;  %843 = vrot.lane.b32.xlu2 %v2238_v27, %s2479_s26  ;;  %v2231_v30 = vld [vmem:[%s2583_s12] sm:$0xff]  ;;  %v546_v32 = vsel %vm526_vm0, %v2225_v29, 0  ;;  %v2224_v33 = vld [vmem:[%s2571_s25 + $0x8] sm:$0xff]  ;;  %v2250_v36 = vld [vmem:[%s2571_s25 + $0x18] sm:$0xff]  ;;  %v2647_v13 = vand.u32 127, %v459_v11  ;;  %s2874_s6 = scalar_lea.vmem %s3254_s3, %s2218_s30  ;;  %vm1466_vm5 = vcmask 781824  }
  0x3f   : > { %v2235_v31 = vld [vmem:[%s2571_s25] sm:$0xff]  ;;  %v2232_v34 = vld [vmem:[%s2583_s12 + $0x8] sm:$0xff]  ;;  %v543_v35 = vsel %vm526_vm0, %v2224_v33, 0  ;;  %v2249_v38 = vld [vmem:[%s2571_s25 + $0x10] sm:$0xff]  ;;  %vm1821_vm6 = vcmask 1044224  }
  0x40   : > { %v2223_v37 = vld [vmem:[%s2571_s25] sm:$0xff]  ;;  %v2261_v41 = vld [vmem:[%s2571_s25 + $0x10] sm:$0xff]  ;;  %v2248_v42 = vld [vmem:[%s2571_s25 + $0x8] sm:$0xff]  ;;  %vm461_vm1 = vcmp.lt.s32.totalorder %v2647_v13, 8 }
  0x41   : > { %v540_v39 = vsel %vm526_vm0, %v2223_v37, 0  ;;  %v2219_v40 = vld [vmem:[%s2583_s12] sm:$0xff]  ;;  %v2220_v43 = vld [vmem:[%s2583_s12 + $0x8] sm:$0xff]  ;;  %v2233_v44 = vld [vmem:[%s2583_s12 + $0x10] sm:$0xff] }
  0x42   : > { %v2247_v45 = vld [vmem:[%s2571_s25] sm:$0xff]  ;;  %v2262_v46 = vld [vmem:[%s2571_s25 + $0x18] sm:$0xff]  ;;  %v2221_v48 = vld [vmem:[%s2583_s12 + $0x10] sm:$0xff] }
  0x43   : > { %v2259_v47 = vld [vmem:[%s2571_s25] sm:$0xff]  ;;  %v2234_v49 = vld [vmem:[%s2583_s12 + $0x18] sm:$0xff]  ;;  %v2260_v51 = vld [vmem:[%s2571_s25 + $0x8] sm:$0xff] }
  0x44   : > { %v2255_v50 = vld [vmem:[%s2583_s12] sm:$0xff]  ;;  %v2222_v52 = vld [vmem:[%s2583_s12 + $0x18] sm:$0xff]  ;;  %v2245_v54 = vld [vmem:[%s2583_s12 + $0x10] sm:$0xff] }
  0x45   : > { %809 = vrot.lane.b32.xlu0 %v2231_v30, %s2479_s26  ;;  %1198 = vrot.lane.b32.xlu1 %v2250_v36, %s2480_s27  ;;  %v2243_v53 = vld [vmem:[%s2583_s12] sm:$0xff]  ;;  %v2256_v57 = vld [vmem:[%s2583_s12 + $0x8] sm:$0xff] }
  0x46   : > { %556 = vmatpush.bf16.xpose.msra.mxu0 %v546_v32  ;;  %837 = vrot.lane.b32.xlu2 %v2235_v31, %s2479_s26  ;;  %v2244_v58 = vld [vmem:[%s2583_s12 + $0x8] sm:$0xff]  ;;  %v2230_v2 = vld [vmem:[%s2639_s29 + $0x18] sm:$0xff]  ;;  %v2229_v4 = vld [vmem:[%s2639_s29 + $0x10] sm:$0xff] }
  0x47   : > { %723 = vmatpush.bf16.msra.mxu1 %v2230_v2  ;;  %v2228_v5 = vld [vmem:[%s2639_s29 + $0x8] sm:$0xff]  ;;  %v2227_v9 = vld [vmem:[%s2639_s29] sm:$0xff] }
  0x4b   : > { %724 = vmatpush.bf16.msra.mxu1 %v2229_v4 }
  0x4d   : > { %811 = vrot.lane.b32.xlu0 %v2232_v34, %s2479_s26  ;;  %815 = vrot.lane.b32.xlu1 %v2234_v49, %s2479_s26 }
  0x4e   : > { %557 = vmatpush.bf16.xpose.msra.mxu0 %v543_v35  ;;  %813 = vrot.lane.b32.xlu2 %v2233_v44, %s2479_s26 }
  0x4f   : > { %725 = vmatpush.bf16.msra.mxu1 %v2228_v5 }
  0x53   : > { %726 = vmatpush.bf16.msra.mxu1 %v2227_v9 }
  0x55   : > { %1196 = vrot.lane.b32.xlu0 %v2249_v38, %s2480_s27  ;;  %1164 = vrot.lane.b32.xlu1 %v2243_v53, %s2480_s27 }
  0x56   : > { %558 = vmatpush.bf16.xpose.msra.mxu0 %v540_v39  ;;  %1553 = vrot.lane.b32.xlu2 %v2262_v46, %s2481_s28 }
  0x5d   : > { %2024 = vmatmul.msk.bf16.vlgmr.msra.gmra.mxu0 %vm526_vm0, %v2219_v40  ;;  %1551 = vrot.lane.b32.xlu0 %v2261_v41, %s2481_s28 }
  0x5e   : > { %1549 = vrot.lane.b32.xlu2 %v2260_v51, %s2481_s28  ;;  %1521 = vrot.lane.b32.xlu1 %v2256_v57, %s2481_s28 }
  0x65   : > { %1194 = vrot.lane.b32.xlu0 %v2248_v42, %s2480_s27 }
  0x66   : > { %1166 = vrot.lane.b32.xlu2 %v2244_v58, %s2480_s27 }
  0x6d   : > { %2025 = vmatmul.msk.bf16.gmra.mxu0 %vm526_vm0, %v2220_v43  ;;  %1192 = vrot.lane.b32.xlu0 %v2247_v45, %s2480_s27 }
  0x75   : > { %1547 = vrot.lane.b32.xlu0 %v2259_v47, %s2481_s28 }
  0x7d   : > { %2026 = vmatmul.msk.bf16.gmra.mxu0 %vm526_vm0, %v2221_v48  ;;  %1519 = vrot.lane.b32.xlu0 %v2255_v50, %s2481_s28 }
  0x85   : > { %1168 = vrot.lane.b32.xlu0 %v2245_v54, %s2480_s27  ;;  %v2258_v54 = vld [vmem:[%s2583_s12 + $0x18] sm:$0xff] }
  0x8d   : > { %2027 = vmatmul.msk.bf16.gmra.mxu0 %vm526_vm0, %v2222_v52 }
  0x98   : > { %v844_v55 = vpop.permute.xlu2 %843 }
  0x99   : > { %v867_v56 = vsel %vm526_vm0, %v844_v55, 0 }
  0x9a   : > { %873 = vmatpush.bf16.xpose.msra.mxu2 %v867_v56 }
  0xa0   : > { %v838_v63 = vpop.permute.xlu2 %837 }
  0xa1   : > { %v858_v1 = vsel %vm526_vm0, %v838_v63, 0 }
  0xa8   : > { %v814_v7 = vpop.permute.xlu2 %813 }
  0xaf   : > { %v842_v59 = vpop.permute.xlu1 %841  ;;  %v840_v61 = vpop.permute.xlu0 %839 }
  0xb0   : > { %v864_v60 = vsel %vm526_vm0, %v842_v59, 0  ;;  %v861_v62 = vsel %vm526_vm0, %v840_v61, 0  ;;  %v1554_v12 = vpop.permute.xlu2 %1553 }
  0xb1   : > { %874 = vmatpush.bf16.xpose.msra.mxu2 %v864_v60  ;;  %v1577_v16 = vsel %vm526_vm0, %v1554_v12, 0 }
  0xb2   : > { %1583 = vmatpush.bf16.xpose.msrb.mxu0 %v1577_v16  ;;  %v2257_v16 = vld [vmem:[%s2583_s12 + $0x10] sm:$0xff] }
  0xb7   : > { %v810_v0 = vpop.permute.xlu0 %809  ;;  %v1199_v6 = vpop.permute.xlu1 %1198 }
  0xb8   : > { %v1222_v10 = vsel %vm526_vm0, %v1199_v6, 0  ;;  %v1550_v24 = vpop.permute.xlu2 %1549 }
  0xb9   : > { %875 = vmatpush.bf16.xpose.msra.mxu2 %v861_v62  ;;  %1228 = vmatpush.bf16.xpose.msrb.mxu1 %v1222_v10  ;;  %v1571_v28 = vsel %vm526_vm0, %v1550_v24, 0 }
  0xbf   : > { %v812_v3 = vpop.permute.xlu0 %811  ;;  %v816_v39 = vpop.permute.xlu1 %815 }
  0xc1   : > { %876 = vmatpush.bf16.xpose.msra.mxu2 %v858_v1 }
  0xc7   : > { %v1197_v8 = vpop.permute.xlu0 %1196  ;;  %v2682_v46 = vpop.permute.xlu1 %1164 }
  0xc8   : > { %2080 = vmatmul.msk.bf16.vlgmr.msra.gmra.mxu2 %vm526_vm0, %v810_v0  ;;  %v1219_v15 = vsel %vm526_vm0, %v1197_v8, 0 }
  0xc9   : > { %1229 = vmatpush.bf16.xpose.msrb.mxu1 %v1219_v15 }
  0xcf   : > { %v1552_v14 = vpop.permute.xlu0 %1551 }
  0xd0   : > { %v1574_v21 = vsel %vm526_vm0, %v1552_v14, 0  ;;  %v1522_v50 = vpop.permute.xlu1 %1521 }
  0xd1   : > { %1584 = vmatpush.bf16.xpose.msrb.mxu0 %v1574_v21 }
  0xd7   : > { %v1195_v20 = vpop.permute.xlu0 %1194 }
  0xd8   : > { %2081 = vmatmul.msk.bf16.gmra.mxu2 %vm526_vm0, %v812_v3  ;;  %v1216_v27 = vsel %vm526_vm0, %v1195_v20, 0 }
  0xd9   : > { %1230 = vmatpush.bf16.xpose.msrb.mxu1 %v1216_v27  ;;  %1585 = vmatpush.bf16.xpose.msrb.mxu0 %v1571_v28 }
  0xda   : > { %v560_v17 = vpop.f32.mrf.mxu0 }
  0xdb   : > { %v582_v18 = vsel %vm461_vm1, %v560_v17, -1e+30 }
  0xdc   : > { %v591_v19 = vsel %vm590_vm2, %v582_v18, -inf }
  0xdd   : > { %592 = vmax.xlane.f32.xlu0 %v591_v19 }
  0xdf   : > { %v1193_v26 = vpop.permute.xlu0 %1192 }
  0xe0   : > { %v1213_v33 = vsel %vm526_vm0, %v1193_v26, 0 }
  0xe1   : > { %1231 = vmatpush.bf16.xpose.msrb.mxu1 %v1213_v33 }
  0xe2   : > { %v562_v22 = vpop.f32.mrf.mxu0 }
  0xe3   : > { %v583_v23 = vsel %vm461_vm1, %v562_v22, -1e+30 }
  0xe4   : > { %v594_v25 = vsel %vm590_vm2, %v583_v23, -inf }
  0xe5   : > { %595 = vmax.xlane.f32.xlu0 %v594_v25 }
  0xe7   : > { %v1548_v32 = vpop.permute.xlu0 %1547 }
  0xe8   : > { %2082 = vmatmul.msk.bf16.gmra.mxu2 %vm526_vm0, %v814_v7  ;;  %v1568_v34 = vsel %vm526_vm0, %v1548_v32, 0 }
  0xe9   : > { %1586 = vmatpush.bf16.xpose.msrb.mxu0 %v1568_v34 }
  0xea   : > { %v565_v29 = vpop.f32.mrf.mxu0 }
  0xeb   : > { %v584_v30 = vsel %vm461_vm1, %v565_v29, -1e+30  ;;  %v2246_v29 = vld [vmem:[%s2583_s12 + $0x18] sm:$0xff] }
  0xec   : > { %v597_v31 = vsel %vm590_vm2, %v584_v30, -inf }
  0xed   : > { %598 = vmax.xlane.f32.xlu1 %v597_v31 }
  0xef   : > { %v1520_v38 = vpop.permute.xlu0 %1519 }
  0xf0   : > { %2192 = vmatmul.msk.bf16.vlgmr.msrb.gmra.mxu0 %vm526_vm0, %v1520_v38 }
  0xf2   : > { %v567_v35 = vpop.f32.mrf.mxu0 }
  0xf3   : > { %v585_v36 = vsel %vm461_vm1, %v567_v35, -1e+30  ;;  %v2242_v35 = vld [vmem:[%s2639_s29 + $0x18] sm:$0xff] }
  0xf4   : > { %v600_v37 = vsel %vm590_vm2, %v585_v36, -inf }
  0xf5   : > { %601 = vmax.xlane.f32.xlu1 %v600_v37 }
  0xf7   : > { %v2699_v55 = vpop.permute.xlu0 %1168 }
  0xf8   : > { %2083 = vmatmul.msk.bf16.gmra.mxu2 %vm526_vm0, %v816_v39 }
  0xfa   : > { %v570_v40 = vpop.f32.mrf.mxu0 }
  0xfb   : > { %v2675_v41 = vsel %vm461_vm1, %v570_v40, -1e+30  ;;  %v2239_v40 = vld [vmem:[%s2639_s29] sm:$0xff] }
  0xfc   : > { %v603_v42 = vsel %vm590_vm2, %v2675_v41, -inf }
  0xfd   : > { %604 = vmax.xlane.f32.xlu2 %v603_v42 }
 0x100   : > { %2193 = vmatmul.msk.bf16.gmra.mxu0 %vm526_vm0, %v1522_v50 }
 0x102   : > { %v572_v43 = vpop.f32.mrf.mxu0 }
 0x103   : > { %v587_v44 = vsel %vm461_vm1, %v572_v43, -1e+30 }
 0x104   : > { %v606_v45 = vsel %vm590_vm2, %v587_v44, -inf }
 0x105   : > { %607 = vmax.xlane.f32.xlu0 %v606_v45 }
 0x10a   : > { %v575_v47 = vpop.f32.mrf.mxu0 }
 0x10b   : > { %v2686_v48 = vsel %vm461_vm1, %v575_v47, -1e+30 }
 0x10c   : > { %v609_v49 = vsel %vm590_vm2, %v2686_v48, -inf }
 0x10d   : > { %610 = vmax.xlane.f32.xlu1 %v609_v49 }
 0x112   : > { %v577_v51 = vpop.f32.mrf.mxu0 }
 0x113   : > { %v2693_v52 = vsel %vm461_vm1, %v577_v51, -1e+30 }
 0x114   : > { %v612_v53 = vsel %vm590_vm2, %v2693_v52, -inf }
 0x115   : > { %613 = vmax.xlane.f32.xlu0 %v612_v53 }
 0x129   : > { %1525 = vrot.lane.b32.xlu0 %v2258_v54, %s2481_s28 }
 0x14b   : > { %v878_v56 = vpop.f32.mrf.mxu2 }
 0x14c   : > { %v2743_v32 = vsel %vm461_vm1, %v878_v56, -1e+30 }
 0x14d   : > { %v906_v34 = vsel %vm590_vm2, %v2743_v32, -inf }
 0x150   : > { %v593_v57 = vpop.xlane.xlu0 %592 }
 0x151   : > { %v615_v58 = vsub.f32 %v582_v18, %v593_v57 }
 0x153   : > { %v623_v59 = vmul.f32 1.442695, %v615_v58  ;;  %v2701_v60 = vpop.f32.mrf.mxu2 }
 0x154   : > { %v2777_v56 = vsel %vm461_vm1, %v2701_v60, -1e+30 }
 0x155   : > { %2311 = vpow2.f32 %v623_v59  ;;  %v909_v57 = vsel %vm590_vm2, %v2777_v56, -inf }
 0x158   : > { %v596_v61 = vpop.xlane.xlu0 %595 }
 0x159   : > { %v616_v62 = vsub.f32 %v583_v23, %v596_v61 }
 0x15b   : > { %v2703_v63 = vpop.eup %2311  ;;  %v625_v0 = vmul.f32 1.442695, %v616_v62  ;;  %v883_v1 = vpop.f32.mrf.mxu2 }
 0x15c   : > { %v2707_v2 = vsel %vm461_vm1, %v883_v1, -1e+30  ;;  %v639_v3 = vsel %vm590_vm2, %v2703_v63, 0.0 }
 0x15d   : > { %2313 = vpow2.f32 %v625_v0  ;;  %640 = vadd.xlane.f32.xlu2 %v639_v3  ;;  %v912_v4 = vsel %vm590_vm2, %v2707_v2, -inf }
 0x15e   : > { %913 = vmax.xlane.f32.xlu0 %v912_v4 }
 0x160   : > { %v599_v5 = vpop.xlane.xlu1 %598 }
 0x161   : > { %v617_v6 = vsub.f32 %v584_v30, %v599_v5  ;;  %v2739_v30 = vpop.permute.xlu2 %1166 }
 0x163   : > { %v2713_v7 = vpop.eup %2313  ;;  %v627_v8 = vmul.f32 1.442695, %v617_v6  ;;  %v885_v17 = vpop.f32.mrf.mxu2 }
 0x164   : > { %v642_v9 = vsel %vm590_vm2, %v2713_v7, 0.0  ;;  %v2752_v37 = vsel %vm461_vm1, %v885_v17, -1e+30 }
 0x165   : > { %2315 = vpow2.f32 %v627_v8  ;;  %643 = vadd.xlane.f32.xlu1 %v642_v9  ;;  %v915_v39 = vsel %vm590_vm2, %v2752_v37, -inf }
 0x168   : > { %v602_v10 = vpop.xlane.xlu1 %601 }
 0x169   : > { %v618_v11 = vsub.f32 %v585_v36, %v602_v10 }
 0x16b   : > { %v2717_v12 = vpop.eup %2315  ;;  %v629_v14 = vmul.f32 1.442695, %v618_v11  ;;  %v888_v22 = vpop.f32.mrf.mxu2 }
 0x16c   : > { %v645_v15 = vsel %vm590_vm2, %v2717_v12, 0.0  ;;  %v2787_v61 = vsel %vm461_vm1, %v888_v22, -1e+30 }
 0x16d   : > { %2317 = vpow2.f32 %v629_v14  ;;  %646 = vadd.xlane.f32.xlu1 %v645_v15  ;;  %v1588_v58 = vpop.f32.mrf.mxu0  ;;  %v918_v60 = vsel %vm590_vm2, %v2787_v61, -inf }
 0x170   : > { %v605_v38 = vpop.xlane.xlu2 %604 }
 0x171   : > { %v619_v42 = vsub.f32 %v2675_v41, %v605_v38  ;;  %v2827_v38 = vsel %vm461_vm1, %v1588_v58, -1e+30 }
 0x173   : > { %v2722_v18 = vpop.eup %2317  ;;  %v890_v26 = vpop.f32.mrf.mxu2 }
 0x174   : > { %v648_v19 = vsel %vm590_vm2, %v2722_v18, 0.0  ;;  %v2733_v27 = vsel %vm461_vm1, %v890_v26, -1e+30  ;;  %v2240_v26 = vld [vmem:[%s2639_s29 + $0x8] sm:$0xff] }
 0x175   : > { %1523 = vrot.lane.b32.xlu2 %v2257_v16, %s2481_s28  ;;  %649 = vadd.xlane.f32.xlu1 %v648_v19  ;;  %v921_v28 = vsel %vm590_vm2, %v2733_v27, -inf  ;;  %v1590_v62 = vpop.f32.mrf.mxu0 }
 0x176   : > { %v2793_v0 = vsel %vm461_vm1, %v1590_v62, -1e+30 }
 0x177   : > { %v1619_v4 = vsel %vm590_vm2, %v2793_v0, -inf }
 0x178   : > { %v608_v20 = vpop.xlane.xlu0 %607 }
 0x179   : > { %v620_v21 = vsub.f32 %v587_v44, %v608_v20  ;;  %v631_v44 = vmul.f32 1.442695, %v619_v42 }
 0x17b   : > { %v633_v23 = vmul.f32 1.442695, %v620_v21  ;;  %v893_v47 = vpop.f32.mrf.mxu2 }
 0x17c   : > { %v2765_v49 = vsel %vm461_vm1, %v893_v47, -1e+30 }
 0x17d   : > { %2319 = vpow2.f32 %v633_v23  ;;  %v924_v41 = vsel %vm590_vm2, %v2765_v49, -inf  ;;  %v1593_v6 = vpop.f32.mrf.mxu0 }
 0x17e   : > { %v2803_v8 = vsel %vm461_vm1, %v1593_v6, -1e+30 }
 0x17f   : > { %v1622_v14 = vsel %vm590_vm2, %v2803_v8, -inf }
 0x180   : > { %v611_v50 = vpop.xlane.xlu1 %610 }
 0x183   : > { %v2727_v24 = vpop.eup %2319  ;;  %v895_v3 = vpop.f32.mrf.mxu2 }
 0x184   : > { %v654_v25 = vsel %vm590_vm2, %v2727_v24, 0.0  ;;  %v2799_v5 = vsel %vm461_vm1, %v895_v3, -1e+30 }
 0x185   : > { %655 = vadd.xlane.f32.xlu0 %v654_v25  ;;  %v927_v9 = vsel %vm590_vm2, %v2799_v5, -inf }
 0x188   : > { %v614_v31 = vpop.xlane.xlu0 %613 }
 0x189   : > { %v622_v33 = vsub.f32 %v2693_v52, %v614_v31  ;;  %v621_v52 = vsub.f32 %v2686_v48, %v611_v50 }
 0x18b   : > { %v637_v36 = vmul.f32 1.442695, %v622_v33  ;;  %v635_v54 = vmul.f32 1.442695, %v621_v52  ;;  %v2241_v33 = vld [vmem:[%s2639_s29 + $0x10] sm:$0xff] }
 0x18d   : > { %922 = vmax.xlane.f32.xlu0 %v921_v28  ;;  %2321 = vpow2.f32 %v637_v36 }
 0x18e   : > { %1170 = vrot.lane.b32.xlu1 %v2246_v29, %s2480_s27  ;;  %2323 = vpow2.f32 %v631_v44 }
 0x18f   : > { %2325 = vpow2.f32 %v635_v54 }
 0x193   : > { %v2759_v43 = vpop.eup %2321 }
 0x194   : > { %v660_v45 = vsel %vm590_vm2, %v2759_v43, 0.0  ;;  %v2767_v51 = vpop.eup %2323 }
 0x195   : > { %v651_v53 = vsel %vm590_vm2, %v2767_v51, 0.0  ;;  %v2781_v59 = vpop.eup %2325 }
 0x196   : > { %v657_v48 = vsel %vm590_vm2, %v2781_v59, 0.0 }
 0x19b   : > { %v1526_v22 = vpop.permute.xlu0 %1525 }
 0x19e   : > { %907 = vmax.xlane.f32.xlu2 %v906_v34 }
 0x1a1   : > { %1024 = vrot.lane.b32.xlu0 %v2242_v35, %s2479_s26 }
 0x1a6   : > { %916 = vmax.xlane.f32.xlu2 %v915_v39 }
 0x1a9   : > { %1018 = vrot.lane.b32.xlu0 %v2239_v40, %s2479_s26 }
 0x1ae   : > { %661 = vadd.xlane.f32.xlu2 %v660_v45 }
 0x1b6   : > { %925 = vmax.xlane.f32.xlu2 %v924_v41 }
 0x1b8   : > { %652 = vadd.xlane.f32.xlu1 %v651_v53 }
 0x1c0   : > { %910 = vmax.xlane.f32.xlu1 %v909_v57 }
 0x1c8   : > { %658 = vadd.xlane.f32.xlu1 %v657_v48 }
 0x1ce   : > { %1022 = vrot.lane.b32.xlu2 %v2241_v33, %s2479_s26 }
 0x1d0   : > { %v641_v1 = vpop.xlane.xlu2 %640  ;;  %919 = vmax.xlane.f32.xlu1 %v918_v60 }
 0x1d1   : > { %2327 = vrcp.f32 %v641_v1 }
 0x1d3   : > { %1620 = vmax.xlane.f32.xlu0 %v1619_v4 }
 0x1d7   : > { %v2328_v15 = vpop.eup %2327 }
 0x1d8   : > { %v1524_v10 = vpop.permute.xlu2 %1523  ;;  %928 = vmax.xlane.f32.xlu1 %v927_v9  ;;  %v644_v11 = vpop.xlane.xlu1 %643  ;;  %v671_v19 = vmul.f32 %v2328_v15, %v2703_v63 }
 0x1d9   : > { %2329 = vrcp.f32 %v644_v11  ;;  %2194 = vmatmul.msk.bf16.gmra.mxu0 %vm526_vm0, %v1524_v10 }
 0x1db   : > { %1623 = vmax.xlane.f32.xlu0 %v1622_v14 }
 0x1df   : > { %v2330_v16 = vpop.eup %2329 }
 0x1e0   : > { %v647_v17 = vpop.xlane.xlu1 %646  ;;  %v672_v20 = vmul.f32 %v2330_v16, %v2713_v7  ;;  %v2819_v7 = vpop.xlane.xlu0 %913 }
 0x1e1   : > { %2331 = vrcp.f32 %v647_v17 }
 0x1e2   : > { %v679_v21 = vpack.c.bf16 %v672_v20, %v671_v19 }
 0x1e4   : > { %2044 = vmatmul.msk.bf16.vlgmr.msra.gmra.mxu1 %vm590_vm2, %v679_v21 }
 0x1e7   : > { %v2332_v25 = vpop.eup %2331 }
 0x1e8   : > { %v650_v23 = vpop.xlane.xlu1 %649  ;;  %v673_v29 = vmul.f32 %v2332_v25, %v2717_v12  ;;  %v1616_v12 = vsel %vm590_vm2, %v2827_v38, -inf  ;;  %v2254_v25 = vld [vmem:[%s2639_s29 + $0x18] sm:$0xff] }
 0x1e9   : > { %2333 = vrcp.f32 %v650_v23  ;;  %2195 = vmatmul.msk.bf16.gmra.mxu0 %vm526_vm0, %v1526_v22 }
 0x1ef   : > { %v2334_v28 = vpop.eup %2333 }
 0x1f0   : > { %v674_v31 = vmul.f32 %v2334_v28, %v2722_v18  ;;  %v1595_v18 = vpop.f32.mrf.mxu0 }
 0x1f1   : > { %1020 = vrot.lane.b32.xlu1 %v2240_v26, %s2479_s26  ;;  %v2833_v39 = vsel %vm461_vm1, %v1595_v18, -1e+30  ;;  %v2253_v18 = vld [vmem:[%s2639_s29 + $0x10] sm:$0xff] }
 0x1f2   : > { %v680_v63 = vpack.c.bf16 %v674_v31, %v673_v29  ;;  %v1625_v40 = vsel %vm590_vm2, %v2833_v39, -inf }
 0x1f4   : > { %2045 = vmatmul.msk.bf16.gmra.mxu1 %vm590_vm2, %v680_v63  ;;  %v2265_v63 = vld [vmem:[%s2639_s29 + $0x10] sm:$0xff] }
 0x1f8   : > { %v656_v34 = vpop.xlane.xlu0 %655 }
 0x1f9   : > { %2335 = vrcp.f32 %v656_v34 }
 0x1ff   : > { %v2336_v50 = vpop.eup %2335 }
 0x200   : > { %v2823_v35 = vpop.xlane.xlu0 %922  ;;  %v2837_v42 = vpop.permute.xlu1 %1170  ;;  %v676_v54 = vmul.f32 %v2336_v50, %v2727_v24 }
 0x211   : > { %v2839_v44 = vpop.xlane.xlu2 %907 }
 0x213   : > { %v1025_v36 = vpop.permute.xlu0 %1024 }
 0x214   : > { %1046 = vmatpush.bf16.msra.mxu3 %v1025_v36 }
 0x219   : > { %v2841_v47 = vpop.xlane.xlu2 %916 }
 0x21b   : > { %1617 = vmax.xlane.f32.xlu1 %v1616_v12  ;;  %v1019_v20 = vpop.permute.xlu0 %1018  ;;  %v2266_v12 = vld [vmem:[%s2639_s29 + $0x18] sm:$0xff] }
 0x221   : > { %v662_v58 = vpop.xlane.xlu2 %661 }
 0x223   : > { %1626 = vmax.xlane.f32.xlu1 %v1625_v40  ;;  %v933_v40 = vsub.f32 %v2752_v37, %v2841_v47  ;;  %v930_v37 = vsub.f32 %v2743_v32, %v2839_v44 }
 0x229   : > { %v2854_v6 = vpop.xlane.xlu2 %925 }
 0x22b   : > { %v653_v45 = vpop.xlane.xlu1 %652 }
 0x22c   : > { %2337 = vrcp.f32 %v653_v45  ;;  %v944_v45 = vmul.f32 1.442695, %v933_v40 }
 0x22d   : > { %2339 = vrcp.f32 %v662_v58 }
 0x231   : > { %v1023_v14 = vpop.permute.xlu2 %1022 }
 0x232   : > { %v2338_v41 = vpop.eup %2337  ;;  %1047 = vmatpush.bf16.msra.mxu3 %v1023_v14 }
 0x233   : > { %v2843_v52 = vpop.xlane.xlu1 %910  ;;  %v675_v53 = vmul.f32 %v2338_v41, %v2767_v51  ;;  %v2340_v62 = vpop.eup %2339 }
 0x234   : > { %v678_v3 = vmul.f32 %v2340_v62, %v2759_v43  ;;  %v931_v41 = vsub.f32 %v2777_v56, %v2843_v52  ;;  %v938_v56 = vmul.f32 1.442695, %v930_v37 }
 0x235   : > { %v681_v57 = vpack.c.bf16 %v676_v54, %v675_v53 }
 0x237   : > { %2046 = vmatmul.msk.bf16.gmra.mxu1 %vm590_vm2, %v681_v57 }
 0x23b   : > { %v659_v48 = vpop.xlane.xlu1 %658 }
 0x23c   : > { %2341 = vrcp.f32 %v659_v48 }
 0x23d   : > { %2343 = vpow2.f32 %v944_v45 }
 0x242   : > { %v2342_v60 = vpop.eup %2341 }
 0x243   : > { %v677_v1 = vmul.f32 %v2342_v60, %v2781_v59  ;;  %v2851_v51 = vpop.xlane.xlu1 %919  ;;  %v2916_v53 = vpop.eup %2343 }
 0x244   : > { %v963_v57 = vsel %vm590_vm2, %v2916_v53, 0.0 }
 0x245   : > { %v682_v4 = vpack.c.bf16 %v678_v3, %v677_v1 }
 0x246   : > { %v1621_v52 = vpop.xlane.xlu0 %1620 }
 0x247   : > { %2047 = vmatmul.msk.bf16.gmra.mxu1 %vm590_vm2, %v682_v4  ;;  %v1641_v60 = vsub.f32 %v2793_v0, %v1621_v52  ;;  %v932_v0 = vsub.f32 %v2707_v2, %v2819_v7  ;;  %v934_v2 = vsub.f32 %v2787_v61, %v2851_v51 }
 0x249   : > { %v1650_v44 = vmul.f32 1.442695, %v1641_v60 }
 0x24b   : > { %v929_v43 = vpop.xlane.xlu1 %928 }
 0x24c   : > { %v937_v54 = vsub.f32 %v2799_v5, %v929_v43  ;;  %v942_v43 = vmul.f32 1.442695, %v932_v0 }
 0x256   : > { %v1598_v24 = vpop.f32.mrf.mxu0 }
 0x257   : > { %v2858_v9 = vsel %vm461_vm1, %v1598_v24, -1e+30  ;;  %2136 = vmatmul.msk.bf16.vlgmr.msrb.gmra.mxu1 %vm526_vm0, %v2682_v46 }
 0x258   : > { %v1628_v59 = vsel %vm590_vm2, %v2858_v9, -inf }
 0x259   : > { %1629 = vmax.xlane.f32.xlu0 %v1628_v59 }
 0x25e   : > { %v1600_v10 = vpop.f32.mrf.mxu0 }
 0x25f   : > { %v2867_v11 = vsel %vm461_vm1, %v1600_v10, -1e+30 }
 0x260   : > { %v1631_v15 = vsel %vm590_vm2, %v2867_v11, -inf }
 0x261   : > { %v728_v46 = vpop.f32.mrf.mxu1  ;;  %1632 = vmax.xlane.f32.xlu1 %v1631_v15 }
 0x262   : > { %v748_v16 = vpack.c.bf16 %v728_v46, %v728_v46  ;;  %v946_v46 = vmul.f32 1.442695, %v934_v2 }
 0x263   : > { %v1021_v17 = vpop.permute.xlu1 %1020 }
 0x264   : > { %757 = vst.msk [vmem:[%s2874_s6] sm:$0xf] %vm756_vm3, %v748_v16  ;;  %1048 = vmatpush.bf16.msra.mxu3 %v1021_v17 }
 0x266   : > { %v1603_v19 = vpop.f32.mrf.mxu0 }
 0x267   : > { %v2880_v21 = vsel %vm461_vm1, %v1603_v19, -1e+30  ;;  %2137 = vmatmul.msk.bf16.gmra.mxu1 %vm526_vm0, %v2739_v30 }
 0x268   : > { %v1634_v22 = vsel %vm590_vm2, %v2880_v21, -inf  ;;  %1049 = vmatpush.bf16.msra.mxu3 %v1019_v20  ;;  %v936_v20 = vsub.f32 %v2765_v49, %v2854_v6 }
 0x269   : > { %v730_v23 = vpop.f32.mrf.mxu1  ;;  %1635 = vmax.xlane.f32.xlu1 %v1634_v22 }
 0x26a   : > { %v749_v26 = vpack.c.bf16 %v730_v23, %v730_v23  ;;  %v950_v51 = vmul.f32 1.442695, %v936_v20 }
 0x26c   : > { %758 = vst.msk [vmem:[%s2874_s6 + $0x4] sm:$0xf] %vm756_vm3, %v749_v26 }
 0x26d   : > { %1379 = vrot.lane.b32.xlu0 %v2254_v25, %s2480_s27 }
 0x26e   : > { %v1605_v28 = vpop.f32.mrf.mxu0 }
 0x26f   : > { %v2892_v30 = vsel %vm461_vm1, %v1605_v28, -1e+30 }
 0x270   : > { %v1637_v29 = vsel %vm590_vm2, %v2892_v30, -inf }
 0x271   : > { %v733_v31 = vpop.f32.mrf.mxu1  ;;  %1638 = vmax.xlane.f32.xlu2 %v1637_v29  ;;  %v2971_v29 = vpop.xlane.xlu0 %1623 }
 0x272   : > { %v750_v33 = vpack.c.bf16 %v733_v31, %v733_v31 }
 0x274   : > { %759 = vst.msk [vmem:[%s2874_s6 + $0x8] sm:$0xf] %vm756_vm3, %v750_v33 }
 0x275   : > { %1732 = vrot.lane.b32.xlu0 %v2265_v63, %s2481_s28 }
 0x277   : > { %2138 = vmatmul.msk.bf16.gmra.mxu1 %vm526_vm0, %v2699_v55  ;;  %v935_v55 = vsub.f32 %v2733_v27, %v2823_v35  ;;  %v952_v27 = vmul.f32 1.442695, %v937_v54 }
 0x279   : > { %v735_v34 = vpop.f32.mrf.mxu1  ;;  %v948_v50 = vmul.f32 1.442695, %v935_v55 }
 0x27a   : > { %v751_v36 = vpack.c.bf16 %v735_v34, %v735_v34 }
 0x27b   : > { %2345 = vpow2.f32 %v948_v50 }
 0x27c   : > { %760 = vst.msk [vmem:[%s2874_s6 + $0xc] sm:$0xf] %vm756_vm3, %v751_v36 }
 0x281   : > { %v2924_v47 = vpop.eup %2345 }
 0x282   : > { %1734 = vrot.lane.b32.xlu1 %v2266_v12, %s2481_s28  ;;  %v969_v5 = vsel %vm590_vm2, %v2924_v47, 0.0 }
 0x287   : > { %2139 = vmatmul.msk.bf16.gmra.mxu1 %vm526_vm0, %v2837_v42  ;;  %v940_v42 = vmul.f32 1.442695, %v931_v41 }
 0x289   : > { %1377 = vrot.lane.b32.xlu2 %v2253_v18, %s2480_s27  ;;  %2347 = vpow2.f32 %v940_v42 }
 0x28a   : > { %2349 = vpow2.f32 %v952_v27 }
 0x28b   : > { %2351 = vpow2.f32 %v938_v56 }
 0x28e   : > { %v1618_v58 = vpop.xlane.xlu1 %1617 }
 0x28f   : > { %v1640_v35 = vsub.f32 %v2827_v38, %v1618_v58  ;;  %v2928_v62 = vpop.eup %2347 }
 0x290   : > { %v2931_v32 = vpop.eup %2349  ;;  %v957_v38 = vsel %vm590_vm2, %v2928_v62, 0.0 }
 0x291   : > { %v1648_v48 = vmul.f32 1.442695, %v1640_v35  ;;  %v2935_v1 = vpop.eup %2351  ;;  %v975_v3 = vsel %vm590_vm2, %v2931_v32, 0.0 }
 0x292   : > { %v954_v24 = vsel %vm590_vm2, %v2935_v1, 0.0 }
 0x293   : > { %2353 = vpow2.f32 %v1648_v48 }
 0x294   : > { %2355 = vpow2.f32 %v1650_v44 }
 0x295   : > { %2357 = vpow2.f32 %v942_v43 }
 0x296   : > { %2359 = vpow2.f32 %v946_v46  ;;  %v2985_v12 = vpop.xlane.xlu1 %1626 }
 0x297   : > { %2361 = vpow2.f32 %v950_v51 }
 0x299   : > { %v2939_v4 = vpop.eup %2353 }
 0x29a   : > { %v1664_v59 = vsel %vm590_vm2, %v2939_v4, 0.0  ;;  %v2947_v15 = vpop.eup %2355 }
 0x29b   : > { %v1667_v7 = vsel %vm590_vm2, %v2947_v15, 0.0  ;;  %v2955_v19 = vpop.eup %2357 }
 0x29c   : > { %v960_v61 = vsel %vm590_vm2, %v2955_v19, 0.0  ;;  %v2963_v25 = vpop.eup %2359 }
 0x29d   : > { %v966_v26 = vsel %vm590_vm2, %v2963_v25, 0.0  ;;  %v2969_v6 = vpop.eup %2361 }
 0x29e   : > { %v972_v31 = vsel %vm590_vm2, %v2969_v6, 0.0 }
 0x29f   : > { %964 = vadd.xlane.f32.xlu0 %v963_v57 }
 0x2a7   : > { %970 = vadd.xlane.f32.xlu0 %v969_v5 }
 0x2ac   : > { %958 = vadd.xlane.f32.xlu1 %v957_v38 }
 0x2af   : > { %976 = vadd.xlane.f32.xlu0 %v975_v3 }
 0x2b2   : > { %955 = vadd.xlane.f32.xlu2 %v954_v24 }
 0x2b4   : > { %1665 = vadd.xlane.f32.xlu1 %v1664_v59  ;;  %v738_v10 = vpop.f32.mrf.mxu1 }
 0x2b5   : > { %v752_v14 = vpack.c.bf16 %v738_v10, %v738_v10 }
 0x2b7   : > { %761 = vst.msk [vmem:[%s2874_s6 + $0x10] sm:$0xf] %vm756_vm3, %v752_v14 }
 0x2ba   : > { %1668 = vadd.xlane.f32.xlu2 %v1667_v7  ;;  %v2264_v7 = vld [vmem:[%s2639_s29 + $0x8] sm:$0xff] }
 0x2bc   : > { %v740_v16 = vpop.f32.mrf.mxu1 }
 0x2bd   : > { %v753_v17 = vpack.c.bf16 %v740_v16, %v740_v16  ;;  %v2252_v16 = vld [vmem:[%s2639_s29 + $0x8] sm:$0xff] }
 0x2bf   : > { %762 = vst.msk [vmem:[%s2874_s6 + $0x14] sm:$0xf] %vm756_vm3, %v753_v17 }
 0x2c2   : > { %961 = vadd.xlane.f32.xlu2 %v960_v61 }
 0x2c4   : > { %v743_v22 = vpop.f32.mrf.mxu1 }
 0x2c5   : > { %v754_v23 = vpack.c.bf16 %v743_v22, %v743_v22 }
 0x2c7   : > { %763 = vst.msk [vmem:[%s2874_s6 + $0x18] sm:$0xf] %vm756_vm3, %v754_v23 }
 0x2ca   : > { %967 = vadd.xlane.f32.xlu2 %v966_v26 }
 0x2cc   : > { %v745_v28 = vpop.f32.mrf.mxu1  ;;  %v2983_v36 = vpop.xlane.xlu0 %1629 }
 0x2cd   : > { %v755_v49 = vpack.c.bf16 %v745_v28, %v745_v28 }
 0x2cf   : > { %764 = vst.msk [vmem:[%s2874_s6 + $0x1c] sm:$0xf] %vm756_vm3, %v755_v49 }
 0x2d2   : > { %973 = vadd.xlane.f32.xlu2 %v972_v31 }
 0x2d4   : > { %v1233_v63 = vpop.f32.mrf.mxu1  ;;  %v2993_v50 = vpop.xlane.xlu1 %1632 }
 0x2d5   : > { %v2979_v33 = vsel %vm461_vm1, %v1233_v63, -1e+30 }
 0x2d6   : > { %v1261_v34 = vsel %vm590_vm2, %v2979_v33, -inf }
 0x2d7   : > { %1262 = vmax.xlane.f32.xlu0 %v1261_v34 }
 0x2dc   : > { %v1235_v18 = vpop.f32.mrf.mxu1  ;;  %v3003_v58 = vpop.xlane.xlu1 %1635 }
 0x2dd   : > { %v2989_v40 = vsel %vm461_vm1, %v1235_v18, -1e+30 }
 0x2de   : > { %v1264_v45 = vsel %vm590_vm2, %v2989_v40, -inf }
 0x2df   : > { %1265 = vmax.xlane.f32.xlu2 %v1264_v45  ;;  %v1380_v55 = vpop.permute.xlu0 %1379 }
 0x2e0   : > { %1401 = vmatpush.bf16.msrb.mxu3 %v1380_v55 }
 0x2e4   : > { %v2995_v41 = vpop.xlane.xlu2 %1638  ;;  %v1238_v54 = vpop.f32.mrf.mxu1 }
 0x2e5   : > { %v2999_v42 = vsel %vm461_vm1, %v1238_v54, -1e+30 }
 0x2e6   : > { %v1267_v57 = vsel %vm590_vm2, %v2999_v42, -inf }
 0x2e7   : > { %1268 = vmax.xlane.f32.xlu1 %v1267_v57  ;;  %v1733_v38 = vpop.permute.xlu0 %1732 }
 0x2eb   : > { %1730 = vrot.lane.b32.xlu0 %v2264_v7, %s2481_s28 }
 0x2ec   : > { %v1378_v37 = vpop.permute.xlu2 %1377  ;;  %v1240_v27 = vpop.f32.mrf.mxu1 }
 0x2ed   : > { %v3007_v35 = vsel %vm461_vm1, %v1240_v27, -1e+30  ;;  %1402 = vmatpush.bf16.msrb.mxu3 %v1378_v37 }
 0x2ee   : > { %v1270_v56 = vsel %vm590_vm2, %v3007_v35, -inf }
 0x2ef   : > { %1271 = vmax.xlane.f32.xlu2 %v1270_v56 }
 0x2f4   : > { %v1243_v52 = vpop.f32.mrf.mxu1  ;;  %v1735_v48 = vpop.permute.xlu1 %1734 }
 0x2f5   : > { %v3013_v5 = vsel %vm461_vm1, %v1243_v52, -1e+30  ;;  %1756 = vmatpush.bf16.msrb.mxu2 %v1735_v48 }
 0x2f6   : > { %v1273_v60 = vsel %vm590_vm2, %v3013_v5, -inf }
 0x2f7   : > { %1274 = vmax.xlane.f32.xlu1 %v1273_v60 }
 0x2f9   : > { %1757 = vmatpush.bf16.msrb.mxu2 %v1733_v38 }
 0x2fc   : > { %v1245_v44 = vpop.f32.mrf.mxu1 }
 0x2fd   : > { %v3019_v3 = vsel %vm461_vm1, %v1245_v44, -1e+30 }
 0x2fe   : > { %v1276_v0 = vsel %vm590_vm2, %v3019_v3, -inf }
 0x2ff   : > { %1277 = vmax.xlane.f32.xlu2 %v1276_v0 }
 0x304   : > { %v1248_v24 = vpop.f32.mrf.mxu1 }
 0x305   : > { %v3025_v59 = vsel %vm461_vm1, %v1248_v24, -1e+30 }
 0x306   : > { %v1279_v43 = vsel %vm590_vm2, %v3025_v59, -inf }
 0x307   : > { %1280 = vmax.xlane.f32.xlu1 %v1279_v43 }
 0x30c   : > { %v1250_v10 = vpop.f32.mrf.mxu1 }
 0x30d   : > { %v3031_v14 = vsel %vm461_vm1, %v1250_v10, -1e+30 }
 0x30e   : > { %v1282_v2 = vsel %vm590_vm2, %v3031_v14, -inf }
 0x30f   : > { %1283 = vmax.xlane.f32.xlu2 %v1282_v2 }
 0x312   : > { %v965_v26 = vpop.xlane.xlu0 %964 }
 0x31f   : > { %v959_v46 = vpop.xlane.xlu1 %958 }
 0x320   : > { %1375 = vrot.lane.b32.xlu1 %v2252_v16, %s2480_s27  ;;  %2363 = vrcp.f32 %v959_v46 }
 0x325   : > { %v956_v17 = vpop.xlane.xlu2 %955 }
 0x326   : > { %2365 = vrcp.f32 %v956_v17  ;;  %v2364_v61 = vpop.eup %2363 }
 0x327   : > { %v1666_v20 = vpop.xlane.xlu1 %1665  ;;  %v987_v23 = vmul.f32 %v2364_v61, %v2928_v62  ;;  %v971_v62 = vpop.xlane.xlu0 %970 }
 0x328   : > { %2367 = vrcp.f32 %v1666_v20 }
 0x32c   : > { %v2366_v51 = vpop.eup %2365 }
 0x32d   : > { %v1669_v13 = vpop.xlane.xlu2 %1668  ;;  %v986_v22 = vmul.f32 %v2366_v51, %v2935_v1 }
 0x32e   : > { %2369 = vrcp.f32 %v1669_v13  ;;  %v2368_v49 = vpop.eup %2367 }
 0x32f   : > { %v994_v28 = vpack.c.bf16 %v987_v23, %v986_v22  ;;  %2371 = vrcp.f32 %v965_v26  ;;  %v3043_v63 = vmul.f32 %v2368_v49, %v2939_v4  ;;  %v977_v4 = vpop.xlane.xlu0 %976  ;;  %v2251_v22 = vld [vmem:[%s2639_s29] sm:$0xff] }
 0x331   : > { %2100 = vmatmul.msk.bf16.vlgmr.msra.gmra.mxu3 %vm590_vm2, %v994_v28 }
 0x334   : > { %v2370_v31 = vpop.eup %2369 }
 0x335   : > { %v3046_v34 = vmul.f32 %v2370_v31, %v2947_v15  ;;  %v962_v18 = vpop.xlane.xlu2 %961  ;;  %v2372_v45 = vpop.eup %2371 }
 0x336   : > { %2373 = vrcp.f32 %v962_v18  ;;  %v989_v57 = vmul.f32 %v2372_v45, %v2916_v53 }
 0x337   : > { %v1704_v1 = vpack.c.bf16 %v3046_v34, %v3043_v63 }
 0x33c   : > { %v2374_v55 = vpop.eup %2373 }
 0x33d   : > { %v988_v54 = vmul.f32 %v2374_v55, %v2955_v19  ;;  %v968_v37 = vpop.xlane.xlu2 %967  ;;  %v1642_v55 = vsub.f32 %v2803_v8, %v2971_v29 }
 0x33e   : > { %2375 = vrcp.f32 %v968_v37 }
 0x33f   : > { %v995_v27 = vpack.c.bf16 %v989_v57, %v988_v54  ;;  %2377 = vrcp.f32 %v971_v62  ;;  %v1652_v54 = vmul.f32 1.442695, %v1642_v55 }
 0x341   : > { %2101 = vmatmul.msk.bf16.gmra.mxu3 %vm590_vm2, %v995_v27  ;;  %v1644_v27 = vsub.f32 %v2858_v9, %v2983_v36 }
 0x344   : > { %v2376_v15 = vpop.eup %2375 }
 0x345   : > { %v2378_v56 = vpop.eup %2377  ;;  %v974_v52 = vpop.xlane.xlu2 %973  ;;  %v990_v38 = vmul.f32 %v2376_v15, %v2963_v25  ;;  %v1656_v15 = vmul.f32 1.442695, %v1644_v27 }
 0x346   : > { %v991_v19 = vmul.f32 %v2378_v56, %v2924_v47  ;;  %v1643_v56 = vsub.f32 %v2833_v39, %v2985_v12 }
 0x348   : > { %v996_v53 = vpack.c.bf16 %v991_v19, %v990_v38 }
 0x34a   : > { %v1263_v48 = vpop.xlane.xlu0 %1262 }
 0x34b   : > { %v1285_v60 = vsub.f32 %v2979_v33, %v1263_v48  ;;  %v1654_v48 = vmul.f32 1.442695, %v1643_v56 }
 0x34d   : > { %v1293_v44 = vmul.f32 1.442695, %v1285_v60 }
 0x34f   : > { %2379 = vpow2.f32 %v1293_v44 }
 0x350   : > { %2381 = vrcp.f32 %v974_v52 }
 0x351   : > { %2102 = vmatmul.msk.bf16.gmra.mxu3 %vm590_vm2, %v996_v53  ;;  %2383 = vrcp.f32 %v977_v4 }
 0x352   : > { %v1266_v0 = vpop.xlane.xlu2 %1265 }
 0x353   : > { %v1286_v24 = vsub.f32 %v2989_v40, %v1266_v0 }
 0x355   : > { %v3058_v43 = vpop.eup %2379  ;;  %v1295_v10 = vmul.f32 1.442695, %v1286_v24 }
 0x356   : > { %v1309_v33 = vsel %vm590_vm2, %v3058_v43, 0.0  ;;  %v2382_v25 = vpop.eup %2381 }
 0x357   : > { %2385 = vpow2.f32 %v1295_v10  ;;  %1310 = vadd.xlane.f32.xlu2 %v1309_v33  ;;  %v2384_v47 = vpop.eup %2383  ;;  %v992_v2 = vmul.f32 %v2382_v25, %v2969_v6  ;;  %v1647_v25 = vsub.f32 %v2892_v30, %v2995_v41 }
 0x358   : > { %v993_v46 = vmul.f32 %v2384_v47, %v2931_v32  ;;  %v1645_v32 = vsub.f32 %v2867_v11, %v2993_v50 }
 0x359   : > { %v1662_v47 = vmul.f32 1.442695, %v1647_v25 }
 0x35a   : > { %v997_v16 = vpack.c.bf16 %v993_v46, %v992_v2  ;;  %v1269_v17 = vpop.xlane.xlu1 %1268  ;;  %v1658_v49 = vmul.f32 1.442695, %v1645_v32 }
 0x35b   : > { %v1287_v57 = vsub.f32 %v2999_v42, %v1269_v17 }
 0x35d   : > { %v3063_v7 = vpop.eup %2385  ;;  %v1297_v4 = vmul.f32 1.442695, %v1287_v57 }
 0x35e   : > { %v1312_v40 = vsel %vm590_vm2, %v3063_v7, 0.0 }
 0x35f   : > { %1313 = vadd.xlane.f32.xlu0 %v1312_v40 }
 0x361   : > { %2103 = vmatmul.msk.bf16.gmra.mxu3 %vm590_vm2, %v997_v16 }
 0x362   : > { %v1272_v20 = vpop.xlane.xlu2 %1271 }
 0x363   : > { %v1288_v61 = vsub.f32 %v3007_v35, %v1272_v20  ;;  %v2263_v35 = vld [vmem:[%s2639_s29] sm:$0xff] }
 0x365   : > { %v1299_v51 = vmul.f32 1.442695, %v1288_v61 }
 0x367   : > { %2387 = vpow2.f32 %v1299_v51 }
 0x36a   : > { %v1275_v13 = vpop.xlane.xlu1 %1274 }
 0x36b   : > { %v1289_v6 = vsub.f32 %v3013_v5, %v1275_v13  ;;  %v1646_v5 = vsub.f32 %v2880_v21, %v3003_v58  ;;  %v1731_v58 = vpop.permute.xlu0 %1730 }
 0x36c   : > { %1758 = vmatpush.bf16.msrb.mxu2 %v1731_v58 }
 0x36d   : > { %v3072_v23 = vpop.eup %2387  ;;  %v1301_v26 = vmul.f32 1.442695, %v1289_v6  ;;  %v1660_v50 = vmul.f32 1.442695, %v1646_v5 }
 0x36e   : > { %v1318_v28 = vsel %vm590_vm2, %v3072_v23, 0.0 }
 0x36f   : > { %2389 = vpow2.f32 %v1301_v26  ;;  %1319 = vadd.xlane.f32.xlu1 %v1318_v28  ;;  %1373 = vrot.lane.b32.xlu2 %v2251_v22, %s2480_s27 }
 0x370   : > { %2391 = vpow2.f32 %v1658_v49 }
 0x371   : > { %2393 = vpow2.f32 %v1660_v50 }
 0x372   : > { %v1278_v37 = vpop.xlane.xlu2 %1277  ;;  %2395 = vpow2.f32 %v1652_v54 }
 0x373   : > { %1728 = vrot.lane.b32.xlu0 %v2263_v35, %s2481_s28  ;;  %2397 = vpow2.f32 %v1297_v4  ;;  %v1290_v36 = vsub.f32 %v3019_v3, %v1278_v37 }
 0x374   : > { %2399 = vpow2.f32 %v1656_v15 }
 0x375   : > { %v3081_v31 = vpop.eup %2389  ;;  %2401 = vpow2.f32 %v1654_v48  ;;  %v1303_v12 = vmul.f32 1.442695, %v1290_v36 }
 0x376   : > { %v1321_v11 = vsel %vm590_vm2, %v3081_v31, 0.0  ;;  %v3087_v18 = vpop.eup %2391 }
 0x377   : > { %1322 = vadd.xlane.f32.xlu1 %v1321_v11  ;;  %v1679_v62 = vsel %vm590_vm2, %v3087_v18, 0.0  ;;  %v3091_v45 = vpop.eup %2393 }
 0x378   : > { %v1682_v21 = vsel %vm590_vm2, %v3091_v45, 0.0  ;;  %v3102_v29 = vpop.eup %2395 }
 0x379   : > { %v1670_v42 = vsel %vm590_vm2, %v3102_v29, 0.0  ;;  %v3107_v60 = vpop.eup %2397 }
 0x37a   : > { %v3110_v38 = vpop.eup %2399  ;;  %v1315_v39 = vsel %vm590_vm2, %v3107_v60, 0.0  ;;  %v1281_v44 = vpop.xlane.xlu1 %1280 }
 0x37b   : > { %v3116_v19 = vpop.eup %2401  ;;  %v1291_v53 = vsub.f32 %v3025_v59, %v1281_v44 }
 0x37c   : > { %v1673_v3 = vsel %vm590_vm2, %v3116_v19, 0.0 }
 0x37d   : > { %v1305_v24 = vmul.f32 1.442695, %v1291_v53 }
 0x37f   : > { %1680 = vadd.xlane.f32.xlu1 %v1679_v62 }
 0x382   : > { %v1284_v8 = vpop.xlane.xlu2 %1283 }
 0x383   : > { %v1292_v52 = vsub.f32 %v3031_v14, %v1284_v8  ;;  %v1676_v14 = vsel %vm590_vm2, %v3110_v38, 0.0 }
 0x385   : > { %v1307_v9 = vmul.f32 1.442695, %v1292_v52 }
 0x387   : > { %1683 = vadd.xlane.f32.xlu1 %v1682_v21  ;;  %2403 = vpow2.f32 %v1307_v9 }
 0x388   : > { %2405 = vpow2.f32 %v1303_v12 }
 0x389   : > { %2407 = vpow2.f32 %v1305_v24 }
 0x38a   : > { %2409 = vpow2.f32 %v1662_v47 }
 0x38d   : > { %v3119_v0 = vpop.eup %2403 }
 0x38e   : > { %v1330_v10 = vsel %vm590_vm2, %v3119_v0, 0.0  ;;  %v3125_v33 = vpop.eup %2405 }
 0x38f   : > { %v1324_v59 = vsel %vm590_vm2, %v3125_v33, 0.0  ;;  %v3131_v2 = vpop.eup %2407 }
 0x390   : > { %v1327_v16 = vsel %vm590_vm2, %v3131_v2, 0.0  ;;  %v3135_v17 = vpop.eup %2409 }
 0x391   : > { %v1685_v30 = vsel %vm590_vm2, %v3135_v17, 0.0 }
 0x392   : > { %v1376_v46 = vpop.permute.xlu1 %1375 }
 0x393   : > { %1403 = vmatpush.bf16.msrb.mxu3 %v1376_v46 }
 0x398   : > { %1671 = vadd.xlane.f32.xlu2 %v1670_v42 }
 0x39d   : > { %1316 = vadd.xlane.f32.xlu0 %v1315_v39 }
 0x3a0   : > { %1677 = vadd.xlane.f32.xlu2 %v1676_v14 }
 0x3a5   : > { %1674 = vadd.xlane.f32.xlu0 %v1673_v3 }
 0x3a8   : > { %1331 = vadd.xlane.f32.xlu2 %v1330_v10 }
 0x3ad   : > { %1325 = vadd.xlane.f32.xlu0 %v1324_v59 }
 0x3b4   : > { %v1051_v40 = vpop.f32.mrf.mxu3 }
 0x3b5   : > { %1328 = vadd.xlane.f32.xlu0 %v1327_v16  ;;  %v1071_v61 = vpack.c.bf16 %v1051_v40, %v1051_v40 }
 0x3bc   : > { %v1053_v20 = vpop.f32.mrf.mxu3 }
 0x3bd   : > { %v1072_v41 = vpack.c.bf16 %v1053_v20, %v1053_v20  ;;  %1686 = vadd.xlane.f32.xlu0 %v1685_v30 }
 0x3bf   : > { %1089 = vrot.lane.b32.xlu1 %v1072_v41, %s2481_s28 }
 0x3c0   : > { %1087 = vrot.lane.b32.xlu2 %v1071_v61, %s2481_s28 }
 0x3c4   : > { %v1056_v51 = vpop.f32.mrf.mxu3 }
 0x3c5   : > { %v1073_v32 = vpack.c.bf16 %v1056_v51, %v1056_v51 }
 0x3ca   : > { %v1311_v13 = vpop.xlane.xlu2 %1310 }
 0x3cb   : > { %2411 = vrcp.f32 %v1311_v13 }
 0x3cc   : > { %v1058_v6 = vpop.f32.mrf.mxu3 }
 0x3cd   : > { %v1074_v22 = vpack.c.bf16 %v1058_v6, %v1058_v6 }
 0x3cf   : > { %1093 = vrot.lane.b32.xlu2 %v1074_v22, %s2481_s28 }
 0x3d1   : > { %1091 = vrot.lane.b32.xlu0 %v1073_v32, %s2481_s28  ;;  %v2412_v49 = vpop.eup %2411 }
 0x3d2   : > { %v1314_v26 = vpop.xlane.xlu0 %1313  ;;  %v1374_v28 = vpop.permute.xlu2 %1373  ;;  %v1341_v50 = vmul.f32 %v2412_v49, %v3058_v43 }
 0x3d3   : > { %2413 = vrcp.f32 %v1314_v26  ;;  %1404 = vmatpush.bf16.msrb.mxu3 %v1374_v28 }
 0x3d4   : > { %v1061_v35 = vpop.f32.mrf.mxu3 }
 0x3d5   : > { %v1075_v5 = vpack.c.bf16 %v1061_v35, %v1061_v35 }
 0x3d9   : > { %v2414_v11 = vpop.eup %2413  ;;  %1095 = vrot.lane.b32.xlu0 %v1075_v5, %s2481_s28 }
 0x3da   : > { %v1342_v62 = vmul.f32 %v2414_v11, %v3063_v7 }
 0x3dc   : > { %v1063_v55 = vpop.f32.mrf.mxu3  ;;  %v1349_v21 = vpack.c.bf16 %v1342_v62, %v1341_v50 }
 0x3dd   : > { %v1076_v58 = vpack.c.bf16 %v1063_v55, %v1063_v55 }
 0x3de   : > { %2156 = vmatmul.msk.bf16.vlgmr.msrb.gmra.mxu3 %vm590_vm2, %v1349_v21 }
 0x3df   : > { %1097 = vrot.lane.b32.xlu1 %v1076_v58, %s2481_s28 }
 0x3e2   : > { %v1320_v27 = vpop.xlane.xlu1 %1319 }
 0x3e3   : > { %2415 = vrcp.f32 %v1320_v27 }
 0x3e4   : > { %v1066_v54 = vpop.f32.mrf.mxu3 }
 0x3e5   : > { %v1077_v57 = vpack.c.bf16 %v1066_v54, %v1066_v54  ;;  %v1729_v37 = vpop.permute.xlu0 %1728 }
 0x3e6   : > { %1759 = vmatpush.bf16.msrb.mxu2 %v1729_v37 }
 0x3e7   : > { %1099 = vrot.lane.b32.xlu2 %v1077_v57, %s2481_s28 }
 0x3e9   : > { %2212 = vmatmul.msk.bf16.vlgmr.msrb.gmra.mxu2 %vm590_vm2, %v1704_v1  ;;  %v2416_v8 = vpop.eup %2415 }
 0x3ea   : > { %v1323_v52 = vpop.xlane.xlu1 %1322  ;;  %v1344_v63 = vmul.f32 %v2416_v8, %v3072_v23 }
 0x3ec   : > { %v1068_v43 = vpop.f32.mrf.mxu3 }
 0x3ed   : > { %v1078_v7 = vpack.c.bf16 %v1068_v43, %v1068_v43 }
 0x3ef   : > { %1101 = vrot.lane.b32.xlu0 %v1078_v7, %s2481_s28 }
 0x3f2   : > { %v1681_v12 = vpop.xlane.xlu1 %1680 }
 0x40b   : > { %v1672_v4 = vpop.xlane.xlu2 %1671 }
 0x410   : > { %v1317_v15 = vpop.xlane.xlu0 %1316 }
 0x411   : > { %2417 = vrcp.f32 %v1317_v15 }
 0x412   : > { %2419 = vrcp.f32 %v1672_v4 }
 0x413   : > { %v1678_v56 = vpop.xlane.xlu2 %1677 }
 0x417   : > { %v2418_v48 = vpop.eup %2417 }
 0x418   : > { %v1675_v42 = vpop.xlane.xlu0 %1674  ;;  %v1343_v9 = vmul.f32 %v2418_v48, %v3107_v60  ;;  %v2420_v36 = vpop.eup %2419 }
 0x419   : > { %2421 = vrcp.f32 %v1675_v42  ;;  %v1698_v44 = vmul.f32 %v2420_v36, %v3102_v29 }
 0x41a   : > { %v1350_v34 = vpack.c.bf16 %v1344_v63, %v1343_v9  ;;  %2423 = vrcp.f32 %v1323_v52 }
 0x41b   : > { %v1332_v1 = vpop.xlane.xlu2 %1331 }
 0x41c   : > { %2157 = vmatmul.msk.bf16.gmra.mxu3 %vm590_vm2, %v1350_v34 }
 0x41f   : > { %v2422_v39 = vpop.eup %2421 }
 0x420   : > { %v1326_v14 = vpop.xlane.xlu0 %1325  ;;  %v1699_v53 = vmul.f32 %v2422_v39, %v3116_v19  ;;  %v2424_v3 = vpop.eup %2423 }
 0x421   : > { %2425 = vrcp.f32 %v1326_v14  ;;  %v1345_v25 = vmul.f32 %v2424_v3, %v3081_v31  ;;  %v1684_v19 = vpop.xlane.xlu1 %1683 }
 0x422   : > { %v1705_v60 = vpack.c.bf16 %v1699_v53, %v1698_v44  ;;  %2427 = vrcp.f32 %v1678_v56 }
 0x423   : > { %v1088_v23 = vpop.permute.xlu2 %1087  ;;  %2429 = vrcp.f32 %v1681_v12 }
 0x424   : > { %1112 = vst.msk [vmem:[%s2874_s6] sm:$0xf] %vm1111_vm4, %v1088_v23  ;;  %2213 = vmatmul.msk.bf16.gmra.mxu2 %vm590_vm2, %v1705_v60 }
 0x427   : > { %v2426_v24 = vpop.eup %2425 }
 0x428   : > { %v1329_v10 = vpop.xlane.xlu0 %1328  ;;  %v1346_v29 = vmul.f32 %v2426_v24, %v3125_v33  ;;  %v2428_v47 = vpop.eup %2427 }
 0x429   : > { %v2430_v40 = vpop.eup %2429  ;;  %2431 = vrcp.f32 %v1329_v10  ;;  %v1700_v16 = vmul.f32 %v2428_v47, %v3110_v38 }
 0x42a   : > { %v1351_v59 = vpack.c.bf16 %v1346_v29, %v1345_v25  ;;  %2433 = vrcp.f32 %v1332_v1  ;;  %v1701_v20 = vmul.f32 %v2430_v40, %v3087_v18 }
 0x42b   : > { %v1094_v46 = vpop.permute.xlu2 %1093 }
 0x42c   : > { %1115 = vst.msk [vmem:[%s2874_s6 + $0xc] sm:$0xf] %vm1111_vm4, %v1094_v46  ;;  %2158 = vmatmul.msk.bf16.gmra.mxu3 %vm590_vm2, %v1351_v59  ;;  %v1706_v31 = vpack.c.bf16 %v1701_v20, %v1700_v16 }
 0x42f   : > { %v2432_v33 = vpop.eup %2431 }
 0x430   : > { %v1687_v41 = vpop.xlane.xlu0 %1686  ;;  %v2434_v61 = vpop.eup %2433  ;;  %v1347_v51 = vmul.f32 %v2432_v33, %v3131_v2 }
 0x431   : > { %v1090_v30 = vpop.permute.xlu1 %1089  ;;  %2435 = vrcp.f32 %v1687_v41  ;;  %v1348_v38 = vmul.f32 %v2434_v61, %v3119_v0 }
 0x432   : > { %1113 = vst.msk [vmem:[%s2874_s6 + $0x4] sm:$0xf] %vm1111_vm4, %v1090_v30  ;;  %2437 = vrcp.f32 %v1684_v19 }
 0x433   : > { %v1352_v18 = vpack.c.bf16 %v1348_v38, %v1347_v51 }
 0x434   : > { %2214 = vmatmul.msk.bf16.gmra.mxu2 %vm590_vm2, %v1706_v31 }
 0x437   : > { %v2436_v13 = vpop.eup %2435 }
 0x438   : > { %v2438_v6 = vpop.eup %2437  ;;  %v1703_v22 = vmul.f32 %v2436_v13, %v3135_v17 }
 0x439   : > { %v1702_v32 = vmul.f32 %v2438_v6, %v3091_v45 }
 0x43b   : > { %v1707_v28 = vpack.c.bf16 %v1703_v22, %v1702_v32 }
 0x43c   : > { %2159 = vmatmul.msk.bf16.gmra.mxu3 %vm590_vm2, %v1352_v18 }
 0x441   : > { %v1100_v26 = vpop.permute.xlu2 %1099 }
 0x442   : > { %1118 = vst.msk [vmem:[%s2874_s6 + $0x18] sm:$0xf] %vm1111_vm4, %v1100_v26 }
 0x443   : > { %v1092_v2 = vpop.permute.xlu0 %1091 }
 0x444   : > { %1114 = vst.msk [vmem:[%s2874_s6 + $0x8] sm:$0xf] %vm1111_vm4, %v1092_v2  ;;  %2215 = vmatmul.msk.bf16.gmra.mxu2 %vm590_vm2, %v1707_v28 }
 0x44b   : > { %v1096_v0 = vpop.permute.xlu0 %1095 }
 0x44c   : > { %1116 = vst.msk [vmem:[%s2874_s6 + $0x10] sm:$0xf] %vm1111_vm4, %v1096_v0 }
 0x451   : > { %v1098_v35 = vpop.permute.xlu1 %1097 }
 0x452   : > { %1117 = vst.msk [vmem:[%s2874_s6 + $0x14] sm:$0xf] %vm1111_vm4, %v1098_v35 }
 0x461   : > { %v1102_v49 = vpop.permute.xlu0 %1101  ;;  %v1406_v50 = vpop.f32.mrf.mxu3 }
 0x462   : > { %1119 = vst.msk [vmem:[%s2874_s6 + $0x1c] sm:$0xf] %vm1111_vm4, %v1102_v49  ;;  %v1426_v42 = vpack.c.bf16 %v1406_v50, %v1406_v50 }
 0x469   : > { %v1408_v62 = vpop.f32.mrf.mxu3 }
 0x46a   : > { %v1427_v43 = vpack.c.bf16 %v1408_v62, %v1408_v62 }
 0x46c   : > { %v1761_v17 = vpop.f32.mrf.mxu2 }
 0x46d   : > { %v1781_v45 = vpack.c.bf16 %v1761_v17, %v1761_v17 }
 0x46f   : > { %1797 = vrot.lane.b32.xlu0 %v1781_v45, %s2479_s26 }
 0x474   : > { %v1763_v5 = vpop.f32.mrf.mxu2 }
 0x475   : > { %v1782_v11 = vpack.c.bf16 %v1763_v5, %v1763_v5 }
 0x477   : > { %1799 = vrot.lane.b32.xlu1 %v1782_v11, %s2479_s26 }
 0x49f   : > { %v1411_v55 = vpop.f32.mrf.mxu3 }
 0x4a0   : > { %v1428_v15 = vpack.c.bf16 %v1411_v55, %v1411_v55 }
 0x4a7   : > { %v1413_v21 = vpop.f32.mrf.mxu3  ;;  %v1766_v58 = vpop.f32.mrf.mxu2 }
 0x4a8   : > { %v1783_v54 = vpack.c.bf16 %v1766_v58, %v1766_v58  ;;  %v1429_v1 = vpack.c.bf16 %v1413_v21, %v1413_v21 }
 0x4aa   : > { %1801 = vrot.lane.b32.xlu2 %v1783_v54, %s2479_s26 }
 0x4af   : > { %v1416_v57 = vpop.f32.mrf.mxu3  ;;  %v1768_v37 = vpop.f32.mrf.mxu2 }
 0x4b0   : > { %v1784_v7 = vpack.c.bf16 %v1768_v37, %v1768_v37  ;;  %v1430_v8 = vpack.c.bf16 %v1416_v57, %v1416_v57 }
 0x4b2   : > { %1444 = vrot.lane.b32.xlu2 %v1427_v43, %s2480_s27  ;;  %1803 = vrot.lane.b32.xlu0 %v1784_v7, %s2479_s26 }
 0x4b7   : > { %v1418_v27 = vpop.f32.mrf.mxu3  ;;  %v1771_v4 = vpop.f32.mrf.mxu2 }
 0x4b8   : > { %v1785_v56 = vpack.c.bf16 %v1771_v4, %v1771_v4  ;;  %v1431_v9 = vpack.c.bf16 %v1418_v27, %v1418_v27 }
 0x4ba   : > { %1446 = vrot.lane.b32.xlu0 %v1428_v15, %s2480_s27  ;;  %1805 = vrot.lane.b32.xlu1 %v1785_v56, %s2479_s26 }
 0x4bb   : > { %1450 = vrot.lane.b32.xlu2 %v1430_v8, %s2480_s27 }
 0x4bf   : > { %v1421_v52 = vpop.f32.mrf.mxu3  ;;  %v1773_v48 = vpop.f32.mrf.mxu2 }
 0x4c0   : > { %v1432_v12 = vpack.c.bf16 %v1421_v52, %v1421_v52  ;;  %v1786_v14 = vpack.c.bf16 %v1773_v48, %v1773_v48 }
 0x4c2   : > { %1442 = vrot.lane.b32.xlu1 %v1426_v42, %s2480_s27  ;;  %1452 = vrot.lane.b32.xlu0 %v1431_v9, %s2480_s27 }
 0x4c7   : > { %v1423_v63 = vpop.f32.mrf.mxu3  ;;  %v1776_v34 = vpop.f32.mrf.mxu2 }
 0x4c8   : > { %v1433_v36 = vpack.c.bf16 %v1423_v63, %v1423_v63  ;;  %v1787_v39 = vpack.c.bf16 %v1776_v34, %v1776_v34 }
 0x4ca   : > { %1448 = vrot.lane.b32.xlu1 %v1429_v1, %s2480_s27  ;;  %1456 = vrot.lane.b32.xlu2 %v1433_v36, %s2480_s27 }
 0x4cb   : > { %1809 = vrot.lane.b32.xlu0 %v1787_v39, %s2479_s26 }
 0x4cf   : > { %v1778_v44 = vpop.f32.mrf.mxu2 }
 0x4d0   : > { %v1788_v53 = vpack.c.bf16 %v1778_v44, %v1778_v44 }
 0x4d2   : > { %1454 = vrot.lane.b32.xlu1 %v1432_v12, %s2480_s27  ;;  %1807 = vrot.lane.b32.xlu2 %v1786_v14, %s2479_s26 }
 0x4da   : > { %1811 = vrot.lane.b32.xlu1 %v1788_v53, %s2479_s26 }
 0x4e1   : > { %v1798_v10 = vpop.permute.xlu0 %1797 }
 0x4e9   : > { %v1800_v3 = vpop.permute.xlu1 %1799 }
 0x504   : > { %v1802_v60 = vpop.permute.xlu2 %1801 }
 0x50c   : > { %v1445_v23 = vpop.permute.xlu2 %1444 }
 0x50d   : > { %1468 = vst.msk [vmem:[%s2874_s6 + $0x4] sm:$0xf] %vm1466_vm5, %v1445_v23 }
 0x50e   : > { %1823 = vst.msk [vmem:[%s2874_s6 + $0x4] sm:$0xf] %vm1821_vm6, %v1800_v3 }
 0x515   : > { %v1451_v24 = vpop.permute.xlu2 %1450 }
 0x516   : > { %1471 = vst.msk [vmem:[%s2874_s6 + $0x10] sm:$0xf] %vm1466_vm5, %v1451_v24 }
 0x524   : > { %v1457_v25 = vpop.permute.xlu2 %1456  ;;  %v1804_v29 = vpop.permute.xlu0 %1803 }
 0x525   : > { %1474 = vst.msk [vmem:[%s2874_s6 + $0x1c] sm:$0xf] %vm1466_vm5, %v1457_v25 }
 0x52c   : > { %v1806_v19 = vpop.permute.xlu1 %1805  ;;  %v1447_v59 = vpop.permute.xlu0 %1446 }
 0x52d   : > { %1826 = vst.msk [vmem:[%s2874_s6 + $0x10] sm:$0xf] %vm1821_vm6, %v1806_v19  ;;  %v1808_v40 = vpop.permute.xlu2 %1807 }
 0x52e   : > { %1469 = vst.msk [vmem:[%s2874_s6 + $0x8] sm:$0xf] %vm1466_vm5, %v1447_v59 }
 0x52f   : > { %1824 = vst.msk [vmem:[%s2874_s6 + $0x8] sm:$0xf] %vm1821_vm6, %v1802_v60 }
 0x534   : > { %v1443_v47 = vpop.permute.xlu1 %1442  ;;  %v1453_v46 = vpop.permute.xlu0 %1452 }
 0x535   : > { %1467 = vst.msk [vmem:[%s2874_s6] sm:$0xf] %vm1466_vm5, %v1443_v47 }
 0x536   : > { %1822 = vst.msk [vmem:[%s2874_s6] sm:$0xf] %vm1821_vm6, %v1798_v10 }
 0x537   : > { %1472 = vst.msk [vmem:[%s2874_s6 + $0x14] sm:$0xf] %vm1466_vm5, %v1453_v46 }
 0x538   : > { %1827 = vst.msk [vmem:[%s2874_s6 + $0x14] sm:$0xf] %vm1821_vm6, %v1808_v40 }
 0x53c   : > { %v1449_v16 = vpop.permute.xlu1 %1448 }
 0x53d   : > { %1470 = vst.msk [vmem:[%s2874_s6 + $0xc] sm:$0xf] %vm1466_vm5, %v1449_v16  ;;  %v1810_v30 = vpop.permute.xlu0 %1809 }
 0x53e   : > { %1825 = vst.msk [vmem:[%s2874_s6 + $0xc] sm:$0xf] %vm1821_vm6, %v1804_v29 }
 0x544   : > { %v1455_v20 = vpop.permute.xlu1 %1454 }
 0x545   : > { %1473 = vst.msk [vmem:[%s2874_s6 + $0x18] sm:$0xf] %vm1466_vm5, %v1455_v20 }
 0x546   : > { %1828 = vst.msk [vmem:[%s2874_s6 + $0x18] sm:$0xf] %vm1821_vm6, %v1810_v30 }
 0x54c   : > { %v1812_v41 = vpop.permute.xlu1 %1811 }
 0x54d   : > { %1829 = vst.msk [vmem:[%s2874_s6 + $0x1c] sm:$0xf] %vm1821_vm6, %v1812_v41 }
 0x54e PF: > { %s13_s16 = sadd.s32 1, %s2477_s16   ;;  %s3256_s12 = smov %s2465_s13 }
 0x54f   : > { %p10_p10 = scmp.ge.s32.totalorder %s13_s16, 4   ;;  %s3257_s13 = smov %s2541_s21 }
 0x550   : > { %s3258_s14 = smov %s2473_s15  ;;  %s3259_s15 = smov %s3261_s17 }
 0x551   :  { %12 = sbr.rel (!%p10_p10) target bundleno = 3 (0x3), region = 206 }

// kernel: encoder_forward.14
= control target key start
LH: loop header
LB: loop body
LE: loop exit
PB: predicated region body
PF: predicated region fallthrough
CT: control target
= control target key end

     0   :  { %11 = vsyncpa [#allocation4], 0  ;;  %s1249_s24 = smov [#allocation3]   ;;  %s1250_s26 = smov 64   ;;  %s1786_s0 = inlined_call_operand.vmem [shape: bf16[128,256], index: 0, kind: input, shape index: {}]   ;;  %s1787_s1 = inlined_call_operand.hbm [shape: bf16[256,128], index: 1, kind: input, shape index: {}]   ;;  %s1788_s2 = inlined_call_operand.vmem [shape: f32[1,128], index: 2, kind: input, shape index: {}]   ;;  %s1789_s3 = inlined_call_operand.vmem [shape: bf16[128,128], index: 3, kind: input, shape index: {}]   ;;  %s1790_s4 = inlined_call_operand.vmem [shape: f32[1,128], index: 4, kind: input, shape index: {}]   ;;  %s1791_s5 = inlined_call_operand.vmem [shape: f32[1,128], index: 5, kind: input, shape index: {}]   ;;  %s1792_s6 = inlined_call_operand.vmem [shape: bf16[128,128], index: 6, kind: output, shape index: {}]  }
   0x1   :  { %s18_s23 = sshll.u32 %s1787_s1, 4  ;;  %s20_s25 = sshll.u32 %s1249_s24, 4  ;;  %s19_s23 = int_to_ptr.hbm [resolvable:$true] %s18_s23  ;;  %s21_s25 = int_to_ptr.vmem [resolvable:$true] %s20_s25 }
   0x2   :  { %s1251_s27 = smov 4  }
   0x3   :  { %26 = dma.hbm_to_vmem [thread:$0]  %s19_s23, 2048, %s21_s25, [#allocation4], %s1250_s26, %s1250_s26, %s1251_s27  }
   0x4   :  { %1247 = dma.done.wait [#allocation4], 2048  }
   0x5   :  { %1248 = vsyncadd [#allocation4], 4294965248  ;;  %v1071_v0 = vld [vmem:[#allocation3 + $0x38] sm:$0xff]  ;;  %v1070_v2 = vld [vmem:[#allocation3 + $0x30] sm:$0xff] }
   0x6   :  { %v1079_v1 = vld [vmem:[#allocation3 + $0x78] sm:$0xff]  ;;  %299 = vmatpush.bf16.msra.mxu0 %v1071_v0  ;;  %1166 = vmatpush.bf16.msra.mxu2 %v1071_v0  ;;  %v1078_v3 = vld [vmem:[#allocation3 + $0x70] sm:$0xff]  ;;  %v1069_v4 = vld [vmem:[#allocation3 + $0x28] sm:$0xff] }
   0x7   :  { %348 = vmatpush.bf16.msra.mxu1 %v1079_v1  ;;  %1174 = vmatpush.bf16.msra.mxu3 %v1079_v1  ;;  %v1077_v5 = vld [vmem:[#allocation3 + $0x68] sm:$0xff]  ;;  %v1068_v6 = vld [vmem:[#allocation3 + $0x20] sm:$0xff]  ;;  %v1067_v8 = vld [vmem:[#allocation3 + $0x18] sm:$0xff] }
   0x8   :  { %v1076_v7 = vld [vmem:[#allocation3 + $0x60] sm:$0xff]  ;;  %v1075_v9 = vld [vmem:[#allocation3 + $0x58] sm:$0xff]  ;;  %v1066_v10 = vld [vmem:[#allocation3 + $0x10] sm:$0xff] }
   0x9   :  { %v1074_v11 = vld [vmem:[#allocation3 + $0x50] sm:$0xff]  ;;  %v1065_v12 = vld [vmem:[#allocation3 + $0x8] sm:$0xff]  ;;  %v1064_v14 = vld [vmem:[#allocation3] sm:$0xff] }
   0xa   :  { %300 = vmatpush.bf16.msra.mxu0 %v1070_v2  ;;  %1167 = vmatpush.bf16.msra.mxu2 %v1070_v2  ;;  %v1073_v13 = vld [vmem:[#allocation3 + $0x48] sm:$0xff]  ;;  %v1072_v15 = vld [vmem:[#allocation3 + $0x40] sm:$0xff]  ;;  %v930_v28 = vld [vmem:[%s1786_s0 + $0x10] sm:$0xf] }
   0xb   :  { %349 = vmatpush.bf16.msra.mxu1 %v1078_v3  ;;  %1175 = vmatpush.bf16.msra.mxu3 %v1078_v3  ;;  %v922_v16 = vld [vmem:[%s1786_s0] sm:$0xf]  ;;  %v1049_v17 = vld [vmem:[%s1786_s0 + $0x4] sm:$0xf0]  ;;  %v1048_v20 = vld [vmem:[%s1786_s0 + $0x4] sm:$0xf] }
   0xc   :  { %v954_v18 = vld [vmem:[%s1786_s0 + $0x40] sm:$0xf]  ;;  %v1057_v19 = vld [vmem:[%s1786_s0 + $0x44] sm:$0xf0]  ;;  %v924_v21 = vld [vmem:[%s1786_s0 + $0x8] sm:$0xf0]  ;;  %v923_v24 = vor.u32 %v1049_v17, %v922_v16 }
   0xd   :  { %v1056_v22 = vld [vmem:[%s1786_s0 + $0x44] sm:$0xf]  ;;  %v956_v23 = vld [vmem:[%s1786_s0 + $0x48] sm:$0xf0]  ;;  %v955_v25 = vor.u32 %v1057_v19, %v954_v18  ;;  %v927_v26 = vor.u32 %v1048_v20, %v924_v21  ;;  %v1051_v29 = vld [vmem:[%s1786_s0 + $0x14] sm:$0xf0] }
   0xe   :  { %301 = vmatpush.bf16.msra.mxu0 %v1069_v4  ;;  %1168 = vmatpush.bf16.msra.mxu2 %v1069_v4  ;;  %v959_v27 = vor.u32 %v1056_v22, %v956_v23  ;;  %v962_v30 = vld [vmem:[%s1786_s0 + $0x50] sm:$0xf]  ;;  %v1059_v31 = vld [vmem:[%s1786_s0 + $0x54] sm:$0xf0]  ;;  %v1050_v32 = vld [vmem:[%s1786_s0 + $0x14] sm:$0xf]  ;;  %v931_v36 = vor.u32 %v1051_v29, %v930_v28 }
   0xf   :  { %350 = vmatpush.bf16.msra.mxu1 %v1077_v5  ;;  %1176 = vmatpush.bf16.msra.mxu3 %v1077_v5  ;;  %v932_v33 = vld [vmem:[%s1786_s0 + $0x18] sm:$0xf0]  ;;  %v1058_v34 = vld [vmem:[%s1786_s0 + $0x54] sm:$0xf]  ;;  %v963_v37 = vor.u32 %v1059_v31, %v962_v30  ;;  %v938_v40 = vld [vmem:[%s1786_s0 + $0x20] sm:$0xf] }
  0x10   :  { %v964_v35 = vld [vmem:[%s1786_s0 + $0x58] sm:$0xf0]  ;;  %v935_v38 = vor.u32 %v1050_v32, %v932_v33  ;;  %v1053_v41 = vld [vmem:[%s1786_s0 + $0x24] sm:$0xf0]  ;;  %v970_v42 = vld [vmem:[%s1786_s0 + $0x60] sm:$0xf] }
  0x11   :  { %v967_v39 = vor.u32 %v1058_v34, %v964_v35  ;;  %v1061_v43 = vld [vmem:[%s1786_s0 + $0x64] sm:$0xf0]  ;;  %v1052_v44 = vld [vmem:[%s1786_s0 + $0x24] sm:$0xf]  ;;  %v940_v45 = vld [vmem:[%s1786_s0 + $0x28] sm:$0xf0]  ;;  %v939_v48 = vor.u32 %v1053_v41, %v938_v40 }
  0x12   :  { %302 = vmatpush.bf16.msra.mxu0 %v1068_v6  ;;  %1169 = vmatpush.bf16.msra.mxu2 %v1068_v6  ;;  %v1060_v46 = vld [vmem:[%s1786_s0 + $0x64] sm:$0xf]  ;;  %v972_v47 = vld [vmem:[%s1786_s0 + $0x68] sm:$0xf0]  ;;  %v971_v49 = vor.u32 %v1061_v43, %v970_v42  ;;  %v943_v50 = vor.u32 %v1052_v44, %v940_v45  ;;  %v946_v52 = vld [vmem:[%s1786_s0 + $0x30] sm:$0xf] }
  0x13   :  { %351 = vmatpush.bf16.msra.mxu1 %v1076_v7  ;;  %1177 = vmatpush.bf16.msra.mxu3 %v1076_v7  ;;  %v975_v51 = vor.u32 %v1060_v46, %v972_v47  ;;  %v1055_v53 = vld [vmem:[%s1786_s0 + $0x34] sm:$0xf0]  ;;  %v978_v54 = vld [vmem:[%s1786_s0 + $0x70] sm:$0xf]  ;;  %v1054_v56 = vld [vmem:[%s1786_s0 + $0x34] sm:$0xf] }
  0x14   :  { %v1063_v55 = vld [vmem:[%s1786_s0 + $0x74] sm:$0xf0]  ;;  %v948_v57 = vld [vmem:[%s1786_s0 + $0x38] sm:$0xf0]  ;;  %v1062_v58 = vld [vmem:[%s1786_s0 + $0x74] sm:$0xf]  ;;  %v947_v60 = vor.u32 %v1055_v53, %v946_v52 }
  0x15   :  { %v980_v59 = vld [vmem:[%s1786_s0 + $0x78] sm:$0xf0]  ;;  %v979_v61 = vor.u32 %v1063_v55, %v978_v54  ;;  %v951_v62 = vor.u32 %v1054_v56, %v948_v57  ;;  %v1081_v0 = vld [vmem:[%s1789_s3] sm:$0xff]   ;;  %v1152_v23 = vld [vmem:[%s1789_s3 + $0x8] sm:$0xff]  }
  0x16   :  { %303 = vmatpush.bf16.msra.mxu0 %v1067_v8  ;;  %1170 = vmatpush.bf16.msra.mxu2 %v1067_v8  ;;  %v983_v63 = vor.u32 %v1062_v58, %v980_v59  ;;  %v1393_v2 = vld [vmem:[%s1788_s2] ss:$0 sm:$0xff]  ;;  %v1082_v5 = vunpack.c.l.bf16 %v1081_v0  ;;  %v1083_v17 = vunpack.c.h.bf16 %v1081_v0  ;;  %v1086_v29 = vunpack.c.l.bf16 %v1152_v23  ;;  %v1156_v32 = vld [vmem:[%s1789_s3 + $0x28] sm:$0xff]   ;;  %v1153_v55 = vld [vmem:[%s1789_s3 + $0x10] sm:$0xff]  }
  0x17   :  { %352 = vmatpush.bf16.msra.mxu1 %v1075_v9  ;;  %1178 = vmatpush.bf16.msra.mxu3 %v1075_v9  ;;  %v1155_v7 = vld [vmem:[%s1789_s3 + $0x20] sm:$0xff]   ;;  %v1087_v52 = vunpack.c.h.bf16 %v1152_v23  ;;  %v1157_v56 = vld [vmem:[%s1789_s3 + $0x30] sm:$0xff]  }
  0x18   :  { %v1099_v30 = vunpack.c.h.bf16 %v1155_v7  ;;  %v1106_v0 = vunpack.c.l.bf16 %v1157_v56 }
  0x1a   :  { %304 = vmatpush.bf16.msra.mxu0 %v1066_v10  ;;  %1171 = vmatpush.bf16.msra.mxu2 %v1066_v10 }
  0x1b   :  { %353 = vmatpush.bf16.msra.mxu1 %v1074_v11  ;;  %1179 = vmatpush.bf16.msra.mxu3 %v1074_v11 }
  0x1e   :  { %305 = vmatpush.bf16.msra.mxu0 %v1065_v12  ;;  %1172 = vmatpush.bf16.msra.mxu2 %v1065_v12 }
  0x1f   :  { %354 = vmatpush.bf16.msra.mxu1 %v1073_v13  ;;  %1180 = vmatpush.bf16.msra.mxu3 %v1073_v13  ;;  %v1098_v13 = vunpack.c.l.bf16 %v1155_v7 }
  0x22   :  { %306 = vmatpush.bf16.msra.mxu0 %v1064_v14  ;;  %1173 = vmatpush.bf16.msra.mxu2 %v1064_v14 }
  0x23   :  { %355 = vmatpush.bf16.msra.mxu1 %v1072_v15  ;;  %1181 = vmatpush.bf16.msra.mxu3 %v1072_v15 }
  0x25   :  { %307 = vmatmul.bf16.vlgmr.msra.gmra.mxu0 %v923_v24  ;;  %327 = vmatmul.bf16.vlgmr.msra.gmra.mxu2 %v955_v25 }
  0x26   :  { %356 = vmatmul.bf16.vlgmr.msra.gmra.mxu1 %v927_v26  ;;  %376 = vmatmul.bf16.vlgmr.msra.gmra.mxu3 %v959_v27 }
  0x35   :  { %312 = vmatmul.bf16.gmra.mxu0 %v931_v36  ;;  %332 = vmatmul.bf16.gmra.mxu2 %v963_v37 }
  0x36   :  { %361 = vmatmul.bf16.gmra.mxu1 %v935_v38  ;;  %381 = vmatmul.bf16.gmra.mxu3 %v967_v39  ;;  %v1102_v39 = vunpack.c.l.bf16 %v1156_v32 }
  0x45   :  { %317 = vmatmul.bf16.gmra.mxu0 %v939_v48  ;;  %337 = vmatmul.bf16.gmra.mxu2 %v971_v49  ;;  %v1103_v48 = vunpack.c.h.bf16 %v1156_v32 }
  0x46   :  { %366 = vmatmul.bf16.gmra.mxu1 %v943_v50  ;;  %386 = vmatmul.bf16.gmra.mxu3 %v975_v51 }
  0x55   :  { %322 = vmatmul.bf16.gmra.mxu0 %v947_v60  ;;  %342 = vmatmul.bf16.gmra.mxu2 %v979_v61 }
  0x56   :  { %371 = vmatmul.bf16.gmra.mxu1 %v951_v62  ;;  %391 = vmatmul.bf16.gmra.mxu3 %v983_v63  ;;  %v1090_v63 = vunpack.c.l.bf16 %v1153_v55 }
  0xa2   :  { %v308_v1 = vpop.f32.mrf.mxu0 }
  0xa3   :  { %v357_v3 = vpop.f32.mrf.mxu1 }
  0xa4   :  { %v358_v4 = vadd.f32 %v357_v3, %v308_v1 }
  0xa6   :  { %v452_v6 = vadd.f32 %v1393_v2, %v358_v4 }
  0xa8   :  { %v328_v8 = vpop.f32.mrf.mxu2  ;;  %v1399_v9 = vadd.f32 %v1082_v5, %v452_v6 }
  0xa9   :  { %v377_v10 = vpop.f32.mrf.mxu3 }
  0xaa   :  { %v378_v11 = vadd.f32 %v377_v10, %v328_v8  ;;  %516 = vadd.xlane.f32.xlu0 %v1399_v9  ;;  %v310_v12 = vpop.f32.mrf.mxu0  ;;  %v1154_v10 = vld [vmem:[%s1789_s3 + $0x18] sm:$0xff]  }
  0xab   :  { %v359_v14 = vpop.f32.mrf.mxu1 }
  0xac   :  { %v460_v15 = vadd.f32 %v1393_v2, %v378_v11  ;;  %v360_v16 = vadd.f32 %v359_v14, %v310_v12  ;;  %v1091_v14 = vunpack.c.h.bf16 %v1153_v55 }
  0xae   :  { %v453_v18 = vadd.f32 %v1393_v2, %v360_v16  ;;  %v1404_v19 = vadd.f32 %v1098_v13, %v460_v15  ;;  %v1107_v15 = vunpack.c.h.bf16 %v1157_v56 }
  0xb0   :  { %532 = vadd.xlane.f32.xlu2 %v1404_v19  ;;  %v330_v20 = vpop.f32.mrf.mxu2  ;;  %v1407_v21 = vadd.f32 %v1083_v17, %v453_v18 }
  0xb1   :  { %v379_v22 = vpop.f32.mrf.mxu3 }
  0xb2   :  { %v380_v24 = vadd.f32 %v379_v22, %v330_v20  ;;  %518 = vadd.xlane.f32.xlu0 %v1407_v21  ;;  %v313_v25 = vpop.f32.mrf.mxu0  ;;  %v1094_v20 = vunpack.c.l.bf16 %v1154_v10 }
  0xb3   :  { %v362_v26 = vpop.f32.mrf.mxu1 }
  0xb4   :  { %v461_v27 = vadd.f32 %v1393_v2, %v380_v24  ;;  %v363_v28 = vadd.f32 %v362_v26, %v313_v25  ;;  %v1158_v25 = vld [vmem:[%s1789_s3 + $0x38] sm:$0xff]  }
  0xb6   :  { %v454_v31 = vadd.f32 %v1393_v2, %v363_v28  ;;  %v1420_v35 = vadd.f32 %v1099_v30, %v461_v27 }
  0xb8   :  { %v333_v33 = vpop.f32.mrf.mxu2  ;;  %v1418_v34 = vadd.f32 %v1086_v29, %v454_v31  ;;  %v1110_v31 = vunpack.c.l.bf16 %v1158_v25 }
  0xb9   :  { %v382_v36 = vpop.f32.mrf.mxu3 }
  0xba   :  { %v383_v37 = vadd.f32 %v382_v36, %v333_v33  ;;  %520 = vadd.xlane.f32.xlu1 %v1418_v34  ;;  %534 = vadd.xlane.f32.xlu0 %v1420_v35  ;;  %v315_v38 = vpop.f32.mrf.mxu0 }
  0xbb   :  { %v364_v40 = vpop.f32.mrf.mxu1 }
  0xbc   :  { %v462_v41 = vadd.f32 %v1393_v2, %v383_v37  ;;  %v365_v43 = vadd.f32 %v364_v40, %v315_v38  ;;  %v1095_v37 = vunpack.c.h.bf16 %v1154_v10 }
  0xbe   :  { %v1425_v42 = vadd.f32 %v1102_v39, %v462_v41  ;;  %v455_v50 = vadd.f32 %v1393_v2, %v365_v43 }
  0xc0   :  { %v335_v44 = vpop.f32.mrf.mxu2  ;;  %v1439_v58 = vadd.f32 %v1087_v52, %v455_v50 }
  0xc1   :  { %v384_v45 = vpop.f32.mrf.mxu3 }
  0xc2   :  { %v385_v46 = vadd.f32 %v384_v45, %v335_v44  ;;  %536 = vadd.xlane.f32.xlu1 %v1425_v42  ;;  %v318_v47 = vpop.f32.mrf.mxu0  ;;  %v1111_v45 = vunpack.c.h.bf16 %v1158_v25 }
  0xc3   :  { %v367_v49 = vpop.f32.mrf.mxu1 }
  0xc4   :  { %v463_v51 = vadd.f32 %v1393_v2, %v385_v46  ;;  %v368_v53 = vadd.f32 %v367_v49, %v318_v47 }
  0xc6   :  { %v1430_v54 = vadd.f32 %v1103_v48, %v463_v51  ;;  %v456_v60 = vadd.f32 %v1393_v2, %v368_v53  ;;  %v1252_v48 = vmov 128.0  }
  0xc7   :  { %1189 = vrcp.f32 %v1252_v48 }
  0xc8   :  { %538 = vadd.xlane.f32.xlu2 %v1430_v54  ;;  %v338_v57 = vpop.f32.mrf.mxu2  ;;  %v1444_v5 = vadd.f32 %v1090_v63, %v456_v60 }
  0xc9   :  { %v387_v59 = vpop.f32.mrf.mxu3 }
  0xca   :  { %v388_v61 = vadd.f32 %v387_v59, %v338_v57  ;;  %522 = vadd.xlane.f32.xlu1 %v1439_v58  ;;  %v320_v62 = vpop.f32.mrf.mxu0 }
  0xcb   :  { %v369_v1 = vpop.f32.mrf.mxu1 }
  0xcc   :  { %v464_v3 = vadd.f32 %v1393_v2, %v388_v61  ;;  %v370_v4 = vadd.f32 %v369_v1, %v320_v62 }
  0xcd   :  { %v1190_v49 = vpop.eup %1189 }
  0xce   :  { %v1446_v6 = vadd.f32 %v1106_v0, %v464_v3  ;;  %v457_v11 = vadd.f32 %v1393_v2, %v370_v4  ;;  %v549_v50 = vmul.f32 128.0, %v1190_v49  ;;  %vm553_vm0 = vweird.f32 %v1190_v49 }
  0xd0   :  { %524 = vadd.xlane.f32.xlu2 %v1444_v5  ;;  %540 = vadd.xlane.f32.xlu0 %v1446_v6  ;;  %v340_v7 = vpop.f32.mrf.mxu2  ;;  %v1456_v23 = vadd.f32 %v1091_v14, %v457_v11  ;;  %v550_v51 = vsub.f32 1.0, %v549_v50 }
  0xd1   :  { %v389_v8 = vpop.f32.mrf.mxu3 }
  0xd2   :  { %v390_v12 = vadd.f32 %v389_v8, %v340_v7  ;;  %v323_v13 = vpop.f32.mrf.mxu0  ;;  %v551_v52 = vmul.f32 %v1190_v49, %v550_v51 }
  0xd3   :  { %v372_v16 = vpop.f32.mrf.mxu1 }
  0xd4   :  { %v465_v17 = vadd.f32 %v1393_v2, %v390_v12  ;;  %v373_v18 = vadd.f32 %v372_v16, %v323_v13  ;;  %v552_v53 = vadd.f32 %v1190_v49, %v551_v52 }
  0xd6   :  { %v458_v22 = vadd.f32 %v1393_v2, %v373_v18  ;;  %v1458_v24 = vadd.f32 %v1107_v15, %v465_v17  ;;  %v1480_v55 = vsel %vm553_vm0, %v1190_v49, %v552_v53 }
  0xd8   :  { %526 = vadd.xlane.f32.xlu2 %v1456_v23  ;;  %542 = vadd.xlane.f32.xlu1 %v1458_v24  ;;  %v343_v26 = vpop.f32.mrf.mxu2  ;;  %v1465_v27 = vadd.f32 %v1094_v20, %v458_v22 }
  0xd9   :  { %v392_v28 = vpop.f32.mrf.mxu3 }
  0xda   :  { %v393_v29 = vadd.f32 %v392_v28, %v343_v26  ;;  %528 = vadd.xlane.f32.xlu0 %v1465_v27  ;;  %v325_v30 = vpop.f32.mrf.mxu0 }
  0xdb   :  { %v374_v32 = vpop.f32.mrf.mxu1 }
  0xdc   :  { %v466_v33 = vadd.f32 %v1393_v2, %v393_v29  ;;  %v375_v36 = vadd.f32 %v374_v32, %v325_v30 }
  0xde   :  { %v459_v38 = vadd.f32 %v1393_v2, %v375_v36  ;;  %v1470_v39 = vadd.f32 %v1110_v31, %v466_v33 }
  0xe0   :  { %544 = vadd.xlane.f32.xlu2 %v1470_v39  ;;  %v345_v40 = vpop.f32.mrf.mxu2  ;;  %v1473_v41 = vadd.f32 %v1095_v37, %v459_v38 }
  0xe1   :  { %v394_v43 = vpop.f32.mrf.mxu3 }
  0xe2   :  { %v395_v44 = vadd.f32 %v394_v43, %v345_v40  ;;  %530 = vadd.xlane.f32.xlu1 %v1473_v41 }
  0xe4   :  { %v467_v46 = vadd.f32 %v1393_v2, %v395_v44 }
  0xe6   :  { %v1477_v47 = vadd.f32 %v1111_v45, %v467_v46 }
  0xe8   :  { %546 = vadd.xlane.f32.xlu0 %v1477_v47 }
 0x11d   :  { %v517_v56 = vpop.xlane.xlu0 %516 }
 0x11e   :  { %v555_v57 = vmul.f32 %v1480_v55, %v517_v56 }
 0x120   :  { %v1484_v59 = vsub.f32 %v1399_v9, %v555_v57 }
 0x122   :  { %v587_v2 = vmul.f32 %v1484_v59, %v1484_v59 }
 0x123   :  { %v533_v60 = vpop.xlane.xlu2 %532 }
 0x124   :  { %v563_v61 = vmul.f32 %v1480_v55, %v533_v60  ;;  %603 = vadd.xlane.f32.xlu1 %v587_v2 }
 0x125   :  { %v519_v62 = vpop.xlane.xlu0 %518 }
 0x126   :  { %v1490_v63 = vsub.f32 %v1404_v19, %v563_v61  ;;  %v556_v0 = vmul.f32 %v1480_v55, %v519_v62 }
 0x128   :  { %v1494_v1 = vsub.f32 %v1407_v21, %v556_v0  ;;  %v595_v9 = vmul.f32 %v1490_v63, %v1490_v63 }
 0x12a   :  { %619 = vadd.xlane.f32.xlu0 %v595_v9  ;;  %v588_v3 = vmul.f32 %v1494_v1, %v1494_v1 }
 0x12c   :  { %605 = vadd.xlane.f32.xlu2 %v588_v3 }
 0x12d   :  { %v521_v4 = vpop.xlane.xlu1 %520  ;;  %v535_v7 = vpop.xlane.xlu0 %534 }
 0x12e   :  { %v557_v8 = vmul.f32 %v1480_v55, %v521_v4  ;;  %v564_v19 = vmul.f32 %v1480_v55, %v535_v7 }
 0x130   :  { %v1503_v10 = vsub.f32 %v1418_v34, %v557_v8  ;;  %v1506_v21 = vsub.f32 %v1420_v35, %v564_v19 }
 0x132   :  { %v589_v11 = vmul.f32 %v1503_v10, %v1503_v10  ;;  %v596_v12 = vmul.f32 %v1506_v21, %v1506_v21 }
 0x134   :  { %607 = vadd.xlane.f32.xlu0 %v589_v11  ;;  %621 = vadd.xlane.f32.xlu1 %v596_v12 }
 0x135   :  { %v537_v13 = vpop.xlane.xlu1 %536 }
 0x136   :  { %v565_v14 = vmul.f32 %v1480_v55, %v537_v13 }
 0x138   :  { %v1514_v15 = vsub.f32 %v1425_v42, %v565_v14 }
 0x13a   :  { %v597_v34 = vmul.f32 %v1514_v15, %v1514_v15 }
 0x13b   :  { %v539_v16 = vpop.xlane.xlu2 %538 }
 0x13c   :  { %v566_v35 = vmul.f32 %v1480_v55, %v539_v16  ;;  %623 = vadd.xlane.f32.xlu2 %v597_v34 }
 0x13d   :  { %v523_v17 = vpop.xlane.xlu1 %522 }
 0x13e   :  { %v1520_v18 = vsub.f32 %v1430_v54, %v566_v35  ;;  %v558_v20 = vmul.f32 %v1480_v55, %v523_v17 }
 0x140   :  { %v1524_v22 = vsub.f32 %v1439_v58, %v558_v20  ;;  %v598_v42 = vmul.f32 %v1520_v18, %v1520_v18 }
 0x142   :  { %625 = vadd.xlane.f32.xlu0 %v598_v42  ;;  %v590_v25 = vmul.f32 %v1524_v22, %v1524_v22 }
 0x143   :  { %v525_v26 = vpop.xlane.xlu2 %524  ;;  %v541_v28 = vpop.xlane.xlu0 %540 }
 0x144   :  { %v559_v29 = vmul.f32 %v1480_v55, %v525_v26  ;;  %v567_v30 = vmul.f32 %v1480_v55, %v541_v28  ;;  %609 = vadd.xlane.f32.xlu1 %v590_v25 }
 0x146   :  { %v1533_v54 = vsub.f32 %v1444_v5, %v559_v29  ;;  %v1536_v58 = vsub.f32 %v1446_v6, %v567_v30 }
 0x148   :  { %v591_v31 = vmul.f32 %v1533_v54, %v1533_v54  ;;  %v599_v32 = vmul.f32 %v1536_v58, %v1536_v58 }
 0x14a   :  { %611 = vadd.xlane.f32.xlu2 %v591_v31 }
 0x14b   :  { %v527_v33 = vpop.xlane.xlu2 %526  ;;  %v543_v37 = vpop.xlane.xlu1 %542 }
 0x14c   :  { %v560_v36 = vmul.f32 %v1480_v55, %v527_v33  ;;  %627 = vadd.xlane.f32.xlu1 %v599_v32  ;;  %v568_v51 = vmul.f32 %v1480_v55, %v543_v37 }
 0x14d   :  { %v529_v38 = vpop.xlane.xlu0 %528 }
 0x14e   :  { %v1544_v40 = vsub.f32 %v1456_v23, %v560_v36  ;;  %v561_v5 = vmul.f32 %v1480_v55, %v529_v38 }
 0x150   :  { %v1548_v6 = vsub.f32 %v1465_v27, %v561_v5  ;;  %v592_v43 = vmul.f32 %v1544_v40, %v1544_v40 }
 0x152   :  { %613 = vadd.xlane.f32.xlu0 %v592_v43  ;;  %v593_v44 = vmul.f32 %v1548_v6, %v1548_v6 }
 0x153   :  { %v545_v45 = vpop.xlane.xlu2 %544 }
 0x154   :  { %v569_v46 = vmul.f32 %v1480_v55, %v545_v45  ;;  %615 = vadd.xlane.f32.xlu1 %v593_v44  ;;  %v1590_v44 = vld [vmem:[%s1790_s4] ss:$0 sm:$0xff] }
 0x155   :  { %v531_v48 = vpop.xlane.xlu1 %530 }
 0x156   :  { %v1556_v23 = vsub.f32 %v1470_v39, %v569_v46  ;;  %v562_v49 = vmul.f32 %v1480_v55, %v531_v48  ;;  %v1569_v39 = vsub.f32 %v1458_v24, %v568_v51 }
 0x158   :  { %v1560_v27 = vsub.f32 %v1473_v41, %v562_v49  ;;  %v601_v50 = vmul.f32 %v1556_v23, %v1556_v23  ;;  %v600_v2 = vmul.f32 %v1569_v39, %v1569_v39 }
 0x15a   :  { %631 = vadd.xlane.f32.xlu0 %v601_v50  ;;  %v594_v52 = vmul.f32 %v1560_v27, %v1560_v27 }
 0x15b   :  { %v547_v53 = vpop.xlane.xlu0 %546 }
 0x15c   :  { %v570_v56 = vmul.f32 %v1480_v55, %v547_v53  ;;  %617 = vadd.xlane.f32.xlu2 %v594_v52 }
 0x15e   :  { %v1572_v57 = vsub.f32 %v1477_v47, %v570_v56 }
 0x160   :  { %v602_v41 = vmul.f32 %v1572_v57, %v1572_v57 }
 0x162   :  { %633 = vadd.xlane.f32.xlu1 %v602_v41 }
 0x164   :  { %629 = vadd.xlane.f32.xlu2 %v600_v2 }
 0x197   :  { %v604_v60 = vpop.xlane.xlu1 %603 }
 0x198   :  { %v635_v61 = vmul.f32 %v604_v60, %v1480_v55 }
 0x19a   :  { %v651_v62 = vadd.f32 1e-05, %v635_v61 }
 0x19c   :  { %1191 = vrsqrt.f32 %v651_v62  ;;  %vm673_vm2 = vweird.f32 %v651_v62 }
 0x19d   :  { %v620_v0 = vpop.xlane.xlu0 %619 }
 0x19e   :  { %v643_v24 = vmul.f32 %v620_v0, %v1480_v55 }
 0x19f   :  { %v606_v9 = vpop.xlane.xlu2 %605 }
 0x1a0   :  { %v659_v3 = vadd.f32 1e-05, %v643_v24  ;;  %v636_v47 = vmul.f32 %v606_v9, %v1480_v55 }
 0x1a2   :  { %v1192_v4 = vpop.eup %1191  ;;  %1193 = vrsqrt.f32 %v659_v3  ;;  %v652_v7 = vadd.f32 1e-05, %v636_v47  ;;  %vm753_vm8 = vweird.f32 %v659_v3 }
 0x1a3   :  { %v668_v8 = vmul.f32 %v1192_v4, %v651_v62  ;;  %vm674_vm1 = vweird.f32 %v1192_v4 }
 0x1a4   :  { %1195 = vrsqrt.f32 %v652_v7  ;;  %vm675_vm3 = vmor %vm673_vm2, %vm674_vm1  ;;  %vm683_vm5 = vweird.f32 %v652_v7 }
 0x1a5   :  { %v669_v19 = vmul.f32 %v1192_v4, %v668_v8 }
 0x1a7   :  { %v670_v11 = vmul.f32 0.5, %v669_v19  ;;  %v622_v12 = vpop.xlane.xlu1 %621  ;;  %v608_v13 = vpop.xlane.xlu0 %607 }
 0x1a8   :  { %v1194_v14 = vpop.eup %1193  ;;  %v644_v34 = vmul.f32 %v622_v12, %v1480_v55  ;;  %v637_v16 = vmul.f32 %v608_v13, %v1480_v55 }
 0x1a9   :  { %v671_v35 = vsub.f32 1.5, %v670_v11  ;;  %v748_v17 = vmul.f32 %v1194_v14, %v659_v3  ;;  %vm754_vm6 = vweird.f32 %v1194_v14 }
 0x1aa   :  { %v1196_v20 = vpop.eup %1195  ;;  %v660_v42 = vadd.f32 1e-05, %v644_v34  ;;  %v1583_v25 = vadd.f32 1e-05, %v637_v16  ;;  %vm755_vm9 = vmor %vm753_vm8, %vm754_vm6 }
 0x1ab   :  { %v672_v26 = vmul.f32 %v1192_v4, %v671_v35  ;;  %v749_v28 = vmul.f32 %v1194_v14, %v748_v17  ;;  %v678_v29 = vmul.f32 %v1196_v20, %v652_v7  ;;  %vm684_vm4 = vweird.f32 %v1196_v20 }
 0x1ac   :  { %1197 = vrsqrt.f32 %v660_v42  ;;  %vm685_vm7 = vmor %vm683_vm5, %vm684_vm4  ;;  %vm763_vm10 = vweird.f32 %v660_v42  ;;  %vm693_vm1 = vweird.f32 %v1583_v25 }
 0x1ad   :  { %v750_v30 = vmul.f32 0.5, %v749_v28  ;;  %v679_v31 = vmul.f32 %v1196_v20, %v678_v29  ;;  %1199 = vrsqrt.f32 %v1583_v25  ;;  %v676_v32 = vsel %vm675_vm3, %v1192_v4, %v672_v26 }
 0x1ae   :  { %v827_v45 = vmul.f32 %v676_v32, %v1484_v59  ;;  %v1603_v59 = vld [vmem:[%s1791_s5] ss:$0 sm:$0xff] }
 0x1af   :  { %v751_v33 = vsub.f32 1.5, %v750_v30  ;;  %v680_v36 = vmul.f32 0.5, %v679_v31  ;;  %v624_v37 = vpop.xlane.xlu2 %623 }
 0x1b0   :  { %v645_v38 = vmul.f32 %v624_v37, %v1480_v55  ;;  %v847_v2 = vmul.f32 %v1590_v44, %v827_v45 }
 0x1b1   :  { %v681_v5 = vsub.f32 1.5, %v680_v36  ;;  %v752_v49 = vmul.f32 %v1194_v14, %v751_v33 }
 0x1b2   :  { %v1198_v43 = vpop.eup %1197  ;;  %v1593_v46 = vadd.f32 1e-05, %v645_v38  ;;  %v867_v19 = vadd.f32 %v1603_v59, %v847_v2 }
 0x1b3   :  { %v1595_v48 = vpop.eup %1199  ;;  %v682_v50 = vmul.f32 %v1196_v20, %v681_v5  ;;  %v758_v51 = vmul.f32 %v1198_v43, %v660_v42  ;;  %v756_v62 = vsel %vm755_vm9, %v1194_v14, %v752_v49  ;;  %vm764_vm11 = vweird.f32 %v1198_v43 }
 0x1b4   :  { %v688_v52 = vmul.f32 %v1595_v48, %v1583_v25  ;;  %1201 = vrsqrt.f32 %v1593_v46  ;;  %vm765_vm12 = vmor %vm763_vm10, %vm764_vm11  ;;  %vm694_vm13 = vweird.f32 %v1595_v48  ;;  %vm773_vm15 = vweird.f32 %v1593_v46 }
 0x1b5   :  { %v686_v53 = vsel %vm685_vm7, %v1196_v20, %v682_v50  ;;  %v759_v56 = vmul.f32 %v1198_v43, %v758_v51  ;;  %v626_v41 = vpop.xlane.xlu0 %625  ;;  %vm1651_vm2 = vmor %vm693_vm1, %vm694_vm13 }
 0x1b6   :  { %v828_v60 = vmul.f32 %v686_v53, %v1494_v1  ;;  %v646_v61 = vmul.f32 %v626_v41, %v1480_v55  ;;  %v689_v24 = vmul.f32 %v1595_v48, %v688_v52  ;;  %v835_v1 = vmul.f32 %v756_v62, %v1490_v63 }
 0x1b7   :  { %v760_v0 = vmul.f32 0.5, %v759_v56  ;;  %v610_v9 = vpop.xlane.xlu1 %609 }
 0x1b8   :  { %v848_v3 = vmul.f32 %v1590_v44, %v828_v60  ;;  %v1610_v47 = vadd.f32 1e-05, %v646_v61  ;;  %v638_v7 = vmul.f32 %v610_v9, %v1480_v55  ;;  %v690_v13 = vmul.f32 0.5, %v689_v24 }
 0x1b9   :  { %v761_v4 = vsub.f32 1.5, %v760_v0  ;;  %v855_v42 = vmul.f32 %v1590_v44, %v835_v1 }
 0x1ba   :  { %v1202_v8 = vpop.eup %1201  ;;  %v868_v11 = vadd.f32 %v1603_v59, %v848_v3  ;;  %1203 = vrsqrt.f32 %v1610_v47  ;;  %v1618_v34 = vadd.f32 1e-05, %v638_v7  ;;  %v691_v28 = vsub.f32 1.5, %v690_v13 }
 0x1bb   :  { %v762_v12 = vmul.f32 %v1198_v43, %v761_v4  ;;  %v768_v14 = vmul.f32 %v1202_v8, %v1593_v46  ;;  %vm774_vm14 = vweird.f32 %v1202_v8  ;;  %v875_v38 = vadd.f32 %v1603_v59, %v855_v42 }
 0x1bc   :  { %v1115_v16 = vpack.c.bf16 %v868_v11, %v867_v19  ;;  %1205 = vrsqrt.f32 %v1618_v34  ;;  %vm1638_vm0 = vmor %vm773_vm15, %vm774_vm14  ;;  %vm783_vm4 = vweird.f32 %v1610_v47  ;;  %vm703_vm6 = vweird.f32 %v1618_v34 }
 0x1bd   :  { %v766_v35 = vsel %vm765_vm12, %v1198_v43, %v762_v12  ;;  %v769_v17 = vmul.f32 %v1202_v8, %v768_v14  ;;  %v612_v20 = vpop.xlane.xlu2 %611  ;;  %v692_v43 = vmul.f32 %v1595_v48, %v691_v28 }
 0x1be   :  { %1116 = vst [vmem:[%s1792_s6] sm:$0xff] %v1115_v16   ;;  %v836_v63 = vmul.f32 %v766_v35, %v1506_v21  ;;  %v639_v26 = vmul.f32 %v612_v20, %v1480_v55 }
 0x1bf   :  { %v770_v29 = vmul.f32 0.5, %v769_v17  ;;  %v628_v30 = vpop.xlane.xlu1 %627  ;;  %v696_v25 = vsel %vm1651_vm2, %v1595_v48, %v692_v43 }
 0x1c0   :  { %v1204_v31 = vpop.eup %1203  ;;  %v856_v32 = vmul.f32 %v1590_v44, %v836_v63  ;;  %v1628_v33 = vadd.f32 1e-05, %v639_v26  ;;  %v647_v50 = vmul.f32 %v628_v30, %v1480_v55 }
 0x1c1   :  { %v771_v36 = vsub.f32 1.5, %v770_v29  ;;  %v778_v37 = vmul.f32 %v1204_v31, %v1610_v47  ;;  %vm784_vm3 = vweird.f32 %v1204_v31 }
 0x1c2   :  { %v876_v21 = vadd.f32 %v1603_v59, %v856_v32  ;;  %1207 = vrsqrt.f32 %v1628_v33  ;;  %v1206_v5 = vpop.eup %1205  ;;  %v1659_v0 = vadd.f32 1e-05, %v647_v50  ;;  %vm785_vm5 = vmor %vm783_vm4, %vm784_vm3  ;;  %vm713_vm10 = vweird.f32 %v1628_v33 }
 0x1c3   :  { %v772_v45 = vmul.f32 %v1202_v8, %v771_v36  ;;  %v779_v49 = vmul.f32 %v1204_v31, %v778_v37  ;;  %v698_v53 = vmul.f32 %v1206_v5, %v1618_v34  ;;  %vm704_vm7 = vweird.f32 %v1206_v5 }
 0x1c4   :  { %v1135_v51 = vpack.c.bf16 %v876_v21, %v875_v38  ;;  %vm705_vm8 = vmor %vm703_vm6, %vm704_vm7 }
 0x1c5   :  { %v776_v46 = vsel %vm1638_vm0, %v1202_v8, %v772_v45  ;;  %v780_v56 = vmul.f32 0.5, %v779_v49  ;;  %v614_v41 = vpop.xlane.xlu0 %613  ;;  %v699_v60 = vmul.f32 %v1206_v5, %v698_v53 }
 0x1c6   :  { %1162 = vst [vmem:[%s1792_s6 + $0x20] sm:$0xff] %v1135_v51   ;;  %v640_v61 = vmul.f32 %v614_v41, %v1480_v55  ;;  %v837_v3 = vmul.f32 %v776_v46, %v1514_v15  ;;  %v829_v15 = vmul.f32 %v696_v25, %v1503_v10 }
 0x1c7   :  { %v781_v62 = vsub.f32 1.5, %v780_v56  ;;  %v616_v24 = vpop.xlane.xlu1 %615  ;;  %v700_v4 = vmul.f32 0.5, %v699_v60 }
 0x1c8   :  { %v1661_v9 = vpop.eup %1207  ;;  %v1664_v7 = vadd.f32 1e-05, %v640_v61  ;;  %v641_v8 = vmul.f32 %v616_v24, %v1480_v55  ;;  %v857_v13 = vmul.f32 %v1590_v44, %v837_v3  ;;  %v849_v10 = vmul.f32 %v1590_v44, %v829_v15 }
 0x1c9   :  { %v782_v19 = vmul.f32 %v1204_v31, %v781_v62  ;;  %v708_v48 = vmul.f32 %v1661_v9, %v1628_v33  ;;  %v701_v1 = vsub.f32 1.5, %v700_v4  ;;  %vm714_vm9 = vweird.f32 %v1661_v9 }
 0x1ca   :  { %1209 = vrsqrt.f32 %v1664_v7  ;;  %v1677_v16 = vadd.f32 1e-05, %v641_v8  ;;  %v877_v29 = vadd.f32 %v1603_v59, %v857_v13  ;;  %v869_v43 = vadd.f32 %v1603_v59, %v849_v10  ;;  %vm715_vm11 = vmor %vm713_vm10, %vm714_vm9 }
 0x1cb   :  { %v786_v11 = vsel %vm785_vm5, %v1204_v31, %v782_v19  ;;  %v709_v12 = vmul.f32 %v1661_v9, %v708_v48  ;;  %1211 = vrsqrt.f32 %v1659_v0  ;;  %v702_v14 = vmul.f32 %v1206_v5, %v701_v1 }
 0x1cc   :  { %v838_v47 = vmul.f32 %v786_v11, %v1520_v18  ;;  %1213 = vrsqrt.f32 %v1677_v16  ;;  %vm723_vm13 = vweird.f32 %v1664_v7  ;;  %vm733_vm0 = vweird.f32 %v1677_v16 }
 0x1cd   :  { %v710_v35 = vmul.f32 0.5, %v709_v12  ;;  %v632_v34 = vpop.xlane.xlu0 %631  ;;  %v706_v20 = vsel %vm705_vm8, %v1206_v5, %v702_v14  ;;  %vm793_vm8 = vweird.f32 %v1659_v0 }
 0x1ce   :  { %v858_v17 = vmul.f32 %v1590_v44, %v838_v47  ;;  %v830_v42 = vmul.f32 %v706_v20, %v1524_v22  ;;  %v649_v26 = vmul.f32 %v632_v34, %v1480_v55 }
 0x1cf   :  { %v711_v63 = vsub.f32 1.5, %v710_v35  ;;  %v618_v28 = vpop.xlane.xlu2 %617 }
 0x1d0   :  { %v1210_v18 = vpop.eup %1209  ;;  %v878_v30 = vadd.f32 %v1603_v59, %v858_v17  ;;  %v642_v31 = vmul.f32 %v618_v28, %v1480_v55  ;;  %v850_v36 = vmul.f32 %v1590_v44, %v830_v42  ;;  %v1693_v21 = vadd.f32 1e-05, %v649_v26 }
 0x1d1   :  { %v1687_v32 = vpop.eup %1211  ;;  %v712_v37 = vmul.f32 %v1661_v9, %v711_v63  ;;  %v718_v22 = vmul.f32 %v1210_v18, %v1664_v7  ;;  %vm724_vm12 = vweird.f32 %v1210_v18 }
 0x1d2   :  { %v1140_v38 = vpack.c.bf16 %v878_v30, %v877_v29  ;;  %v1695_v5 = vadd.f32 1e-05, %v642_v31  ;;  %v870_v45 = vadd.f32 %v1603_v59, %v850_v36  ;;  %v1700_v50 = vpop.eup %1213  ;;  %v788_v51 = vmul.f32 %v1687_v32, %v1659_v0  ;;  %vm725_vm14 = vmor %vm723_vm13, %vm724_vm12 }
 0x1d3   :  { %v719_v49 = vmul.f32 %v1210_v18, %v718_v22  ;;  %1215 = vrsqrt.f32 %v1693_v21  ;;  %v716_v53 = vsel %vm715_vm11, %v1661_v9, %v712_v37  ;;  %v728_v33 = vmul.f32 %v1700_v50, %v1677_v16 }
 0x1d4   :  { %1163 = vst [vmem:[%s1792_s6 + $0x28] sm:$0xff] %v1140_v38   ;;  %v1120_v52 = vpack.c.bf16 %v870_v45, %v869_v43  ;;  %1217 = vrsqrt.f32 %v1695_v5  ;;  %v831_v25 = vmul.f32 %v716_v53, %v1533_v54  ;;  %v789_v62 = vmul.f32 %v1687_v32, %v788_v51 }
 0x1d5   :  { %v720_v46 = vmul.f32 0.5, %v719_v49  ;;  %v634_v56 = vpop.xlane.xlu1 %633  ;;  %v729_v2 = vmul.f32 %v1700_v50, %v728_v33  ;;  %vm734_vm15 = vweird.f32 %v1700_v50  ;;  %vm794_vm4 = vweird.f32 %v1687_v32 }
 0x1d6   :  { %1159 = vst [vmem:[%s1792_s6 + $0x8] sm:$0xff] %v1120_v52   ;;  %v650_v60 = vmul.f32 %v634_v56, %v1480_v55  ;;  %v851_v54 = vmul.f32 %v1590_v44, %v831_v25  ;;  %v790_v12 = vmul.f32 0.5, %v789_v62  ;;  %vm735_vm1 = vmor %vm733_vm0, %vm734_vm15  ;;  %vm813_vm5 = vweird.f32 %v1693_v21 }
 0x1d7   :  { %v721_v41 = vsub.f32 1.5, %v720_v46  ;;  %v630_v61 = vpop.xlane.xlu2 %629  ;;  %v730_v3 = vmul.f32 0.5, %v729_v2  ;;  %vm743_vm7 = vweird.f32 %v1695_v5  ;;  %vm795_vm10 = vmor %vm793_vm8, %vm794_vm4 }
 0x1d8   :  { %v648_v24 = vmul.f32 %v630_v61, %v1480_v55  ;;  %v1721_v4 = vadd.f32 1e-05, %v650_v60  ;;  %v871_v17 = vadd.f32 %v1603_v59, %v851_v54 }
 0x1d9   :  { %v722_v9 = vmul.f32 %v1210_v18, %v721_v41  ;;  %v1216_v8 = vpop.eup %1215  ;;  %v731_v1 = vsub.f32 1.5, %v730_v3 }
 0x1da   :  { %v1723_v19 = vadd.f32 1e-05, %v648_v24  ;;  %v808_v15 = vmul.f32 %v1216_v8, %v1693_v21  ;;  %v1218_v11 = vpop.eup %1217  ;;  %1219 = vrsqrt.f32 %v1721_v4  ;;  %vm814_vm2 = vweird.f32 %v1216_v8 }
 0x1db   :  { %v726_v48 = vsel %vm725_vm14, %v1210_v18, %v722_v9  ;;  %v732_v7 = vmul.f32 %v1700_v50, %v731_v1  ;;  %v738_v47 = vmul.f32 %v1218_v11, %v1695_v5  ;;  %vm744_vm3 = vweird.f32 %v1218_v11  ;;  %vm1746_vm6 = vmor %vm813_vm5, %vm814_vm2 }
 0x1dc   :  { %v832_v55 = vmul.f32 %v726_v48, %v1544_v40  ;;  %v809_v13 = vmul.f32 %v1216_v8, %v808_v15  ;;  %1221 = vrsqrt.f32 %v1723_v19  ;;  %v791_v40 = vsub.f32 1.5, %v790_v12  ;;  %vm745_vm9 = vmor %vm743_vm7, %vm744_vm3 }
 0x1dd   :  { %v739_v34 = vmul.f32 %v1218_v11, %v738_v47  ;;  %v736_v10 = vsel %vm735_vm1, %v1700_v50, %v732_v7  ;;  %vm823_vm12 = vweird.f32 %v1721_v4  ;;  %vm803_vm15 = vweird.f32 %v1723_v19 }
 0x1de   :  { %v852_v14 = vmul.f32 %v1590_v44, %v832_v55  ;;  %v810_v35 = vmul.f32 0.5, %v809_v13  ;;  %v792_v31 = vmul.f32 %v1687_v32, %v791_v40  ;;  %v833_v36 = vmul.f32 %v736_v10, %v1548_v6 }
 0x1df   :  { %v740_v63 = vmul.f32 0.5, %v739_v34 }
 0x1e0   :  { %v872_v20 = vadd.f32 %v1603_v59, %v852_v14  ;;  %v811_v42 = vsub.f32 1.5, %v810_v35  ;;  %v1220_v26 = vpop.eup %1219  ;;  %v853_v21 = vmul.f32 %v1590_v44, %v833_v36  ;;  %v796_v5 = vsel %vm795_vm10, %v1687_v32, %v792_v31 }
 0x1e1   :  { %v741_v29 = vsub.f32 1.5, %v740_v63  ;;  %v818_v16 = vmul.f32 %v1220_v26, %v1721_v4  ;;  %vm824_vm11 = vweird.f32 %v1220_v26  ;;  %v839_v41 = vmul.f32 %v796_v5, %v1536_v58 }
 0x1e2   :  { %v1125_v28 = vpack.c.bf16 %v872_v20, %v871_v17  ;;  %v812_v18 = vmul.f32 %v1216_v8, %v811_v42  ;;  %v1222_v30 = vpop.eup %1221  ;;  %v873_v2 = vadd.f32 %v1603_v59, %v853_v21  ;;  %vm825_vm14 = vmor %vm823_vm12, %vm824_vm11 }
 0x1e3   :  { %v742_v22 = vmul.f32 %v1218_v11, %v741_v29  ;;  %v819_v38 = vmul.f32 %v1220_v26, %v818_v16  ;;  %v798_v43 = vmul.f32 %v1222_v30, %v1723_v19  ;;  %vm804_vm13 = vweird.f32 %v1222_v30 }
 0x1e4   :  { %1160 = vst [vmem:[%s1792_s6 + $0x10] sm:$0xff] %v1125_v28   ;;  %v816_v45 = vsel %vm1746_vm6, %v1216_v8, %v812_v18  ;;  %vm805_vm0 = vmor %vm803_vm15, %vm804_vm13  ;;  %v859_v24 = vmul.f32 %v1590_v44, %v839_v41 }
 0x1e5   :  { %v746_v49 = vsel %vm745_vm9, %v1218_v11, %v742_v22  ;;  %v820_v6 = vmul.f32 0.5, %v819_v38  ;;  %v799_v50 = vmul.f32 %v1222_v30, %v798_v43  ;;  %v841_v0 = vmul.f32 %v816_v45, %v1556_v23 }
 0x1e6   :  { %v834_v51 = vmul.f32 %v746_v49, %v1560_v27 }
 0x1e7   :  { %v821_v52 = vsub.f32 1.5, %v820_v6  ;;  %v800_v53 = vmul.f32 0.5, %v799_v50  ;;  %v861_v23 = vmul.f32 %v1590_v44, %v841_v0 }
 0x1e8   :  { %v854_v46 = vmul.f32 %v1590_v44, %v834_v51 }
 0x1e9   :  { %v822_v33 = vmul.f32 %v1220_v26, %v821_v52  ;;  %v801_v56 = vsub.f32 1.5, %v800_v53  ;;  %v881_v3 = vadd.f32 %v1603_v59, %v861_v23 }
 0x1ea   :  { %v874_v27 = vadd.f32 %v1603_v59, %v854_v46 }
 0x1eb   :  { %v826_v32 = vsel %vm825_vm14, %v1220_v26, %v822_v33  ;;  %v802_v60 = vmul.f32 %v1222_v30, %v801_v56 }
 0x1ec   :  { %v1130_v61 = vpack.c.bf16 %v874_v27, %v873_v2  ;;  %v842_v25 = vmul.f32 %v826_v32, %v1572_v57  ;;  %v879_v57 = vadd.f32 %v1603_v59, %v859_v24 }
 0x1ed   :  { %v806_v62 = vsel %vm805_vm0, %v1222_v30, %v802_v60 }
 0x1ee   :  { %1161 = vst [vmem:[%s1792_s6 + $0x18] sm:$0xff] %v1130_v61   ;;  %v862_v58 = vmul.f32 %v1590_v44, %v842_v25  ;;  %v840_v9 = vmul.f32 %v806_v62, %v1569_v39 }
 0x1f0   :  { %v882_v4 = vadd.f32 %v1603_v59, %v862_v58  ;;  %v860_v8 = vmul.f32 %v1590_v44, %v840_v9 }
 0x1f2   :  { %v1150_v19 = vpack.c.bf16 %v882_v4, %v881_v3  ;;  %v880_v48 = vadd.f32 %v1603_v59, %v860_v8 }
 0x1f4   :  { %1165 = vst [vmem:[%s1792_s6 + $0x38] sm:$0xff] %v1150_v19   ;;  %v1145_v1 = vpack.c.bf16 %v880_v48, %v879_v57 }
 0x1f6   :  { %1164 = vst [vmem:[%s1792_s6 + $0x30] sm:$0xff] %v1145_v1  }
 0x1f7   :  { %919 = vsyncpa [#allocation4], 1 }

// kernel: encoder_forward.17
= control target key start
LH: loop header
LB: loop body
LE: loop exit
PB: predicated region body
PF: predicated region fallthrough
CT: control target
= control target key end

     0   :  { %11 = vsyncpa [#allocation4], 0  ;;  %s1032_s24 = smov [#allocation3]   ;;  %s1033_s26 = smov 64   ;;  %s1555_s0 = inlined_call_operand.vmem [shape: bf16[128,128], index: 0, kind: input, shape index: {}]   ;;  %s1556_s1 = inlined_call_operand.hbm [shape: bf16[128,128], index: 1, kind: input, shape index: {}]   ;;  %s1557_s2 = inlined_call_operand.vmem [shape: f32[1,128], index: 2, kind: input, shape index: {}]   ;;  %s1558_s3 = inlined_call_operand.vmem [shape: bf16[128,128], index: 3, kind: input, shape index: {}]   ;;  %s1559_s4 = inlined_call_operand.vmem [shape: f32[1,128], index: 4, kind: input, shape index: {}]   ;;  %s1560_s5 = inlined_call_operand.vmem [shape: f32[1,128], index: 5, kind: input, shape index: {}]   ;;  %s1561_s6 = inlined_call_operand.vmem [shape: bf16[128,128], index: 6, kind: output, shape index: {}]  }
   0x1   :  { %s18_s23 = sshll.u32 %s1556_s1, 4  ;;  %s20_s25 = sshll.u32 %s1032_s24, 4  ;;  %s19_s23 = int_to_ptr.hbm [resolvable:$true] %s18_s23  ;;  %s21_s25 = int_to_ptr.vmem [resolvable:$true] %s20_s25 }
   0x2   :  { %s1034_s27 = smov 4  }
   0x3   :  { %26 = dma.hbm_to_vmem [thread:$0]  %s19_s23, 1024, %s21_s25, [#allocation4], %s1033_s26, %s1033_s26, %s1034_s27  }
   0x4   :  { %1030 = dma.done.wait [#allocation4], 1024  }
   0x5   :  { %1031 = vsyncadd [#allocation4], 4294966272  ;;  %v854_v0 = vld [vmem:[#allocation3 + $0x38] sm:$0xff]  ;;  %v853_v1 = vld [vmem:[#allocation3 + $0x30] sm:$0xff] }
   0x6   :  { %203 = vmatpush.bf16.msra.mxu0 %v854_v0  ;;  %941 = vmatpush.bf16.msra.mxu1 %v854_v0  ;;  %v852_v2 = vld [vmem:[#allocation3 + $0x28] sm:$0xff]  ;;  %v851_v3 = vld [vmem:[#allocation3 + $0x20] sm:$0xff]  ;;  %v850_v4 = vld [vmem:[#allocation3 + $0x18] sm:$0xff] }
   0x7   :  { %942 = vmatpush.bf16.msra.mxu2 %v854_v0  ;;  %943 = vmatpush.bf16.msra.mxu3 %v854_v0  ;;  %v849_v5 = vld [vmem:[#allocation3 + $0x10] sm:$0xff]  ;;  %v848_v6 = vld [vmem:[#allocation3 + $0x8] sm:$0xff]  ;;  %v847_v7 = vld [vmem:[#allocation3] sm:$0xff] }
   0x8   :  { %v839_v8 = vld [vmem:[%s1555_s0] sm:$0xff]  ;;  %v841_v9 = vld [vmem:[%s1555_s0 + $0x10] sm:$0xff]  ;;  %v840_v12 = vld [vmem:[%s1555_s0 + $0x8] sm:$0xff] }
   0x9   :  { %v843_v10 = vld [vmem:[%s1555_s0 + $0x20] sm:$0xff]  ;;  %v845_v11 = vld [vmem:[%s1555_s0 + $0x30] sm:$0xff]  ;;  %v842_v13 = vld [vmem:[%s1555_s0 + $0x18] sm:$0xff] }
   0xa   :  { %204 = vmatpush.bf16.msra.mxu0 %v853_v1  ;;  %944 = vmatpush.bf16.msra.mxu1 %v853_v1  ;;  %v844_v14 = vld [vmem:[%s1555_s0 + $0x28] sm:$0xff]  ;;  %v846_v15 = vld [vmem:[%s1555_s0 + $0x38] sm:$0xff]  ;;  %v928_v16 = vld [vmem:[%s1558_s3 + $0x10] sm:$0xff]  }
   0xb   :  { %945 = vmatpush.bf16.msra.mxu2 %v853_v1  ;;  %946 = vmatpush.bf16.msra.mxu3 %v853_v1  ;;  %v856_v17 = vld [vmem:[%s1558_s3] sm:$0xff]   ;;  %v865_v19 = vunpack.c.l.bf16 %v928_v16  ;;  %v932_v28 = vld [vmem:[%s1558_s3 + $0x30] sm:$0xff]   ;;  %v866_v44 = vunpack.c.h.bf16 %v928_v16  ;;  %v927_v47 = vld [vmem:[%s1558_s3 + $0x8] sm:$0xff]  }
   0xc   :  { %v1107_v18 = vld [vmem:[%s1557_s2] ss:$0 sm:$0xff]  ;;  %v857_v20 = vunpack.c.l.bf16 %v856_v17  ;;  %v881_v32 = vunpack.c.l.bf16 %v932_v28  ;;  %v882_v39 = vunpack.c.h.bf16 %v932_v28  ;;  %v858_v45 = vunpack.c.h.bf16 %v856_v17  ;;  %v931_v59 = vld [vmem:[%s1558_s3 + $0x28] sm:$0xff]   ;;  %v929_v60 = vld [vmem:[%s1558_s3 + $0x18] sm:$0xff]  }
   0xd   :  { %v930_v27 = vld [vmem:[%s1558_s3 + $0x20] sm:$0xff]   ;;  %v861_v53 = vunpack.c.l.bf16 %v927_v47  ;;  %v877_v0 = vunpack.c.l.bf16 %v931_v59  ;;  %v862_v17 = vunpack.c.h.bf16 %v927_v47  ;;  %v1035_v28 = vmov 128.0  }
   0xe   :  { %205 = vmatpush.bf16.msra.mxu0 %v852_v2  ;;  %947 = vmatpush.bf16.msra.mxu1 %v852_v2  ;;  %v873_v29 = vunpack.c.l.bf16 %v930_v27  ;;  %v874_v56 = vunpack.c.h.bf16 %v930_v27  ;;  %972 = vrcp.f32 %v1035_v28 }
   0xf   :  { %948 = vmatpush.bf16.msra.mxu2 %v852_v2  ;;  %949 = vmatpush.bf16.msra.mxu3 %v852_v2  ;;  %v869_v2 = vunpack.c.l.bf16 %v929_v60 }
  0x12   :  { %206 = vmatpush.bf16.msra.mxu0 %v851_v3  ;;  %950 = vmatpush.bf16.msra.mxu1 %v851_v3 }
  0x13   :  { %951 = vmatpush.bf16.msra.mxu2 %v851_v3  ;;  %952 = vmatpush.bf16.msra.mxu3 %v851_v3  ;;  %v878_v3 = vunpack.c.h.bf16 %v931_v59 }
  0x16   :  { %207 = vmatpush.bf16.msra.mxu0 %v850_v4  ;;  %953 = vmatpush.bf16.msra.mxu1 %v850_v4 }
  0x17   :  { %954 = vmatpush.bf16.msra.mxu2 %v850_v4  ;;  %955 = vmatpush.bf16.msra.mxu3 %v850_v4 }
  0x1a   :  { %208 = vmatpush.bf16.msra.mxu0 %v849_v5  ;;  %956 = vmatpush.bf16.msra.mxu1 %v849_v5 }
  0x1b   :  { %957 = vmatpush.bf16.msra.mxu2 %v849_v5  ;;  %958 = vmatpush.bf16.msra.mxu3 %v849_v5 }
  0x1e   :  { %209 = vmatpush.bf16.msra.mxu0 %v848_v6  ;;  %959 = vmatpush.bf16.msra.mxu1 %v848_v6 }
  0x1f   :  { %960 = vmatpush.bf16.msra.mxu2 %v848_v6  ;;  %961 = vmatpush.bf16.msra.mxu3 %v848_v6 }
  0x22   :  { %210 = vmatpush.bf16.msra.mxu0 %v847_v7  ;;  %962 = vmatpush.bf16.msra.mxu1 %v847_v7 }
  0x23   :  { %963 = vmatpush.bf16.msra.mxu2 %v847_v7  ;;  %964 = vmatpush.bf16.msra.mxu3 %v847_v7 }
  0x25   :  { %211 = vmatmul.bf16.vlgmr.msra.gmra.mxu0 %v839_v8  ;;  %221 = vmatmul.bf16.vlgmr.msra.gmra.mxu1 %v841_v9  ;;  %v933_v8 = vld [vmem:[%s1558_s3 + $0x38] sm:$0xff]  }
  0x26   :  { %231 = vmatmul.bf16.vlgmr.msra.gmra.mxu2 %v843_v10  ;;  %241 = vmatmul.bf16.vlgmr.msra.gmra.mxu3 %v845_v11 }
  0x35   :  { %216 = vmatmul.bf16.gmra.mxu0 %v840_v12  ;;  %226 = vmatmul.bf16.gmra.mxu1 %v842_v13  ;;  %v885_v13 = vunpack.c.l.bf16 %v933_v8 }
  0x36   :  { %236 = vmatmul.bf16.gmra.mxu2 %v844_v14  ;;  %246 = vmatmul.bf16.gmra.mxu3 %v846_v15  ;;  %v886_v15 = vunpack.c.h.bf16 %v933_v8 }
  0xa2   :  { %v212_v21 = vpop.f32.mrf.mxu0  ;;  %v222_v22 = vpop.f32.mrf.mxu1 }
  0xa3   :  { %v307_v23 = vadd.f32 %v1107_v18, %v212_v21  ;;  %v311_v24 = vadd.f32 %v1107_v18, %v222_v22 }
  0xa5   :  { %v1111_v25 = vadd.f32 %v865_v19, %v311_v24  ;;  %v1113_v26 = vadd.f32 %v857_v20, %v307_v23  ;;  %v870_v24 = vunpack.c.h.bf16 %v929_v60 }
  0xa7   :  { %379 = vadd.xlane.f32.xlu2 %v1111_v25  ;;  %371 = vadd.xlane.f32.xlu0 %v1113_v26 }
  0xa9   :  { %v232_v30 = vpop.f32.mrf.mxu2  ;;  %v242_v31 = vpop.f32.mrf.mxu3 }
  0xaa   :  { %v315_v33 = vadd.f32 %v1107_v18, %v232_v30  ;;  %v319_v34 = vadd.f32 %v1107_v18, %v242_v31  ;;  %v214_v35 = vpop.f32.mrf.mxu0  ;;  %v224_v38 = vpop.f32.mrf.mxu1 }
  0xab   :  { %v308_v40 = vadd.f32 %v1107_v18, %v214_v35  ;;  %v312_v41 = vadd.f32 %v1107_v18, %v224_v38 }
  0xac   :  { %v1125_v36 = vadd.f32 %v873_v29, %v315_v33  ;;  %v1127_v37 = vadd.f32 %v881_v32, %v319_v34  ;;  %v973_v29 = vpop.eup %972 }
  0xad   :  { %v1139_v50 = vadd.f32 %v866_v44, %v312_v41  ;;  %v1141_v51 = vadd.f32 %v858_v45, %v308_v40  ;;  %v404_v30 = vmul.f32 128.0, %v973_v29  ;;  %vm408_vm0 = vweird.f32 %v973_v29 }
  0xaf   :  { %387 = vadd.xlane.f32.xlu2 %v1125_v36  ;;  %395 = vadd.xlane.f32.xlu0 %v1127_v37  ;;  %v405_v31 = vsub.f32 1.0, %v404_v30 }
  0xb1   :  { %v234_v42 = vpop.f32.mrf.mxu2  ;;  %v244_v43 = vpop.f32.mrf.mxu3  ;;  %v406_v32 = vmul.f32 %v973_v29, %v405_v31 }
  0xb2   :  { %v320_v46 = vadd.f32 %v1107_v18, %v244_v43  ;;  %v217_v49 = vpop.f32.mrf.mxu0  ;;  %v316_v54 = vadd.f32 %v1107_v18, %v234_v42  ;;  %v227_v63 = vpop.f32.mrf.mxu1 }
  0xb3   :  { %v309_v52 = vadd.f32 %v1107_v18, %v217_v49  ;;  %v313_v1 = vadd.f32 %v1107_v18, %v227_v63  ;;  %v407_v33 = vadd.f32 %v973_v29, %v406_v32 }
  0xb4   :  { %v1137_v48 = vadd.f32 %v882_v39, %v320_v46  ;;  %v1156_v61 = vadd.f32 %v874_v56, %v316_v54 }
  0xb5   :  { %v1148_v57 = vadd.f32 %v861_v53, %v309_v52  ;;  %v1165_v7 = vadd.f32 %v869_v2, %v313_v1  ;;  %v1191_v34 = vsel %vm408_vm0, %v973_v29, %v407_v33 }
  0xb6   :  { %397 = vadd.xlane.f32.xlu1 %v1137_v48 }
  0xb7   :  { %381 = vadd.xlane.f32.xlu2 %v1139_v50  ;;  %373 = vadd.xlane.f32.xlu0 %v1141_v51 }
  0xb9   :  { %v237_v55 = vpop.f32.mrf.mxu2  ;;  %v247_v58 = vpop.f32.mrf.mxu3 }
  0xba   :  { %v317_v62 = vadd.f32 %v1107_v18, %v237_v55  ;;  %v219_v11 = vpop.f32.mrf.mxu0  ;;  %v321_v12 = vadd.f32 %v1107_v18, %v247_v58  ;;  %v229_v22 = vpop.f32.mrf.mxu1 }
  0xbb   :  { %v310_v16 = vadd.f32 %v1107_v18, %v219_v11  ;;  %v314_v23 = vadd.f32 %v1107_v18, %v229_v22 }
  0xbc   :  { %v1163_v6 = vadd.f32 %v877_v0, %v317_v62  ;;  %v1178_v19 = vadd.f32 %v885_v13, %v321_v12 }
  0xbd   :  { %v1182_v21 = vadd.f32 %v862_v17, %v310_v16  ;;  %v1188_v27 = vadd.f32 %v870_v24, %v314_v23 }
  0xbe   :  { %375 = vadd.xlane.f32.xlu1 %v1148_v57 }
  0xbf   :  { %389 = vadd.xlane.f32.xlu0 %v1156_v61 }
  0xc1   :  { %v239_v4 = vpop.f32.mrf.mxu2  ;;  %v249_v10 = vpop.f32.mrf.mxu3 }
  0xc2   :  { %v318_v5 = vadd.f32 %v1107_v18, %v239_v4  ;;  %v322_v14 = vadd.f32 %v1107_v18, %v249_v10 }
  0xc4   :  { %v1170_v9 = vadd.f32 %v878_v3, %v318_v5  ;;  %v1180_v20 = vadd.f32 %v886_v15, %v322_v14 }
  0xc6   :  { %393 = vadd.xlane.f32.xlu2 %v1170_v9  ;;  %391 = vadd.xlane.f32.xlu1 %v1163_v6 }
  0xc7   :  { %383 = vadd.xlane.f32.xlu0 %v1165_v7 }
  0xce   :  { %399 = vadd.xlane.f32.xlu2 %v1178_v19  ;;  %377 = vadd.xlane.f32.xlu1 %v1182_v21 }
  0xcf   :  { %401 = vadd.xlane.f32.xlu0 %v1180_v20 }
  0xd6   :  { %385 = vadd.xlane.f32.xlu1 %v1188_v27 }
 0x11a   :  { %v380_v35 = vpop.xlane.xlu2 %379  ;;  %v372_v38 = vpop.xlane.xlu0 %371 }
 0x11b   :  { %v414_v39 = vmul.f32 %v1191_v34, %v380_v35  ;;  %v410_v18 = vmul.f32 %v1191_v34, %v372_v38 }
 0x11d   :  { %v1196_v40 = vsub.f32 %v1111_v25, %v414_v39  ;;  %v1199_v41 = vsub.f32 %v1113_v26, %v410_v18 }
 0x11f   :  { %v446_v42 = vmul.f32 %v1196_v40, %v1196_v40  ;;  %v442_v43 = vmul.f32 %v1199_v41, %v1199_v41 }
 0x121   :  { %466 = vadd.xlane.f32.xlu2 %v446_v42  ;;  %458 = vadd.xlane.f32.xlu1 %v442_v43 }
 0x122   :  { %v388_v44 = vpop.xlane.xlu2 %387  ;;  %v396_v45 = vpop.xlane.xlu0 %395 }
 0x123   :  { %v418_v46 = vmul.f32 %v1191_v34, %v388_v44  ;;  %v422_v47 = vmul.f32 %v1191_v34, %v396_v45 }
 0x125   :  { %v1208_v25 = vsub.f32 %v1125_v36, %v418_v46  ;;  %v1211_v26 = vsub.f32 %v1127_v37, %v422_v47 }
 0x127   :  { %v450_v49 = vmul.f32 %v1208_v25, %v1208_v25  ;;  %v454_v52 = vmul.f32 %v1211_v26, %v1211_v26 }
 0x129   :  { %v398_v53 = vpop.xlane.xlu1 %397  ;;  %474 = vadd.xlane.f32.xlu0 %v450_v49  ;;  %482 = vadd.xlane.f32.xlu1 %v454_v52 }
 0x12a   :  { %v382_v54 = vpop.xlane.xlu2 %381  ;;  %v374_v55 = vpop.xlane.xlu0 %373  ;;  %v423_v33 = vmul.f32 %v1191_v34, %v398_v53 }
 0x12b   :  { %v415_v56 = vmul.f32 %v1191_v34, %v382_v54  ;;  %v411_v58 = vmul.f32 %v1191_v34, %v374_v55 }
 0x12c   :  { %v1285_v39 = vsub.f32 %v1137_v48, %v423_v33 }
 0x12d   :  { %v1220_v36 = vsub.f32 %v1139_v50, %v415_v56  ;;  %v1223_v37 = vsub.f32 %v1141_v51, %v411_v58 }
 0x12f   :  { %v447_v59 = vmul.f32 %v1220_v36, %v1220_v36  ;;  %v443_v60 = vmul.f32 %v1223_v37, %v1223_v37 }
 0x131   :  { %v376_v62 = vpop.xlane.xlu1 %375  ;;  %468 = vadd.xlane.f32.xlu0 %v447_v59  ;;  %460 = vadd.xlane.f32.xlu2 %v443_v60 }
 0x132   :  { %v412_v63 = vmul.f32 %v1191_v34, %v376_v62  ;;  %v390_v0 = vpop.xlane.xlu0 %389 }
 0x133   :  { %v419_v1 = vmul.f32 %v1191_v34, %v390_v0 }
 0x134   :  { %v1232_v50 = vsub.f32 %v1148_v57, %v412_v63 }
 0x135   :  { %v1235_v51 = vsub.f32 %v1156_v61, %v419_v1 }
 0x136   :  { %v444_v2 = vmul.f32 %v1232_v50, %v1232_v50 }
 0x137   :  { %v451_v3 = vmul.f32 %v1235_v51, %v1235_v51 }
 0x139   :  { %v394_v4 = vpop.xlane.xlu2 %393  ;;  %v392_v5 = vpop.xlane.xlu1 %391  ;;  %462 = vadd.xlane.f32.xlu0 %v444_v2  ;;  %476 = vadd.xlane.f32.xlu1 %v451_v3 }
 0x13a   :  { %v421_v8 = vmul.f32 %v1191_v34, %v394_v4  ;;  %v420_v10 = vmul.f32 %v1191_v34, %v392_v5  ;;  %v384_v11 = vpop.xlane.xlu0 %383 }
 0x13b   :  { %v416_v57 = vmul.f32 %v1191_v34, %v384_v11 }
 0x13c   :  { %v1245_v61 = vsub.f32 %v1170_v9, %v421_v8  ;;  %v1248_v12 = vsub.f32 %v1163_v6, %v420_v10 }
 0x13d   :  { %v1251_v13 = vsub.f32 %v1165_v7, %v416_v57 }
 0x13e   :  { %v452_v14 = vmul.f32 %v1248_v12, %v1248_v12  ;;  %v453_v15 = vmul.f32 %v1245_v61, %v1245_v61 }
 0x13f   :  { %v448_v16 = vmul.f32 %v1251_v13, %v1251_v13 }
 0x140   :  { %478 = vadd.xlane.f32.xlu2 %v452_v14 }
 0x141   :  { %v400_v17 = vpop.xlane.xlu2 %399  ;;  %v378_v22 = vpop.xlane.xlu1 %377  ;;  %480 = vadd.xlane.f32.xlu0 %v453_v15  ;;  %470 = vadd.xlane.f32.xlu1 %v448_v16 }
 0x142   :  { %v424_v6 = vmul.f32 %v1191_v34, %v400_v17  ;;  %v413_v9 = vmul.f32 %v1191_v34, %v378_v22  ;;  %v402_v24 = vpop.xlane.xlu0 %401 }
 0x143   :  { %v425_v28 = vmul.f32 %v1191_v34, %v402_v24 }
 0x144   :  { %v1262_v7 = vsub.f32 %v1178_v19, %v424_v6  ;;  %v1265_v23 = vsub.f32 %v1182_v21, %v413_v9 }
 0x145   :  { %v1274_v19 = vsub.f32 %v1180_v20, %v425_v28  ;;  %v455_v20 = vmul.f32 %v1285_v39, %v1285_v39 }
 0x146   :  { %v456_v29 = vmul.f32 %v1262_v7, %v1262_v7  ;;  %v445_v30 = vmul.f32 %v1265_v23, %v1265_v23 }
 0x147   :  { %v457_v38 = vmul.f32 %v1274_v19, %v1274_v19 }
 0x149   :  { %v386_v31 = vpop.xlane.xlu1 %385  ;;  %486 = vadd.xlane.f32.xlu0 %v456_v29  ;;  %464 = vadd.xlane.f32.xlu1 %v445_v30 }
 0x14a   :  { %v417_v32 = vmul.f32 %v1191_v34, %v386_v31 }
 0x14c   :  { %v1277_v21 = vsub.f32 %v1188_v27, %v417_v32 }
 0x14e   :  { %v449_v35 = vmul.f32 %v1277_v21, %v1277_v21 }
 0x150   :  { %472 = vadd.xlane.f32.xlu2 %v449_v35 }
 0x151   :  { %488 = vadd.xlane.f32.xlu1 %v457_v38 }
 0x158   :  { %484 = vadd.xlane.f32.xlu2 %v455_v20 }
 0x194   :  { %v467_v18 = vpop.xlane.xlu2 %466  ;;  %v459_v27 = vpop.xlane.xlu1 %458 }
 0x195   :  { %v494_v42 = vmul.f32 %v467_v18, %v1191_v34  ;;  %v490_v43 = vmul.f32 %v459_v27, %v1191_v34 }
 0x197   :  { %v510_v44 = vadd.f32 1e-05, %v494_v42  ;;  %v506_v45 = vadd.f32 1e-05, %v490_v43 }
 0x199   :  { %974 = vrsqrt.f32 %v510_v44  ;;  %vm568_vm2 = vweird.f32 %v510_v44  ;;  %vm528_vm5 = vweird.f32 %v506_v45 }
 0x19a   :  { %976 = vrsqrt.f32 %v506_v45 }
 0x19c   :  { %v475_v46 = vpop.xlane.xlu0 %474  ;;  %v483_v58 = vpop.xlane.xlu1 %482 }
 0x19d   :  { %v498_v47 = vmul.f32 %v475_v46, %v1191_v34  ;;  %v502_v6 = vmul.f32 %v483_v58, %v1191_v34 }
 0x19f   :  { %v975_v49 = vpop.eup %974  ;;  %v1292_v48 = vadd.f32 1e-05, %v498_v47  ;;  %v1334_v27 = vadd.f32 1e-05, %v502_v6 }
 0x1a0   :  { %v1294_v52 = vpop.eup %976  ;;  %v563_v53 = vmul.f32 %v975_v49, %v510_v44  ;;  %vm569_vm1 = vweird.f32 %v975_v49 }
 0x1a1   :  { %v523_v54 = vmul.f32 %v1294_v52, %v506_v45  ;;  %978 = vrsqrt.f32 %v1292_v48  ;;  %vm529_vm3 = vweird.f32 %v1294_v52  ;;  %vm570_vm4 = vmor %vm568_vm2, %vm569_vm1  ;;  %vm608_vm7 = vweird.f32 %v1292_v48 }
 0x1a2   :  { %v564_v55 = vmul.f32 %v975_v49, %v563_v53  ;;  %vm1325_vm6 = vmor %vm528_vm5, %vm529_vm3 }
 0x1a3   :  { %v524_v56 = vmul.f32 %v1294_v52, %v523_v54 }
 0x1a4   :  { %v461_v59 = vpop.xlane.xlu2 %460  ;;  %v469_v60 = vpop.xlane.xlu0 %468  ;;  %v565_v62 = vmul.f32 0.5, %v564_v55 }
 0x1a5   :  { %v491_v63 = vmul.f32 %v461_v59, %v1191_v34  ;;  %v495_v0 = vmul.f32 %v469_v60, %v1191_v34  ;;  %v525_v2 = vmul.f32 0.5, %v524_v56  ;;  %v1345_v56 = vld [vmem:[%s1559_s4] ss:$0 sm:$0xff] }
 0x1a6   :  { %v566_v8 = vsub.f32 1.5, %v565_v62 }
 0x1a7   :  { %v1301_v1 = vpop.eup %978  ;;  %v1303_v3 = vadd.f32 1e-05, %v491_v63  ;;  %v1305_v4 = vadd.f32 1e-05, %v495_v0  ;;  %v526_v11 = vsub.f32 1.5, %v525_v2 }
 0x1a8   :  { %v603_v5 = vmul.f32 %v1301_v1, %v1292_v48  ;;  %v567_v15 = vmul.f32 %v975_v49, %v566_v8  ;;  %vm609_vm8 = vweird.f32 %v1301_v1 }
 0x1a9   :  { %980 = vrsqrt.f32 %v1303_v3  ;;  %v527_v24 = vmul.f32 %v1294_v52, %v526_v11  ;;  %vm538_vm10 = vweird.f32 %v1303_v3  ;;  %vm1361_vm12 = vmor %vm608_vm7, %vm609_vm8  ;;  %vm578_vm13 = vweird.f32 %v1305_v4 }
 0x1aa   :  { %v604_v10 = vmul.f32 %v1301_v1, %v603_v5  ;;  %982 = vrsqrt.f32 %v1305_v4  ;;  %v571_v32 = vsel %vm570_vm4, %v975_v49, %v567_v15 }
 0x1ab   :  { %v531_v18 = vsel %vm1325_vm6, %v1294_v52, %v527_v24  ;;  %v686_v44 = vmul.f32 %v571_v32, %v1196_v40 }
 0x1ac   :  { %v463_v57 = vpop.xlane.xlu0 %462  ;;  %v477_v14 = vpop.xlane.xlu1 %476  ;;  %v605_v16 = vmul.f32 0.5, %v604_v10  ;;  %v682_v40 = vmul.f32 %v531_v18, %v1199_v41 }
 0x1ad   :  { %v492_v17 = vmul.f32 %v463_v57, %v1191_v34  ;;  %v499_v22 = vmul.f32 %v477_v14, %v1191_v34  ;;  %v706_v11 = vmul.f32 %v1345_v56, %v686_v44 }
 0x1ae   :  { %v606_v33 = vsub.f32 1.5, %v605_v16  ;;  %v702_v57 = vmul.f32 %v1345_v56, %v682_v40 }
 0x1af   :  { %v981_v9 = vpop.eup %980  ;;  %v1317_v28 = vadd.f32 1e-05, %v492_v17  ;;  %v1319_v29 = vadd.f32 1e-05, %v499_v22 }
 0x1b0   :  { %v983_v30 = vpop.eup %982  ;;  %v533_v31 = vmul.f32 %v981_v9, %v1303_v3  ;;  %v607_v53 = vmul.f32 %v1301_v1, %v606_v33  ;;  %vm539_vm9 = vweird.f32 %v981_v9 }
 0x1b1   :  { %v573_v35 = vmul.f32 %v983_v30, %v1305_v4  ;;  %984 = vrsqrt.f32 %v1317_v28  ;;  %vm579_vm11 = vweird.f32 %v983_v30  ;;  %vm540_vm14 = vmor %vm538_vm10, %vm539_vm9  ;;  %v1379_v4 = vld [vmem:[%s1560_s5] ss:$0 sm:$0xff]  ;;  %vm618_vm0 = vweird.f32 %v1319_v29 }
 0x1b2   :  { %v534_v20 = vmul.f32 %v981_v9, %v533_v31  ;;  %986 = vrsqrt.f32 %v1319_v29  ;;  %v611_v8 = vsel %vm1361_vm12, %v1301_v1, %v607_v53  ;;  %vm580_vm15 = vmor %vm578_vm13, %vm579_vm11  ;;  %vm548_vm10 = vweird.f32 %v1317_v28 }
 0x1b3   :  { %v574_v42 = vmul.f32 %v983_v30, %v573_v35  ;;  %v479_v43 = vpop.xlane.xlu2 %478  ;;  %v690_v17 = vmul.f32 %v611_v8, %v1208_v25  ;;  %v722_v35 = vadd.f32 %v1379_v4, %v702_v57 }
 0x1b4   :  { %v535_v45 = vmul.f32 0.5, %v534_v20  ;;  %v500_v46 = vmul.f32 %v479_v43, %v1191_v34  ;;  %v481_v47 = vpop.xlane.xlu0 %480  ;;  %v471_v49 = vpop.xlane.xlu1 %470 }
 0x1b5   :  { %v575_v54 = vmul.f32 0.5, %v574_v42  ;;  %v501_v52 = vmul.f32 %v481_v47, %v1191_v34  ;;  %v496_v55 = vmul.f32 %v471_v49, %v1191_v34  ;;  %v710_v43 = vmul.f32 %v1345_v56, %v690_v17 }
 0x1b6   :  { %v536_v58 = vsub.f32 1.5, %v535_v45  ;;  %v1348_v59 = vadd.f32 1e-05, %v500_v46 }
 0x1b7   :  { %v1350_v60 = vpop.eup %984  ;;  %v576_v62 = vsub.f32 1.5, %v575_v54  ;;  %v1353_v63 = vadd.f32 1e-05, %v501_v52  ;;  %v1368_v5 = vadd.f32 1e-05, %v496_v55  ;;  %v730_v8 = vadd.f32 %v1379_v4, %v710_v43 }
 0x1b8   :  { %v1355_v0 = vpop.eup %986  ;;  %v537_v2 = vmul.f32 %v981_v9, %v536_v58  ;;  %v543_v3 = vmul.f32 %v1350_v60, %v1317_v28  ;;  %988 = vrsqrt.f32 %v1348_v59  ;;  %vm628_vm4 = vweird.f32 %v1348_v59 }
 0x1b9   :  { %v577_v10 = vmul.f32 %v983_v30, %v576_v62  ;;  %v613_v48 = vmul.f32 %v1355_v0, %v1319_v29  ;;  %990 = vrsqrt.f32 %v1353_v63  ;;  %vm619_vm1 = vweird.f32 %v1355_v0 }
 0x1ba   :  { %v541_v14 = vsel %vm540_vm14, %v981_v9, %v537_v2  ;;  %992 = vrsqrt.f32 %v1334_v27  ;;  %v544_v6 = vmul.f32 %v1350_v60, %v543_v3  ;;  %vm620_vm2 = vmor %vm618_vm0, %vm619_vm1  ;;  %vm549_vm6 = vweird.f32 %v1350_v60 }
 0x1bb   :  { %v683_v1 = vmul.f32 %v541_v14, %v1223_v37  ;;  %v581_v15 = vsel %vm580_vm15, %v983_v30, %v577_v10  ;;  %v614_v16 = vmul.f32 %v1355_v0, %v613_v48  ;;  %994 = vrsqrt.f32 %v1368_v5  ;;  %vm1463_vm11 = vmor %vm548_vm10, %vm549_vm6 }
 0x1bc   :  { %v687_v22 = vmul.f32 %v581_v15, %v1220_v36  ;;  %v487_v9 = vpop.xlane.xlu0 %486  ;;  %v465_v24 = vpop.xlane.xlu1 %464  ;;  %v726_v30 = vadd.f32 %v1379_v4, %v706_v11  ;;  %v545_v45 = vmul.f32 0.5, %v544_v6  ;;  %vm638_vm8 = vweird.f32 %v1353_v63 }
 0x1bd   :  { %v703_v31 = vmul.f32 %v1345_v56, %v683_v1  ;;  %v615_v32 = vmul.f32 0.5, %v614_v16  ;;  %v504_v33 = vmul.f32 %v487_v9, %v1191_v34  ;;  %v493_v37 = vmul.f32 %v465_v24, %v1191_v34 }
 0x1be   :  { %v707_v25 = vmul.f32 %v1345_v56, %v687_v22  ;;  %v989_v36 = vpop.eup %988  ;;  %v546_v11 = vsub.f32 1.5, %v545_v45  ;;  %vm588_vm13 = vweird.f32 %v1368_v5 }
 0x1bf   :  { %v723_v38 = vadd.f32 %v1379_v4, %v703_v31  ;;  %v616_v20 = vsub.f32 1.5, %v615_v32  ;;  %v1401_v18 = vadd.f32 1e-05, %v504_v33  ;;  %v991_v42 = vpop.eup %990  ;;  %v623_v46 = vmul.f32 %v989_v36, %v1348_v59 }
 0x1c0   :  { %v727_v44 = vadd.f32 %v1379_v4, %v707_v25  ;;  %v1406_v47 = vpop.eup %992  ;;  %v633_v54 = vmul.f32 %v991_v42, %v1353_v63  ;;  %v1410_v52 = vadd.f32 1e-05, %v493_v37  ;;  %vm629_vm3 = vweird.f32 %v989_v36 }
 0x1c1   :  { %v890_v49 = vpack.c.bf16 %v723_v38, %v722_v35  ;;  %v617_v53 = vmul.f32 %v1355_v0, %v616_v20  ;;  %v1412_v55 = vpop.eup %994  ;;  %v624_v58 = vmul.f32 %v989_v36, %v623_v46  ;;  %996 = vrsqrt.f32 %v1401_v18  ;;  %vm630_vm7 = vmor %vm628_vm4, %vm629_vm3 }
 0x1c2   :  { %v900_v40 = vpack.c.bf16 %v727_v44, %v726_v30  ;;  %v634_v41 = vmul.f32 %v991_v42, %v633_v54  ;;  %v583_v2 = vmul.f32 %v1412_v55, %v1368_v5  ;;  %v643_v29 = vmul.f32 %v1406_v47, %v1334_v27 }
 0x1c3   :  { %891 = vst [vmem:[%s1561_s6] sm:$0xff] %v890_v49   ;;  %v621_v62 = vsel %vm620_vm2, %v1355_v0, %v617_v53  ;;  %v473_v3 = vpop.xlane.xlu2 %472  ;;  %v625_v48 = vmul.f32 0.5, %v624_v58  ;;  %998 = vrsqrt.f32 %v1410_v52  ;;  %vm639_vm5 = vweird.f32 %v991_v42 }
 0x1c4   :  { %935 = vst [vmem:[%s1561_s6 + $0x10] sm:$0xff] %v900_v40   ;;  %v691_v10 = vmul.f32 %v621_v62, %v1235_v51  ;;  %v635_v57 = vmul.f32 0.5, %v634_v41  ;;  %v584_v0 = vmul.f32 %v1412_v55, %v583_v2  ;;  %v489_v14 = vpop.xlane.xlu1 %488  ;;  %v497_v16 = vmul.f32 %v473_v3, %v1191_v34  ;;  %vm640_vm9 = vmor %vm638_vm8, %vm639_vm5 }
 0x1c5   :  { %v626_v15 = vsub.f32 1.5, %v625_v48  ;;  %v505_v31 = vmul.f32 %v489_v14, %v1191_v34  ;;  %v547_v33 = vmul.f32 %v1350_v60, %v546_v11  ;;  %v644_v63 = vmul.f32 %v1406_v47, %v643_v29 }
 0x1c6   :  { %v711_v1 = vmul.f32 %v1345_v56, %v691_v10  ;;  %v636_v17 = vsub.f32 1.5, %v635_v57  ;;  %v585_v22 = vmul.f32 0.5, %v584_v0  ;;  %v1438_v24 = vadd.f32 1e-05, %v497_v16 }
 0x1c7   :  { %v1435_v51 = vpop.eup %996  ;;  %v627_v9 = vmul.f32 %v989_v36, %v626_v15  ;;  %v1456_v46 = vadd.f32 1e-05, %v505_v31  ;;  %v551_v28 = vsel %vm1463_vm11, %v1350_v60, %v547_v33  ;;  %vm589_vm12 = vweird.f32 %v1412_v55 }
 0x1c8   :  { %v731_v6 = vadd.f32 %v1379_v4, %v711_v1  ;;  %v637_v32 = vmul.f32 %v991_v42, %v636_v17  ;;  %v663_v59 = vmul.f32 %v1435_v51, %v1401_v18  ;;  %1000 = vrsqrt.f32 %v1438_v24  ;;  %vm1482_vm14 = vmor %vm588_vm13, %vm589_vm12 }
 0x1c9   :  { %v631_v30 = vsel %vm630_vm7, %v989_v36, %v627_v9  ;;  %v999_v35 = vpop.eup %998  ;;  %v586_v20 = vsub.f32 1.5, %v585_v22  ;;  %1002 = vrsqrt.f32 %v1456_v46  ;;  %v645_v62 = vmul.f32 0.5, %v644_v63 }
 0x1ca   :  { %v910_v37 = vpack.c.bf16 %v731_v6, %v730_v8  ;;  %v692_v25 = vmul.f32 %v631_v30, %v1248_v12  ;;  %v641_v38 = vsel %vm640_vm9, %v991_v42, %v637_v32  ;;  %v664_v43 = vmul.f32 %v1435_v51, %v663_v59 }
 0x1cb   :  { %v485_v44 = vpop.xlane.xlu2 %484  ;;  %v693_v36 = vmul.f32 %v641_v38, %v1245_v61  ;;  %v553_v45 = vmul.f32 %v999_v35, %v1410_v52  ;;  %v587_v40 = vmul.f32 %v1412_v55, %v586_v20  ;;  %v684_v60 = vmul.f32 %v551_v28, %v1232_v50 }
 0x1cc   :  { %937 = vst [vmem:[%s1561_s6 + $0x20] sm:$0xff] %v910_v37   ;;  %v712_v12 = vmul.f32 %v1345_v56, %v692_v25  ;;  %v665_v42 = vmul.f32 0.5, %v664_v43  ;;  %v503_v49 = vmul.f32 %v485_v44, %v1191_v34  ;;  %vm559_vm15 = vweird.f32 %v999_v35 }
 0x1cd   :  { %v713_v54 = vmul.f32 %v1345_v56, %v693_v36  ;;  %v554_v61 = vmul.f32 %v999_v35, %v553_v45  ;;  %v591_v57 = vsel %vm1482_vm14, %v1412_v55, %v587_v40  ;;  %v646_v14 = vsub.f32 1.5, %v645_v62 }
 0x1ce   :  { %v1474_v34 = vadd.f32 1e-05, %v503_v49  ;;  %v1001_v58 = vpop.eup %1000  ;;  %v732_v41 = vadd.f32 %v1379_v4, %v712_v12  ;;  %v666_v8 = vsub.f32 1.5, %v665_v42  ;;  %vm558_vm0 = vweird.f32 %v1410_v52 }
 0x1cf   :  { %v733_v2 = vadd.f32 %v1379_v4, %v713_v54  ;;  %v555_v3 = vmul.f32 0.5, %v554_v61  ;;  %v593_v29 = vmul.f32 %v1001_v58, %v1438_v24  ;;  %v1003_v5 = vpop.eup %1002  ;;  %vm669_vm1 = vweird.f32 %v1435_v51  ;;  %vm560_vm2 = vmor %vm558_vm0, %vm559_vm15 }
 0x1d0   :  { %1004 = vrsqrt.f32 %v1474_v34  ;;  %v667_v50 = vmul.f32 %v1435_v51, %v666_v8  ;;  %v673_v16 = vmul.f32 %v1003_v5, %v1456_v46  ;;  %v704_v55 = vmul.f32 %v1345_v56, %v684_v60 }
 0x1d1   :  { %v915_v10 = vpack.c.bf16 %v733_v2, %v732_v41  ;;  %v556_v11 = vsub.f32 1.5, %v555_v3  ;;  %v594_v0 = vmul.f32 %v1001_v58, %v593_v29  ;;  %v688_v17 = vmul.f32 %v591_v57, %v1251_v13 }
 0x1d2   :  { %vm668_vm3 = vweird.f32 %v1401_v18  ;;  %vm599_vm4 = vweird.f32 %v1001_v58  ;;  %v674_v52 = vmul.f32 %v1003_v5, %v673_v16  ;;  %v647_v32 = vmul.f32 %v1406_v47, %v646_v14 }
 0x1d3   :  { %938 = vst [vmem:[%s1561_s6 + $0x28] sm:$0xff] %v915_v10   ;;  %v557_v1 = vmul.f32 %v999_v35, %v556_v11  ;;  %v595_v15 = vmul.f32 0.5, %v594_v0  ;;  %vm649_vm5 = vweird.f32 %v1406_v47  ;;  %vm1504_vm6 = vmor %vm668_vm3, %vm669_vm1  ;;  %vm598_vm7 = vweird.f32 %v1438_v24 }
 0x1d4   :  { %v675_v37 = vmul.f32 0.5, %v674_v52  ;;  %vm648_vm8 = vweird.f32 %v1334_v27  ;;  %v724_v30 = vadd.f32 %v1379_v4, %v704_v55  ;;  %vm600_vm9 = vmor %vm598_vm7, %vm599_vm4  ;;  %vm679_vm11 = vweird.f32 %v1003_v5 }
 0x1d5   :  { %v561_v22 = vsel %vm560_vm2, %v999_v35, %v557_v1  ;;  %v596_v31 = vsub.f32 1.5, %v595_v15  ;;  %v708_v35 = vmul.f32 %v1345_v56, %v688_v17  ;;  %vm1517_vm10 = vmor %vm648_vm8, %vm649_vm5  ;;  %vm678_vm12 = vweird.f32 %v1456_v46 }
 0x1d6   :  { %v1005_v6 = vpop.eup %1004  ;;  %v685_v9 = vmul.f32 %v561_v22, %v1265_v23  ;;  %v671_v23 = vsel %vm1504_vm6, %v1435_v51, %v667_v50  ;;  %v676_v51 = vsub.f32 1.5, %v675_v37  ;;  %v651_v43 = vsel %vm1517_vm10, %v1406_v47, %v647_v32  ;;  %vm680_vm13 = vmor %vm678_vm12, %vm679_vm11 }
 0x1d7   :  { %v653_v13 = vmul.f32 %v1005_v6, %v1474_v34  ;;  %v597_v33 = vmul.f32 %v1001_v58, %v596_v31  ;;  %v696_v27 = vmul.f32 %v671_v23, %v1262_v7  ;;  %vm659_vm14 = vweird.f32 %v1005_v6 }
 0x1d8   :  { %v705_v18 = vmul.f32 %v1345_v56, %v685_v9  ;;  %v677_v45 = vmul.f32 %v1003_v5, %v676_v51  ;;  %v694_v49 = vmul.f32 %v651_v43, %v1211_v26  ;;  %v728_v53 = vadd.f32 %v1379_v4, %v708_v35 }
 0x1d9   :  { %v654_v25 = vmul.f32 %v1005_v6, %v653_v13  ;;  %v601_v20 = vsel %vm600_vm9, %v1001_v58, %v597_v33  ;;  %vm658_vm15 = vweird.f32 %v1474_v34 }
 0x1da   :  { %v725_v38 = vadd.f32 %v1379_v4, %v705_v18  ;;  %v689_v44 = vmul.f32 %v601_v20, %v1277_v21  ;;  %v681_v7 = vsel %vm680_vm13, %v1003_v5, %v677_v45  ;;  %v716_v21 = vmul.f32 %v1345_v56, %v696_v27  ;;  %vm660_vm0 = vmor %vm658_vm15, %vm659_vm14 }
 0x1db   :  { %v655_v63 = vmul.f32 0.5, %v654_v25  ;;  %v697_v46 = vmul.f32 %v681_v7, %v1274_v19  ;;  %v714_v40 = vmul.f32 %v1345_v56, %v694_v49 }
 0x1dc   :  { %v895_v36 = vpack.c.bf16 %v725_v38, %v724_v30  ;;  %v709_v12 = vmul.f32 %v1345_v56, %v689_v44  ;;  %v736_v62 = vadd.f32 %v1379_v4, %v716_v21 }
 0x1dd   :  { %v656_v42 = vsub.f32 1.5, %v655_v63  ;;  %v717_v26 = vmul.f32 %v1345_v56, %v697_v46  ;;  %v734_v2 = vadd.f32 %v1379_v4, %v714_v40 }
 0x1de   :  { %934 = vst [vmem:[%s1561_s6 + $0x8] sm:$0xff] %v895_v36   ;;  %v729_v47 = vadd.f32 %v1379_v4, %v709_v12 }
 0x1df   :  { %v657_v54 = vmul.f32 %v1005_v6, %v656_v42  ;;  %v737_v34 = vadd.f32 %v1379_v4, %v717_v26 }
 0x1e0   :  { %v905_v61 = vpack.c.bf16 %v729_v47, %v728_v53 }
 0x1e1   :  { %v661_v28 = vsel %vm660_vm0, %v1005_v6, %v657_v54  ;;  %v925_v41 = vpack.c.bf16 %v737_v34, %v736_v62 }
 0x1e2   :  { %v695_v58 = vmul.f32 %v661_v28, %v1285_v39  ;;  %936 = vst [vmem:[%s1561_s6 + $0x18] sm:$0xff] %v905_v61  }
 0x1e3   :  { %940 = vst [vmem:[%s1561_s6 + $0x38] sm:$0xff] %v925_v41  }
 0x1e4   :  { %v715_v19 = vmul.f32 %v1345_v56, %v695_v58 }
 0x1e6   :  { %v735_v3 = vadd.f32 %v1379_v4, %v715_v19 }
 0x1e8   :  { %v920_v39 = vpack.c.bf16 %v735_v3, %v734_v2 }
 0x1ea   :  { %939 = vst [vmem:[%s1561_s6 + $0x30] sm:$0xff] %v920_v39  }
 0x1eb   :  { %774 = vsyncpa [#allocation4], 1 }

// kernel: encoder_forward.19
= control target key start
LH: loop header
LB: loop body
LE: loop exit
PB: predicated region body
PF: predicated region fallthrough
CT: control target
= control target key end

     0   :  { %13 = vsyncpa [#allocation4], 0  ;;  %s1586_s30 = smov [#allocation3]   ;;  %s1587_s10 = smov 64   ;;  %s2384_s0 = inlined_call_operand.vmem [shape: bf16[128,256], index: 0, kind: input, shape index: {}]   ;;  %s2385_s1 = inlined_call_operand.hbm [shape: bf16[256,128], index: 1, kind: input, shape index: {}]   ;;  %s2386_s2 = inlined_call_operand.vmem [shape: f32[1,128], index: 2, kind: input, shape index: {}]   ;;  %s2387_s3 = inlined_call_operand.vmem [shape: bf16[128,128], index: 3, kind: input, shape index: {}]   ;;  %s2388_s4 = inlined_call_operand.vmem [shape: f32[1,128], index: 4, kind: input, shape index: {}]   ;;  %s2389_s5 = inlined_call_operand.vmem [shape: f32[1,128], index: 5, kind: input, shape index: {}]   ;;  %s2390_s6 = inlined_call_operand.vmem [shape: f32[1,128], index: 6, kind: input, shape index: {}]   ;;  %s2391_s7 = inlined_call_operand.vmem [shape: f32[1,128], index: 7, kind: input, shape index: {}]   ;;  %s2392_s8 = inlined_call_operand.vmem [shape: f32[128,128], index: 8, kind: output, shape index: {}]  }
   0x1   :  { %s20_s29 = sshll.u32 %s2385_s1, 4  ;;  %s22_s9 = sshll.u32 %s1586_s30, 4  ;;  %s21_s29 = int_to_ptr.hbm [resolvable:$true] %s20_s29  ;;  %s23_s9 = int_to_ptr.vmem [resolvable:$true] %s22_s9 }
   0x2   :  { %s1588_s11 = smov 4  }
   0x3   :  { %28 = dma.hbm_to_vmem [thread:$0]  %s21_s29, 2048, %s23_s9, [#allocation4], %s1587_s10, %s1587_s10, %s1588_s11  }
   0x4   :  { %1584 = dma.done.wait [#allocation4], 2048  }
   0x5   :  { %1585 = vsyncadd [#allocation4], 4294965248  ;;  %v1421_v0 = vld [vmem:[#allocation3 + $0x38] sm:$0xff]  ;;  %v1420_v2 = vld [vmem:[#allocation3 + $0x30] sm:$0xff] }
   0x6   :  { %v1429_v1 = vld [vmem:[#allocation3 + $0x78] sm:$0xff]  ;;  %305 = vmatpush.bf16.msra.mxu0 %v1421_v0  ;;  %1469 = vmatpush.bf16.msra.mxu2 %v1421_v0  ;;  %v1428_v3 = vld [vmem:[#allocation3 + $0x70] sm:$0xff]  ;;  %v1419_v4 = vld [vmem:[#allocation3 + $0x28] sm:$0xff] }
   0x7   :  { %354 = vmatpush.bf16.msra.mxu1 %v1429_v1  ;;  %1477 = vmatpush.bf16.msra.mxu3 %v1429_v1  ;;  %v1427_v5 = vld [vmem:[#allocation3 + $0x68] sm:$0xff]  ;;  %v1418_v6 = vld [vmem:[#allocation3 + $0x20] sm:$0xff]  ;;  %v1417_v8 = vld [vmem:[#allocation3 + $0x18] sm:$0xff] }
   0x8   :  { %v1426_v7 = vld [vmem:[#allocation3 + $0x60] sm:$0xff]  ;;  %v1425_v9 = vld [vmem:[#allocation3 + $0x58] sm:$0xff]  ;;  %v1416_v10 = vld [vmem:[#allocation3 + $0x10] sm:$0xff] }
   0x9   :  { %v1424_v11 = vld [vmem:[#allocation3 + $0x50] sm:$0xff]  ;;  %v1415_v12 = vld [vmem:[#allocation3 + $0x8] sm:$0xff]  ;;  %v1414_v14 = vld [vmem:[#allocation3] sm:$0xff] }
   0xa   :  { %306 = vmatpush.bf16.msra.mxu0 %v1420_v2  ;;  %1470 = vmatpush.bf16.msra.mxu2 %v1420_v2  ;;  %v1423_v13 = vld [vmem:[#allocation3 + $0x48] sm:$0xff]  ;;  %v1422_v15 = vld [vmem:[#allocation3 + $0x40] sm:$0xff]  ;;  %v1280_v28 = vld [vmem:[%s2384_s0 + $0x10] sm:$0xf] }
   0xb   :  { %355 = vmatpush.bf16.msra.mxu1 %v1428_v3  ;;  %1478 = vmatpush.bf16.msra.mxu3 %v1428_v3  ;;  %v1272_v16 = vld [vmem:[%s2384_s0] sm:$0xf]  ;;  %v1399_v17 = vld [vmem:[%s2384_s0 + $0x4] sm:$0xf0]  ;;  %v1398_v20 = vld [vmem:[%s2384_s0 + $0x4] sm:$0xf] }
   0xc   :  { %v1304_v18 = vld [vmem:[%s2384_s0 + $0x40] sm:$0xf]  ;;  %v1407_v19 = vld [vmem:[%s2384_s0 + $0x44] sm:$0xf0]  ;;  %v1274_v21 = vld [vmem:[%s2384_s0 + $0x8] sm:$0xf0]  ;;  %v1273_v24 = vor.u32 %v1399_v17, %v1272_v16 }
   0xd   :  { %v1406_v22 = vld [vmem:[%s2384_s0 + $0x44] sm:$0xf]  ;;  %v1306_v23 = vld [vmem:[%s2384_s0 + $0x48] sm:$0xf0]  ;;  %v1305_v25 = vor.u32 %v1407_v19, %v1304_v18  ;;  %v1277_v26 = vor.u32 %v1398_v20, %v1274_v21  ;;  %v1401_v29 = vld [vmem:[%s2384_s0 + $0x14] sm:$0xf0] }
   0xe   :  { %307 = vmatpush.bf16.msra.mxu0 %v1419_v4  ;;  %1471 = vmatpush.bf16.msra.mxu2 %v1419_v4  ;;  %v1309_v27 = vor.u32 %v1406_v22, %v1306_v23  ;;  %v1312_v30 = vld [vmem:[%s2384_s0 + $0x50] sm:$0xf]  ;;  %v1409_v31 = vld [vmem:[%s2384_s0 + $0x54] sm:$0xf0]  ;;  %v1400_v32 = vld [vmem:[%s2384_s0 + $0x14] sm:$0xf]  ;;  %v1281_v36 = vor.u32 %v1401_v29, %v1280_v28 }
   0xf   :  { %356 = vmatpush.bf16.msra.mxu1 %v1427_v5  ;;  %1479 = vmatpush.bf16.msra.mxu3 %v1427_v5  ;;  %v1282_v33 = vld [vmem:[%s2384_s0 + $0x18] sm:$0xf0]  ;;  %v1408_v34 = vld [vmem:[%s2384_s0 + $0x54] sm:$0xf]  ;;  %v1313_v37 = vor.u32 %v1409_v31, %v1312_v30  ;;  %v1288_v40 = vld [vmem:[%s2384_s0 + $0x20] sm:$0xf] }
  0x10   :  { %v1314_v35 = vld [vmem:[%s2384_s0 + $0x58] sm:$0xf0]  ;;  %v1285_v38 = vor.u32 %v1400_v32, %v1282_v33  ;;  %v1403_v41 = vld [vmem:[%s2384_s0 + $0x24] sm:$0xf0]  ;;  %v1320_v42 = vld [vmem:[%s2384_s0 + $0x60] sm:$0xf] }
  0x11   :  { %v1317_v39 = vor.u32 %v1408_v34, %v1314_v35  ;;  %v1411_v43 = vld [vmem:[%s2384_s0 + $0x64] sm:$0xf0]  ;;  %v1402_v44 = vld [vmem:[%s2384_s0 + $0x24] sm:$0xf]  ;;  %v1290_v45 = vld [vmem:[%s2384_s0 + $0x28] sm:$0xf0]  ;;  %v1289_v48 = vor.u32 %v1403_v41, %v1288_v40 }
  0x12   :  { %308 = vmatpush.bf16.msra.mxu0 %v1418_v6  ;;  %1472 = vmatpush.bf16.msra.mxu2 %v1418_v6  ;;  %v1410_v46 = vld [vmem:[%s2384_s0 + $0x64] sm:$0xf]  ;;  %v1322_v47 = vld [vmem:[%s2384_s0 + $0x68] sm:$0xf0]  ;;  %v1321_v49 = vor.u32 %v1411_v43, %v1320_v42  ;;  %v1293_v50 = vor.u32 %v1402_v44, %v1290_v45  ;;  %v1296_v52 = vld [vmem:[%s2384_s0 + $0x30] sm:$0xf] }
  0x13   :  { %357 = vmatpush.bf16.msra.mxu1 %v1426_v7  ;;  %1480 = vmatpush.bf16.msra.mxu3 %v1426_v7  ;;  %v1325_v51 = vor.u32 %v1410_v46, %v1322_v47  ;;  %v1405_v53 = vld [vmem:[%s2384_s0 + $0x34] sm:$0xf0]  ;;  %v1328_v54 = vld [vmem:[%s2384_s0 + $0x70] sm:$0xf]  ;;  %v1404_v56 = vld [vmem:[%s2384_s0 + $0x34] sm:$0xf] }
  0x14   :  { %v1413_v55 = vld [vmem:[%s2384_s0 + $0x74] sm:$0xf0]  ;;  %v1298_v57 = vld [vmem:[%s2384_s0 + $0x38] sm:$0xf0]  ;;  %v1412_v58 = vld [vmem:[%s2384_s0 + $0x74] sm:$0xf]  ;;  %v1297_v60 = vor.u32 %v1405_v53, %v1296_v52 }
  0x15   :  { %v1330_v59 = vld [vmem:[%s2384_s0 + $0x78] sm:$0xf0]  ;;  %v1329_v61 = vor.u32 %v1413_v55, %v1328_v54  ;;  %v1301_v62 = vor.u32 %v1404_v56, %v1298_v57  ;;  %v1431_v0 = vld [vmem:[%s2387_s3] sm:$0xff]   ;;  %v1462_v23 = vld [vmem:[%s2387_s3 + $0x8] sm:$0xff]  }
  0x16   :  { %309 = vmatpush.bf16.msra.mxu0 %v1417_v8  ;;  %1473 = vmatpush.bf16.msra.mxu2 %v1417_v8  ;;  %v1333_v63 = vor.u32 %v1412_v58, %v1330_v59  ;;  %v1740_v2 = vld [vmem:[%s2386_s2] ss:$0 sm:$0xff]  ;;  %v1432_v5 = vunpack.c.l.bf16 %v1431_v0  ;;  %v1433_v17 = vunpack.c.h.bf16 %v1431_v0  ;;  %v1436_v29 = vunpack.c.l.bf16 %v1462_v23  ;;  %v1466_v32 = vld [vmem:[%s2387_s3 + $0x28] sm:$0xff]   ;;  %v1463_v55 = vld [vmem:[%s2387_s3 + $0x10] sm:$0xff]  }
  0x17   :  { %358 = vmatpush.bf16.msra.mxu1 %v1425_v9  ;;  %1481 = vmatpush.bf16.msra.mxu3 %v1425_v9  ;;  %v1465_v7 = vld [vmem:[%s2387_s3 + $0x20] sm:$0xff]   ;;  %v1437_v52 = vunpack.c.h.bf16 %v1462_v23  ;;  %v1467_v56 = vld [vmem:[%s2387_s3 + $0x30] sm:$0xff]  }
  0x18   :  { %v1449_v30 = vunpack.c.h.bf16 %v1465_v7  ;;  %v1456_v0 = vunpack.c.l.bf16 %v1467_v56 }
  0x1a   :  { %310 = vmatpush.bf16.msra.mxu0 %v1416_v10  ;;  %1474 = vmatpush.bf16.msra.mxu2 %v1416_v10 }
  0x1b   :  { %359 = vmatpush.bf16.msra.mxu1 %v1424_v11  ;;  %1482 = vmatpush.bf16.msra.mxu3 %v1424_v11 }
  0x1e   :  { %311 = vmatpush.bf16.msra.mxu0 %v1415_v12  ;;  %1475 = vmatpush.bf16.msra.mxu2 %v1415_v12 }
  0x1f   :  { %360 = vmatpush.bf16.msra.mxu1 %v1423_v13  ;;  %1483 = vmatpush.bf16.msra.mxu3 %v1423_v13  ;;  %v1448_v13 = vunpack.c.l.bf16 %v1465_v7 }
  0x22   :  { %312 = vmatpush.bf16.msra.mxu0 %v1414_v14  ;;  %1476 = vmatpush.bf16.msra.mxu2 %v1414_v14 }
  0x23   :  { %361 = vmatpush.bf16.msra.mxu1 %v1422_v15  ;;  %1484 = vmatpush.bf16.msra.mxu3 %v1422_v15 }
  0x25   :  { %313 = vmatmul.bf16.vlgmr.msra.gmra.mxu0 %v1273_v24  ;;  %333 = vmatmul.bf16.vlgmr.msra.gmra.mxu2 %v1305_v25 }
  0x26   :  { %362 = vmatmul.bf16.vlgmr.msra.gmra.mxu1 %v1277_v26  ;;  %382 = vmatmul.bf16.vlgmr.msra.gmra.mxu3 %v1309_v27 }
  0x35   :  { %318 = vmatmul.bf16.gmra.mxu0 %v1281_v36  ;;  %338 = vmatmul.bf16.gmra.mxu2 %v1313_v37 }
  0x36   :  { %367 = vmatmul.bf16.gmra.mxu1 %v1285_v38  ;;  %387 = vmatmul.bf16.gmra.mxu3 %v1317_v39  ;;  %v1452_v39 = vunpack.c.l.bf16 %v1466_v32 }
  0x45   :  { %323 = vmatmul.bf16.gmra.mxu0 %v1289_v48  ;;  %343 = vmatmul.bf16.gmra.mxu2 %v1321_v49  ;;  %v1453_v48 = vunpack.c.h.bf16 %v1466_v32 }
  0x46   :  { %372 = vmatmul.bf16.gmra.mxu1 %v1293_v50  ;;  %392 = vmatmul.bf16.gmra.mxu3 %v1325_v51 }
  0x55   :  { %328 = vmatmul.bf16.gmra.mxu0 %v1297_v60  ;;  %348 = vmatmul.bf16.gmra.mxu2 %v1329_v61 }
  0x56   :  { %377 = vmatmul.bf16.gmra.mxu1 %v1301_v62  ;;  %397 = vmatmul.bf16.gmra.mxu3 %v1333_v63  ;;  %v1440_v63 = vunpack.c.l.bf16 %v1463_v55 }
  0xa2   :  { %v314_v1 = vpop.f32.mrf.mxu0 }
  0xa3   :  { %v363_v3 = vpop.f32.mrf.mxu1 }
  0xa4   :  { %v364_v4 = vadd.f32 %v363_v3, %v314_v1 }
  0xa6   :  { %v458_v6 = vadd.f32 %v1740_v2, %v364_v4 }
  0xa8   :  { %v334_v8 = vpop.f32.mrf.mxu2  ;;  %v1746_v9 = vadd.f32 %v1432_v5, %v458_v6 }
  0xa9   :  { %v383_v10 = vpop.f32.mrf.mxu3 }
  0xaa   :  { %v384_v11 = vadd.f32 %v383_v10, %v334_v8  ;;  %522 = vadd.xlane.f32.xlu0 %v1746_v9  ;;  %v316_v12 = vpop.f32.mrf.mxu0  ;;  %v1464_v10 = vld [vmem:[%s2387_s3 + $0x18] sm:$0xff]  }
  0xab   :  { %v365_v14 = vpop.f32.mrf.mxu1 }
  0xac   :  { %v466_v15 = vadd.f32 %v1740_v2, %v384_v11  ;;  %v366_v16 = vadd.f32 %v365_v14, %v316_v12  ;;  %v1441_v14 = vunpack.c.h.bf16 %v1463_v55 }
  0xae   :  { %v459_v18 = vadd.f32 %v1740_v2, %v366_v16  ;;  %v1751_v19 = vadd.f32 %v1448_v13, %v466_v15  ;;  %v1457_v15 = vunpack.c.h.bf16 %v1467_v56 }
  0xb0   :  { %538 = vadd.xlane.f32.xlu2 %v1751_v19  ;;  %v336_v20 = vpop.f32.mrf.mxu2  ;;  %v1754_v21 = vadd.f32 %v1433_v17, %v459_v18 }
  0xb1   :  { %v385_v22 = vpop.f32.mrf.mxu3 }
  0xb2   :  { %v386_v24 = vadd.f32 %v385_v22, %v336_v20  ;;  %524 = vadd.xlane.f32.xlu0 %v1754_v21  ;;  %v319_v25 = vpop.f32.mrf.mxu0  ;;  %v1444_v20 = vunpack.c.l.bf16 %v1464_v10 }
  0xb3   :  { %v368_v26 = vpop.f32.mrf.mxu1 }
  0xb4   :  { %v467_v27 = vadd.f32 %v1740_v2, %v386_v24  ;;  %v369_v28 = vadd.f32 %v368_v26, %v319_v25  ;;  %v1468_v25 = vld [vmem:[%s2387_s3 + $0x38] sm:$0xff]  }
  0xb6   :  { %v460_v31 = vadd.f32 %v1740_v2, %v369_v28  ;;  %v1767_v35 = vadd.f32 %v1449_v30, %v467_v27 }
  0xb8   :  { %v339_v33 = vpop.f32.mrf.mxu2  ;;  %v1765_v34 = vadd.f32 %v1436_v29, %v460_v31  ;;  %v1460_v31 = vunpack.c.l.bf16 %v1468_v25 }
  0xb9   :  { %v388_v36 = vpop.f32.mrf.mxu3 }
  0xba   :  { %v389_v37 = vadd.f32 %v388_v36, %v339_v33  ;;  %526 = vadd.xlane.f32.xlu1 %v1765_v34  ;;  %540 = vadd.xlane.f32.xlu0 %v1767_v35  ;;  %v321_v38 = vpop.f32.mrf.mxu0 }
  0xbb   :  { %v370_v40 = vpop.f32.mrf.mxu1 }
  0xbc   :  { %v468_v41 = vadd.f32 %v1740_v2, %v389_v37  ;;  %v371_v43 = vadd.f32 %v370_v40, %v321_v38  ;;  %v1445_v37 = vunpack.c.h.bf16 %v1464_v10 }
  0xbe   :  { %v1772_v42 = vadd.f32 %v1452_v39, %v468_v41  ;;  %v461_v50 = vadd.f32 %v1740_v2, %v371_v43 }
  0xc0   :  { %v341_v44 = vpop.f32.mrf.mxu2  ;;  %v1786_v58 = vadd.f32 %v1437_v52, %v461_v50 }
  0xc1   :  { %v390_v45 = vpop.f32.mrf.mxu3 }
  0xc2   :  { %v391_v46 = vadd.f32 %v390_v45, %v341_v44  ;;  %542 = vadd.xlane.f32.xlu1 %v1772_v42  ;;  %v324_v47 = vpop.f32.mrf.mxu0  ;;  %v1461_v45 = vunpack.c.h.bf16 %v1468_v25 }
  0xc3   :  { %v373_v49 = vpop.f32.mrf.mxu1 }
  0xc4   :  { %v469_v51 = vadd.f32 %v1740_v2, %v391_v46  ;;  %v374_v53 = vadd.f32 %v373_v49, %v324_v47 }
  0xc6   :  { %v1777_v54 = vadd.f32 %v1453_v48, %v469_v51  ;;  %v462_v60 = vadd.f32 %v1740_v2, %v374_v53  ;;  %v1589_v48 = vmov 128.0  }
  0xc7   :  { %1494 = vrcp.f32 %v1589_v48 }
  0xc8   :  { %544 = vadd.xlane.f32.xlu2 %v1777_v54  ;;  %v344_v57 = vpop.f32.mrf.mxu2  ;;  %v1791_v5 = vadd.f32 %v1440_v63, %v462_v60 }
  0xc9   :  { %v393_v59 = vpop.f32.mrf.mxu3 }
  0xca   :  { %v394_v61 = vadd.f32 %v393_v59, %v344_v57  ;;  %528 = vadd.xlane.f32.xlu1 %v1786_v58  ;;  %v326_v62 = vpop.f32.mrf.mxu0 }
  0xcb   :  { %v375_v1 = vpop.f32.mrf.mxu1 }
  0xcc   :  { %v470_v3 = vadd.f32 %v1740_v2, %v394_v61  ;;  %v376_v4 = vadd.f32 %v375_v1, %v326_v62 }
  0xcd   :  { %v1495_v49 = vpop.eup %1494 }
  0xce   :  { %v1793_v6 = vadd.f32 %v1456_v0, %v470_v3  ;;  %v463_v11 = vadd.f32 %v1740_v2, %v376_v4  ;;  %v555_v50 = vmul.f32 128.0, %v1495_v49  ;;  %vm559_vm0 = vweird.f32 %v1495_v49 }
  0xd0   :  { %530 = vadd.xlane.f32.xlu2 %v1791_v5  ;;  %546 = vadd.xlane.f32.xlu0 %v1793_v6  ;;  %v346_v7 = vpop.f32.mrf.mxu2  ;;  %v1803_v23 = vadd.f32 %v1441_v14, %v463_v11  ;;  %v556_v51 = vsub.f32 1.0, %v555_v50 }
  0xd1   :  { %v395_v8 = vpop.f32.mrf.mxu3 }
  0xd2   :  { %v396_v12 = vadd.f32 %v395_v8, %v346_v7  ;;  %v329_v13 = vpop.f32.mrf.mxu0  ;;  %v557_v52 = vmul.f32 %v1495_v49, %v556_v51 }
  0xd3   :  { %v378_v16 = vpop.f32.mrf.mxu1 }
  0xd4   :  { %v471_v17 = vadd.f32 %v1740_v2, %v396_v12  ;;  %v379_v18 = vadd.f32 %v378_v16, %v329_v13  ;;  %v558_v53 = vadd.f32 %v1495_v49, %v557_v52 }
  0xd6   :  { %v464_v22 = vadd.f32 %v1740_v2, %v379_v18  ;;  %v1805_v24 = vadd.f32 %v1457_v15, %v471_v17  ;;  %v1827_v55 = vsel %vm559_vm0, %v1495_v49, %v558_v53 }
  0xd8   :  { %532 = vadd.xlane.f32.xlu2 %v1803_v23  ;;  %548 = vadd.xlane.f32.xlu1 %v1805_v24  ;;  %v349_v26 = vpop.f32.mrf.mxu2  ;;  %v1812_v27 = vadd.f32 %v1444_v20, %v464_v22 }
  0xd9   :  { %v398_v28 = vpop.f32.mrf.mxu3 }
  0xda   :  { %v399_v29 = vadd.f32 %v398_v28, %v349_v26  ;;  %534 = vadd.xlane.f32.xlu0 %v1812_v27  ;;  %v331_v30 = vpop.f32.mrf.mxu0 }
  0xdb   :  { %v380_v32 = vpop.f32.mrf.mxu1 }
  0xdc   :  { %v472_v33 = vadd.f32 %v1740_v2, %v399_v29  ;;  %v381_v36 = vadd.f32 %v380_v32, %v331_v30 }
  0xde   :  { %v465_v38 = vadd.f32 %v1740_v2, %v381_v36  ;;  %v1817_v39 = vadd.f32 %v1460_v31, %v472_v33 }
  0xe0   :  { %550 = vadd.xlane.f32.xlu2 %v1817_v39  ;;  %v351_v40 = vpop.f32.mrf.mxu2  ;;  %v1820_v41 = vadd.f32 %v1445_v37, %v465_v38 }
  0xe1   :  { %v400_v43 = vpop.f32.mrf.mxu3 }
  0xe2   :  { %v401_v44 = vadd.f32 %v400_v43, %v351_v40  ;;  %536 = vadd.xlane.f32.xlu1 %v1820_v41 }
  0xe4   :  { %v473_v46 = vadd.f32 %v1740_v2, %v401_v44 }
  0xe6   :  { %v1824_v47 = vadd.f32 %v1461_v45, %v473_v46 }
  0xe8   :  { %552 = vadd.xlane.f32.xlu0 %v1824_v47 }
 0x11d   :  { %v523_v56 = vpop.xlane.xlu0 %522 }
 0x11e   :  { %v561_v57 = vmul.f32 %v1827_v55, %v523_v56 }
 0x120   :  { %v1831_v59 = vsub.f32 %v1746_v9, %v561_v57 }
 0x122   :  { %v593_v2 = vmul.f32 %v1831_v59, %v1831_v59 }
 0x123   :  { %v539_v60 = vpop.xlane.xlu2 %538 }
 0x124   :  { %v569_v61 = vmul.f32 %v1827_v55, %v539_v60  ;;  %609 = vadd.xlane.f32.xlu1 %v593_v2 }
 0x125   :  { %v525_v62 = vpop.xlane.xlu0 %524 }
 0x126   :  { %v1837_v63 = vsub.f32 %v1751_v19, %v569_v61  ;;  %v562_v0 = vmul.f32 %v1827_v55, %v525_v62 }
 0x128   :  { %v1841_v1 = vsub.f32 %v1754_v21, %v562_v0  ;;  %v601_v9 = vmul.f32 %v1837_v63, %v1837_v63 }
 0x12a   :  { %625 = vadd.xlane.f32.xlu0 %v601_v9  ;;  %v594_v3 = vmul.f32 %v1841_v1, %v1841_v1 }
 0x12c   :  { %611 = vadd.xlane.f32.xlu2 %v594_v3 }
 0x12d   :  { %v527_v4 = vpop.xlane.xlu1 %526  ;;  %v541_v7 = vpop.xlane.xlu0 %540 }
 0x12e   :  { %v563_v8 = vmul.f32 %v1827_v55, %v527_v4  ;;  %v570_v19 = vmul.f32 %v1827_v55, %v541_v7 }
 0x130   :  { %v1850_v10 = vsub.f32 %v1765_v34, %v563_v8  ;;  %v1853_v21 = vsub.f32 %v1767_v35, %v570_v19 }
 0x132   :  { %v595_v11 = vmul.f32 %v1850_v10, %v1850_v10  ;;  %v602_v12 = vmul.f32 %v1853_v21, %v1853_v21 }
 0x134   :  { %613 = vadd.xlane.f32.xlu0 %v595_v11  ;;  %627 = vadd.xlane.f32.xlu1 %v602_v12 }
 0x135   :  { %v543_v13 = vpop.xlane.xlu1 %542 }
 0x136   :  { %v571_v14 = vmul.f32 %v1827_v55, %v543_v13 }
 0x138   :  { %v1861_v15 = vsub.f32 %v1772_v42, %v571_v14 }
 0x13a   :  { %v603_v34 = vmul.f32 %v1861_v15, %v1861_v15 }
 0x13b   :  { %v545_v16 = vpop.xlane.xlu2 %544 }
 0x13c   :  { %v572_v35 = vmul.f32 %v1827_v55, %v545_v16  ;;  %629 = vadd.xlane.f32.xlu2 %v603_v34 }
 0x13d   :  { %v529_v17 = vpop.xlane.xlu1 %528 }
 0x13e   :  { %v1867_v18 = vsub.f32 %v1777_v54, %v572_v35  ;;  %v564_v20 = vmul.f32 %v1827_v55, %v529_v17 }
 0x140   :  { %v1871_v22 = vsub.f32 %v1786_v58, %v564_v20  ;;  %v604_v42 = vmul.f32 %v1867_v18, %v1867_v18 }
 0x142   :  { %631 = vadd.xlane.f32.xlu0 %v604_v42  ;;  %v596_v25 = vmul.f32 %v1871_v22, %v1871_v22 }
 0x143   :  { %v531_v26 = vpop.xlane.xlu2 %530  ;;  %v547_v28 = vpop.xlane.xlu0 %546 }
 0x144   :  { %v565_v29 = vmul.f32 %v1827_v55, %v531_v26  ;;  %v573_v30 = vmul.f32 %v1827_v55, %v547_v28  ;;  %615 = vadd.xlane.f32.xlu1 %v596_v25 }
 0x146   :  { %v1880_v54 = vsub.f32 %v1791_v5, %v565_v29  ;;  %v1883_v58 = vsub.f32 %v1793_v6, %v573_v30  ;;  %v1938_v30 = vld [vmem:[%s2388_s4] ss:$0 sm:$0xff] }
 0x148   :  { %v597_v31 = vmul.f32 %v1880_v54, %v1880_v54  ;;  %v605_v32 = vmul.f32 %v1883_v58, %v1883_v58 }
 0x14a   :  { %617 = vadd.xlane.f32.xlu2 %v597_v31 }
 0x14b   :  { %v533_v33 = vpop.xlane.xlu2 %532  ;;  %v549_v37 = vpop.xlane.xlu1 %548 }
 0x14c   :  { %v566_v36 = vmul.f32 %v1827_v55, %v533_v33  ;;  %633 = vadd.xlane.f32.xlu1 %v605_v32  ;;  %v574_v51 = vmul.f32 %v1827_v55, %v549_v37  ;;  %v1945_v37 = vld [vmem:[%s2389_s5] ss:$0 sm:$0xff] }
 0x14d   :  { %v535_v38 = vpop.xlane.xlu0 %534 }
 0x14e   :  { %v1891_v40 = vsub.f32 %v1803_v23, %v566_v36  ;;  %v567_v5 = vmul.f32 %v1827_v55, %v535_v38 }
 0x150   :  { %v1895_v6 = vsub.f32 %v1812_v27, %v567_v5  ;;  %v598_v43 = vmul.f32 %v1891_v40, %v1891_v40 }
 0x152   :  { %619 = vadd.xlane.f32.xlu0 %v598_v43  ;;  %v599_v44 = vmul.f32 %v1895_v6, %v1895_v6 }
 0x153   :  { %v551_v45 = vpop.xlane.xlu2 %550 }
 0x154   :  { %v575_v46 = vmul.f32 %v1827_v55, %v551_v45  ;;  %621 = vadd.xlane.f32.xlu1 %v599_v44 }
 0x155   :  { %v537_v48 = vpop.xlane.xlu1 %536 }
 0x156   :  { %v1903_v23 = vsub.f32 %v1817_v39, %v575_v46  ;;  %v568_v49 = vmul.f32 %v1827_v55, %v537_v48  ;;  %v1916_v39 = vsub.f32 %v1805_v24, %v574_v51 }
 0x158   :  { %v1907_v27 = vsub.f32 %v1820_v41, %v568_v49  ;;  %v607_v50 = vmul.f32 %v1903_v23, %v1903_v23  ;;  %v606_v2 = vmul.f32 %v1916_v39, %v1916_v39 }
 0x15a   :  { %637 = vadd.xlane.f32.xlu0 %v607_v50  ;;  %v600_v52 = vmul.f32 %v1907_v27, %v1907_v27 }
 0x15b   :  { %v553_v53 = vpop.xlane.xlu0 %552 }
 0x15c   :  { %v576_v56 = vmul.f32 %v1827_v55, %v553_v53  ;;  %623 = vadd.xlane.f32.xlu2 %v600_v52 }
 0x15e   :  { %v1919_v57 = vsub.f32 %v1824_v47, %v576_v56 }
 0x160   :  { %v608_v41 = vmul.f32 %v1919_v57, %v1919_v57 }
 0x162   :  { %639 = vadd.xlane.f32.xlu1 %v608_v41 }
 0x164   :  { %635 = vadd.xlane.f32.xlu2 %v606_v2 }
 0x197   :  { %v610_v60 = vpop.xlane.xlu1 %609 }
 0x198   :  { %v641_v61 = vmul.f32 %v610_v60, %v1827_v55 }
 0x19a   :  { %v657_v62 = vadd.f32 1e-05, %v641_v61 }
 0x19c   :  { %1496 = vrsqrt.f32 %v657_v62  ;;  %vm679_vm2 = vweird.f32 %v657_v62 }
 0x19d   :  { %v626_v0 = vpop.xlane.xlu0 %625 }
 0x19e   :  { %v649_v24 = vmul.f32 %v626_v0, %v1827_v55 }
 0x19f   :  { %v612_v9 = vpop.xlane.xlu2 %611 }
 0x1a0   :  { %v665_v3 = vadd.f32 1e-05, %v649_v24  ;;  %v642_v47 = vmul.f32 %v612_v9, %v1827_v55 }
 0x1a2   :  { %v1497_v4 = vpop.eup %1496  ;;  %1498 = vrsqrt.f32 %v665_v3  ;;  %v658_v7 = vadd.f32 1e-05, %v642_v47  ;;  %vm759_vm5 = vweird.f32 %v665_v3 }
 0x1a3   :  { %v674_v8 = vmul.f32 %v1497_v4, %v657_v62  ;;  %vm680_vm1 = vweird.f32 %v1497_v4 }
 0x1a4   :  { %1500 = vrsqrt.f32 %v658_v7  ;;  %vm681_vm3 = vmor %vm679_vm2, %vm680_vm1  ;;  %vm689_vm8 = vweird.f32 %v658_v7 }
 0x1a5   :  { %v675_v19 = vmul.f32 %v1497_v4, %v674_v8 }
 0x1a7   :  { %v676_v11 = vmul.f32 0.5, %v675_v19  ;;  %v628_v12 = vpop.xlane.xlu1 %627  ;;  %v614_v13 = vpop.xlane.xlu0 %613 }
 0x1a8   :  { %v1499_v14 = vpop.eup %1498  ;;  %v650_v34 = vmul.f32 %v628_v12, %v1827_v55  ;;  %v643_v16 = vmul.f32 %v614_v13, %v1827_v55 }
 0x1a9   :  { %v677_v35 = vsub.f32 1.5, %v676_v11  ;;  %v754_v17 = vmul.f32 %v1499_v14, %v665_v3  ;;  %vm760_vm4 = vweird.f32 %v1499_v14 }
 0x1aa   :  { %v1501_v20 = vpop.eup %1500  ;;  %v1930_v42 = vadd.f32 1e-05, %v650_v34  ;;  %v1932_v25 = vadd.f32 1e-05, %v643_v16  ;;  %vm761_vm7 = vmor %vm759_vm5, %vm760_vm4 }
 0x1ab   :  { %v678_v26 = vmul.f32 %v1497_v4, %v677_v35  ;;  %v755_v28 = vmul.f32 %v1499_v14, %v754_v17  ;;  %v684_v29 = vmul.f32 %v1501_v20, %v658_v7  ;;  %vm690_vm6 = vweird.f32 %v1501_v20 }
 0x1ac   :  { %1502 = vrsqrt.f32 %v1930_v42  ;;  %vm691_vm9 = vmor %vm689_vm8, %vm690_vm6  ;;  %vm769_vm12 = vweird.f32 %v1930_v42  ;;  %vm699_vm14 = vweird.f32 %v1932_v25 }
 0x1ad   :  { %v756_v31 = vmul.f32 0.5, %v755_v28  ;;  %v685_v32 = vmul.f32 %v1501_v20, %v684_v29  ;;  %1504 = vrsqrt.f32 %v1932_v25  ;;  %v682_v33 = vsel %vm681_vm3, %v1497_v4, %v678_v26 }
 0x1ae   :  { %v833_v36 = vmul.f32 %v682_v33, %v1831_v59 }
 0x1af   :  { %v757_v38 = vsub.f32 1.5, %v756_v31  ;;  %v686_v5 = vmul.f32 0.5, %v685_v32  ;;  %v630_v43 = vpop.xlane.xlu2 %629 }
 0x1b0   :  { %v651_v44 = vmul.f32 %v630_v43, %v1827_v55  ;;  %v853_v45 = vmul.f32 %v1938_v30, %v833_v36 }
 0x1b1   :  { %v758_v46 = vmul.f32 %v1499_v14, %v757_v38  ;;  %v687_v48 = vsub.f32 1.5, %v686_v5 }
 0x1b2   :  { %v1503_v49 = vpop.eup %1502  ;;  %v1949_v59 = vadd.f32 1e-05, %v651_v44  ;;  %v1952_v50 = vadd.f32 %v1945_v37, %v853_v45 }
 0x1b3   :  { %v1505_v51 = vpop.eup %1504  ;;  %v688_v52 = vmul.f32 %v1501_v20, %v687_v48  ;;  %v764_v53 = vmul.f32 %v1503_v49, %v1930_v42  ;;  %v762_v56 = vsel %vm761_vm7, %v1499_v14, %v758_v46  ;;  %vm770_vm10 = vweird.f32 %v1503_v49 }
 0x1b4   :  { %v694_v41 = vmul.f32 %v1505_v51, %v1932_v25  ;;  %1506 = vrsqrt.f32 %v1949_v59  ;;  %889 = vadd.xlane.f32.xlu2 %v1952_v50  ;;  %v841_v61 = vmul.f32 %v762_v56, %v1837_v63  ;;  %vm700_vm11 = vweird.f32 %v1505_v51  ;;  %vm771_vm13 = vmor %vm769_vm12, %vm770_vm10 }
 0x1b5   :  { %v765_v2 = vmul.f32 %v1503_v49, %v764_v53  ;;  %v632_v60 = vpop.xlane.xlu0 %631  ;;  %v692_v62 = vsel %vm691_vm9, %v1501_v20, %v688_v52  ;;  %vm701_vm15 = vmor %vm699_vm14, %vm700_vm11  ;;  %vm779_vm1 = vweird.f32 %v1949_v59 }
 0x1b6   :  { %v695_v0 = vmul.f32 %v1505_v51, %v694_v41  ;;  %v652_v24 = vmul.f32 %v632_v60, %v1827_v55  ;;  %v834_v9 = vmul.f32 %v692_v62, %v1841_v1  ;;  %v861_v4 = vmul.f32 %v1938_v30, %v841_v61 }
 0x1b7   :  { %v766_v3 = vmul.f32 0.5, %v765_v2  ;;  %v616_v47 = vpop.xlane.xlu1 %615 }
 0x1b8   :  { %v696_v7 = vmul.f32 0.5, %v695_v0  ;;  %v1962_v8 = vadd.f32 1e-05, %v652_v24  ;;  %v644_v19 = vmul.f32 %v616_v47, %v1827_v55  ;;  %v854_v11 = vmul.f32 %v1938_v30, %v834_v9 }
 0x1b9   :  { %v767_v12 = vsub.f32 1.5, %v766_v3  ;;  %v1967_v63 = vadd.f32 %v1945_v37, %v861_v4 }
 0x1ba   :  { %v1507_v13 = vpop.eup %1506  ;;  %v697_v14 = vsub.f32 1.5, %v696_v7  ;;  %1508 = vrsqrt.f32 %v1962_v8  ;;  %v1970_v1 = vadd.f32 1e-05, %v644_v19  ;;  %v1976_v35 = vadd.f32 %v1945_v37, %v854_v11 }
 0x1bb   :  { %v768_v34 = vmul.f32 %v1503_v49, %v767_v12  ;;  %v774_v16 = vmul.f32 %v1507_v13, %v1949_v59  ;;  %905 = vadd.xlane.f32.xlu1 %v1967_v63  ;;  %vm780_vm0 = vweird.f32 %v1507_v13  ;;  %vm789_vm5 = vweird.f32 %v1962_v8 }
 0x1bc   :  { %v698_v17 = vmul.f32 %v1505_v51, %v697_v14  ;;  %1510 = vrsqrt.f32 %v1970_v1  ;;  %891 = vadd.xlane.f32.xlu0 %v1976_v35  ;;  %vm781_vm2 = vmor %vm779_vm1, %vm780_vm0  ;;  %vm709_vm7 = vweird.f32 %v1970_v1 }
 0x1bd   :  { %v775_v20 = vmul.f32 %v1507_v13, %v774_v16  ;;  %v618_v26 = vpop.xlane.xlu2 %617  ;;  %v772_v28 = vsel %vm771_vm13, %v1503_v49, %v768_v34 }
 0x1be   :  { %v645_v42 = vmul.f32 %v618_v26, %v1827_v55  ;;  %v842_v29 = vmul.f32 %v772_v28, %v1853_v21  ;;  %v702_v31 = vsel %vm701_vm15, %v1505_v51, %v698_v17 }
 0x1bf   :  { %v776_v32 = vmul.f32 0.5, %v775_v20  ;;  %v634_v33 = vpop.xlane.xlu1 %633  ;;  %v835_v36 = vmul.f32 %v702_v31, %v1850_v10 }
 0x1c0   :  { %v1509_v38 = vpop.eup %1508  ;;  %v1984_v5 = vadd.f32 1e-05, %v645_v42  ;;  %v653_v25 = vmul.f32 %v634_v33, %v1827_v55  ;;  %v862_v43 = vmul.f32 %v1938_v30, %v842_v29 }
 0x1c1   :  { %v777_v44 = vsub.f32 1.5, %v776_v32  ;;  %v784_v45 = vmul.f32 %v1509_v38, %v1962_v8  ;;  %v855_v46 = vmul.f32 %v1938_v30, %v835_v36  ;;  %vm790_vm3 = vweird.f32 %v1509_v38 }
 0x1c2   :  { %v1511_v48 = vpop.eup %1510  ;;  %1512 = vrsqrt.f32 %v1984_v5  ;;  %v1991_v21 = vadd.f32 1e-05, %v653_v25  ;;  %v1994_v10 = vadd.f32 %v1945_v37, %v862_v43  ;;  %vm791_vm6 = vmor %vm789_vm5, %vm790_vm3  ;;  %vm719_vm11 = vweird.f32 %v1984_v5 }
 0x1c3   :  { %v778_v49 = vmul.f32 %v1507_v13, %v777_v44  ;;  %v785_v51 = vmul.f32 %v1509_v38, %v784_v45  ;;  %v704_v52 = vmul.f32 %v1511_v48, %v1970_v1  ;;  %v2001_v53 = vadd.f32 %v1945_v37, %v855_v46 }
 0x1c4   :  { %1514 = vrsqrt.f32 %v1991_v21  ;;  %907 = vadd.xlane.f32.xlu2 %v1994_v10  ;;  %vm710_vm4 = vweird.f32 %v1511_v48  ;;  %vm799_vm13 = vweird.f32 %v1991_v21 }
 0x1c5   :  { %v786_v56 = vmul.f32 0.5, %v785_v51  ;;  %v705_v41 = vmul.f32 %v1511_v48, %v704_v52  ;;  %v620_v2 = vpop.xlane.xlu0 %619  ;;  %v782_v60 = vsel %vm781_vm2, %v1507_v13, %v778_v49  ;;  %893 = vadd.xlane.f32.xlu1 %v2001_v53  ;;  %vm711_vm8 = vmor %vm709_vm7, %vm710_vm4 }
 0x1c6   :  { %v646_v61 = vmul.f32 %v620_v2, %v1827_v55  ;;  %v843_v59 = vmul.f32 %v782_v60, %v1861_v15 }
 0x1c7   :  { %v787_v62 = vsub.f32 1.5, %v786_v56  ;;  %v706_v0 = vmul.f32 0.5, %v705_v41  ;;  %v622_v24 = vpop.xlane.xlu1 %621 }
 0x1c8   :  { %v1513_v9 = vpop.eup %1512  ;;  %v2006_v3 = vadd.f32 1e-05, %v646_v61  ;;  %v647_v47 = vmul.f32 %v622_v24, %v1827_v55  ;;  %v863_v4 = vmul.f32 %v1938_v30, %v843_v59 }
 0x1c9   :  { %v788_v7 = vmul.f32 %v1509_v38, %v787_v62  ;;  %v707_v19 = vsub.f32 1.5, %v706_v0  ;;  %v714_v11 = vmul.f32 %v1513_v9, %v1984_v5  ;;  %vm720_vm9 = vweird.f32 %v1513_v9 }
 0x1ca   :  { %v1515_v12 = vpop.eup %1514  ;;  %1516 = vrsqrt.f32 %v2006_v3  ;;  %v2013_v15 = vadd.f32 1e-05, %v647_v47  ;;  %v2016_v13 = vadd.f32 %v1945_v37, %v863_v4  ;;  %vm721_vm12 = vmor %vm719_vm11, %vm720_vm9  ;;  %vm729_vm1 = vweird.f32 %v2006_v3 }
 0x1cb   :  { %v708_v14 = vmul.f32 %v1511_v48, %v707_v19  ;;  %v715_v34 = vmul.f32 %v1513_v9, %v714_v11  ;;  %v794_v16 = vmul.f32 %v1515_v12, %v1991_v21  ;;  %v792_v8 = vsel %vm791_vm6, %v1509_v38, %v788_v7 }
 0x1cc   :  { %1518 = vrsqrt.f32 %v2013_v15  ;;  %909 = vadd.xlane.f32.xlu0 %v2016_v13  ;;  %v844_v28 = vmul.f32 %v792_v8, %v1867_v18  ;;  %vm800_vm10 = vweird.f32 %v1515_v12  ;;  %vm739_vm3 = vweird.f32 %v2013_v15 }
 0x1cd   :  { %v716_v17 = vmul.f32 0.5, %v715_v34  ;;  %v795_v20 = vmul.f32 %v1515_v12, %v794_v16  ;;  %v638_v26 = vpop.xlane.xlu0 %637  ;;  %v712_v42 = vsel %vm711_vm8, %v1511_v48, %v708_v14  ;;  %vm801_vm14 = vmor %vm799_vm13, %vm800_vm10 }
 0x1ce   :  { %v655_v29 = vmul.f32 %v638_v26, %v1827_v55  ;;  %v836_v31 = vmul.f32 %v712_v42, %v1871_v22  ;;  %v864_v36 = vmul.f32 %v1938_v30, %v844_v28 }
 0x1cf   :  { %v717_v1 = vsub.f32 1.5, %v716_v17  ;;  %v796_v32 = vmul.f32 0.5, %v795_v20  ;;  %v624_v33 = vpop.xlane.xlu2 %623 }
 0x1d0   :  { %v2026_v25 = vpop.eup %1516  ;;  %v2028_v43 = vadd.f32 1e-05, %v655_v29  ;;  %v648_v38 = vmul.f32 %v624_v33, %v1827_v55  ;;  %v856_v44 = vmul.f32 %v1938_v30, %v836_v31  ;;  %v2039_v49 = vadd.f32 %v1945_v37, %v864_v36 }
 0x1d1   :  { %v718_v18 = vmul.f32 %v1513_v9, %v717_v1  ;;  %v797_v45 = vsub.f32 1.5, %v796_v32  ;;  %v724_v22 = vmul.f32 %v2026_v25, %v2006_v3  ;;  %vm730_vm15 = vweird.f32 %v2026_v25 }
 0x1d2   :  { %v1519_v46 = vpop.eup %1518  ;;  %1520 = vrsqrt.f32 %v2028_v43  ;;  %v2036_v48 = vadd.f32 1e-05, %v648_v38  ;;  %911 = vadd.xlane.f32.xlu1 %v2039_v49  ;;  %v2047_v5 = vadd.f32 %v1945_v37, %v856_v44  ;;  %vm731_vm2 = vmor %vm729_vm1, %vm730_vm15  ;;  %vm819_vm7 = vweird.f32 %v2028_v43 }
 0x1d3   :  { %v798_v51 = vmul.f32 %v1515_v12, %v797_v45  ;;  %v725_v52 = vmul.f32 %v2026_v25, %v724_v22  ;;  %v734_v56 = vmul.f32 %v1519_v46, %v2013_v15  ;;  %v722_v41 = vsel %vm721_vm12, %v1513_v9, %v718_v18 }
 0x1d4   :  { %1522 = vrsqrt.f32 %v2036_v48  ;;  %v837_v59 = vmul.f32 %v722_v41, %v1880_v54  ;;  %895 = vadd.xlane.f32.xlu2 %v2047_v5  ;;  %vm740_vm0 = vweird.f32 %v1519_v46  ;;  %vm749_vm9 = vweird.f32 %v2036_v48 }
 0x1d5   :  { %v726_v2 = vmul.f32 0.5, %v725_v52  ;;  %v735_v60 = vmul.f32 %v1519_v46, %v734_v56  ;;  %v640_v61 = vpop.xlane.xlu1 %639  ;;  %v802_v62 = vsel %vm801_vm14, %v1515_v12, %v798_v51  ;;  %vm741_vm4 = vmor %vm739_vm3, %vm740_vm0 }
 0x1d6   :  { %v656_v21 = vmul.f32 %v640_v61, %v1827_v55  ;;  %v845_v0 = vmul.f32 %v802_v62, %v1883_v58  ;;  %v857_v7 = vmul.f32 %v1938_v30, %v837_v59 }
 0x1d7   :  { %v727_v24 = vsub.f32 1.5, %v726_v2  ;;  %v736_v47 = vmul.f32 0.5, %v735_v60  ;;  %v636_v4 = vpop.xlane.xlu2 %635 }
 0x1d8   :  { %v1521_v19 = vpop.eup %1520  ;;  %v2055_v9 = vadd.f32 1e-05, %v656_v21  ;;  %v654_v11 = vmul.f32 %v636_v4, %v1827_v55  ;;  %v865_v54 = vmul.f32 %v1938_v30, %v845_v0  ;;  %v2064_v8 = vadd.f32 %v1945_v37, %v857_v7 }
 0x1d9   :  { %v728_v12 = vmul.f32 %v2026_v25, %v727_v24  ;;  %v737_v14 = vsub.f32 1.5, %v736_v47  ;;  %v814_v58 = vmul.f32 %v1521_v19, %v2028_v43  ;;  %vm820_vm5 = vweird.f32 %v1521_v19 }
 0x1da   :  { %v1523_v34 = vpop.eup %1522  ;;  %1524 = vrsqrt.f32 %v2055_v9  ;;  %v670_v16 = vadd.f32 1e-05, %v654_v11  ;;  %897 = vadd.xlane.f32.xlu0 %v2064_v8  ;;  %v2070_v28 = vadd.f32 %v1945_v37, %v865_v54  ;;  %vm821_vm8 = vmor %vm819_vm7, %vm820_vm5  ;;  %vm829_vm12 = vweird.f32 %v2055_v9 }
 0x1db   :  { %v738_v17 = vmul.f32 %v1519_v46, %v737_v14  ;;  %v815_v20 = vmul.f32 %v1521_v19, %v814_v58  ;;  %v744_v26 = vmul.f32 %v1523_v34, %v2036_v48  ;;  %v732_v3 = vsel %vm731_vm2, %v2026_v25, %v728_v12 }
 0x1dc   :  { %1526 = vrsqrt.f32 %v670_v16  ;;  %v838_v31 = vmul.f32 %v732_v3, %v1891_v40  ;;  %913 = vadd.xlane.f32.xlu2 %v2070_v28  ;;  %vm750_vm6 = vweird.f32 %v1523_v34  ;;  %vm809_vm15 = vweird.f32 %v670_v16 }
 0x1dd   :  { %v816_v42 = vmul.f32 0.5, %v815_v20  ;;  %v745_v29 = vmul.f32 %v1523_v34, %v744_v26  ;;  %v742_v1 = vsel %vm741_vm4, %v1519_v46, %v738_v17  ;;  %vm751_vm10 = vmor %vm749_vm9, %vm750_vm6 }
 0x1de   :  { %v839_v15 = vmul.f32 %v742_v1, %v1895_v6  ;;  %v858_v36 = vmul.f32 %v1938_v30, %v838_v31 }
 0x1df   :  { %v817_v32 = vsub.f32 1.5, %v816_v42  ;;  %v746_v33 = vmul.f32 0.5, %v745_v29 }
 0x1e0   :  { %v1525_v38 = vpop.eup %1524  ;;  %v859_v44 = vmul.f32 %v1938_v30, %v839_v15  ;;  %v2081_v40 = vadd.f32 %v1945_v37, %v858_v36 }
 0x1e1   :  { %v818_v18 = vmul.f32 %v1521_v19, %v817_v32  ;;  %v747_v45 = vsub.f32 1.5, %v746_v33  ;;  %v824_v25 = vmul.f32 %v1525_v38, %v2055_v9  ;;  %vm830_vm11 = vweird.f32 %v1525_v38 }
 0x1e2   :  { %v1527_v22 = vpop.eup %1526  ;;  %v2084_v6 = vadd.f32 %v1945_v37, %v859_v44  ;;  %899 = vadd.xlane.f32.xlu1 %v2081_v40  ;;  %vm831_vm14 = vmor %vm829_vm12, %vm830_vm11 }
 0x1e3   :  { %v748_v46 = vmul.f32 %v1523_v34, %v747_v45  ;;  %v825_v51 = vmul.f32 %v1525_v38, %v824_v25  ;;  %v804_v52 = vmul.f32 %v1527_v22, %v670_v16  ;;  %v822_v56 = vsel %vm821_vm8, %v1521_v19, %v818_v18 }
 0x1e4   :  { %v847_v43 = vmul.f32 %v822_v56, %v1903_v23  ;;  %901 = vadd.xlane.f32.xlu2 %v2084_v6  ;;  %vm810_vm13 = vweird.f32 %v1527_v22 }
 0x1e5   :  { %v826_v41 = vmul.f32 0.5, %v825_v51  ;;  %v805_v2 = vmul.f32 %v1527_v22, %v804_v52  ;;  %v752_v60 = vsel %vm751_vm10, %v1523_v34, %v748_v46  ;;  %vm811_vm0 = vmor %vm809_vm15, %vm810_vm13 }
 0x1e6   :  { %v840_v61 = vmul.f32 %v752_v60, %v1907_v27  ;;  %v867_v48 = vmul.f32 %v1938_v30, %v847_v43 }
 0x1e7   :  { %v827_v59 = vsub.f32 1.5, %v826_v41  ;;  %v806_v62 = vmul.f32 0.5, %v805_v2 }
 0x1e8   :  { %v860_v21 = vmul.f32 %v1938_v30, %v840_v61  ;;  %v2095_v47 = vadd.f32 %v1945_v37, %v867_v48 }
 0x1e9   :  { %v828_v0 = vmul.f32 %v1525_v38, %v827_v59  ;;  %v807_v24 = vsub.f32 1.5, %v806_v62 }
 0x1ea   :  { %v2098_v23 = vadd.f32 %v1945_v37, %v860_v21  ;;  %917 = vadd.xlane.f32.xlu1 %v2095_v47 }
 0x1eb   :  { %v808_v27 = vmul.f32 %v1527_v22, %v807_v24  ;;  %v832_v4 = vsel %vm831_vm14, %v1525_v38, %v828_v0 }
 0x1ec   :  { %v848_v7 = vmul.f32 %v832_v4, %v1919_v57 }
 0x1ed   :  { %v812_v19 = vsel %vm811_vm0, %v1527_v22, %v808_v27 }
 0x1ee   :  { %v868_v9 = vmul.f32 %v1938_v30, %v848_v7  ;;  %v846_v11 = vmul.f32 %v812_v19, %v1916_v39 }
 0x1f0   :  { %v2105_v54 = vadd.f32 %v1945_v37, %v868_v9  ;;  %v866_v12 = vmul.f32 %v1938_v30, %v846_v11 }
 0x1f2   :  { %919 = vadd.xlane.f32.xlu2 %v2105_v54  ;;  %v2110_v14 = vadd.f32 %v1945_v37, %v866_v12 }
 0x1f4   :  { %915 = vadd.xlane.f32.xlu0 %v2110_v14 }
 0x1fc   :  { %903 = vadd.xlane.f32.xlu0 %v2098_v23 }
 0x227   :  { %v890_v57 = vpop.xlane.xlu2 %889 }
 0x228   :  { %v921_v58 = vmul.f32 %v890_v57, %v1827_v55 }
 0x22a   :  { %v2116_v34 = vsub.f32 %v1952_v50, %v921_v58 }
 0x22c   :  { %v953_v39 = vmul.f32 %v2116_v34, %v2116_v34 }
 0x22e   :  { %v906_v16 = vpop.xlane.xlu1 %905  ;;  %969 = vadd.xlane.f32.xlu0 %v953_v39 }
 0x22f   :  { %v929_v30 = vmul.f32 %v906_v16, %v1827_v55  ;;  %v892_v17 = vpop.xlane.xlu0 %891 }
 0x230   :  { %v922_v20 = vmul.f32 %v892_v17, %v1827_v55 }
 0x231   :  { %v2122_v37 = vsub.f32 %v1967_v63, %v929_v30 }
 0x232   :  { %v2126_v26 = vsub.f32 %v1976_v35, %v922_v20 }
 0x233   :  { %v961_v50 = vmul.f32 %v2122_v37, %v2122_v37 }
 0x234   :  { %v954_v3 = vmul.f32 %v2126_v26, %v2126_v26 }
 0x235   :  { %985 = vadd.xlane.f32.xlu2 %v961_v50 }
 0x236   :  { %971 = vadd.xlane.f32.xlu1 %v954_v3 }
 0x237   :  { %v908_v42 = vpop.xlane.xlu2 %907 }
 0x238   :  { %v930_v29 = vmul.f32 %v908_v42, %v1827_v55  ;;  %v894_v31 = vpop.xlane.xlu1 %893 }
 0x239   :  { %v923_v1 = vmul.f32 %v894_v31, %v1827_v55 }
 0x23a   :  { %v2134_v63 = vsub.f32 %v1994_v10, %v930_v29 }
 0x23b   :  { %v2138_v35 = vsub.f32 %v2001_v53, %v923_v1 }
 0x23c   :  { %v962_v15 = vmul.f32 %v2134_v63, %v2134_v63 }
 0x23d   :  { %v955_v32 = vmul.f32 %v2138_v35, %v2138_v35 }
 0x23e   :  { %987 = vadd.xlane.f32.xlu0 %v962_v15 }
 0x23f   :  { %v910_v33 = vpop.xlane.xlu0 %909  ;;  %973 = vadd.xlane.f32.xlu2 %v955_v32 }
 0x240   :  { %v931_v36 = vmul.f32 %v910_v33, %v1827_v55 }
 0x242   :  { %v2146_v38 = vsub.f32 %v2016_v13, %v931_v36 }
 0x244   :  { %v963_v10 = vmul.f32 %v2146_v38, %v2146_v38 }
 0x245   :  { %v912_v53 = vpop.xlane.xlu1 %911 }
 0x246   :  { %989 = vadd.xlane.f32.xlu1 %v963_v10  ;;  %v932_v44 = vmul.f32 %v912_v53, %v1827_v55 }
 0x247   :  { %v896_v18 = vpop.xlane.xlu2 %895 }
 0x248   :  { %v2152_v45 = vsub.f32 %v2039_v49, %v932_v44  ;;  %v924_v25 = vmul.f32 %v896_v18, %v1827_v55 }
 0x24a   :  { %v2156_v22 = vsub.f32 %v2047_v5, %v924_v25  ;;  %v964_v13 = vmul.f32 %v2152_v45, %v2152_v45 }
 0x24c   :  { %991 = vadd.xlane.f32.xlu2 %v964_v13  ;;  %v956_v46 = vmul.f32 %v2156_v22, %v2156_v22 }
 0x24d   :  { %v898_v51 = vpop.xlane.xlu0 %897 }
 0x24e   :  { %v925_v52 = vmul.f32 %v898_v51, %v1827_v55  ;;  %975 = vadd.xlane.f32.xlu0 %v956_v46  ;;  %v2220_v51 = vld [vmem:[%s2390_s6] ss:$0 sm:$0xff] }
 0x24f   :  { %v914_v56 = vpop.xlane.xlu2 %913 }
 0x250   :  { %v2164_v49 = vsub.f32 %v2064_v8, %v925_v52  ;;  %v933_v41 = vmul.f32 %v914_v56, %v1827_v55 }
 0x252   :  { %v2168_v5 = vsub.f32 %v2070_v28, %v933_v41  ;;  %v957_v2 = vmul.f32 %v2164_v49, %v2164_v49 }
 0x254   :  { %977 = vadd.xlane.f32.xlu1 %v957_v2  ;;  %v965_v43 = vmul.f32 %v2168_v5, %v2168_v5 }
 0x255   :  { %v900_v60 = vpop.xlane.xlu1 %899 }
 0x256   :  { %v926_v61 = vmul.f32 %v900_v60, %v1827_v55  ;;  %993 = vadd.xlane.f32.xlu0 %v965_v43  ;;  %v2228_v43 = vld [vmem:[%s2391_s7] ss:$0 sm:$0xff] }
 0x257   :  { %v902_v59 = vpop.xlane.xlu2 %901 }
 0x258   :  { %v2176_v8 = vsub.f32 %v2081_v40, %v926_v61  ;;  %v927_v62 = vmul.f32 %v902_v59, %v1827_v55 }
 0x25a   :  { %v2180_v28 = vsub.f32 %v2084_v6, %v927_v62  ;;  %v958_v48 = vmul.f32 %v2176_v8, %v2176_v8 }
 0x25c   :  { %979 = vadd.xlane.f32.xlu2 %v958_v48  ;;  %v959_v21 = vmul.f32 %v2180_v28, %v2180_v28 }
 0x25d   :  { %v918_v0 = vpop.xlane.xlu1 %917 }
 0x25e   :  { %v935_v24 = vmul.f32 %v918_v0, %v1827_v55  ;;  %981 = vadd.xlane.f32.xlu0 %v959_v21 }
 0x260   :  { %v2188_v27 = vsub.f32 %v2095_v47, %v935_v24 }
 0x262   :  { %v967_v40 = vmul.f32 %v2188_v27, %v2188_v27 }
 0x264   :  { %997 = vadd.xlane.f32.xlu2 %v967_v40 }
 0x265   :  { %v920_v4 = vpop.xlane.xlu2 %919 }
 0x266   :  { %v936_v6 = vmul.f32 %v920_v4, %v1827_v55 }
 0x267   :  { %v916_v7 = vpop.xlane.xlu0 %915 }
 0x268   :  { %v2194_v19 = vsub.f32 %v2105_v54, %v936_v6  ;;  %v934_v57 = vmul.f32 %v916_v7, %v1827_v55 }
 0x26a   :  { %v968_v9 = vmul.f32 %v2194_v19, %v2194_v19  ;;  %v2206_v39 = vsub.f32 %v2110_v14, %v934_v57 }
 0x26c   :  { %999 = vadd.xlane.f32.xlu0 %v968_v9  ;;  %v966_v54 = vmul.f32 %v2206_v39, %v2206_v39 }
 0x26f   :  { %v904_v11 = vpop.xlane.xlu0 %903 }
 0x270   :  { %v928_v12 = vmul.f32 %v904_v11, %v1827_v55 }
 0x272   :  { %v2200_v47 = vsub.f32 %v2098_v23, %v928_v12 }
 0x274   :  { %v960_v58 = vmul.f32 %v2200_v47, %v2200_v47 }
 0x276   :  { %983 = vadd.xlane.f32.xlu1 %v960_v58 }
 0x27e   :  { %995 = vadd.xlane.f32.xlu1 %v966_v54 }
 0x2a1   :  { %v970_v16 = vpop.xlane.xlu0 %969 }
 0x2a2   :  { %v1001_v30 = vmul.f32 %v970_v16, %v1827_v55 }
 0x2a4   :  { %v1017_v17 = vadd.f32 1e-05, %v1001_v30 }
 0x2a6   :  { %1528 = vrsqrt.f32 %v1017_v17  ;;  %vm1039_vm2 = vweird.f32 %v1017_v17 }
 0x2a8   :  { %v986_v23 = vpop.xlane.xlu2 %985 }
 0x2a9   :  { %v1009_v20 = vmul.f32 %v986_v23, %v1827_v55  ;;  %v972_v50 = vpop.xlane.xlu1 %971 }
 0x2aa   :  { %v1002_v42 = vmul.f32 %v972_v50, %v1827_v55 }
 0x2ab   :  { %v1025_v3 = vadd.f32 1e-05, %v1009_v20 }
 0x2ac   :  { %v1529_v29 = vpop.eup %1528  ;;  %v1018_v14 = vadd.f32 1e-05, %v1002_v42 }
 0x2ad   :  { %v1034_v31 = vmul.f32 %v1529_v29, %v1017_v17  ;;  %1530 = vrsqrt.f32 %v1025_v3  ;;  %vm1040_vm1 = vweird.f32 %v1529_v29  ;;  %vm1119_vm5 = vweird.f32 %v1025_v3 }
 0x2ae   :  { %1532 = vrsqrt.f32 %v1018_v14  ;;  %vm1041_vm3 = vmor %vm1039_vm2, %vm1040_vm1  ;;  %vm1049_vm8 = vweird.f32 %v1018_v14 }
 0x2af   :  { %v1035_v1 = vmul.f32 %v1529_v29, %v1034_v31 }
 0x2b1   :  { %v1036_v15 = vmul.f32 0.5, %v1035_v1  ;;  %v988_v32 = vpop.xlane.xlu0 %987 }
 0x2b2   :  { %v1010_v33 = vmul.f32 %v988_v32, %v1827_v55  ;;  %v974_v53 = vpop.xlane.xlu2 %973 }
 0x2b3   :  { %v1531_v36 = vpop.eup %1530  ;;  %v1037_v10 = vsub.f32 1.5, %v1036_v15  ;;  %v1003_v18 = vmul.f32 %v974_v53, %v1827_v55 }
 0x2b4   :  { %v1114_v44 = vmul.f32 %v1531_v36, %v1025_v3  ;;  %v2215_v25 = vadd.f32 1e-05, %v1010_v33  ;;  %v1533_v46 = vpop.eup %1532  ;;  %vm1120_vm4 = vweird.f32 %v1531_v36 }
 0x2b5   :  { %v1038_v13 = vmul.f32 %v1529_v29, %v1037_v10  ;;  %v2222_v56 = vadd.f32 1e-05, %v1003_v18  ;;  %v1044_v2 = vmul.f32 %v1533_v46, %v1018_v14  ;;  %vm1121_vm6 = vmor %vm1119_vm5, %vm1120_vm4  ;;  %vm1050_vm7 = vweird.f32 %v1533_v46 }
 0x2b6   :  { %v1115_v52 = vmul.f32 %v1531_v36, %v1114_v44  ;;  %1534 = vrsqrt.f32 %v2215_v25  ;;  %vm1051_vm9 = vmor %vm1049_vm8, %vm1050_vm7  ;;  %vm1129_vm12 = vweird.f32 %v2215_v25 }
 0x2b7   :  { %v1042_v41 = vsel %vm1041_vm3, %v1529_v29, %v1038_v13  ;;  %1536 = vrsqrt.f32 %v2222_v56  ;;  %v1045_v59 = vmul.f32 %v1533_v46, %v1044_v2  ;;  %vm1059_vm13 = vweird.f32 %v2222_v56 }
 0x2b8   :  { %v1193_v60 = vmul.f32 %v1042_v41, %v2116_v34  ;;  %v1116_v61 = vmul.f32 0.5, %v1115_v52 }
 0x2b9   :  { %v990_v62 = vpop.xlane.xlu1 %989  ;;  %v1046_v24 = vmul.f32 0.5, %v1045_v59 }
 0x2ba   :  { %v1213_v48 = vmul.f32 %v2220_v51, %v1193_v60  ;;  %v1117_v21 = vsub.f32 1.5, %v1116_v61  ;;  %v1011_v0 = vmul.f32 %v990_v62, %v1827_v55 }
 0x2bb   :  { %v1047_v34 = vsub.f32 1.5, %v1046_v24 }
 0x2bc   :  { %v1535_v40 = vpop.eup %1534  ;;  %v1233_v4 = vadd.f32 %v2228_v43, %v1213_v48  ;;  %v1118_v6 = vmul.f32 %v1531_v36, %v1117_v21  ;;  %v2235_v7 = vadd.f32 1e-05, %v1011_v0 }
 0x2bd   :  { %v1124_v9 = vmul.f32 %v1535_v40, %v2215_v25  ;;  %v1537_v11 = vpop.eup %1536  ;;  %v1048_v58 = vmul.f32 %v1533_v46, %v1047_v34  ;;  %vm1130_vm10 = vweird.f32 %v1535_v40 }
 0x2be   :  { %1249 = vst [vmem:[%s2392_s8] sm:$0xff] %v1233_v4  ;;  %v1122_v12 = vsel %vm1121_vm6, %v1531_v36, %v1118_v6  ;;  %1538 = vrsqrt.f32 %v2235_v7  ;;  %v1054_v54 = vmul.f32 %v1537_v11, %v2222_v56  ;;  %vm1060_vm11 = vweird.f32 %v1537_v11  ;;  %vm1131_vm14 = vmor %vm1129_vm12, %vm1130_vm10 }
 0x2bf   :  { %v1201_v57 = vmul.f32 %v1122_v12, %v2122_v37  ;;  %v1125_v16 = vmul.f32 %v1535_v40, %v1124_v9  ;;  %v1052_v17 = vsel %vm1051_vm9, %v1533_v46, %v1048_v58  ;;  %v992_v20 = vpop.xlane.xlu2 %991  ;;  %vm1061_vm15 = vmor %vm1059_vm13, %vm1060_vm11  ;;  %vm1139_vm1 = vweird.f32 %v2235_v7 }
 0x2c0   :  { %v1055_v23 = vmul.f32 %v1537_v11, %v1054_v54  ;;  %v1194_v50 = vmul.f32 %v1052_v17, %v2126_v26  ;;  %v1012_v42 = vmul.f32 %v992_v20, %v1827_v55 }
 0x2c1   :  { %v1221_v30 = vmul.f32 %v2220_v51, %v1201_v57  ;;  %v1126_v3 = vmul.f32 0.5, %v1125_v16  ;;  %v976_v37 = vpop.xlane.xlu0 %975 }
 0x2c2   :  { %v1056_v31 = vmul.f32 0.5, %v1055_v23  ;;  %v1214_v1 = vmul.f32 %v2220_v51, %v1194_v50  ;;  %v2249_v32 = vadd.f32 1e-05, %v1012_v42  ;;  %v1004_v33 = vmul.f32 %v976_v37, %v1827_v55 }
 0x2c3   :  { %v1241_v29 = vadd.f32 %v2228_v43, %v1221_v30  ;;  %v1127_v15 = vsub.f32 1.5, %v1126_v3 }
 0x2c4   :  { %v1539_v14 = vpop.eup %1538  ;;  %v1057_v26 = vsub.f32 1.5, %v1056_v31  ;;  %v1234_v10 = vadd.f32 %v2228_v43, %v1214_v1  ;;  %1540 = vrsqrt.f32 %v2249_v32  ;;  %v2261_v13 = vadd.f32 1e-05, %v1004_v33 }
 0x2c5   :  { %1257 = vst [vmem:[%s2392_s8 + $0x40] sm:$0xff] %v1241_v29  ;;  %v1134_v36 = vmul.f32 %v1539_v14, %v2235_v7  ;;  %v1128_v53 = vmul.f32 %v1535_v40, %v1127_v15  ;;  %vm1140_vm0 = vweird.f32 %v1539_v14  ;;  %vm1149_vm4 = vweird.f32 %v2249_v32 }
 0x2c6   :  { %v1058_v44 = vmul.f32 %v1537_v11, %v1057_v26  ;;  %1250 = vst [vmem:[%s2392_s8 + $0x8] sm:$0xff] %v1234_v10  ;;  %1542 = vrsqrt.f32 %v2261_v13  ;;  %vm1141_vm2 = vmor %vm1139_vm1, %vm1140_vm0  ;;  %vm1069_vm7 = vweird.f32 %v2261_v13 }
 0x2c7   :  { %v1135_v18 = vmul.f32 %v1539_v14, %v1134_v36  ;;  %v1132_v46 = vsel %vm1131_vm14, %v1535_v40, %v1128_v53  ;;  %v978_v2 = vpop.xlane.xlu1 %977 }
 0x2c8   :  { %v1062_v52 = vsel %vm1061_vm15, %v1537_v11, %v1058_v44  ;;  %v1202_v41 = vmul.f32 %v1132_v46, %v2134_v63  ;;  %v1005_v60 = vmul.f32 %v978_v2, %v1827_v55 }
 0x2c9   :  { %v1136_v25 = vmul.f32 0.5, %v1135_v18  ;;  %v1195_v56 = vmul.f32 %v1062_v52, %v2138_v35  ;;  %v994_v62 = vpop.xlane.xlu0 %993 }
 0x2ca   :  { %v1222_v61 = vmul.f32 %v2220_v51, %v1202_v41  ;;  %v1541_v48 = vpop.eup %1540  ;;  %v2272_v0 = vadd.f32 1e-05, %v1005_v60  ;;  %v1013_v63 = vmul.f32 %v994_v62, %v1827_v55 }
 0x2cb   :  { %v1137_v59 = vsub.f32 1.5, %v1136_v25  ;;  %v1215_v21 = vmul.f32 %v2220_v51, %v1195_v56  ;;  %v1144_v35 = vmul.f32 %v1541_v48, %v2249_v32  ;;  %vm1150_vm3 = vweird.f32 %v1541_v48 }
 0x2cc   :  { %v1242_v24 = vadd.f32 %v2228_v43, %v1222_v61  ;;  %1544 = vrsqrt.f32 %v2272_v0  ;;  %v2280_v6 = vadd.f32 1e-05, %v1013_v63  ;;  %v1543_v34 = vpop.eup %1542  ;;  %vm1151_vm5 = vmor %vm1149_vm4, %vm1150_vm3  ;;  %vm1079_vm10 = vweird.f32 %v2272_v0 }
 0x2cd   :  { %v1138_v40 = vmul.f32 %v1539_v14, %v1137_v59  ;;  %v1235_v4 = vadd.f32 %v2228_v43, %v1215_v21  ;;  %v1145_v11 = vmul.f32 %v1541_v48, %v1144_v35  ;;  %v1064_v12 = vmul.f32 %v1543_v34, %v2261_v13 }
 0x2ce   :  { %1258 = vst [vmem:[%s2392_s8 + $0x48] sm:$0xff] %v1242_v24  ;;  %1546 = vrsqrt.f32 %v2280_v6  ;;  %vm1070_vm6 = vweird.f32 %v1543_v34  ;;  %vm1159_vm13 = vweird.f32 %v2280_v6 }
 0x2cf   :  { %v1142_v9 = vsel %vm1141_vm2, %v1539_v14, %v1138_v40  ;;  %1251 = vst [vmem:[%s2392_s8 + $0x10] sm:$0xff] %v1235_v4  ;;  %v1146_v57 = vmul.f32 0.5, %v1145_v11  ;;  %v980_v58 = vpop.xlane.xlu2 %979  ;;  %v1065_v16 = vmul.f32 %v1543_v34, %v1064_v12  ;;  %vm1071_vm8 = vmor %vm1069_vm7, %vm1070_vm6 }
 0x2d0   :  { %v1203_v7 = vmul.f32 %v1142_v9, %v2146_v38  ;;  %v1006_v30 = vmul.f32 %v980_v58, %v1827_v55 }
 0x2d1   :  { %v1147_v17 = vsub.f32 1.5, %v1146_v57  ;;  %v982_v23 = vpop.xlane.xlu0 %981  ;;  %v1066_v3 = vmul.f32 0.5, %v1065_v16 }
 0x2d2   :  { %v1223_v54 = vmul.f32 %v2220_v51, %v1203_v7  ;;  %v1545_v20 = vpop.eup %1544  ;;  %v2294_v42 = vadd.f32 1e-05, %v1006_v30  ;;  %v1007_v38 = vmul.f32 %v982_v23, %v1827_v55 }
 0x2d3   :  { %v1148_v29 = vmul.f32 %v1541_v48, %v1147_v17  ;;  %v1074_v31 = vmul.f32 %v1545_v20, %v2272_v0  ;;  %v1067_v14 = vsub.f32 1.5, %v1066_v3  ;;  %vm1080_vm9 = vweird.f32 %v1545_v20 }
 0x2d4   :  { %v1243_v50 = vadd.f32 %v2228_v43, %v1223_v54  ;;  %v1547_v37 = vpop.eup %1546  ;;  %1548 = vrsqrt.f32 %v2294_v42  ;;  %v2303_v1 = vadd.f32 1e-05, %v1007_v38  ;;  %vm1081_vm12 = vmor %vm1079_vm10, %vm1080_vm9  ;;  %vm1089_vm0 = vweird.f32 %v2294_v42 }
 0x2d5   :  { %v1152_v15 = vsel %vm1151_vm5, %v1541_v48, %v1148_v29  ;;  %v1075_v33 = vmul.f32 %v1545_v20, %v1074_v31  ;;  %v1154_v26 = vmul.f32 %v1547_v37, %v2280_v6  ;;  %v1068_v36 = vmul.f32 %v1543_v34, %v1067_v14 }
 0x2d6   :  { %1259 = vst [vmem:[%s2392_s8 + $0x50] sm:$0xff] %v1243_v50  ;;  %v1204_v32 = vmul.f32 %v1152_v15, %v2152_v45  ;;  %1550 = vrsqrt.f32 %v2303_v1  ;;  %vm1160_vm11 = vweird.f32 %v1547_v37  ;;  %vm1099_vm3 = vweird.f32 %v2303_v1 }
 0x2d7   :  { %v1076_v10 = vmul.f32 0.5, %v1075_v33  ;;  %v1155_v53 = vmul.f32 %v1547_v37, %v1154_v26  ;;  %v998_v44 = vpop.xlane.xlu2 %997  ;;  %v1072_v46 = vsel %vm1071_vm8, %v1543_v34, %v1068_v36  ;;  %vm1161_vm14 = vmor %vm1159_vm13, %vm1160_vm11 }
 0x2d8   :  { %v1224_v18 = vmul.f32 %v2220_v51, %v1204_v32  ;;  %v1015_v52 = vmul.f32 %v998_v44, %v1827_v55  ;;  %v1196_v41 = vmul.f32 %v1072_v46, %v2156_v22 }
 0x2d9   :  { %v1077_v25 = vsub.f32 1.5, %v1076_v10  ;;  %v1156_v2 = vmul.f32 0.5, %v1155_v53 }
 0x2da   :  { %v1549_v45 = vpop.eup %1548  ;;  %v1244_v56 = vadd.f32 %v2228_v43, %v1224_v18  ;;  %v2314_v13 = vadd.f32 1e-05, %v1015_v52  ;;  %v1216_v60 = vmul.f32 %v2220_v51, %v1196_v41 }
 0x2db   :  { %v1078_v61 = vmul.f32 %v1545_v20, %v1077_v25  ;;  %v1157_v59 = vsub.f32 1.5, %v1156_v2  ;;  %v1084_v62 = vmul.f32 %v1549_v45, %v2294_v42  ;;  %vm1090_vm15 = vweird.f32 %v1549_v45 }
 0x2dc   :  { %v1551_v48 = vpop.eup %1550  ;;  %1260 = vst [vmem:[%s2392_s8 + $0x58] sm:$0xff] %v1244_v56  ;;  %1552 = vrsqrt.f32 %v2314_v13  ;;  %v1236_v22 = vadd.f32 %v2228_v43, %v1216_v60  ;;  %vm1091_vm1 = vmor %vm1089_vm0, %vm1090_vm15  ;;  %vm1179_vm6 = vweird.f32 %v2314_v13 }
 0x2dd   :  { %v1082_v21 = vsel %vm1081_vm12, %v1545_v20, %v1078_v61  ;;  %v1158_v0 = vmul.f32 %v1547_v37, %v1157_v59  ;;  %v1085_v63 = vmul.f32 %v1549_v45, %v1084_v62  ;;  %v1094_v35 = vmul.f32 %v1551_v48, %v2303_v1 }
 0x2de   :  { %v1197_v40 = vmul.f32 %v1082_v21, %v2164_v49  ;;  %1252 = vst [vmem:[%s2392_s8 + $0x18] sm:$0xff] %v1236_v22  ;;  %vm1100_vm2 = vweird.f32 %v1551_v48 }
 0x2df   :  { %v1000_v24 = vpop.xlane.xlu0 %999  ;;  %v1162_v6 = vsel %vm1161_vm14, %v1547_v37, %v1158_v0  ;;  %v1086_v34 = vmul.f32 0.5, %v1085_v63  ;;  %v1095_v7 = vmul.f32 %v1551_v48, %v1094_v35  ;;  %vm1101_vm4 = vmor %vm1099_vm3, %vm1100_vm2 }
 0x2e0   :  { %v1016_v4 = vmul.f32 %v1000_v24, %v1827_v55  ;;  %v1217_v9 = vmul.f32 %v2220_v51, %v1197_v40  ;;  %v1205_v11 = vmul.f32 %v1162_v6, %v2168_v5 }
 0x2e1   :  { %v1087_v57 = vsub.f32 1.5, %v1086_v34  ;;  %v1096_v16 = vmul.f32 0.5, %v1095_v7 }
 0x2e2   :  { %v1032_v12 = vadd.f32 1e-05, %v1016_v4  ;;  %v1553_v49 = vpop.eup %1552  ;;  %v1237_v58 = vadd.f32 %v2228_v43, %v1217_v9  ;;  %v1225_v54 = vmul.f32 %v2220_v51, %v1205_v11 }
 0x2e3   :  { %v1088_v30 = vmul.f32 %v1549_v45, %v1087_v57  ;;  %v1174_v17 = vmul.f32 %v1553_v49, %v2314_v13  ;;  %v1097_v23 = vsub.f32 1.5, %v1096_v16  ;;  %vm1180_vm5 = vweird.f32 %v1553_v49 }
 0x2e4   :  { %1554 = vrsqrt.f32 %v1032_v12  ;;  %1253 = vst [vmem:[%s2392_s8 + $0x20] sm:$0xff] %v1237_v58  ;;  %v1245_v5 = vadd.f32 %v2228_v43, %v1225_v54  ;;  %vm1181_vm7 = vmor %vm1179_vm6, %vm1180_vm5  ;;  %vm1189_vm9 = vweird.f32 %v1032_v12 }
 0x2e5   :  { %v1092_v20 = vsel %vm1091_vm1, %v1549_v45, %v1088_v30  ;;  %v1175_v50 = vmul.f32 %v1553_v49, %v1174_v17  ;;  %v1098_v42 = vmul.f32 %v1551_v48, %v1097_v23 }
 0x2e6   :  { %1261 = vst [vmem:[%s2392_s8 + $0x60] sm:$0xff] %v1245_v5  ;;  %v1198_v3 = vmul.f32 %v1092_v20, %v2176_v8 }
 0x2e7   :  { %v1176_v38 = vmul.f32 0.5, %v1175_v50  ;;  %v1102_v14 = vsel %vm1101_vm4, %v1551_v48, %v1098_v42 }
 0x2e8   :  { %v1218_v37 = vmul.f32 %v2220_v51, %v1198_v3  ;;  %v1199_v33 = vmul.f32 %v1102_v14, %v2180_v28 }
 0x2e9   :  { %v984_v29 = vpop.xlane.xlu1 %983  ;;  %v1177_v26 = vsub.f32 1.5, %v1176_v38 }
 0x2ea   :  { %v1555_v31 = vpop.eup %1554  ;;  %v1008_v15 = vmul.f32 %v984_v29, %v1827_v55  ;;  %v1238_v36 = vadd.f32 %v2228_v43, %v1218_v37  ;;  %v1219_v10 = vmul.f32 %v2220_v51, %v1199_v33 }
 0x2eb   :  { %v1184_v32 = vmul.f32 %v1555_v31, %v1032_v12  ;;  %v1178_v1 = vmul.f32 %v1553_v49, %v1177_v26  ;;  %vm1190_vm8 = vweird.f32 %v1555_v31 }
 0x2ec   :  { %v1024_v8 = vadd.f32 1e-05, %v1008_v15  ;;  %1254 = vst [vmem:[%s2392_s8 + $0x28] sm:$0xff] %v1238_v36  ;;  %v1239_v28 = vadd.f32 %v2228_v43, %v1219_v10  ;;  %vm1191_vm10 = vmor %vm1189_vm9, %vm1190_vm8 }
 0x2ed   :  { %v1185_v53 = vmul.f32 %v1555_v31, %v1184_v32  ;;  %v1182_v44 = vsel %vm1181_vm7, %v1553_v49, %v1178_v1 }
 0x2ee   :  { %1556 = vrsqrt.f32 %v1024_v8  ;;  %v1207_v46 = vmul.f32 %v1182_v44, %v2188_v27  ;;  %1255 = vst [vmem:[%s2392_s8 + $0x30] sm:$0xff] %v1239_v28  ;;  %vm1109_vm12 = vweird.f32 %v1024_v8 }
 0x2ef   :  { %v1186_v18 = vmul.f32 0.5, %v1185_v53 }
 0x2f0   :  { %v1227_v25 = vmul.f32 %v2220_v51, %v1207_v46 }
 0x2f1   :  { %v1187_v52 = vsub.f32 1.5, %v1186_v18  ;;  %v996_v41 = vpop.xlane.xlu1 %995 }
 0x2f2   :  { %v1014_v2 = vmul.f32 %v996_v41, %v1827_v55  ;;  %v1247_v13 = vadd.f32 %v2228_v43, %v1227_v25 }
 0x2f3   :  { %v1188_v45 = vmul.f32 %v1555_v31, %v1187_v52 }
 0x2f4   :  { %v1557_v56 = vpop.eup %1556  ;;  %v1030_v60 = vadd.f32 1e-05, %v1014_v2  ;;  %1263 = vst [vmem:[%s2392_s8 + $0x70] sm:$0xff] %v1247_v13 }
 0x2f5   :  { %v1192_v61 = vsel %vm1191_vm10, %v1555_v31, %v1188_v45  ;;  %v1104_v27 = vmul.f32 %v1557_v56, %v1024_v8  ;;  %vm1110_vm11 = vweird.f32 %v1557_v56 }
 0x2f6   :  { %v1208_v59 = vmul.f32 %v1192_v61, %v2194_v19  ;;  %1558 = vrsqrt.f32 %v1030_v60  ;;  %vm1111_vm13 = vmor %vm1109_vm12, %vm1110_vm11  ;;  %vm1169_vm15 = vweird.f32 %v1030_v60 }
 0x2f7   :  { %v1105_v62 = vmul.f32 %v1557_v56, %v1104_v27 }
 0x2f8   :  { %v1228_v48 = vmul.f32 %v2220_v51, %v1208_v59 }
 0x2f9   :  { %v1106_v55 = vmul.f32 0.5, %v1105_v62 }
 0x2fa   :  { %v1248_v22 = vadd.f32 %v2228_v43, %v1228_v48 }
 0x2fb   :  { %v1107_v21 = vsub.f32 1.5, %v1106_v55 }
 0x2fc   :  { %v1559_v0 = vpop.eup %1558  ;;  %1264 = vst [vmem:[%s2392_s8 + $0x78] sm:$0xff] %v1248_v22 }
 0x2fd   :  { %v1108_v63 = vmul.f32 %v1557_v56, %v1107_v21  ;;  %v1164_v24 = vmul.f32 %v1559_v0, %v1030_v60  ;;  %vm1170_vm14 = vweird.f32 %v1559_v0 }
 0x2fe   :  { %vm1171_vm0 = vmor %vm1169_vm15, %vm1170_vm14 }
 0x2ff   :  { %v1112_v40 = vsel %vm1111_vm13, %v1557_v56, %v1108_v63  ;;  %v1165_v19 = vmul.f32 %v1559_v0, %v1164_v24 }
 0x300   :  { %v1200_v35 = vmul.f32 %v1112_v40, %v2200_v47 }
 0x301   :  { %v1166_v4 = vmul.f32 0.5, %v1165_v19 }
 0x302   :  { %v1220_v6 = vmul.f32 %v2220_v51, %v1200_v35 }
 0x303   :  { %v1167_v34 = vsub.f32 1.5, %v1166_v4 }
 0x304   :  { %v1240_v9 = vadd.f32 %v2228_v43, %v1220_v6 }
 0x305   :  { %v1168_v11 = vmul.f32 %v1559_v0, %v1167_v34 }
 0x306   :  { %1256 = vst [vmem:[%s2392_s8 + $0x38] sm:$0xff] %v1240_v9 }
 0x307   :  { %v1172_v7 = vsel %vm1171_vm0, %v1559_v0, %v1168_v11 }
 0x308   :  { %v1206_v12 = vmul.f32 %v1172_v7, %v2206_v39 }
 0x30a   :  { %v1226_v57 = vmul.f32 %v2220_v51, %v1206_v12 }
 0x30c   :  { %v1246_v47 = vadd.f32 %v2228_v43, %v1226_v57 }
 0x30e   :  { %1262 = vst [vmem:[%s2392_s8 + $0x68] sm:$0xff] %v1246_v47 }
 0x30f   :  { %1269 = vsyncpa [#allocation4], 1 }

</bundles_post_ra>
